<compile_context>
chip_gen: v7x
topology: tpu7x:2x2x1
jax: 0.10.0
libtpu: 0.0.40
codegen_flags: <defaults>
</compile_context>

<pallas_src>
import functools
import math

import jax
import jax.numpy as jnp
from jax.experimental import pallas as pl
from jax.experimental.pallas import tpu as pltpu

LANE = 128           # TPU lane width: all channel axes are zero-padded to this
_COL0 = 8            # sublane-aligned column offset of the interior of the
                     # conv1->conv2 VMEM scratch (keeps the scratch store aligned)


def _round_up(n, m=LANE):
    return ((n + m - 1) // m) * m


# ----------------------------------------------------------------------------
# Pallas kernels
# ----------------------------------------------------------------------------
def _stem_kernel(x_ref, w_ref, b_ref, o_ref, x32_ref, *, h_out, w_out):
    """3x3 stride-1 pad-1 conv + folded BN + ReLU for one batch element."""
    # Stage the bf16 input once as f32 so all 9 (unaligned) tap slices are
    # taken from the best-supported layout.
    x32_ref[...] = x_ref[...].astype(jnp.float32)
    hw = h_out * w_out
    cout = o_ref.shape[-1]
    acc = jnp.zeros((hw, cout), jnp.float32)
    for di in range(3):
        for dj in range(3):
            tap = x32_ref[pl.ds(di, h_out), pl.ds(dj, w_out), :]
            tap = tap.reshape(hw, -1).astype(jnp.bfloat16)
            acc = acc + jnp.dot(tap, w_ref[3 * di + dj],
                                preferred_element_type=jnp.float32)
    out = jnp.maximum(acc + b_ref[...], 0.0)
    o_ref[...] = out.reshape(h_out, w_out, cout).astype(o_ref.dtype)


# 3x3 tap offset (for stride 2) -> (row/col parity, phase-index offset)
_PHASE = ((0, 0), (1, 0), (0, 1))


def _block_kernel(*refs, stride, has_down, fuse_head, h_out, w_out, inv_hw):
    """One ResNet BasicBlock (+ optional fused avgpool/FC head), one batch elem."""
    it = iter(refs)
    x_ref = next(it)
    w1_ref, b1_ref = next(it), next(it)
    w2_ref, b2_ref = next(it), next(it)
    wd_ref = bd_ref = fcw_ref = fcb_ref = None
    if has_down:
        wd_ref, bd_ref = next(it), next(it)
    if fuse_head:
        fcw_ref, fcb_ref = next(it), next(it)
    o_ref = next(it)
    logit_ref = next(it) if fuse_head else None
    x32_ref = next(it)
    mid_ref = next(it)

    hw = h_out * w_out
    cmid = w1_ref.shape[-1]
    cout = w2_ref.shape[-1]

    # stage bf16 input once as f32 (cheap; makes all tap slices plain f32 loads)
    x32_ref[...] = x_ref[...].astype(jnp.float32)

    # ---- conv1 (3x3, stride `stride`, pad 1) + bn1 + relu -------------------
    acc1 = jnp.zeros((hw, cmid), jnp.float32)
    for di in range(3):
        for dj in range(3):
            if stride == 1:
                tap = x32_ref[pl.ds(di, h_out), pl.ds(dj, w_out), :]
            else:  # stride 2: input is phase-split (4, Hp/2, Wp/2, C)
                pr, rs = _PHASE[di]
                pc, cs = _PHASE[dj]
                tap = x32_ref[2 * pr + pc, pl.ds(rs, h_out), pl.ds(cs, w_out), :]
            tap = tap.reshape(hw, -1).astype(jnp.bfloat16)
            acc1 = acc1 + jnp.dot(tap, w1_ref[3 * di + dj],
                                  preferred_element_type=jnp.float32)
    mid = jnp.maximum(acc1 + b1_ref[...], 0.0)

    # intermediate activation stays in VMEM only (never written to HBM),
    # stored with a zero halo so conv2's taps are plain contiguous slices.
    mid_ref[...] = jnp.zeros_like(mid_ref)
    mid_ref[pl.ds(1, h_out), pl.ds(_COL0, w_out), :] = mid.reshape(h_out, w_out, cmid)

    # ---- conv2 (3x3, stride 1, pad 1) + bn2 ---------------------------------
    acc2 = jnp.zeros((hw, cout), jnp.float32)
    for di in range(3):
        for dj in range(3):
            tap = mid_ref[pl.ds(di, h_out), pl.ds(_COL0 - 1 + dj, w_out), :]
            tap = tap.reshape(hw, -1).astype(jnp.bfloat16)
            acc2 = acc2 + jnp.dot(tap, w2_ref[3 * di + dj],
                                  preferred_element_type=jnp.float32)
    acc2 = acc2 + b2_ref[...]

    # ---- residual path (identity, or fused 1x1 downsample conv + bn) -------
    if has_down:
        if stride == 1:
            xd = x32_ref[pl.ds(1, h_out), pl.ds(1, w_out), :]
        else:
            xd = x32_ref[3, pl.ds(0, h_out), pl.ds(0, w_out), :]   # phase (1,1)
        xd = xd.reshape(hw, -1).astype(jnp.bfloat16)
        res = jnp.dot(xd, wd_ref[...],
                      preferred_element_type=jnp.float32) + bd_ref[...]
    else:
        res = x32_ref[pl.ds(1, h_out), pl.ds(1, w_out), :].reshape(hw, cout)

    out = jnp.maximum(acc2 + res, 0.0)
    o_ref[...] = out.reshape(h_out, w_out, cout).astype(o_ref.dtype)

    # ---- fused global average pool + FC head (last block only) -------------
    if fuse_head:
        pooled = jnp.sum(out, axis=0, keepdims=True) * inv_hw          # (1, C)
        logits = jnp.dot(pooled, fcw_ref[...],
                         preferred_element_type=jnp.float32) + fcb_ref[...]
        # replicate over 8 sublanes so the output block stays (8,128)-aligned
        logit_ref[...] = jnp.broadcast_to(logits, logit_ref.shape)


# ----------------------------------------------------------------------------
# pallas_call wrappers
# ----------------------------------------------------------------------------
def stem_conv(x_pad, w, b):
    # x_pad: (B, H+2, W+2, Cin_p) bf16 ; w: (9, Cin_p, Cout_p) bf16 ; b: (1, Cout_p) f32
    B, hp, wp, cin_p = x_pad.shape
    h_out, w_out = hp - 2, wp - 2
    cout = w.shape[-1]
    kern = functools.partial(_stem_kernel, h_out=h_out, w_out=w_out)
    flops = 2 * B * h_out * w_out * 9 * cin_p * cout
    bytes_acc = int(x_pad.size * 2 + w.size * 2 + b.size * 4
                    + B * h_out * w_out * cout * 2)
    return pl.pallas_call(
        kern,
        out_shape=jax.ShapeDtypeStruct((B, h_out, w_out, cout), jnp.bfloat16),
        grid=(B,),
        in_specs=[
            pl.BlockSpec((None, hp, wp, cin_p), lambda i: (i, 0, 0, 0)),
            pl.BlockSpec((9, cin_p, cout), lambda i: (0, 0, 0)),
            pl.BlockSpec((1, cout), lambda i: (0, 0)),
        ],
        out_specs=pl.BlockSpec((None, h_out, w_out, cout), lambda i: (i, 0, 0, 0)),
        scratch_shapes=[pltpu.VMEM((hp, wp, cin_p), jnp.float32)],
        compiler_params=pltpu.CompilerParams(
            dimension_semantics=("parallel",),
            vmem_limit_bytes=32 * 1024 * 1024),
        cost_estimate=pl.CostEstimate(flops=flops, transcendentals=0,
                                      bytes_accessed=bytes_acc),
    )(x_pad, w, b)


def basic_block(x_in, blk, *, fuse_head=False, fc_w=None, fc_b=None):
    stride = blk["stride"]
    has_down = "wd" in blk
    B = x_in.shape[0]
    if stride == 1:
        _, hp, wp, cin_p = x_in.shape
        h_out, w_out = hp - 2, wp - 2
        x_spec = pl.BlockSpec((None, hp, wp, cin_p), lambda i: (i, 0, 0, 0))
        x32 = pltpu.VMEM((hp, wp, cin_p), jnp.float32)
    else:  # stride 2: phase-split input (B, 4, Hp/2, Wp/2, Cin_p)
        _, _, hp2, wp2, cin_p = x_in.shape
        h_out, w_out = hp2 - 1, wp2 - 1
        x_spec = pl.BlockSpec((None, 4, hp2, wp2, cin_p), lambda i: (i, 0, 0, 0, 0))
        x32 = pltpu.VMEM((4, hp2, wp2, cin_p), jnp.float32)
    cmid = blk["w1"].shape[-1]
    cout = blk["w2"].shape[-1]

    in_specs = [
        x_spec,
        pl.BlockSpec((9, cin_p, cmid), lambda i: (0, 0, 0)),
        pl.BlockSpec((1, cmid), lambda i: (0, 0)),
        pl.BlockSpec((9, cmid, cout), lambda i: (0, 0, 0)),
        pl.BlockSpec((1, cout), lambda i: (0, 0)),
    ]
    args = [x_in, blk["w1"], blk["b1"], blk["w2"], blk["b2"]]
    flops = 2 * B * h_out * w_out * 9 * (cin_p * cmid + cmid * cout)
    if has_down:
        in_specs += [pl.BlockSpec((cin_p, cout), lambda i: (0, 0)),
                     pl.BlockSpec((1, cout), lambda i: (0, 0))]
        args += [blk["wd"], blk["bd"]]
        flops += 2 * B * h_out * w_out * cin_p * cout
    if fuse_head:
        ncp = fc_w.shape[-1]
        in_specs += [pl.BlockSpec((cout, ncp), lambda i: (0, 0)),
                     pl.BlockSpec((1, ncp), lambda i: (0, 0))]
        args += [fc_w, fc_b]
        out_shape = (jax.ShapeDtypeStruct((B, h_out, w_out, cout), jnp.bfloat16),
                     jax.ShapeDtypeStruct((B, 8, ncp), jnp.float32))
        out_specs = (pl.BlockSpec((None, h_out, w_out, cout), lambda i: (i, 0, 0, 0)),
                     pl.BlockSpec((None, 8, ncp), lambda i: (i, 0, 0)))
    else:
        out_shape = jax.ShapeDtypeStruct((B, h_out, w_out, cout), jnp.bfloat16)
        out_specs = pl.BlockSpec((None, h_out, w_out, cout), lambda i: (i, 0, 0, 0))

    scratch = [x32,
               pltpu.VMEM((h_out + 2, w_out + _COL0 + 2, cmid), jnp.float32)]
    bytes_acc = int(sum(int(a.size) * a.dtype.itemsize for a in args)
                    + B * h_out * w_out * cout * 2)
    kern = functools.partial(_block_kernel, stride=stride, has_down=has_down,
                             fuse_head=fuse_head, h_out=h_out, w_out=w_out,
                             inv_hw=1.0 / (h_out * w_out))
    return pl.pallas_call(
        kern,
        out_shape=out_shape,
        grid=(B,),
        in_specs=in_specs,
        out_specs=out_specs,
        scratch_shapes=scratch,
        compiler_params=pltpu.CompilerParams(
            dimension_semantics=("parallel",),
            vmem_limit_bytes=32 * 1024 * 1024),
        cost_estimate=pl.CostEstimate(flops=flops, transcendentals=0,
                                      bytes_accessed=bytes_acc),
    )(*args)


# ----------------------------------------------------------------------------
# Parameter construction (deterministic, mirrors the PyTorch __init__ rules)
# ----------------------------------------------------------------------------
def _init_conv(key, kh, kw, cin, cout):
    n = kh * kw * cout
    return jax.random.normal(key, (kh, kw, cin, cout), jnp.float32) * math.sqrt(2.0 / n)


def _init_bn(c):
    # gamma=1, beta=0, running_mean=0, running_var=1 (inference-mode BN)
    return (jnp.ones((c,), jnp.float32), jnp.zeros((c,), jnp.float32),
            jnp.zeros((c,), jnp.float32), jnp.ones((c,), jnp.float32))


def make_scat_resnet_params(key, J, N, channels, layers, num_classes):
    nfscat = 1 + 8 * J
    nspace = N // (2 ** J)
    keys = iter(jax.random.split(key, 256))

    params = {
        "nfscat": nfscat,
        "nspace": nspace,
        "conv1": _init_conv(next(keys), 3, 3, 3 * nfscat, channels[0]),
        "bn1": _init_bn(channels[0]),
        "stages": [],
    }
    inplanes = channels[0]
    for li, (planes, nblocks) in enumerate(zip(channels, layers)):
        stride = 1 if li == 0 else 2
        stage = []
        for bi in range(nblocks):
            s = stride if bi == 0 else 1
            blk = {
                "stride": s,
                "w1": _init_conv(next(keys), 3, 3, inplanes, planes),
                "bn1": _init_bn(planes),
                "w2": _init_conv(next(keys), 3, 3, planes, planes),
                "bn2": _init_bn(planes),
            }
            if s != 1 or inplanes != planes:
                blk["wd"] = _init_conv(next(keys), 1, 1, inplanes, planes)
                blk["bnd"] = _init_bn(planes)
            stage.append(blk)
            inplanes = planes
        params["stages"].append(stage)

    cf = channels[-1]
    bound = 1.0 / math.sqrt(cf)
    params["fc_w"] = jax.random.uniform(next(keys), (cf, num_classes), jnp.float32,
                                        minval=-bound, maxval=bound)
    params["fc_b"] = jax.random.uniform(next(keys), (num_classes,), jnp.float32,
                                        minval=-bound, maxval=bound)
    return params


def _fold_pad_conv_bn(w, bn, cin_p, cout_p, eps=1e-5):
    """Fold inference BN into conv weight/bias, pad channels to LANE, cast bf16."""
    gamma, beta, mean, var = bn
    s = gamma / jnp.sqrt(var + eps)
    wf = w * s                                # scale folded into the weights
    bf = beta - mean * s                      # folded BN bias
    kh, kw, cin, cout = w.shape
    wp = jnp.zeros((kh * kw, cin_p, cout_p), jnp.float32)
    wp = wp.at[:, :cin, :cout].set(wf.reshape(kh * kw, cin, cout))
    bp = jnp.zeros((1, cout_p), jnp.float32).at[0, :cout].set(bf)
    return wp.astype(jnp.bfloat16), bp


def prepare_kernel_params(raw):
    nfscat, nspace = raw["nfscat"], raw["nspace"]
    cin = 3 * nfscat
    cin_p = _round_up(cin)
    c0_p = _round_up(raw["conv1"].shape[-1])
    kp = {"nfscat": nfscat, "nspace": nspace, "cin": cin, "cin_p": cin_p,
          "n_stages": len(raw["stages"])}
    kp["stem_w"], kp["stem_b"] = _fold_pad_conv_bn(raw["conv1"], raw["bn1"],
                                                   cin_p, c0_p)
    blocks = []
    in_p = c0_p
    for stage in raw["stages"]:
        for blk in stage:
            planes_p = _round_up(blk["w1"].shape[-1])
            nb = {"stride": blk["stride"]}
            nb["w1"], nb["b1"] = _fold_pad_conv_bn(blk["w1"], blk["bn1"], in_p, planes_p)
            nb["w2"], nb["b2"] = _fold_pad_conv_bn(blk["w2"], blk["bn2"], planes_p, planes_p)
            if "wd" in blk:
                wd, bd = _fold_pad_conv_bn(blk["wd"], blk["bnd"], in_p, planes_p)
                nb["wd"], nb["bd"] = wd[0], bd
            blocks.append(nb)
            in_p = planes_p
    kp["blocks"] = blocks

    cf, nc = raw["fc_w"].shape
    cf_p, nc_p = _round_up(cf), _round_up(nc)
    kp["num_classes"] = nc
    kp["fc_w"] = jnp.zeros((cf_p, nc_p), jnp.float32).at[:cf, :nc].set(raw["fc_w"])
    kp["fc_b"] = jnp.zeros((1, nc_p), jnp.float32).at[0, :nc].set(raw["fc_b"])
    return kp


# ----------------------------------------------------------------------------
# Forward pass
# ----------------------------------------------------------------------------
def _pad_hw(x):
    return jnp.pad(x, ((0, 0), (1, 1), (1, 1), (0, 0)))


def _phase_split(xp):
    # (B, Hp, Wp, C) with Hp, Wp even -> (B, 4, Hp//2, Wp//2, C),
    # phase index p = 2*row_parity + col_parity.  Same total bytes (no im2col).
    B, hp, wp, c = xp.shape
    x = xp.reshape(B, hp // 2, 2, wp // 2, 2, c)
    x = jnp.transpose(x, (0, 2, 4, 1, 3, 5))
    return x.reshape(B, 4, hp // 2, wp // 2, c)


def scat_resnet_forward(kp, x_nchw):
    nfscat, nspace = kp["nfscat"], kp["nspace"]
    B = x_nchw.shape[0]
    # x = x.view(B, 3*nfscat, nspace, nspace)  -> NHWC for the kernels
    x = x_nchw.reshape(B, 3 * nfscat, nspace, nspace)
    x = jnp.transpose(x, (0, 2, 3, 1))
    # zero-pad channels to 128 lanes, bf16 activations in HBM
    x = jnp.pad(x, ((0, 0), (0, 0), (0, 0), (0, kp["cin_p"] - kp["cin"])))
    x = x.astype(jnp.bfloat16)

    # stem: conv 3x3 s1 p1 + bn + relu   (use_conv1x1 == 0 path)
    x = stem_conv(_pad_hw(x), kp["stem_w"], kp["stem_b"])

    blocks = kp["blocks"]
    logits = None
    for i, blk in enumerate(blocks):
        xp = _pad_hw(x)
        if blk["stride"] == 2:
            assert x.shape[1] % 2 == 0 and x.shape[2] % 2 == 0, x.shape
            xp = _phase_split(xp)
        if i == len(blocks) - 1:
            x, logits = basic_block(xp, blk, fuse_head=True,
                                    fc_w=kp["fc_w"], fc_b=kp["fc_b"])
        else:
            x = basic_block(xp, blk)

    # the module's AvgPool2d kernel size must equal the final spatial size
    n_ch = kp["n_stages"]
    pool_k = int((nspace + 2 ** (n_ch - 2)) // 2 ** (n_ch - 1))
    assert x.shape[1] == x.shape[2] == pool_k, (x.shape, pool_k)
    # TODO(synk): use_conv1x1 > 0 (1x1 stem / block_of_1x1) branches not implemented.
    return logits[:, 0, :kp["num_classes"]]


# ----------------------------------------------------------------------------
if __name__ == "__main__":
    key = jax.random.PRNGKey(0)
    pkey, xkey = jax.random.split(key)

    # Small but structurally faithful config:
    J, N = 1, 32                 # nfscat = 9, nspace = 16
    channels = [16, 32]
    layers = [1, 1]
    num_classes = 10
    B = 2

    raw = make_scat_resnet_params(pkey, J, N, channels, layers, num_classes)
    kp = prepare_kernel_params(raw)

    nfscat = 1 + 8 * J
    nspace = N // (2 ** J)
    x = jax.random.normal(xkey, (B, 3 * nfscat, nspace, nspace), jnp.float32)

    fwd = jax.jit(functools.partial(scat_resnet_forward, kp))
    out = jax.block_until_ready(fwd(x))

    assert out.shape == (B, num_classes), out.shape
    assert jnp.all(jnp.isfinite(out))
    print("KERNEL_OK")
</pallas_src>

<mosaic_0001>
module attributes {stable_mosaic.version = 11 : i64} {
  func.func @_stem_kernel(%arg0: i32, %arg1: memref<1x18x18x128xbf16, #tpu.memory_space<vmem>>, %arg2: memref<9x128x128xbf16, #tpu.memory_space<vmem>>, %arg3: memref<1x128xf32, #tpu.memory_space<vmem>>, %arg4: memref<1x16x16x128xbf16, #tpu.memory_space<vmem>>, %arg5: memref<18x18x128xf32, #tpu.memory_space<vmem>>) attributes {dimension_semantics = [#tpu.dimension_semantics<parallel>], iteration_bounds = array<i64: 2>, scalar_prefetch = 0 : i64, scratch_operands = 1 : i64, tpu.core_type = #tpu.core_type<tc>, window_params = [{transform_indices = @transform_0, window_bounds = array<i64: 1, 18, 18, 128>}, {pipeline_mode = #tpu.pipeline_mode<synchronous>, transform_indices = @transform_1, window_bounds = array<i64: 9, 128, 128>}, {pipeline_mode = #tpu.pipeline_mode<synchronous>, transform_indices = @transform_2, window_bounds = array<i64: 1, 128>}, {transform_indices = @transform_3, window_bounds = array<i64: 1, 16, 16, 128>}]} {
    %c0 = arith.constant 0 : index
    %c0_0 = arith.constant 0 : index
    %c0_1 = arith.constant 0 : index
    %c0_2 = arith.constant 0 : index
    %0 = vector.load %arg1[%c0, %c0_0, %c0_1, %c0_2] : memref<1x18x18x128xbf16, #tpu.memory_space<vmem>>, vector<1x18x18x128xbf16>
    %1 = vector.shape_cast %0 : vector<1x18x18x128xbf16> to vector<18x18x128xbf16>
    %2 = arith.extf %1 : vector<18x18x128xbf16> to vector<18x18x128xf32>
    %c0_3 = arith.constant 0 : index
    %c0_4 = arith.constant 0 : index
    %c0_5 = arith.constant 0 : index
    %3 = vector.load %arg5[%c0_3, %c0_4, %c0_5] : memref<18x18x128xf32, #tpu.memory_space<vmem>>, vector<18x18x128xf32>
    tpu.vector_store %arg5[%c0_3, %c0_4, %c0_5], %2 {strides = array<i32>} : memref<18x18x128xf32, #tpu.memory_space<vmem>>, vector<18x18x128xf32>,
    %cst = arith.constant 0.000000e+00 : f32
    %4 = vector.broadcast %cst : f32 to vector<256x128xf32>
    %c0_6 = arith.constant 0 : index
    %c0_7 = arith.constant 0 : index
    %c0_8 = arith.constant 0 : index
    %5 = vector.load %arg5[%c0_6, %c0_7, %c0_8] : memref<18x18x128xf32, #tpu.memory_space<vmem>>, vector<16x16x128xf32>
    %6 = vector.shape_cast %5 : vector<16x16x128xf32> to vector<256x128xf32>
    %7 = arith.truncf %6 : vector<256x128xf32> to vector<256x128xbf16>
    %c0_9 = arith.constant 0 : index
    %c0_10 = arith.constant 0 : index
    %c0_11 = arith.constant 0 : index
    %8 = vector.load %arg2[%c0_9, %c0_10, %c0_11] : memref<9x128x128xbf16, #tpu.memory_space<vmem>>, vector<1x128x128xbf16>
    %9 = vector.shape_cast %8 : vector<1x128x128xbf16> to vector<128x128xbf16>
    %cst_12 = arith.constant dense<0.000000e+00> : vector<256x128xf32>
    %10 = tpu.matmul %7, %9, %cst_12 {dimension_numbers = #tpu.dot_dimension_numbers<[1], [0], [0], [1], [0, 0, 1, 1], [], []>} : vector<256x128xbf16>, vector<128x128xbf16>, vector<256x128xf32> -> vector<256x128xf32>
    %11 = arith.addf %4, %10 : vector<256x128xf32>
    %c0_13 = arith.constant 0 : index
    %c1 = arith.constant 1 : index
    %c0_14 = arith.constant 0 : index
    %12 = vector.load %arg5[%c0_13, %c1, %c0_14] : memref<18x18x128xf32, #tpu.memory_space<vmem>>, vector<16x16x128xf32>
    %13 = vector.shape_cast %12 : vector<16x16x128xf32> to vector<256x128xf32>
    %14 = arith.truncf %13 : vector<256x128xf32> to vector<256x128xbf16>
    %c1_15 = arith.constant 1 : index
    %c0_16 = arith.constant 0 : index
    %c0_17 = arith.constant 0 : index
    %15 = vector.load %arg2[%c1_15, %c0_16, %c0_17] : memref<9x128x128xbf16, #tpu.memory_space<vmem>>, vector<1x128x128xbf16>
    %16 = vector.shape_cast %15 : vector<1x128x128xbf16> to vector<128x128xbf16>
    %cst_18 = arith.constant dense<0.000000e+00> : vector<256x128xf32>
    %17 = tpu.matmul %14, %16, %cst_18 {dimension_numbers = #tpu.dot_dimension_numbers<[1], [0], [0], [1], [0, 0, 1, 1], [], []>} : vector<256x128xbf16>, vector<128x128xbf16>, vector<256x128xf32> -> vector<256x128xf32>
    %18 = arith.addf %11, %17 : vector<256x128xf32>
    %c0_19 = arith.constant 0 : index
    %c2 = arith.constant 2 : index
    %c0_20 = arith.constant 0 : index
    %19 = vector.load %arg5[%c0_19, %c2, %c0_20] : memref<18x18x128xf32, #tpu.memory_space<vmem>>, vector<16x16x128xf32>
    %20 = vector.shape_cast %19 : vector<16x16x128xf32> to vector<256x128xf32>
    %21 = arith.truncf %20 : vector<256x128xf32> to vector<256x128xbf16>
    %c2_21 = arith.constant 2 : index
    %c0_22 = arith.constant 0 : index
    %c0_23 = arith.constant 0 : index
    %22 = vector.load %arg2[%c2_21, %c0_22, %c0_23] : memref<9x128x128xbf16, #tpu.memory_space<vmem>>, vector<1x128x128xbf16>
    %23 = vector.shape_cast %22 : vector<1x128x128xbf16> to vector<128x128xbf16>
    %cst_24 = arith.constant dense<0.000000e+00> : vector<256x128xf32>
    %24 = tpu.matmul %21, %23, %cst_24 {dimension_numbers = #tpu.dot_dimension_numbers<[1], [0], [0], [1], [0, 0, 1, 1], [], []>} : vector<256x128xbf16>, vector<128x128xbf16>, vector<256x128xf32> -> vector<256x128xf32>
    %25 = arith.addf %18, %24 : vector<256x128xf32>
    %c1_25 = arith.constant 1 : index
    %c0_26 = arith.constant 0 : index
    %c0_27 = arith.constant 0 : index
    %26 = vector.load %arg5[%c1_25, %c0_26, %c0_27] : memref<18x18x128xf32, #tpu.memory_space<vmem>>, vector<16x16x128xf32>
    %27 = vector.shape_cast %26 : vector<16x16x128xf32> to vector<256x128xf32>
    %28 = arith.truncf %27 : vector<256x128xf32> to vector<256x128xbf16>
    %c3 = arith.constant 3 : index
    %c0_28 = arith.constant 0 : index
    %c0_29 = arith.constant 0 : index
    %29 = vector.load %arg2[%c3, %c0_28, %c0_29] : memref<9x128x128xbf16, #tpu.memory_space<vmem>>, vector<1x128x128xbf16>
    %30 = vector.shape_cast %29 : vector<1x128x128xbf16> to vector<128x128xbf16>
    %cst_30 = arith.constant dense<0.000000e+00> : vector<256x128xf32>
    %31 = tpu.matmul %28, %30, %cst_30 {dimension_numbers = #tpu.dot_dimension_numbers<[1], [0], [0], [1], [0, 0, 1, 1], [], []>} : vector<256x128xbf16>, vector<128x128xbf16>, vector<256x128xf32> -> vector<256x128xf32>
    %32 = arith.addf %25, %31 : vector<256x128xf32>
    %c1_31 = arith.constant 1 : index
    %c1_32 = arith.constant 1 : index
    %c0_33 = arith.constant 0 : index
    %33 = vector.load %arg5[%c1_31, %c1_32, %c0_33] : memref<18x18x128xf32, #tpu.memory_space<vmem>>, vector<16x16x128xf32>
    %34 = vector.shape_cast %33 : vector<16x16x128xf32> to vector<256x128xf32>
    %35 = arith.truncf %34 : vector<256x128xf32> to vector<256x128xbf16>
    %c4 = arith.constant 4 : index
    %c0_34 = arith.constant 0 : index
    %c0_35 = arith.constant 0 : index
    %36 = vector.load %arg2[%c4, %c0_34, %c0_35] : memref<9x128x128xbf16, #tpu.memory_space<vmem>>, vector<1x128x128xbf16>
    %37 = vector.shape_cast %36 : vector<1x128x128xbf16> to vector<128x128xbf16>
    %cst_36 = arith.constant dense<0.000000e+00> : vector<256x128xf32>
    %38 = tpu.matmul %35, %37, %cst_36 {dimension_numbers = #tpu.dot_dimension_numbers<[1], [0], [0], [1], [0, 0, 1, 1], [], []>} : vector<256x128xbf16>, vector<128x128xbf16>, vector<256x128xf32> -> vector<256x128xf32>
    %39 = arith.addf %32, %38 : vector<256x128xf32>
    %c1_37 = arith.constant 1 : index
    %c2_38 = arith.constant 2 : index
    %c0_39 = arith.constant 0 : index
    %40 = vector.load %arg5[%c1_37, %c2_38, %c0_39] : memref<18x18x128xf32, #tpu.memory_space<vmem>>, vector<16x16x128xf32>
    %41 = vector.shape_cast %40 : vector<16x16x128xf32> to vector<256x128xf32>
    %42 = arith.truncf %41 : vector<256x128xf32> to vector<256x128xbf16>
    %c5 = arith.constant 5 : index
    %c0_40 = arith.constant 0 : index
    %c0_41 = arith.constant 0 : index
    %43 = vector.load %arg2[%c5, %c0_40, %c0_41] : memref<9x128x128xbf16, #tpu.memory_space<vmem>>, vector<1x128x128xbf16>
    %44 = vector.shape_cast %43 : vector<1x128x128xbf16> to vector<128x128xbf16>
    %cst_42 = arith.constant dense<0.000000e+00> : vector<256x128xf32>
    %45 = tpu.matmul %42, %44, %cst_42 {dimension_numbers = #tpu.dot_dimension_numbers<[1], [0], [0], [1], [0, 0, 1, 1], [], []>} : vector<256x128xbf16>, vector<128x128xbf16>, vector<256x128xf32> -> vector<256x128xf32>
    %46 = arith.addf %39, %45 : vector<256x128xf32>
    %c2_43 = arith.constant 2 : index
    %c0_44 = arith.constant 0 : index
    %c0_45 = arith.constant 0 : index
    %47 = vector.load %arg5[%c2_43, %c0_44, %c0_45] : memref<18x18x128xf32, #tpu.memory_space<vmem>>, vector<16x16x128xf32>
    %48 = vector.shape_cast %47 : vector<16x16x128xf32> to vector<256x128xf32>
    %49 = arith.truncf %48 : vector<256x128xf32> to vector<256x128xbf16>
    %c6 = arith.constant 6 : index
    %c0_46 = arith.constant 0 : index
    %c0_47 = arith.constant 0 : index
    %50 = vector.load %arg2[%c6, %c0_46, %c0_47] : memref<9x128x128xbf16, #tpu.memory_space<vmem>>, vector<1x128x128xbf16>
    %51 = vector.shape_cast %50 : vector<1x128x128xbf16> to vector<128x128xbf16>
    %cst_48 = arith.constant dense<0.000000e+00> : vector<256x128xf32>
    %52 = tpu.matmul %49, %51, %cst_48 {dimension_numbers = #tpu.dot_dimension_numbers<[1], [0], [0], [1], [0, 0, 1, 1], [], []>} : vector<256x128xbf16>, vector<128x128xbf16>, vector<256x128xf32> -> vector<256x128xf32>
    %53 = arith.addf %46, %52 : vector<256x128xf32>
    %c2_49 = arith.constant 2 : index
    %c1_50 = arith.constant 1 : index
    %c0_51 = arith.constant 0 : index
    %54 = vector.load %arg5[%c2_49, %c1_50, %c0_51] : memref<18x18x128xf32, #tpu.memory_space<vmem>>, vector<16x16x128xf32>
    %55 = vector.shape_cast %54 : vector<16x16x128xf32> to vector<256x128xf32>
    %56 = arith.truncf %55 : vector<256x128xf32> to vector<256x128xbf16>
    %c7 = arith.constant 7 : index
    %c0_52 = arith.constant 0 : index
    %c0_53 = arith.constant 0 : index
    %57 = vector.load %arg2[%c7, %c0_52, %c0_53] : memref<9x128x128xbf16, #tpu.memory_space<vmem>>, vector<1x128x128xbf16>
    %58 = vector.shape_cast %57 : vector<1x128x128xbf16> to vector<128x128xbf16>
    %cst_54 = arith.constant dense<0.000000e+00> : vector<256x128xf32>
    %59 = tpu.matmul %56, %58, %cst_54 {dimension_numbers = #tpu.dot_dimension_numbers<[1], [0], [0], [1], [0, 0, 1, 1], [], []>} : vector<256x128xbf16>, vector<128x128xbf16>, vector<256x128xf32> -> vector<256x128xf32>
    %60 = arith.addf %53, %59 : vector<256x128xf32>
    %c2_55 = arith.constant 2 : index
    %c2_56 = arith.constant 2 : index
    %c0_57 = arith.constant 0 : index
    %61 = vector.load %arg5[%c2_55, %c2_56, %c0_57] : memref<18x18x128xf32, #tpu.memory_space<vmem>>, vector<16x16x128xf32>
    %62 = vector.shape_cast %61 : vector<16x16x128xf32> to vector<256x128xf32>
    %63 = arith.truncf %62 : vector<256x128xf32> to vector<256x128xbf16>
    %c8 = arith.constant 8 : index
    %c0_58 = arith.constant 0 : index
    %c0_59 = arith.constant 0 : index
    %64 = vector.load %arg2[%c8, %c0_58, %c0_59] : memref<9x128x128xbf16, #tpu.memory_space<vmem>>, vector<1x128x128xbf16>
    %65 = vector.shape_cast %64 : vector<1x128x128xbf16> to vector<128x128xbf16>
    %cst_60 = arith.constant dense<0.000000e+00> : vector<256x128xf32>
    %66 = tpu.matmul %63, %65, %cst_60 {dimension_numbers = #tpu.dot_dimension_numbers<[1], [0], [0], [1], [0, 0, 1, 1], [], []>} : vector<256x128xbf16>, vector<128x128xbf16>, vector<256x128xf32> -> vector<256x128xf32>
    %67 = arith.addf %60, %66 : vector<256x128xf32>
    %c0_61 = arith.constant 0 : index
    %c0_62 = arith.constant 0 : index
    %68 = vector.load %arg3[%c0_61, %c0_62] : memref<1x128xf32, #tpu.memory_space<vmem>>, vector<1x128xf32>
    %69 = vector.broadcast %68 : vector<1x128xf32> to vector<256x128xf32>
    %70 = arith.addf %67, %69 : vector<256x128xf32>
    %cst_63 = arith.constant 0.000000e+00 : f32
    %71 = vector.broadcast %cst_63 : f32 to vector<256x128xf32>
    %72 = arith.maximumf %70, %71 : vector<256x128xf32>
    %73 = vector.shape_cast %72 : vector<256x128xf32> to vector<16x16x128xf32>
    %74 = arith.truncf %73 : vector<16x16x128xf32> to vector<16x16x128xbf16>
    %c0_64 = arith.constant 0 : index
    %c0_65 = arith.constant 0 : index
    %c0_66 = arith.constant 0 : index
    %c0_67 = arith.constant 0 : index
    %75 = vector.load %arg4[%c0_64, %c0_65, %c0_66, %c0_67] : memref<1x16x16x128xbf16, #tpu.memory_space<vmem>>, vector<1x16x16x128xbf16>
    %76 = vector.shape_cast %75 : vector<1x16x16x128xbf16> to vector<16x16x128xbf16>
    %77 = vector.shape_cast %74 : vector<16x16x128xbf16> to vector<1x16x16x128xbf16>
    tpu.vector_store %arg4[%c0_64, %c0_65, %c0_66, %c0_67], %77 {strides = array<i32>} : memref<1x16x16x128xbf16, #tpu.memory_space<vmem>>, vector<1x16x16x128xbf16>,
    return
  }
  func.func @transform_0(%arg0: i32) -> (i32, i32, i32, i32) {
    %c0_i32 = arith.constant 0 : i32
    %c0_i32_0 = arith.constant 0 : i32
    %c0_i32_1 = arith.constant 0 : i32
    %c0_i32_2 = arith.constant 0 : i32
    return %arg0, %c0_i32, %c0_i32_0, %c0_i32_1 : i32, i32, i32, i32
  }
  func.func @transform_1(%arg0: i32) -> (i32, i32, i32) {
    %c0_i32 = arith.constant 0 : i32
    %c0_i32_0 = arith.constant 0 : i32
    %c0_i32_1 = arith.constant 0 : i32
    %c0_i32_2 = arith.constant 0 : i32
    return %c0_i32, %c0_i32_0, %c0_i32_1 : i32, i32, i32
  }
  func.func @transform_2(%arg0: i32) -> (i32, i32) {
    %c0_i32 = arith.constant 0 : i32
    %c0_i32_0 = arith.constant 0 : i32
    %c0_i32_1 = arith.constant 0 : i32
    return %c0_i32, %c0_i32_0 : i32, i32
  }
  func.func @transform_3(%arg0: i32) -> (i32, i32, i32, i32) {
    %c0_i32 = arith.constant 0 : i32
    %c0_i32_0 = arith.constant 0 : i32
    %c0_i32_1 = arith.constant 0 : i32
    %c0_i32_2 = arith.constant 0 : i32
    return %arg0, %c0_i32, %c0_i32_0, %c0_i32_1 : i32, i32, i32, i32
  }
}

module attributes {stable_mosaic.version = 11 : i64} {
  func.func @_block_kernel(%arg0: i32, %arg1: memref<1x18x18x128xbf16, #tpu.memory_space<vmem>>, %arg2: memref<9x128x128xbf16, #tpu.memory_space<vmem>>, %arg3: memref<1x128xf32, #tpu.memory_space<vmem>>, %arg4: memref<9x128x128xbf16, #tpu.memory_space<vmem>>, %arg5: memref<1x128xf32, #tpu.memory_space<vmem>>, %arg6: memref<1x16x16x128xbf16, #tpu.memory_space<vmem>>, %arg7: memref<18x18x128xf32, #tpu.memory_space<vmem>>, %arg8: memref<18x26x128xf32, #tpu.memory_space<vmem>>) attributes {dimension_semantics = [#tpu.dimension_semantics<parallel>], iteration_bounds = array<i64: 2>, scalar_prefetch = 0 : i64, scratch_operands = 2 : i64, tpu.core_type = #tpu.core_type<tc>, window_params = [{transform_indices = @transform_0, window_bounds = array<i64: 1, 18, 18, 128>}, {pipeline_mode = #tpu.pipeline_mode<synchronous>, transform_indices = @transform_1, window_bounds = array<i64: 9, 128, 128>}, {pipeline_mode = #tpu.pipeline_mode<synchronous>, transform_indices = @transform_2, window_bounds = array<i64: 1, 128>}, {pipeline_mode = #tpu.pipeline_mode<synchronous>, transform_indices = @transform_3, window_bounds = array<i64: 9, 128, 128>}, {pipeline_mode = #tpu.pipeline_mode<synchronous>, transform_indices = @transform_4, window_bounds = array<i64: 1, 128>}, {transform_indices = @transform_5, window_bounds = array<i64: 1, 16, 16, 128>}]} {
    %c0 = arith.constant 0 : index
    %c0_0 = arith.constant 0 : index
    %c0_1 = arith.constant 0 : index
    %c0_2 = arith.constant 0 : index
    %0 = vector.load %arg1[%c0, %c0_0, %c0_1, %c0_2] : memref<1x18x18x128xbf16, #tpu.memory_space<vmem>>, vector<1x18x18x128xbf16>
    %1 = vector.shape_cast %0 : vector<1x18x18x128xbf16> to vector<18x18x128xbf16>
    %2 = arith.extf %1 : vector<18x18x128xbf16> to vector<18x18x128xf32>
    %c0_3 = arith.constant 0 : index
    %c0_4 = arith.constant 0 : index
    %c0_5 = arith.constant 0 : index
    %3 = vector.load %arg7[%c0_3, %c0_4, %c0_5] : memref<18x18x128xf32, #tpu.memory_space<vmem>>, vector<18x18x128xf32>
    tpu.vector_store %arg7[%c0_3, %c0_4, %c0_5], %2 {strides = array<i32>} : memref<18x18x128xf32, #tpu.memory_space<vmem>>, vector<18x18x128xf32>,
    %cst = arith.constant 0.000000e+00 : f32
    %4 = vector.broadcast %cst : f32 to vector<256x128xf32>
    %c0_6 = arith.constant 0 : index
    %c0_7 = arith.constant 0 : index
    %c0_8 = arith.constant 0 : index
    %5 = vector.load %arg7[%c0_6, %c0_7, %c0_8] : memref<18x18x128xf32, #tpu.memory_space<vmem>>, vector<16x16x128xf32>
    %6 = vector.shape_cast %5 : vector<16x16x128xf32> to vector<256x128xf32>
    %7 = arith.truncf %6 : vector<256x128xf32> to vector<256x128xbf16>
    %c0_9 = arith.constant 0 : index
    %c0_10 = arith.constant 0 : index
    %c0_11 = arith.constant 0 : index
    %8 = vector.load %arg2[%c0_9, %c0_10, %c0_11] : memref<9x128x128xbf16, #tpu.memory_space<vmem>>, vector<1x128x128xbf16>
    %9 = vector.shape_cast %8 : vector<1x128x128xbf16> to vector<128x128xbf16>
    %cst_12 = arith.constant dense<0.000000e+00> : vector<256x128xf32>
    %10 = tpu.matmul %7, %9, %cst_12 {dimension_numbers = #tpu.dot_dimension_numbers<[1], [0], [0], [1], [0, 0, 1, 1], [], []>} : vector<256x128xbf16>, vector<128x128xbf16>, vector<256x128xf32> -> vector<256x128xf32>
    %11 = arith.addf %4, %10 : vector<256x128xf32>
    %c0_13 = arith.constant 0 : index
    %c1 = arith.constant 1 : index
    %c0_14 = arith.constant 0 : index
    %12 = vector.load %arg7[%c0_13, %c1, %c0_14] : memref<18x18x128xf32, #tpu.memory_space<vmem>>, vector<16x16x128xf32>
    %13 = vector.shape_cast %12 : vector<16x16x128xf32> to vector<256x128xf32>
    %14 = arith.truncf %13 : vector<256x128xf32> to vector<256x128xbf16>
    %c1_15 = arith.constant 1 : index
    %c0_16 = arith.constant 0 : index
    %c0_17 = arith.constant 0 : index
    %15 = vector.load %arg2[%c1_15, %c0_16, %c0_17] : memref<9x128x128xbf16, #tpu.memory_space<vmem>>, vector<1x128x128xbf16>
    %16 = vector.shape_cast %15 : vector<1x128x128xbf16> to vector<128x128xbf16>
    %cst_18 = arith.constant dense<0.000000e+00> : vector<256x128xf32>
    %17 = tpu.matmul %14, %16, %cst_18 {dimension_numbers = #tpu.dot_dimension_numbers<[1], [0], [0], [1], [0, 0, 1, 1], [], []>} : vector<256x128xbf16>, vector<128x128xbf16>, vector<256x128xf32> -> vector<256x128xf32>
    %18 = arith.addf %11, %17 : vector<256x128xf32>
    %c0_19 = arith.constant 0 : index
    %c2 = arith.constant 2 : index
    %c0_20 = arith.constant 0 : index
    %19 = vector.load %arg7[%c0_19, %c2, %c0_20] : memref<18x18x128xf32, #tpu.memory_space<vmem>>, vector<16x16x128xf32>
    %20 = vector.shape_cast %19 : vector<16x16x128xf32> to vector<256x128xf32>
    %21 = arith.truncf %20 : vector<256x128xf32> to vector<256x128xbf16>
    %c2_21 = arith.constant 2 : index
    %c0_22 = arith.constant 0 : index
    %c0_23 = arith.constant 0 : index
    %22 = vector.load %arg2[%c2_21, %c0_22, %c0_23] : memref<9x128x128xbf16, #tpu.memory_space<vmem>>, vector<1x128x128xbf16>
    %23 = vector.shape_cast %22 : vector<1x128x128xbf16> to vector<128x128xbf16>
    %cst_24 = arith.constant dense<0.000000e+00> : vector<256x128xf32>
    %24 = tpu.matmul %21, %23, %cst_24 {dimension_numbers = #tpu.dot_dimension_numbers<[1], [0], [0], [1], [0, 0, 1, 1], [], []>} : vector<256x128xbf16>, vector<128x128xbf16>, vector<256x128xf32> -> vector<256x128xf32>
    %25 = arith.addf %18, %24 : vector<256x128xf32>
    %c1_25 = arith.constant 1 : index
    %c0_26 = arith.constant 0 : index
    %c0_27 = arith.constant 0 : index
    %26 = vector.load %arg7[%c1_25, %c0_26, %c0_27] : memref<18x18x128xf32, #tpu.memory_space<vmem>>, vector<16x16x128xf32>
    %27 = vector.shape_cast %26 : vector<16x16x128xf32> to vector<256x128xf32>
    %28 = arith.truncf %27 : vector<256x128xf32> to vector<256x128xbf16>
    %c3 = arith.constant 3 : index
    %c0_28 = arith.constant 0 : index
    %c0_29 = arith.constant 0 : index
    %29 = vector.load %arg2[%c3, %c0_28, %c0_29] : memref<9x128x128xbf16, #tpu.memory_space<vmem>>, vector<1x128x128xbf16>
    %30 = vector.shape_cast %29 : vector<1x128x128xbf16> to vector<128x128xbf16>
    %cst_30 = arith.constant dense<0.000000e+00> : vector<256x128xf32>
    %31 = tpu.matmul %28, %30, %cst_30 {dimension_numbers = #tpu.dot_dimension_numbers<[1], [0], [0], [1], [0, 0, 1, 1], [], []>} : vector<256x128xbf16>, vector<128x128xbf16>, vector<256x128xf32> -> vector<256x128xf32>
    %32 = arith.addf %25, %31 : vector<256x128xf32>
    %c1_31 = arith.constant 1 : index
    %c1_32 = arith.constant 1 : index
    %c0_33 = arith.constant 0 : index
    %33 = vector.load %arg7[%c1_31, %c1_32, %c0_33] : memref<18x18x128xf32, #tpu.memory_space<vmem>>, vector<16x16x128xf32>
    %34 = vector.shape_cast %33 : vector<16x16x128xf32> to vector<256x128xf32>
    %35 = arith.truncf %34 : vector<256x128xf32> to vector<256x128xbf16>
    %c4 = arith.constant 4 : index
    %c0_34 = arith.constant 0 : index
    %c0_35 = arith.constant 0 : index
    %36 = vector.load %arg2[%c4, %c0_34, %c0_35] : memref<9x128x128xbf16, #tpu.memory_space<vmem>>, vector<1x128x128xbf16>
    %37 = vector.shape_cast %36 : vector<1x128x128xbf16> to vector<128x128xbf16>
    %cst_36 = arith.constant dense<0.000000e+00> : vector<256x128xf32>
    %38 = tpu.matmul %35, %37, %cst_36 {dimension_numbers = #tpu.dot_dimension_numbers<[1], [0], [0], [1], [0, 0, 1, 1], [], []>} : vector<256x128xbf16>, vector<128x128xbf16>, vector<256x128xf32> -> vector<256x128xf32>
    %39 = arith.addf %32, %38 : vector<256x128xf32>
    %c1_37 = arith.constant 1 : index
    %c2_38 = arith.constant 2 : index
    %c0_39 = arith.constant 0 : index
    %40 = vector.load %arg7[%c1_37, %c2_38, %c0_39] : memref<18x18x128xf32, #tpu.memory_space<vmem>>, vector<16x16x128xf32>
    %41 = vector.shape_cast %40 : vector<16x16x128xf32> to vector<256x128xf32>
    %42 = arith.truncf %41 : vector<256x128xf32> to vector<256x128xbf16>
    %c5 = arith.constant 5 : index
    %c0_40 = arith.constant 0 : index
    %c0_41 = arith.constant 0 : index
    %43 = vector.load %arg2[%c5, %c0_40, %c0_41] : memref<9x128x128xbf16, #tpu.memory_space<vmem>>, vector<1x128x128xbf16>
    %44 = vector.shape_cast %43 : vector<1x128x128xbf16> to vector<128x128xbf16>
    %cst_42 = arith.constant dense<0.000000e+00> : vector<256x128xf32>
    %45 = tpu.matmul %42, %44, %cst_42 {dimension_numbers = #tpu.dot_dimension_numbers<[1], [0], [0], [1], [0, 0, 1, 1], [], []>} : vector<256x128xbf16>, vector<128x128xbf16>, vector<256x128xf32> -> vector<256x128xf32>
    %46 = arith.addf %39, %45 : vector<256x128xf32>
    %c2_43 = arith.constant 2 : index
    %c0_44 = arith.constant 0 : index
    %c0_45 = arith.constant 0 : index
    %47 = vector.load %arg7[%c2_43, %c0_44, %c0_45] : memref<18x18x128xf32, #tpu.memory_space<vmem>>, vector<16x16x128xf32>
    %48 = vector.shape_cast %47 : vector<16x16x128xf32> to vector<256x128xf32>
    %49 = arith.truncf %48 : vector<256x128xf32> to vector<256x128xbf16>
    %c6 = arith.constant 6 : index
    %c0_46 = arith.constant 0 : index
    %c0_47 = arith.constant 0 : index
    %50 = vector.load %arg2[%c6, %c0_46, %c0_47] : memref<9x128x128xbf16, #tpu.memory_space<vmem>>, vector<1x128x128xbf16>
    %51 = vector.shape_cast %50 : vector<1x128x128xbf16> to vector<128x128xbf16>
    %cst_48 = arith.constant dense<0.000000e+00> : vector<256x128xf32>
    %52 = tpu.matmul %49, %51, %cst_48 {dimension_numbers = #tpu.dot_dimension_numbers<[1], [0], [0], [1], [0, 0, 1, 1], [], []>} : vector<256x128xbf16>, vector<128x128xbf16>, vector<256x128xf32> -> vector<256x128xf32>
    %53 = arith.addf %46, %52 : vector<256x128xf32>
    %c2_49 = arith.constant 2 : index
    %c1_50 = arith.constant 1 : index
    %c0_51 = arith.constant 0 : index
    %54 = vector.load %arg7[%c2_49, %c1_50, %c0_51] : memref<18x18x128xf32, #tpu.memory_space<vmem>>, vector<16x16x128xf32>
    %55 = vector.shape_cast %54 : vector<16x16x128xf32> to vector<256x128xf32>
    %56 = arith.truncf %55 : vector<256x128xf32> to vector<256x128xbf16>
    %c7 = arith.constant 7 : index
    %c0_52 = arith.constant 0 : index
    %c0_53 = arith.constant 0 : index
    %57 = vector.load %arg2[%c7, %c0_52, %c0_53] : memref<9x128x128xbf16, #tpu.memory_space<vmem>>, vector<1x128x128xbf16>
    %58 = vector.shape_cast %57 : vector<1x128x128xbf16> to vector<128x128xbf16>
    %cst_54 = arith.constant dense<0.000000e+00> : vector<256x128xf32>
    %59 = tpu.matmul %56, %58, %cst_54 {dimension_numbers = #tpu.dot_dimension_numbers<[1], [0], [0], [1], [0, 0, 1, 1], [], []>} : vector<256x128xbf16>, vector<128x128xbf16>, vector<256x128xf32> -> vector<256x128xf32>
    %60 = arith.addf %53, %59 : vector<256x128xf32>
    %c2_55 = arith.constant 2 : index
    %c2_56 = arith.constant 2 : index
    %c0_57 = arith.constant 0 : index
    %61 = vector.load %arg7[%c2_55, %c2_56, %c0_57] : memref<18x18x128xf32, #tpu.memory_space<vmem>>, vector<16x16x128xf32>
    %62 = vector.shape_cast %61 : vector<16x16x128xf32> to vector<256x128xf32>
    %63 = arith.truncf %62 : vector<256x128xf32> to vector<256x128xbf16>
    %c8 = arith.constant 8 : index
    %c0_58 = arith.constant 0 : index
    %c0_59 = arith.constant 0 : index
    %64 = vector.load %arg2[%c8, %c0_58, %c0_59] : memref<9x128x128xbf16, #tpu.memory_space<vmem>>, vector<1x128x128xbf16>
    %65 = vector.shape_cast %64 : vector<1x128x128xbf16> to vector<128x128xbf16>
    %cst_60 = arith.constant dense<0.000000e+00> : vector<256x128xf32>
    %66 = tpu.matmul %63, %65, %cst_60 {dimension_numbers = #tpu.dot_dimension_numbers<[1], [0], [0], [1], [0, 0, 1, 1], [], []>} : vector<256x128xbf16>, vector<128x128xbf16>, vector<256x128xf32> -> vector<256x128xf32>
    %67 = arith.addf %60, %66 : vector<256x128xf32>
    %c0_61 = arith.constant 0 : index
    %c0_62 = arith.constant 0 : index
    %68 = vector.load %arg3[%c0_61, %c0_62] : memref<1x128xf32, #tpu.memory_space<vmem>>, vector<1x128xf32>
    %69 = vector.broadcast %68 : vector<1x128xf32> to vector<256x128xf32>
    %70 = arith.addf %67, %69 : vector<256x128xf32>
    %cst_63 = arith.constant 0.000000e+00 : f32
    %71 = vector.broadcast %cst_63 : f32 to vector<256x128xf32>
    %72 = arith.maximumf %70, %71 : vector<256x128xf32>
    %cst_64 = arith.constant 0.000000e+00 : f32
    %73 = vector.broadcast %cst_64 : f32 to vector<18x26x128xf32>
    %c0_65 = arith.constant 0 : index
    %c0_66 = arith.constant 0 : index
    %c0_67 = arith.constant 0 : index
    %74 = vector.load %arg8[%c0_65, %c0_66, %c0_67] : memref<18x26x128xf32, #tpu.memory_space<vmem>>, vector<18x26x128xf32>
    tpu.vector_store %arg8[%c0_65, %c0_66, %c0_67], %73 {strides = array<i32>} : memref<18x26x128xf32, #tpu.memory_space<vmem>>, vector<18x26x128xf32>,
    %75 = vector.shape_cast %72 : vector<256x128xf32> to vector<16x16x128xf32>
    %c1_68 = arith.constant 1 : index
    %c8_69 = arith.constant 8 : index
    %c0_70 = arith.constant 0 : index
    %76 = vector.load %arg8[%c1_68, %c8_69, %c0_70] : memref<18x26x128xf32, #tpu.memory_space<vmem>>, vector<16x16x128xf32>
    tpu.vector_store %arg8[%c1_68, %c8_69, %c0_70], %75 {strides = array<i32>} : memref<18x26x128xf32, #tpu.memory_space<vmem>>, vector<16x16x128xf32>,
    %cst_71 = arith.constant 0.000000e+00 : f32
    %77 = vector.broadcast %cst_71 : f32 to vector<256x128xf32>
    %c0_72 = arith.constant 0 : index
    %c7_73 = arith.constant 7 : index
    %c0_74 = arith.constant 0 : index
    %78 = vector.load %arg8[%c0_72, %c7_73, %c0_74] : memref<18x26x128xf32, #tpu.memory_space<vmem>>, vector<16x16x128xf32>
    %79 = vector.shape_cast %78 : vector<16x16x128xf32> to vector<256x128xf32>
    %80 = arith.truncf %79 : vector<256x128xf32> to vector<256x128xbf16>
    %c0_75 = arith.constant 0 : index
    %c0_76 = arith.constant 0 : index
    %c0_77 = arith.constant 0 : index
    %81 = vector.load %arg4[%c0_75, %c0_76, %c0_77] : memref<9x128x128xbf16, #tpu.memory_space<vmem>>, vector<1x128x128xbf16>
    %82 = vector.shape_cast %81 : vector<1x128x128xbf16> to vector<128x128xbf16>
    %cst_78 = arith.constant dense<0.000000e+00> : vector<256x128xf32>
    %83 = tpu.matmul %80, %82, %cst_78 {dimension_numbers = #tpu.dot_dimension_numbers<[1], [0], [0], [1], [0, 0, 1, 1], [], []>} : vector<256x128xbf16>, vector<128x128xbf16>, vector<256x128xf32> -> vector<256x128xf32>
    %84 = arith.addf %77, %83 : vector<256x128xf32>
    %c0_79 = arith.constant 0 : index
    %c8_80 = arith.constant 8 : index
    %c0_81 = arith.constant 0 : index
    %85 = vector.load %arg8[%c0_79, %c8_80, %c0_81] : memref<18x26x128xf32, #tpu.memory_space<vmem>>, vector<16x16x128xf32>
    %86 = vector.shape_cast %85 : vector<16x16x128xf32> to vector<256x128xf32>
    %87 = arith.truncf %86 : vector<256x128xf32> to vector<256x128xbf16>
    %c1_82 = arith.constant 1 : index
    %c0_83 = arith.constant 0 : index
    %c0_84 = arith.constant 0 : index
    %88 = vector.load %arg4[%c1_82, %c0_83, %c0_84] : memref<9x128x128xbf16, #tpu.memory_space<vmem>>, vector<1x128x128xbf16>
    %89 = vector.shape_cast %88 : vector<1x128x128xbf16> to vector<128x128xbf16>
    %cst_85 = arith.constant dense<0.000000e+00> : vector<256x128xf32>
    %90 = tpu.matmul %87, %89, %cst_85 {dimension_numbers = #tpu.dot_dimension_numbers<[1], [0], [0], [1], [0, 0, 1, 1], [], []>} : vector<256x128xbf16>, vector<128x128xbf16>, vector<256x128xf32> -> vector<256x128xf32>
    %91 = arith.addf %84, %90 : vector<256x128xf32>
    %c0_86 = arith.constant 0 : index
    %c9 = arith.constant 9 : index
    %c0_87 = arith.constant 0 : index
    %92 = vector.load %arg8[%c0_86, %c9, %c0_87] : memref<18x26x128xf32, #tpu.memory_space<vmem>>, vector<16x16x128xf32>
    %93 = vector.shape_cast %92 : vector<16x16x128xf32> to vector<256x128xf32>
    %94 = arith.truncf %93 : vector<256x128xf32> to vector<256x128xbf16>
    %c2_88 = arith.constant 2 : index
    %c0_89 = arith.constant 0 : index
    %c0_90 = arith.constant 0 : index
    %95 = vector.load %arg4[%c2_88, %c0_89, %c0_90] : memref<9x128x128xbf16, #tpu.memory_space<vmem>>, vector<1x128x128xbf16>
    %96 = vector.shape_cast %95 : vector<1x128x128xbf16> to vector<128x128xbf16>
    %cst_91 = arith.constant dense<0.000000e+00> : vector<256x128xf32>
    %97 = tpu.matmul %94, %96, %cst_91 {dimension_numbers = #tpu.dot_dimension_numbers<[1], [0], [0], [1], [0, 0, 1, 1], [], []>} : vector<256x128xbf16>, vector<128x128xbf16>, vector<256x128xf32> -> vector<256x128xf32>
    %98 = arith.addf %91, %97 : vector<256x128xf32>
    %c1_92 = arith.constant 1 : index
    %c7_93 = arith.constant 7 : index
    %c0_94 = arith.constant 0 : index
    %99 = vector.load %arg8[%c1_92, %c7_93, %c0_94] : memref<18x26x128xf32, #tpu.memory_space<vmem>>, vector<16x16x128xf32>
    %100 = vector.shape_cast %99 : vector<16x16x128xf32> to vector<256x128xf32>
    %101 = arith.truncf %100 : vector<256x128xf32> to vector<256x128xbf16>
    %c3_95 = arith.constant 3 : index
    %c0_96 = arith.constant 0 : index
    %c0_97 = arith.constant 0 : index
    %102 = vector.load %arg4[%c3_95, %c0_96, %c0_97] : memref<9x128x128xbf16, #tpu.memory_space<vmem>>, vector<1x128x128xbf16>
    %103 = vector.shape_cast %102 : vector<1x128x128xbf16> to vector<128x128xbf16>
    %cst_98 = arith.constant dense<0.000000e+00> : vector<256x128xf32>
    %104 = tpu.matmul %101, %103, %cst_98 {dimension_numbers = #tpu.dot_dimension_numbers<[1], [0], [0], [1], [0, 0, 1, 1], [], []>} : vector<256x128xbf16>, vector<128x128xbf16>, vector<256x128xf32> -> vector<256x128xf32>
    %105 = arith.addf %98, %104 : vector<256x128xf32>
    %c1_99 = arith.constant 1 : index
    %c8_100 = arith.constant 8 : index
    %c0_101 = arith.constant 0 : index
    %106 = vector.load %arg8[%c1_99, %c8_100, %c0_101] : memref<18x26x128xf32, #tpu.memory_space<vmem>>, vector<16x16x128xf32>
    %107 = vector.shape_cast %106 : vector<16x16x128xf32> to vector<256x128xf32>
    %108 = arith.truncf %107 : vector<256x128xf32> to vector<256x128xbf16>
    %c4_102 = arith.constant 4 : index
    %c0_103 = arith.constant 0 : index
    %c0_104 = arith.constant 0 : index
    %109 = vector.load %arg4[%c4_102, %c0_103, %c0_104] : memref<9x128x128xbf16, #tpu.memory_space<vmem>>, vector<1x128x128xbf16>
    %110 = vector.shape_cast %109 : vector<1x128x128xbf16> to vector<128x128xbf16>
    %cst_105 = arith.constant dense<0.000000e+00> : vector<256x128xf32>
    %111 = tpu.matmul %108, %110, %cst_105 {dimension_numbers = #tpu.dot_dimension_numbers<[1], [0], [0], [1], [0, 0, 1, 1], [], []>} : vector<256x128xbf16>, vector<128x128xbf16>, vector<256x128xf32> -> vector<256x128xf32>
    %112 = arith.addf %105, %111 : vector<256x128xf32>
    %c1_106 = arith.constant 1 : index
    %c9_107 = arith.constant 9 : index
    %c0_108 = arith.constant 0 : index
    %113 = vector.load %arg8[%c1_106, %c9_107, %c0_108] : memref<18x26x128xf32, #tpu.memory_space<vmem>>, vector<16x16x128xf32>
    %114 = vector.shape_cast %113 : vector<16x16x128xf32> to vector<256x128xf32>
    %115 = arith.truncf %114 : vector<256x128xf32> to vector<256x128xbf16>
    %c5_109 = arith.constant 5 : index
    %c0_110 = arith.constant 0 : index
    %c0_111 = arith.constant 0 : index
    %116 = vector.load %arg4[%c5_109, %c0_110, %c0_111] : memref<9x128x128xbf16, #tpu.memory_space<vmem>>, vector<1x128x128xbf16>
    %117 = vector.shape_cast %116 : vector<1x128x128xbf16> to vector<128x128xbf16>
    %cst_112 = arith.constant dense<0.000000e+00> : vector<256x128xf32>
    %118 = tpu.matmul %115, %117, %cst_112 {dimension_numbers = #tpu.dot_dimension_numbers<[1], [0], [0], [1], [0, 0, 1, 1], [], []>} : vector<256x128xbf16>, vector<128x128xbf16>, vector<256x128xf32> -> vector<256x128xf32>
    %119 = arith.addf %112, %118 : vector<256x128xf32>
    %c2_113 = arith.constant 2 : index
    %c7_114 = arith.constant 7 : index
    %c0_115 = arith.constant 0 : index
    %120 = vector.load %arg8[%c2_113, %c7_114, %c0_115] : memref<18x26x128xf32, #tpu.memory_space<vmem>>, vector<16x16x128xf32>
    %121 = vector.shape_cast %120 : vector<16x16x128xf32> to vector<256x128xf32>
    %122 = arith.truncf %121 : vector<256x128xf32> to vector<256x128xbf16>
    %c6_116 = arith.constant 6 : index
    %c0_117 = arith.constant 0 : index
    %c0_118 = arith.constant 0 : index
    %123 = vector.load %arg4[%c6_116, %c0_117, %c0_118] : memref<9x128x128xbf16, #tpu.memory_space<vmem>>, vector<1x128x128xbf16>
    %124 = vector.shape_cast %123 : vector<1x128x128xbf16> to vector<128x128xbf16>
    %cst_119 = arith.constant dense<0.000000e+00> : vector<256x128xf32>
    %125 = tpu.matmul %122, %124, %cst_119 {dimension_numbers = #tpu.dot_dimension_numbers<[1], [0], [0], [1], [0, 0, 1, 1], [], []>} : vector<256x128xbf16>, vector<128x128xbf16>, vector<256x128xf32> -> vector<256x128xf32>
    %126 = arith.addf %119, %125 : vector<256x128xf32>
    %c2_120 = arith.constant 2 : index
    %c8_121 = arith.constant 8 : index
    %c0_122 = arith.constant 0 : index
    %127 = vector.load %arg8[%c2_120, %c8_121, %c0_122] : memref<18x26x128xf32, #tpu.memory_space<vmem>>, vector<16x16x128xf32>
    %128 = vector.shape_cast %127 : vector<16x16x128xf32> to vector<256x128xf32>
    %129 = arith.truncf %128 : vector<256x128xf32> to vector<256x128xbf16>
    %c7_123 = arith.constant 7 : index
    %c0_124 = arith.constant 0 : index
    %c0_125 = arith.constant 0 : index
    %130 = vector.load %arg4[%c7_123, %c0_124, %c0_125] : memref<9x128x128xbf16, #tpu.memory_space<vmem>>, vector<1x128x128xbf16>
    %131 = vector.shape_cast %130 : vector<1x128x128xbf16> to vector<128x128xbf16>
    %cst_126 = arith.constant dense<0.000000e+00> : vector<256x128xf32>
    %132 = tpu.matmul %129, %131, %cst_126 {dimension_numbers = #tpu.dot_dimension_numbers<[1], [0], [0], [1], [0, 0, 1, 1], [], []>} : vector<256x128xbf16>, vector<128x128xbf16>, vector<256x128xf32> -> vector<256x128xf32>
    %133 = arith.addf %126, %132 : vector<256x128xf32>
    %c2_127 = arith.constant 2 : index
    %c9_128 = arith.constant 9 : index
    %c0_129 = arith.constant 0 : index
    %134 = vector.load %arg8[%c2_127, %c9_128, %c0_129] : memref<18x26x128xf32, #tpu.memory_space<vmem>>, vector<16x16x128xf32>
    %135 = vector.shape_cast %134 : vector<16x16x128xf32> to vector<256x128xf32>
    %136 = arith.truncf %135 : vector<256x128xf32> to vector<256x128xbf16>
    %c8_130 = arith.constant 8 : index
    %c0_131 = arith.constant 0 : index
    %c0_132 = arith.constant 0 : index
    %137 = vector.load %arg4[%c8_130, %c0_131, %c0_132] : memref<9x128x128xbf16, #tpu.memory_space<vmem>>, vector<1x128x128xbf16>
    %138 = vector.shape_cast %137 : vector<1x128x128xbf16> to vector<128x128xbf16>
    %cst_133 = arith.constant dense<0.000000e+00> : vector<256x128xf32>
    %139 = tpu.matmul %136, %138, %cst_133 {dimension_numbers = #tpu.dot_dimension_numbers<[1], [0], [0], [1], [0, 0, 1, 1], [], []>} : vector<256x128xbf16>, vector<128x128xbf16>, vector<256x128xf32> -> vector<256x128xf32>
    %140 = arith.addf %133, %139 : vector<256x128xf32>
    %c0_134 = arith.constant 0 : index
    %c0_135 = arith.constant 0 : index
    %141 = vector.load %arg5[%c0_134, %c0_135] : memref<1x128xf32, #tpu.memory_space<vmem>>, vector<1x128xf32>
    %142 = vector.broadcast %141 : vector<1x128xf32> to vector<256x128xf32>
    %143 = arith.addf %140, %142 : vector<256x128xf32>
    %c1_136 = arith.constant 1 : index
    %c1_137 = arith.constant 1 : index
    %c0_138 = arith.constant 0 : index
    %144 = vector.load %arg7[%c1_136, %c1_137, %c0_138] : memref<18x18x128xf32, #tpu.memory_space<vmem>>, vector<16x16x128xf32>
    %145 = vector.shape_cast %144 : vector<16x16x128xf32> to vector<256x128xf32>
    %146 = arith.addf %143, %145 : vector<256x128xf32>
    %cst_139 = arith.constant 0.000000e+00 : f32
    %147 = vector.broadcast %cst_139 : f32 to vector<256x128xf32>
    %148 = arith.maximumf %146, %147 : vector<256x128xf32>
    %149 = vector.shape_cast %148 : vector<256x128xf32> to vector<16x16x128xf32>
    %150 = arith.truncf %149 : vector<16x16x128xf32> to vector<16x16x128xbf16>
    %c0_140 = arith.constant 0 : index
    %c0_141 = arith.constant 0 : index
    %c0_142 = arith.constant 0 : index
    %c0_143 = arith.constant 0 : index
    %151 = vector.load %arg6[%c0_140, %c0_141, %c0_142, %c0_143] : memref<1x16x16x128xbf16, #tpu.memory_space<vmem>>, vector<1x16x16x128xbf16>
    %152 = vector.shape_cast %151 : vector<1x16x16x128xbf16> to vector<16x16x128xbf16>
    %153 = vector.shape_cast %150 : vector<16x16x128xbf16> to vector<1x16x16x128xbf16>
    tpu.vector_store %arg6[%c0_140, %c0_141, %c0_142, %c0_143], %153 {strides = array<i32>} : memref<1x16x16x128xbf16, #tpu.memory_space<vmem>>, vector<1x16x16x128xbf16>,
    return
  }
  func.func @transform_0(%arg0: i32) -> (i32, i32, i32, i32) {
    %c0_i32 = arith.constant 0 : i32
    %c0_i32_0 = arith.constant 0 : i32
    %c0_i32_1 = arith.constant 0 : i32
    %c0_i32_2 = arith.constant 0 : i32
    return %arg0, %c0_i32, %c0_i32_0, %c0_i32_1 : i32, i32, i32, i32
  }
  func.func @transform_1(%arg0: i32) -> (i32, i32, i32) {
    %c0_i32 = arith.constant 0 : i32
    %c0_i32_0 = arith.constant 0 : i32
    %c0_i32_1 = arith.constant 0 : i32
    %c0_i32_2 = arith.constant 0 : i32
    return %c0_i32, %c0_i32_0, %c0_i32_1 : i32, i32, i32
  }
  func.func @transform_2(%arg0: i32) -> (i32, i32) {
    %c0_i32 = arith.constant 0 : i32
    %c0_i32_0 = arith.constant 0 : i32
    %c0_i32_1 = arith.constant 0 : i32
    return %c0_i32, %c0_i32_0 : i32, i32
  }
  func.func @transform_3(%arg0: i32) -> (i32, i32, i32) {
    %c0_i32 = arith.constant 0 : i32
    %c0_i32_0 = arith.constant 0 : i32
    %c0_i32_1 = arith.constant 0 : i32
    %c0_i32_2 = arith.constant 0 : i32
    return %c0_i32, %c0_i32_0, %c0_i32_1 : i32, i32, i32
  }
  func.func @transform_4(%arg0: i32) -> (i32, i32) {
    %c0_i32 = arith.constant 0 : i32
    %c0_i32_0 = arith.constant 0 : i32
    %c0_i32_1 = arith.constant 0 : i32
    return %c0_i32, %c0_i32_0 : i32, i32
  }
  func.func @transform_5(%arg0: i32) -> (i32, i32, i32, i32) {
    %c0_i32 = arith.constant 0 : i32
    %c0_i32_0 = arith.constant 0 : i32
    %c0_i32_1 = arith.constant 0 : i32
    %c0_i32_2 = arith.constant 0 : i32
    return %arg0, %c0_i32, %c0_i32_0, %c0_i32_1 : i32, i32, i32, i32
  }
}

module attributes {stable_mosaic.version = 11 : i64} {
  func.func @_block_kernel(%arg0: i32, %arg1: memref<1x4x9x9x128xbf16, #tpu.memory_space<vmem>>, %arg2: memref<9x128x128xbf16, #tpu.memory_space<vmem>>, %arg3: memref<1x128xf32, #tpu.memory_space<vmem>>, %arg4: memref<9x128x128xbf16, #tpu.memory_space<vmem>>, %arg5: memref<1x128xf32, #tpu.memory_space<vmem>>, %arg6: memref<128x128xbf16, #tpu.memory_space<vmem>>, %arg7: memref<1x128xf32, #tpu.memory_space<vmem>>, %arg8: memref<128x128xf32, #tpu.memory_space<vmem>>, %arg9: memref<1x128xf32, #tpu.memory_space<vmem>>, %arg10: memref<1x8x8x128xbf16, #tpu.memory_space<vmem>>, %arg11: memref<1x8x128xf32, #tpu.memory_space<vmem>>, %arg12: memref<4x9x9x128xf32, #tpu.memory_space<vmem>>, %arg13: memref<10x18x128xf32, #tpu.memory_space<vmem>>) attributes {dimension_semantics = [#tpu.dimension_semantics<parallel>], iteration_bounds = array<i64: 2>, scalar_prefetch = 0 : i64, scratch_operands = 2 : i64, tpu.core_type = #tpu.core_type<tc>, window_params = [{transform_indices = @transform_0, window_bounds = array<i64: 1, 4, 9, 9, 128>}, {pipeline_mode = #tpu.pipeline_mode<synchronous>, transform_indices = @transform_1, window_bounds = array<i64: 9, 128, 128>}, {pipeline_mode = #tpu.pipeline_mode<synchronous>, transform_indices = @transform_2, window_bounds = array<i64: 1, 128>}, {pipeline_mode = #tpu.pipeline_mode<synchronous>, transform_indices = @transform_3, window_bounds = array<i64: 9, 128, 128>}, {pipeline_mode = #tpu.pipeline_mode<synchronous>, transform_indices = @transform_4, window_bounds = array<i64: 1, 128>}, {pipeline_mode = #tpu.pipeline_mode<synchronous>, transform_indices = @transform_5, window_bounds = array<i64: 128, 128>}, {pipeline_mode = #tpu.pipeline_mode<synchronous>, transform_indices = @transform_6, window_bounds = array<i64: 1, 128>}, {pipeline_mode = #tpu.pipeline_mode<synchronous>, transform_indices = @transform_7, window_bounds = array<i64: 128, 128>}, {pipeline_mode = #tpu.pipeline_mode<synchronous>, transform_indices = @transform_8, window_bounds = array<i64: 1, 128>}, {transform_indices = @transform_9, window_bounds = array<i64: 1, 8, 8, 128>}, {transform_indices = @transform_10, window_bounds = array<i64: 1, 8, 128>}]} {
    %c0 = arith.constant 0 : index
    %c0_0 = arith.constant 0 : index
    %c0_1 = arith.constant 0 : index
    %c0_2 = arith.constant 0 : index
    %c0_3 = arith.constant 0 : index
    %0 = vector.load %arg1[%c0, %c0_0, %c0_1, %c0_2, %c0_3] : memref<1x4x9x9x128xbf16, #tpu.memory_space<vmem>>, vector<1x4x9x9x128xbf16>
    %1 = vector.shape_cast %0 : vector<1x4x9x9x128xbf16> to vector<4x9x9x128xbf16>
    %2 = arith.extf %1 : vector<4x9x9x128xbf16> to vector<4x9x9x128xf32>
    %c0_4 = arith.constant 0 : index
    %c0_5 = arith.constant 0 : index
    %c0_6 = arith.constant 0 : index
    %c0_7 = arith.constant 0 : index
    %3 = vector.load %arg12[%c0_4, %c0_5, %c0_6, %c0_7] : memref<4x9x9x128xf32, #tpu.memory_space<vmem>>, vector<4x9x9x128xf32>
    tpu.vector_store %arg12[%c0_4, %c0_5, %c0_6, %c0_7], %2 {strides = array<i32>} : memref<4x9x9x128xf32, #tpu.memory_space<vmem>>, vector<4x9x9x128xf32>,
    %cst = arith.constant 0.000000e+00 : f32
    %4 = vector.broadcast %cst : f32 to vector<64x128xf32>
    %c0_8 = arith.constant 0 : index
    %c0_9 = arith.constant 0 : index
    %c0_10 = arith.constant 0 : index
    %c0_11 = arith.constant 0 : index
    %5 = vector.load %arg12[%c0_8, %c0_9, %c0_10, %c0_11] : memref<4x9x9x128xf32, #tpu.memory_space<vmem>>, vector<1x8x8x128xf32>
    %6 = vector.shape_cast %5 : vector<1x8x8x128xf32> to vector<8x8x128xf32>
    %7 = vector.shape_cast %6 : vector<8x8x128xf32> to vector<64x128xf32>
    %8 = arith.truncf %7 : vector<64x128xf32> to vector<64x128xbf16>
    %c0_12 = arith.constant 0 : index
    %c0_13 = arith.constant 0 : index
    %c0_14 = arith.constant 0 : index
    %9 = vector.load %arg2[%c0_12, %c0_13, %c0_14] : memref<9x128x128xbf16, #tpu.memory_space<vmem>>, vector<1x128x128xbf16>
    %10 = vector.shape_cast %9 : vector<1x128x128xbf16> to vector<128x128xbf16>
    %cst_15 = arith.constant dense<0.000000e+00> : vector<64x128xf32>
    %11 = tpu.matmul %8, %10, %cst_15 {dimension_numbers = #tpu.dot_dimension_numbers<[1], [0], [0], [1], [0, 0, 1, 1], [], []>} : vector<64x128xbf16>, vector<128x128xbf16>, vector<64x128xf32> -> vector<64x128xf32>
    %12 = arith.addf %4, %11 : vector<64x128xf32>
    %c1 = arith.constant 1 : index
    %c0_16 = arith.constant 0 : index
    %c0_17 = arith.constant 0 : index
    %c0_18 = arith.constant 0 : index
    %13 = vector.load %arg12[%c1, %c0_16, %c0_17, %c0_18] : memref<4x9x9x128xf32, #tpu.memory_space<vmem>>, vector<1x8x8x128xf32>
    %14 = vector.shape_cast %13 : vector<1x8x8x128xf32> to vector<8x8x128xf32>
    %15 = vector.shape_cast %14 : vector<8x8x128xf32> to vector<64x128xf32>
    %16 = arith.truncf %15 : vector<64x128xf32> to vector<64x128xbf16>
    %c1_19 = arith.constant 1 : index
    %c0_20 = arith.constant 0 : index
    %c0_21 = arith.constant 0 : index
    %17 = vector.load %arg2[%c1_19, %c0_20, %c0_21] : memref<9x128x128xbf16, #tpu.memory_space<vmem>>, vector<1x128x128xbf16>
    %18 = vector.shape_cast %17 : vector<1x128x128xbf16> to vector<128x128xbf16>
    %cst_22 = arith.constant dense<0.000000e+00> : vector<64x128xf32>
    %19 = tpu.matmul %16, %18, %cst_22 {dimension_numbers = #tpu.dot_dimension_numbers<[1], [0], [0], [1], [0, 0, 1, 1], [], []>} : vector<64x128xbf16>, vector<128x128xbf16>, vector<64x128xf32> -> vector<64x128xf32>
    %20 = arith.addf %12, %19 : vector<64x128xf32>
    %c0_23 = arith.constant 0 : index
    %c0_24 = arith.constant 0 : index
    %c1_25 = arith.constant 1 : index
    %c0_26 = arith.constant 0 : index
    %21 = vector.load %arg12[%c0_23, %c0_24, %c1_25, %c0_26] : memref<4x9x9x128xf32, #tpu.memory_space<vmem>>, vector<1x8x8x128xf32>
    %22 = vector.shape_cast %21 : vector<1x8x8x128xf32> to vector<8x8x128xf32>
    %23 = vector.shape_cast %22 : vector<8x8x128xf32> to vector<64x128xf32>
    %24 = arith.truncf %23 : vector<64x128xf32> to vector<64x128xbf16>
    %c2 = arith.constant 2 : index
    %c0_27 = arith.constant 0 : index
    %c0_28 = arith.constant 0 : index
    %25 = vector.load %arg2[%c2, %c0_27, %c0_28] : memref<9x128x128xbf16, #tpu.memory_space<vmem>>, vector<1x128x128xbf16>
    %26 = vector.shape_cast %25 : vector<1x128x128xbf16> to vector<128x128xbf16>
    %cst_29 = arith.constant dense<0.000000e+00> : vector<64x128xf32>
    %27 = tpu.matmul %24, %26, %cst_29 {dimension_numbers = #tpu.dot_dimension_numbers<[1], [0], [0], [1], [0, 0, 1, 1], [], []>} : vector<64x128xbf16>, vector<128x128xbf16>, vector<64x128xf32> -> vector<64x128xf32>
    %28 = arith.addf %20, %27 : vector<64x128xf32>
    %c2_30 = arith.constant 2 : index
    %c0_31 = arith.constant 0 : index
    %c0_32 = arith.constant 0 : index
    %c0_33 = arith.constant 0 : index
    %29 = vector.load %arg12[%c2_30, %c0_31, %c0_32, %c0_33] : memref<4x9x9x128xf32, #tpu.memory_space<vmem>>, vector<1x8x8x128xf32>
    %30 = vector.shape_cast %29 : vector<1x8x8x128xf32> to vector<8x8x128xf32>
    %31 = vector.shape_cast %30 : vector<8x8x128xf32> to vector<64x128xf32>
    %32 = arith.truncf %31 : vector<64x128xf32> to vector<64x128xbf16>
    %c3 = arith.constant 3 : index
    %c0_34 = arith.constant 0 : index
    %c0_35 = arith.constant 0 : index
    %33 = vector.load %arg2[%c3, %c0_34, %c0_35] : memref<9x128x128xbf16, #tpu.memory_space<vmem>>, vector<1x128x128xbf16>
    %34 = vector.shape_cast %33 : vector<1x128x128xbf16> to vector<128x128xbf16>
    %cst_36 = arith.constant dense<0.000000e+00> : vector<64x128xf32>
    %35 = tpu.matmul %32, %34, %cst_36 {dimension_numbers = #tpu.dot_dimension_numbers<[1], [0], [0], [1], [0, 0, 1, 1], [], []>} : vector<64x128xbf16>, vector<128x128xbf16>, vector<64x128xf32> -> vector<64x128xf32>
    %36 = arith.addf %28, %35 : vector<64x128xf32>
    %c3_37 = arith.constant 3 : index
    %c0_38 = arith.constant 0 : index
    %c0_39 = arith.constant 0 : index
    %c0_40 = arith.constant 0 : index
    %37 = vector.load %arg12[%c3_37, %c0_38, %c0_39, %c0_40] : memref<4x9x9x128xf32, #tpu.memory_space<vmem>>, vector<1x8x8x128xf32>
    %38 = vector.shape_cast %37 : vector<1x8x8x128xf32> to vector<8x8x128xf32>
    %39 = vector.shape_cast %38 : vector<8x8x128xf32> to vector<64x128xf32>
    %40 = arith.truncf %39 : vector<64x128xf32> to vector<64x128xbf16>
    %c4 = arith.constant 4 : index
    %c0_41 = arith.constant 0 : index
    %c0_42 = arith.constant 0 : index
    %41 = vector.load %arg2[%c4, %c0_41, %c0_42] : memref<9x128x128xbf16, #tpu.memory_space<vmem>>, vector<1x128x128xbf16>
    %42 = vector.shape_cast %41 : vector<1x128x128xbf16> to vector<128x128xbf16>
    %cst_43 = arith.constant dense<0.000000e+00> : vector<64x128xf32>
    %43 = tpu.matmul %40, %42, %cst_43 {dimension_numbers = #tpu.dot_dimension_numbers<[1], [0], [0], [1], [0, 0, 1, 1], [], []>} : vector<64x128xbf16>, vector<128x128xbf16>, vector<64x128xf32> -> vector<64x128xf32>
    %44 = arith.addf %36, %43 : vector<64x128xf32>
    %c2_44 = arith.constant 2 : index
    %c0_45 = arith.constant 0 : index
    %c1_46 = arith.constant 1 : index
    %c0_47 = arith.constant 0 : index
    %45 = vector.load %arg12[%c2_44, %c0_45, %c1_46, %c0_47] : memref<4x9x9x128xf32, #tpu.memory_space<vmem>>, vector<1x8x8x128xf32>
    %46 = vector.shape_cast %45 : vector<1x8x8x128xf32> to vector<8x8x128xf32>
    %47 = vector.shape_cast %46 : vector<8x8x128xf32> to vector<64x128xf32>
    %48 = arith.truncf %47 : vector<64x128xf32> to vector<64x128xbf16>
    %c5 = arith.constant 5 : index
    %c0_48 = arith.constant 0 : index
    %c0_49 = arith.constant 0 : index
    %49 = vector.load %arg2[%c5, %c0_48, %c0_49] : memref<9x128x128xbf16, #tpu.memory_space<vmem>>, vector<1x128x128xbf16>
    %50 = vector.shape_cast %49 : vector<1x128x128xbf16> to vector<128x128xbf16>
    %cst_50 = arith.constant dense<0.000000e+00> : vector<64x128xf32>
    %51 = tpu.matmul %48, %50, %cst_50 {dimension_numbers = #tpu.dot_dimension_numbers<[1], [0], [0], [1], [0, 0, 1, 1], [], []>} : vector<64x128xbf16>, vector<128x128xbf16>, vector<64x128xf32> -> vector<64x128xf32>
    %52 = arith.addf %44, %51 : vector<64x128xf32>
    %c0_51 = arith.constant 0 : index
    %c1_52 = arith.constant 1 : index
    %c0_53 = arith.constant 0 : index
    %c0_54 = arith.constant 0 : index
    %53 = vector.load %arg12[%c0_51, %c1_52, %c0_53, %c0_54] : memref<4x9x9x128xf32, #tpu.memory_space<vmem>>, vector<1x8x8x128xf32>
    %54 = vector.shape_cast %53 : vector<1x8x8x128xf32> to vector<8x8x128xf32>
    %55 = vector.shape_cast %54 : vector<8x8x128xf32> to vector<64x128xf32>
    %56 = arith.truncf %55 : vector<64x128xf32> to vector<64x128xbf16>
    %c6 = arith.constant 6 : index
    %c0_55 = arith.constant 0 : index
    %c0_56 = arith.constant 0 : index
    %57 = vector.load %arg2[%c6, %c0_55, %c0_56] : memref<9x128x128xbf16, #tpu.memory_space<vmem>>, vector<1x128x128xbf16>
    %58 = vector.shape_cast %57 : vector<1x128x128xbf16> to vector<128x128xbf16>
    %cst_57 = arith.constant dense<0.000000e+00> : vector<64x128xf32>
    %59 = tpu.matmul %56, %58, %cst_57 {dimension_numbers = #tpu.dot_dimension_numbers<[1], [0], [0], [1], [0, 0, 1, 1], [], []>} : vector<64x128xbf16>, vector<128x128xbf16>, vector<64x128xf32> -> vector<64x128xf32>
    %60 = arith.addf %52, %59 : vector<64x128xf32>
    %c1_58 = arith.constant 1 : index
    %c1_59 = arith.constant 1 : index
    %c0_60 = arith.constant 0 : index
    %c0_61 = arith.constant 0 : index
    %61 = vector.load %arg12[%c1_58, %c1_59, %c0_60, %c0_61] : memref<4x9x9x128xf32, #tpu.memory_space<vmem>>, vector<1x8x8x128xf32>
    %62 = vector.shape_cast %61 : vector<1x8x8x128xf32> to vector<8x8x128xf32>
    %63 = vector.shape_cast %62 : vector<8x8x128xf32> to vector<64x128xf32>
    %64 = arith.truncf %63 : vector<64x128xf32> to vector<64x128xbf16>
    %c7 = arith.constant 7 : index
    %c0_62 = arith.constant 0 : index
    %c0_63 = arith.constant 0 : index
    %65 = vector.load %arg2[%c7, %c0_62, %c0_63] : memref<9x128x128xbf16, #tpu.memory_space<vmem>>, vector<1x128x128xbf16>
    %66 = vector.shape_cast %65 : vector<1x128x128xbf16> to vector<128x128xbf16>
    %cst_64 = arith.constant dense<0.000000e+00> : vector<64x128xf32>
    %67 = tpu.matmul %64, %66, %cst_64 {dimension_numbers = #tpu.dot_dimension_numbers<[1], [0], [0], [1], [0, 0, 1, 1], [], []>} : vector<64x128xbf16>, vector<128x128xbf16>, vector<64x128xf32> -> vector<64x128xf32>
    %68 = arith.addf %60, %67 : vector<64x128xf32>
    %c0_65 = arith.constant 0 : index
    %c1_66 = arith.constant 1 : index
    %c1_67 = arith.constant 1 : index
    %c0_68 = arith.constant 0 : index
    %69 = vector.load %arg12[%c0_65, %c1_66, %c1_67, %c0_68] : memref<4x9x9x128xf32, #tpu.memory_space<vmem>>, vector<1x8x8x128xf32>
    %70 = vector.shape_cast %69 : vector<1x8x8x128xf32> to vector<8x8x128xf32>
    %71 = vector.shape_cast %70 : vector<8x8x128xf32> to vector<64x128xf32>
    %72 = arith.truncf %71 : vector<64x128xf32> to vector<64x128xbf16>
    %c8 = arith.constant 8 : index
    %c0_69 = arith.constant 0 : index
    %c0_70 = arith.constant 0 : index
    %73 = vector.load %arg2[%c8, %c0_69, %c0_70] : memref<9x128x128xbf16, #tpu.memory_space<vmem>>, vector<1x128x128xbf16>
    %74 = vector.shape_cast %73 : vector<1x128x128xbf16> to vector<128x128xbf16>
    %cst_71 = arith.constant dense<0.000000e+00> : vector<64x128xf32>
    %75 = tpu.matmul %72, %74, %cst_71 {dimension_numbers = #tpu.dot_dimension_numbers<[1], [0], [0], [1], [0, 0, 1, 1], [], []>} : vector<64x128xbf16>, vector<128x128xbf16>, vector<64x128xf32> -> vector<64x128xf32>
    %76 = arith.addf %68, %75 : vector<64x128xf32>
    %c0_72 = arith.constant 0 : index
    %c0_73 = arith.constant 0 : index
    %77 = vector.load %arg3[%c0_72, %c0_73] : memref<1x128xf32, #tpu.memory_space<vmem>>, vector<1x128xf32>
    %78 = vector.broadcast %77 : vector<1x128xf32> to vector<64x128xf32>
    %79 = arith.addf %76, %78 : vector<64x128xf32>
    %cst_74 = arith.constant 0.000000e+00 : f32
    %80 = vector.broadcast %cst_74 : f32 to vector<64x128xf32>
    %81 = arith.maximumf %79, %80 : vector<64x128xf32>
    %cst_75 = arith.constant 0.000000e+00 : f32
    %82 = vector.broadcast %cst_75 : f32 to vector<10x18x128xf32>
    %c0_76 = arith.constant 0 : index
    %c0_77 = arith.constant 0 : index
    %c0_78 = arith.constant 0 : index
    %83 = vector.load %arg13[%c0_76, %c0_77, %c0_78] : memref<10x18x128xf32, #tpu.memory_space<vmem>>, vector<10x18x128xf32>
    tpu.vector_store %arg13[%c0_76, %c0_77, %c0_78], %82 {strides = array<i32>} : memref<10x18x128xf32, #tpu.memory_space<vmem>>, vector<10x18x128xf32>,
    %84 = vector.shape_cast %81 : vector<64x128xf32> to vector<8x8x128xf32>
    %c1_79 = arith.constant 1 : index
    %c8_80 = arith.constant 8 : index
    %c0_81 = arith.constant 0 : index
    %85 = vector.load %arg13[%c1_79, %c8_80, %c0_81] : memref<10x18x128xf32, #tpu.memory_space<vmem>>, vector<8x8x128xf32>
    tpu.vector_store %arg13[%c1_79, %c8_80, %c0_81], %84 {strides = array<i32>} : memref<10x18x128xf32, #tpu.memory_space<vmem>>, vector<8x8x128xf32>,
    %cst_82 = arith.constant 0.000000e+00 : f32
    %86 = vector.broadcast %cst_82 : f32 to vector<64x128xf32>
    %c0_83 = arith.constant 0 : index
    %c7_84 = arith.constant 7 : index
    %c0_85 = arith.constant 0 : index
    %87 = vector.load %arg13[%c0_83, %c7_84, %c0_85] : memref<10x18x128xf32, #tpu.memory_space<vmem>>, vector<8x8x128xf32>
    %88 = vector.shape_cast %87 : vector<8x8x128xf32> to vector<64x128xf32>
    %89 = arith.truncf %88 : vector<64x128xf32> to vector<64x128xbf16>
    %c0_86 = arith.constant 0 : index
    %c0_87 = arith.constant 0 : index
    %c0_88 = arith.constant 0 : index
    %90 = vector.load %arg4[%c0_86, %c0_87, %c0_88] : memref<9x128x128xbf16, #tpu.memory_space<vmem>>, vector<1x128x128xbf16>
    %91 = vector.shape_cast %90 : vector<1x128x128xbf16> to vector<128x128xbf16>
    %cst_89 = arith.constant dense<0.000000e+00> : vector<64x128xf32>
    %92 = tpu.matmul %89, %91, %cst_89 {dimension_numbers = #tpu.dot_dimension_numbers<[1], [0], [0], [1], [0, 0, 1, 1], [], []>} : vector<64x128xbf16>, vector<128x128xbf16>, vector<64x128xf32> -> vector<64x128xf32>
    %93 = arith.addf %86, %92 : vector<64x128xf32>
    %c0_90 = arith.constant 0 : index
    %c8_91 = arith.constant 8 : index
    %c0_92 = arith.constant 0 : index
    %94 = vector.load %arg13[%c0_90, %c8_91, %c0_92] : memref<10x18x128xf32, #tpu.memory_space<vmem>>, vector<8x8x128xf32>
    %95 = vector.shape_cast %94 : vector<8x8x128xf32> to vector<64x128xf32>
    %96 = arith.truncf %95 : vector<64x128xf32> to vector<64x128xbf16>
    %c1_93 = arith.constant 1 : index
    %c0_94 = arith.constant 0 : index
    %c0_95 = arith.constant 0 : index
    %97 = vector.load %arg4[%c1_93, %c0_94, %c0_95] : memref<9x128x128xbf16, #tpu.memory_space<vmem>>, vector<1x128x128xbf16>
    %98 = vector.shape_cast %97 : vector<1x128x128xbf16> to vector<128x128xbf16>
    %cst_96 = arith.constant dense<0.000000e+00> : vector<64x128xf32>
    %99 = tpu.matmul %96, %98, %cst_96 {dimension_numbers = #tpu.dot_dimension_numbers<[1], [0], [0], [1], [0, 0, 1, 1], [], []>} : vector<64x128xbf16>, vector<128x128xbf16>, vector<64x128xf32> -> vector<64x128xf32>
    %100 = arith.addf %93, %99 : vector<64x128xf32>
    %c0_97 = arith.constant 0 : index
    %c9 = arith.constant 9 : index
    %c0_98 = arith.constant 0 : index
    %101 = vector.load %arg13[%c0_97, %c9, %c0_98] : memref<10x18x128xf32, #tpu.memory_space<vmem>>, vector<8x8x128xf32>
    %102 = vector.shape_cast %101 : vector<8x8x128xf32> to vector<64x128xf32>
    %103 = arith.truncf %102 : vector<64x128xf32> to vector<64x128xbf16>
    %c2_99 = arith.constant 2 : index
    %c0_100 = arith.constant 0 : index
    %c0_101 = arith.constant 0 : index
    %104 = vector.load %arg4[%c2_99, %c0_100, %c0_101] : memref<9x128x128xbf16, #tpu.memory_space<vmem>>, vector<1x128x128xbf16>
    %105 = vector.shape_cast %104 : vector<1x128x128xbf16> to vector<128x128xbf16>
    %cst_102 = arith.constant dense<0.000000e+00> : vector<64x128xf32>
    %106 = tpu.matmul %103, %105, %cst_102 {dimension_numbers = #tpu.dot_dimension_numbers<[1], [0], [0], [1], [0, 0, 1, 1], [], []>} : vector<64x128xbf16>, vector<128x128xbf16>, vector<64x128xf32> -> vector<64x128xf32>
    %107 = arith.addf %100, %106 : vector<64x128xf32>
    %c1_103 = arith.constant 1 : index
    %c7_104 = arith.constant 7 : index
    %c0_105 = arith.constant 0 : index
    %108 = vector.load %arg13[%c1_103, %c7_104, %c0_105] : memref<10x18x128xf32, #tpu.memory_space<vmem>>, vector<8x8x128xf32>
    %109 = vector.shape_cast %108 : vector<8x8x128xf32> to vector<64x128xf32>
    %110 = arith.truncf %109 : vector<64x128xf32> to vector<64x128xbf16>
    %c3_106 = arith.constant 3 : index
    %c0_107 = arith.constant 0 : index
    %c0_108 = arith.constant 0 : index
    %111 = vector.load %arg4[%c3_106, %c0_107, %c0_108] : memref<9x128x128xbf16, #tpu.memory_space<vmem>>, vector<1x128x128xbf16>
    %112 = vector.shape_cast %111 : vector<1x128x128xbf16> to vector<128x128xbf16>
    %cst_109 = arith.constant dense<0.000000e+00> : vector<64x128xf32>
    %113 = tpu.matmul %110, %112, %cst_109 {dimension_numbers = #tpu.dot_dimension_numbers<[1], [0], [0], [1], [0, 0, 1, 1], [], []>} : vector<64x128xbf16>, vector<128x128xbf16>, vector<64x128xf32> -> vector<64x128xf32>
    %114 = arith.addf %107, %113 : vector<64x128xf32>
    %c1_110 = arith.constant 1 : index
    %c8_111 = arith.constant 8 : index
    %c0_112 = arith.constant 0 : index
    %115 = vector.load %arg13[%c1_110, %c8_111, %c0_112] : memref<10x18x128xf32, #tpu.memory_space<vmem>>, vector<8x8x128xf32>
    %116 = vector.shape_cast %115 : vector<8x8x128xf32> to vector<64x128xf32>
    %117 = arith.truncf %116 : vector<64x128xf32> to vector<64x128xbf16>
    %c4_113 = arith.constant 4 : index
    %c0_114 = arith.constant 0 : index
    %c0_115 = arith.constant 0 : index
    %118 = vector.load %arg4[%c4_113, %c0_114, %c0_115] : memref<9x128x128xbf16, #tpu.memory_space<vmem>>, vector<1x128x128xbf16>
    %119 = vector.shape_cast %118 : vector<1x128x128xbf16> to vector<128x128xbf16>
    %cst_116 = arith.constant dense<0.000000e+00> : vector<64x128xf32>
    %120 = tpu.matmul %117, %119, %cst_116 {dimension_numbers = #tpu.dot_dimension_numbers<[1], [0], [0], [1], [0, 0, 1, 1], [], []>} : vector<64x128xbf16>, vector<128x128xbf16>, vector<64x128xf32> -> vector<64x128xf32>
    %121 = arith.addf %114, %120 : vector<64x128xf32>
    %c1_117 = arith.constant 1 : index
    %c9_118 = arith.constant 9 : index
    %c0_119 = arith.constant 0 : index
    %122 = vector.load %arg13[%c1_117, %c9_118, %c0_119] : memref<10x18x128xf32, #tpu.memory_space<vmem>>, vector<8x8x128xf32>
    %123 = vector.shape_cast %122 : vector<8x8x128xf32> to vector<64x128xf32>
    %124 = arith.truncf %123 : vector<64x128xf32> to vector<64x128xbf16>
    %c5_120 = arith.constant 5 : index
    %c0_121 = arith.constant 0 : index
    %c0_122 = arith.constant 0 : index
    %125 = vector.load %arg4[%c5_120, %c0_121, %c0_122] : memref<9x128x128xbf16, #tpu.memory_space<vmem>>, vector<1x128x128xbf16>
    %126 = vector.shape_cast %125 : vector<1x128x128xbf16> to vector<128x128xbf16>
    %cst_123 = arith.constant dense<0.000000e+00> : vector<64x128xf32>
    %127 = tpu.matmul %124, %126, %cst_123 {dimension_numbers = #tpu.dot_dimension_numbers<[1], [0], [0], [1], [0, 0, 1, 1], [], []>} : vector<64x128xbf16>, vector<128x128xbf16>, vector<64x128xf32> -> vector<64x128xf32>
    %128 = arith.addf %121, %127 : vector<64x128xf32>
    %c2_124 = arith.constant 2 : index
    %c7_125 = arith.constant 7 : index
    %c0_126 = arith.constant 0 : index
    %129 = vector.load %arg13[%c2_124, %c7_125, %c0_126] : memref<10x18x128xf32, #tpu.memory_space<vmem>>, vector<8x8x128xf32>
    %130 = vector.shape_cast %129 : vector<8x8x128xf32> to vector<64x128xf32>
    %131 = arith.truncf %130 : vector<64x128xf32> to vector<64x128xbf16>
    %c6_127 = arith.constant 6 : index
    %c0_128 = arith.constant 0 : index
    %c0_129 = arith.constant 0 : index
    %132 = vector.load %arg4[%c6_127, %c0_128, %c0_129] : memref<9x128x128xbf16, #tpu.memory_space<vmem>>, vector<1x128x128xbf16>
    %133 = vector.shape_cast %132 : vector<1x128x128xbf16> to vector<128x128xbf16>
    %cst_130 = arith.constant dense<0.000000e+00> : vector<64x128xf32>
    %134 = tpu.matmul %131, %133, %cst_130 {dimension_numbers = #tpu.dot_dimension_numbers<[1], [0], [0], [1], [0, 0, 1, 1], [], []>} : vector<64x128xbf16>, vector<128x128xbf16>, vector<64x128xf32> -> vector<64x128xf32>
    %135 = arith.addf %128, %134 : vector<64x128xf32>
    %c2_131 = arith.constant 2 : index
    %c8_132 = arith.constant 8 : index
    %c0_133 = arith.constant 0 : index
    %136 = vector.load %arg13[%c2_131, %c8_132, %c0_133] : memref<10x18x128xf32, #tpu.memory_space<vmem>>, vector<8x8x128xf32>
    %137 = vector.shape_cast %136 : vector<8x8x128xf32> to vector<64x128xf32>
    %138 = arith.truncf %137 : vector<64x128xf32> to vector<64x128xbf16>
    %c7_134 = arith.constant 7 : index
    %c0_135 = arith.constant 0 : index
    %c0_136 = arith.constant 0 : index
    %139 = vector.load %arg4[%c7_134, %c0_135, %c0_136] : memref<9x128x128xbf16, #tpu.memory_space<vmem>>, vector<1x128x128xbf16>
    %140 = vector.shape_cast %139 : vector<1x128x128xbf16> to vector<128x128xbf16>
    %cst_137 = arith.constant dense<0.000000e+00> : vector<64x128xf32>
    %141 = tpu.matmul %138, %140, %cst_137 {dimension_numbers = #tpu.dot_dimension_numbers<[1], [0], [0], [1], [0, 0, 1, 1], [], []>} : vector<64x128xbf16>, vector<128x128xbf16>, vector<64x128xf32> -> vector<64x128xf32>
    %142 = arith.addf %135, %141 : vector<64x128xf32>
    %c2_138 = arith.constant 2 : index
    %c9_139 = arith.constant 9 : index
    %c0_140 = arith.constant 0 : index
    %143 = vector.load %arg13[%c2_138, %c9_139, %c0_140] : memref<10x18x128xf32, #tpu.memory_space<vmem>>, vector<8x8x128xf32>
    %144 = vector.shape_cast %143 : vector<8x8x128xf32> to vector<64x128xf32>
    %145 = arith.truncf %144 : vector<64x128xf32> to vector<64x128xbf16>
    %c8_141 = arith.constant 8 : index
    %c0_142 = arith.constant 0 : index
    %c0_143 = arith.constant 0 : index
    %146 = vector.load %arg4[%c8_141, %c0_142, %c0_143] : memref<9x128x128xbf16, #tpu.memory_space<vmem>>, vector<1x128x128xbf16>
    %147 = vector.shape_cast %146 : vector<1x128x128xbf16> to vector<128x128xbf16>
    %cst_144 = arith.constant dense<0.000000e+00> : vector<64x128xf32>
    %148 = tpu.matmul %145, %147, %cst_144 {dimension_numbers = #tpu.dot_dimension_numbers<[1], [0], [0], [1], [0, 0, 1, 1], [], []>} : vector<64x128xbf16>, vector<128x128xbf16>, vector<64x128xf32> -> vector<64x128xf32>
    %149 = arith.addf %142, %148 : vector<64x128xf32>
    %c0_145 = arith.constant 0 : index
    %c0_146 = arith.constant 0 : index
    %150 = vector.load %arg5[%c0_145, %c0_146] : memref<1x128xf32, #tpu.memory_space<vmem>>, vector<1x128xf32>
    %151 = vector.broadcast %150 : vector<1x128xf32> to vector<64x128xf32>
    %152 = arith.addf %149, %151 : vector<64x128xf32>
    %c3_147 = arith.constant 3 : index
    %c0_148 = arith.constant 0 : index
    %c0_149 = arith.constant 0 : index
    %c0_150 = arith.constant 0 : index
    %153 = vector.load %arg12[%c3_147, %c0_148, %c0_149, %c0_150] : memref<4x9x9x128xf32, #tpu.memory_space<vmem>>, vector<1x8x8x128xf32>
    %154 = vector.shape_cast %153 : vector<1x8x8x128xf32> to vector<8x8x128xf32>
    %155 = vector.shape_cast %154 : vector<8x8x128xf32> to vector<64x128xf32>
    %156 = arith.truncf %155 : vector<64x128xf32> to vector<64x128xbf16>
    %c0_151 = arith.constant 0 : index
    %c0_152 = arith.constant 0 : index
    %157 = vector.load %arg6[%c0_151, %c0_152] : memref<128x128xbf16, #tpu.memory_space<vmem>>, vector<128x128xbf16>
    %cst_153 = arith.constant dense<0.000000e+00> : vector<64x128xf32>
    %158 = tpu.matmul %156, %157, %cst_153 {dimension_numbers = #tpu.dot_dimension_numbers<[1], [0], [0], [1], [0, 0, 1, 1], [], []>} : vector<64x128xbf16>, vector<128x128xbf16>, vector<64x128xf32> -> vector<64x128xf32>
    %c0_154 = arith.constant 0 : index
    %c0_155 = arith.constant 0 : index
    %159 = vector.load %arg7[%c0_154, %c0_155] : memref<1x128xf32, #tpu.memory_space<vmem>>, vector<1x128xf32>
    %160 = vector.broadcast %159 : vector<1x128xf32> to vector<64x128xf32>
    %161 = arith.addf %158, %160 : vector<64x128xf32>
    %162 = arith.addf %152, %161 : vector<64x128xf32>
    %cst_156 = arith.constant 0.000000e+00 : f32
    %163 = vector.broadcast %cst_156 : f32 to vector<64x128xf32>
    %164 = arith.maximumf %162, %163 : vector<64x128xf32>
    %165 = vector.shape_cast %164 : vector<64x128xf32> to vector<8x8x128xf32>
    %166 = arith.truncf %165 : vector<8x8x128xf32> to vector<8x8x128xbf16>
    %c0_157 = arith.constant 0 : index
    %c0_158 = arith.constant 0 : index
    %c0_159 = arith.constant 0 : index
    %c0_160 = arith.constant 0 : index
    %167 = vector.load %arg10[%c0_157, %c0_158, %c0_159, %c0_160] : memref<1x8x8x128xbf16, #tpu.memory_space<vmem>>, vector<1x8x8x128xbf16>
    %168 = vector.shape_cast %167 : vector<1x8x8x128xbf16> to vector<8x8x128xbf16>
    %169 = vector.shape_cast %166 : vector<8x8x128xbf16> to vector<1x8x8x128xbf16>
    tpu.vector_store %arg10[%c0_157, %c0_158, %c0_159, %c0_160], %169 {strides = array<i32>} : memref<1x8x8x128xbf16, #tpu.memory_space<vmem>>, vector<1x8x8x128xbf16>,
    %cst_161 = arith.constant dense<0.000000e+00> : vector<128xf32>
    %170 = vector.multi_reduction <add>, %164, %cst_161 [0] : vector<64x128xf32> to vector<128xf32>
    %171 = vector.shape_cast %170 : vector<128xf32> to vector<1x128xf32>
    %cst_162 = arith.constant 1.562500e-02 : f32
    %172 = vector.broadcast %cst_162 : f32 to vector<1x128xf32>
    %173 = arith.mulf %171, %172 : vector<1x128xf32>
    %c0_163 = arith.constant 0 : index
    %c0_164 = arith.constant 0 : index
    %174 = vector.load %arg8[%c0_163, %c0_164] : memref<128x128xf32, #tpu.memory_space<vmem>>, vector<128x128xf32>
    %cst_165 = arith.constant dense<0.000000e+00> : vector<1x128xf32>
    %175 = tpu.matmul %173, %174, %cst_165 {dimension_numbers = #tpu.dot_dimension_numbers<[1], [0], [0], [1], [0, 0, 1, 1], [], []>} : vector<1x128xf32>, vector<128x128xf32>, vector<1x128xf32> -> vector<1x128xf32>
    %c0_166 = arith.constant 0 : index
    %c0_167 = arith.constant 0 : index
    %176 = vector.load %arg9[%c0_166, %c0_167] : memref<1x128xf32, #tpu.memory_space<vmem>>, vector<1x128xf32>
    %177 = arith.addf %175, %176 : vector<1x128xf32>
    %178 = vector.shape_cast %177 : vector<1x128xf32> to vector<1x128xf32>
    %179 = vector.broadcast %178 : vector<1x128xf32> to vector<8x128xf32>
    %c0_168 = arith.constant 0 : index
    %c0_169 = arith.constant 0 : index
    %c0_170 = arith.constant 0 : index
    %180 = vector.load %arg11[%c0_168, %c0_169, %c0_170] : memref<1x8x128xf32, #tpu.memory_space<vmem>>, vector<1x8x128xf32>
    %181 = vector.shape_cast %180 : vector<1x8x128xf32> to vector<8x128xf32>
    %182 = vector.shape_cast %179 : vector<8x128xf32> to vector<1x8x128xf32>
    tpu.vector_store %arg11[%c0_168, %c0_169, %c0_170], %182 {strides = array<i32>} : memref<1x8x128xf32, #tpu.memory_space<vmem>>, vector<1x8x128xf32>,
    return
  }
  func.func @transform_0(%arg0: i32) -> (i32, i32, i32, i32, i32) {
    %c0_i32 = arith.constant 0 : i32
    %c0_i32_0 = arith.constant 0 : i32
    %c0_i32_1 = arith.constant 0 : i32
    %c0_i32_2 = arith.constant 0 : i32
    %c0_i32_3 = arith.constant 0 : i32
    return %arg0, %c0_i32, %c0_i32_0, %c0_i32_1, %c0_i32_2 : i32, i32, i32, i32, i32
  }
  func.func @transform_1(%arg0: i32) -> (i32, i32, i32) {
    %c0_i32 = arith.constant 0 : i32
    %c0_i32_0 = arith.constant 0 : i32
    %c0_i32_1 = arith.constant 0 : i32
    %c0_i32_2 = arith.constant 0 : i32
    return %c0_i32, %c0_i32_0, %c0_i32_1 : i32, i32, i32
  }
  func.func @transform_2(%arg0: i32) -> (i32, i32) {
    %c0_i32 = arith.constant 0 : i32
    %c0_i32_0 = arith.constant 0 : i32
    %c0_i32_1 = arith.constant 0 : i32
    return %c0_i32, %c0_i32_0 : i32, i32
  }
  func.func @transform_3(%arg0: i32) -> (i32, i32, i32) {
    %c0_i32 = arith.constant 0 : i32
    %c0_i32_0 = arith.constant 0 : i32
    %c0_i32_1 = arith.constant 0 : i32
    %c0_i32_2 = arith.constant 0 : i32
    return %c0_i32, %c0_i32_0, %c0_i32_1 : i32, i32, i32
  }
  func.func @transform_4(%arg0: i32) -> (i32, i32) {
    %c0_i32 = arith.constant 0 : i32
    %c0_i32_0 = arith.constant 0 : i32
    %c0_i32_1 = arith.constant 0 : i32
    return %c0_i32, %c0_i32_0 : i32, i32
  }
  func.func @transform_5(%arg0: i32) -> (i32, i32) {
    %c0_i32 = arith.constant 0 : i32
    %c0_i32_0 = arith.constant 0 : i32
    %c0_i32_1 = arith.constant 0 : i32
    return %c0_i32, %c0_i32_0 : i32, i32
  }
  func.func @transform_6(%arg0: i32) -> (i32, i32) {
    %c0_i32 = arith.constant 0 : i32
    %c0_i32_0 = arith.constant 0 : i32
    %c0_i32_1 = arith.constant 0 : i32
    return %c0_i32, %c0_i32_0 : i32, i32
  }
  func.func @transform_7(%arg0: i32) -> (i32, i32) {
    %c0_i32 = arith.constant 0 : i32
    %c0_i32_0 = arith.constant 0 : i32
    %c0_i32_1 = arith.constant 0 : i32
    return %c0_i32, %c0_i32_0 : i32, i32
  }
  func.func @transform_8(%arg0: i32) -> (i32, i32) {
    %c0_i32 = arith.constant 0 : i32
    %c0_i32_0 = arith.constant 0 : i32
    %c0_i32_1 = arith.constant 0 : i32
    return %c0_i32, %c0_i32_0 : i32, i32
  }
  func.func @transform_9(%arg0: i32) -> (i32, i32, i32, i32) {
    %c0_i32 = arith.constant 0 : i32
    %c0_i32_0 = arith.constant 0 : i32
    %c0_i32_1 = arith.constant 0 : i32
    %c0_i32_2 = arith.constant 0 : i32
    return %arg0, %c0_i32, %c0_i32_0, %c0_i32_1 : i32, i32, i32, i32
  }
  func.func @transform_10(%arg0: i32) -> (i32, i32, i32) {
    %c0_i32 = arith.constant 0 : i32
    %c0_i32_0 = arith.constant 0 : i32
    %c0_i32_1 = arith.constant 0 : i32
    return %arg0, %c0_i32, %c0_i32_0 : i32, i32, i32
  }
}

</mosaic_0001>

<bundles_post_ra>
// kernel: scat_resnet_forward.3
= control target key start
LH: loop header
LB: loop body
LE: loop exit
PB: predicated region body
PF: predicated region fallthrough
CT: control target
= control target key end

     0   :  { %s4772_s12 = smov 0   ;;  %s5307_s0 = inlined_call_operand.vmem [shape: bf16[2,18,18,128], index: 0, kind: input, shape index: {}]   ;;  %s5308_s1 = inlined_call_operand.vmem [shape: bf16[9,128,128], index: 1, kind: input, shape index: {}]   ;;  %s5309_s2 = inlined_call_operand.vmem [shape: f32[1,128], index: 2, kind: input, shape index: {}]   ;;  %s5310_s3 = inlined_call_operand.vmem [shape: bf16[2,16,16,128], index: 3, kind: output, shape index: {}]  }
   0x1 LB: > { %s3311_s13 = sadd.s32 4294967295, %s4750_s12   ;;  %p3315_p0 = scmp.ge.s32.totalorder %s4750_s12, 1  ;;  %s4750_s12 = sphi %s4772_s12, %s13_s12  }
   0x2   : > { %p137_p1 = scmp.lt.s32.totalorder %s4750_s12, 3 }
   0x4   : > { %p138_p2 = pnand %p3315_p0, %p137_p1 }
   0x5   : > { %v4655_v0 = vld [vmem:[%s5308_s1 + $0x40] sm:$0xff] (!%p138_p2)   ;;  %p161_p3 = scmp.lt.s32.totalorder (!%p138_p2), %s3311_s13, 1  ;;  %v4657_v2 = vld [vmem:[%s5308_s1 + $0x48] sm:$0xff] (!%p138_p2)   ;;  %v4659_v4 = vld [vmem:[%s5308_s1 + $0x50] sm:$0xff] (!%p138_p2)  }
   0x6   : > { %141 = sbr.rel (%p138_p2) target bundleno = 543 (0x21f), region = 32  ;;  %v4656_v1 = vld [vmem:[%s5308_s1 + $0x100] sm:$0xff] (!%p138_p2)   ;;  %3942 = vmatprep.subr.bf16.mxu1 (!%p138_p2), %v4655_v0  ;;  %v4658_v3 = vld [vmem:[%s5308_s1 + $0x108] sm:$0xff] (!%p138_p2)   ;;  %v4660_v5 = vld [vmem:[%s5308_s1 + $0x110] sm:$0xff] (!%p138_p2)  }
   0x7   : > { %4134 = vmatprep.subr.bf16.mxu0 (!%p138_p2), %v4656_v1  ;;  %3943 = vmatpush3.bf16.msra.mxu1 (!%p138_p2), %v4655_v0  ;;  %v4661_v6 = vld [vmem:[%s5308_s1 + $0x58] sm:$0xff] (!%p138_p2)   ;;  %v4663_v8 = vld [vmem:[%s5308_s1 + $0x60] sm:$0xff] (!%p138_p2)   ;;  %v4665_v10 = vld [vmem:[%s5308_s1 + $0x68] sm:$0xff] (!%p138_p2)  }
   0x8   : > { %4135 = vmatpush3.bf16.msra.mxu0 (!%p138_p2), %v4656_v1  ;;  %3944 = vmatprep.subr.bf16.mxu1 (!%p138_p2), %v4657_v2  ;;  %v4662_v7 = vld [vmem:[%s5308_s1 + $0x118] sm:$0xff] (!%p138_p2)   ;;  %v4664_v9 = vld [vmem:[%s5308_s1 + $0x120] sm:$0xff] (!%p138_p2)   ;;  %v4666_v11 = vld [vmem:[%s5308_s1 + $0x128] sm:$0xff] (!%p138_p2)  }
   0x9   : > { %4136 = vmatprep.subr.bf16.mxu0 (!%p138_p2), %v4658_v3  ;;  %v4667_v24 = vld [vmem:[%s5308_s1 + $0x70] sm:$0xff] (!%p138_p2)   ;;  %v4669_v38 = vld [vmem:[%s5308_s1 + $0x78] sm:$0xff] (!%p138_p2)   ;;  %v4671_v45 = vld [vmem:[%s5308_s1] sm:$0xff] (!%p138_p2)  }
   0xa   : > { %v4668_v28 = vld [vmem:[%s5308_s1 + $0x130] sm:$0xff] (!%p138_p2)   ;;  %v4670_v40 = vld [vmem:[%s5308_s1 + $0x138] sm:$0xff] (!%p138_p2)   ;;  %v4672_v55 = vld [vmem:[%s5308_s1 + $0x140] sm:$0xff] (!%p138_p2)  }
   0xb   : > { %3945 = vmatpush3.bf16.msra.mxu1 (!%p138_p2), %v4657_v2  ;;  %v4673_v0 = vld [vmem:[%s5308_s1 + $0x148] sm:$0xff] (!%p138_p2)  }
   0xc   : > { %4137 = vmatpush3.bf16.msra.mxu0 (!%p138_p2), %v4658_v3  ;;  %3946 = vmatprep.subr.bf16.mxu1 (!%p138_p2), %v4659_v4  ;;  %v4674_v3 = vld [vmem:[%s5308_s1 + $0x8] sm:$0xff] (!%p138_p2)  }
   0xd   : > { %s5312_s13 = smov (!%p161_p3, %s3311_s13), 1  ;;  %4138 = vmatprep.subr.bf16.mxu0 %v4660_v5 }
   0xe   : > { %s4646_s30 = smul.u32 216, %s5312_s13  ;;  %s3554_s6 = sshll.u32 %s5312_s13, 7 }
   0xf   : > { %3947 = vmatpush3.bf16.msra.mxu1 %v4659_v4  ;;  %s5254_s9 = scalar_lea.vmem %s5310_s3, %s3554_s6 }
  0x10   : > { %4139 = vmatpush3.bf16.msra.mxu0 %v4660_v5  ;;  %3948 = vmatprep.subr.bf16.mxu1 %v4661_v6  ;;  %s4816_s10 = scalar_lea.vmem %s5307_s0, %s4646_s30 }
  0x11   : > { %4140 = vmatprep.subr.bf16.mxu0 %v4662_v7  ;;  %v3588_v12 = vld [vmem:[%s4816_s10] sm:$0xff]   ;;  %v174_v13 = vld [vmem:[%s4816_s10 + $0x8] sm:$0x1]  ;;  %v4827_v14 = vld [vmem:[%s4816_s10 + $0xc] sm:$0xff]  }
  0x12   : > { %v3589_v15 = vunpack.c.l.bf16 %v3588_v12  ;;  %v3590_v16 = vunpack.c.h.bf16 %v3588_v12  ;;  %v228_v17 = vunpack.c.l.bf16 %v174_v13  ;;  %v177_v18 = vld [vmem:[%s4816_s10 + $0x14] sm:$0x1]  ;;  %v229_v19 = vunpack.c.l.bf16 %v4827_v14  ;;  %v3703_v22 = vld [vmem:[%s4816_s10 + $0x18] sm:$0xff]   ;;  %v180_v23 = vld [vmem:[%s4816_s10 + $0x20] sm:$0x1] }
  0x13   : > { %3949 = vmatpush3.bf16.msra.mxu1 %v4661_v6  ;;  %v230_v20 = vunpack.c.h.bf16 %v4827_v14  ;;  %v231_v21 = vunpack.c.l.bf16 %v177_v18  ;;  %v3593_v25 = vunpack.c.l.bf16 %v3703_v22  ;;  %v3594_v26 = vunpack.c.h.bf16 %v3703_v22  ;;  %v4841_v29 = vld [vmem:[%s4816_s10 + $0x24] sm:$0xff]   ;;  %v183_v30 = vld [vmem:[%s4816_s10 + $0x2c] sm:$0x1]  ;;  %v3704_v34 = vld [vmem:[%s4816_s10 + $0x30] sm:$0xff]  }
  0x14   : > { %4141 = vmatpush3.bf16.msra.mxu0 %v4662_v7  ;;  %3950 = vmatprep.subr.bf16.mxu1 %v4663_v8  ;;  %280 = vst [vmem:[#allocation2] sm:$0xff] %v3589_v15  ;;  %281 = vst [vmem:[#allocation2 + $0x8] sm:$0xff] %v3590_v16  ;;  %v234_v27 = vunpack.c.l.bf16 %v180_v23  ;;  %v235_v31 = vunpack.c.l.bf16 %v4841_v29  ;;  %v236_v32 = vunpack.c.h.bf16 %v4841_v29  ;;  %v237_v33 = vunpack.c.l.bf16 %v183_v30  ;;  %v186_v37 = vld [vmem:[%s4816_s10 + $0x38] sm:$0x1]  ;;  %v4855_v41 = vld [vmem:[%s4816_s10 + $0x3c] sm:$0xff]  }
  0x15   : > { %4142 = vmatprep.subr.bf16.mxu0 %v4664_v9  ;;  %282 = vst [vmem:[#allocation2 + $0x10] sm:$0x3] %v228_v17  ;;  %283 = vst [vmem:[#allocation2 + $0x18] sm:$0xff] %v229_v19  ;;  %v3597_v35 = vunpack.c.l.bf16 %v3704_v34  ;;  %v3598_v36 = vunpack.c.h.bf16 %v3704_v34  ;;  %v240_v39 = vunpack.c.l.bf16 %v186_v37  ;;  %v189_v42 = vld [vmem:[%s4816_s10 + $0x44] sm:$0x1]  ;;  %v241_v46 = vunpack.c.l.bf16 %v4855_v41  ;;  %v3705_v56 = vld [vmem:[%s4816_s10 + $0x48] sm:$0xff]  }
  0x16   : > { %284 = vst [vmem:[#allocation2 + $0x20] sm:$0xff] %v230_v20  ;;  %285 = vst [vmem:[#allocation2 + $0x28] sm:$0x3] %v231_v21  ;;  %v242_v47 = vunpack.c.h.bf16 %v4855_v41  ;;  %v243_v48 = vunpack.c.l.bf16 %v189_v42  ;;  %v192_v57 = vld [vmem:[%s4816_s10 + $0x50] sm:$0x1]  ;;  %v3601_v58 = vunpack.c.l.bf16 %v3705_v56  ;;  %v3602_v59 = vunpack.c.h.bf16 %v3705_v56  ;;  %v4872_v1 = vld [vmem:[%s4816_s10 + $0x54] sm:$0xff]  }
  0x17   : > { %3951 = vmatpush3.bf16.msra.mxu1 %v4663_v8  ;;  %286 = vst [vmem:[#allocation2 + $0x30] sm:$0xff] %v3593_v25  ;;  %287 = vst [vmem:[#allocation2 + $0x38] sm:$0xff] %v3594_v26  ;;  %v246_v60 = vunpack.c.l.bf16 %v192_v57  ;;  %v195_v4 = vld [vmem:[%s4816_s10 + $0x5c] sm:$0x1]  ;;  %v247_v5 = vunpack.c.l.bf16 %v4872_v1  ;;  %v248_v6 = vunpack.c.h.bf16 %v4872_v1  ;;  %v4677_v7 = vld [vmem:[%s5308_s1 + $0x10] sm:$0xff]  }
  0x18   : > { %4143 = vmatpush3.bf16.msra.mxu0 %v4664_v9  ;;  %3952 = vmatprep.subr.bf16.mxu1 %v4665_v10  ;;  %288 = vst [vmem:[#allocation2 + $0x40] sm:$0x3] %v234_v27  ;;  %289 = vst [vmem:[#allocation2 + $0x48] sm:$0xff] %v235_v31  ;;  %v249_v8 = vunpack.c.l.bf16 %v195_v4  ;;  %v3706_v9 = vld [vmem:[%s4816_s10 + $0x60] sm:$0xff]   ;;  %v4675_v12 = vld [vmem:[%s5308_s1 + $0x150] sm:$0xff]  }
  0x19   : > { %4144 = vmatprep.subr.bf16.mxu0 %v4666_v11  ;;  %290 = vst [vmem:[#allocation2 + $0x50] sm:$0xff] %v236_v32  ;;  %291 = vst [vmem:[#allocation2 + $0x58] sm:$0x3] %v237_v33  ;;  %v3605_v13 = vunpack.c.l.bf16 %v3706_v9  ;;  %v3606_v15 = vunpack.c.h.bf16 %v3706_v9  ;;  %v198_v16 = vld [vmem:[%s4816_s10 + $0x68] sm:$0x1]  ;;  %v4889_v20 = vld [vmem:[%s4816_s10 + $0x6c] sm:$0xff]  }
  0x1a   : > { %292 = vst [vmem:[#allocation2 + $0x60] sm:$0xff] %v3597_v35  ;;  %293 = vst [vmem:[#allocation2 + $0x68] sm:$0xff] %v3598_v36  ;;  %v252_v18 = vunpack.c.l.bf16 %v198_v16  ;;  %v201_v22 = vld [vmem:[%s4816_s10 + $0x74] sm:$0x1]  ;;  %v253_v23 = vunpack.c.l.bf16 %v4889_v20  ;;  %v4676_v27 = vld [vmem:[%s5308_s1 + $0x158] sm:$0xff]  }
  0x1b   : > { %3953 = vmatpush3.bf16.msra.mxu1 %v4665_v10  ;;  %v398_v43 = vld [vmem:[#allocation2 + $0x1] sm:$0xff]  ;;  %294 = vst [vmem:[#allocation2 + $0x70] sm:$0x3] %v240_v39  ;;  %295 = vst [vmem:[#allocation2 + $0x78] sm:$0xff] %v241_v46  ;;  %v255_v26 = vunpack.c.l.bf16 %v201_v22  ;;  %v3707_v31 = vld [vmem:[%s4816_s10 + $0x78] sm:$0xff]  }
  0x1c   : > { %4145 = vmatpush3.bf16.msra.mxu0 %v4666_v11  ;;  %3954 = vmatprep.subr.bf16.mxu1 %v4667_v24  ;;  %v399_v44 = vld [vmem:[#allocation2 + $0x9] sm:$0xff]  ;;  %296 = vst [vmem:[#allocation2 + $0x80] sm:$0xff] %v242_v47  ;;  %297 = vst [vmem:[#allocation2 + $0x88] sm:$0x3] %v243_v48  ;;  %v4678_v30 = vld [vmem:[%s5308_s1 + $0x160] sm:$0xff]   ;;  %v3609_v36 = vunpack.c.l.bf16 %v3707_v31  ;;  %v3610_v37 = vunpack.c.h.bf16 %v3707_v31 }
  0x1d   : > { %4146 = vmatprep.subr.bf16.mxu0 %v4668_v28  ;;  %v430_v49 = vpack.c.bf16 %v399_v44, %v398_v43  ;;  %v1494_v50 = vld [vmem:[#allocation2 + $0x19] sm:$0xff]  ;;  %v1495_v51 = vld [vmem:[#allocation2 + $0x21] sm:$0xff]  ;;  %298 = vst [vmem:[#allocation2 + $0x90] sm:$0xff] %v3601_v58  ;;  %299 = vst [vmem:[#allocation2 + $0x98] sm:$0xff] %v3602_v59 }
  0x1e   : > { %v1526_v52 = vpack.c.bf16 %v1495_v51, %v1494_v50  ;;  %v1496_v53 = vld [vmem:[#allocation2 + $0x31] sm:$0xff]  ;;  %300 = vst [vmem:[#allocation2 + $0xa0] sm:$0x3] %v246_v60  ;;  %301 = vst [vmem:[#allocation2 + $0xa8] sm:$0xff] %v247_v5  ;;  %v204_v32 = vld [vmem:[%s4816_s10 + $0x80] sm:$0x1] }
  0x1f   : > { %3955 = vmatpush3.bf16.msra.mxu1 %v4667_v24  ;;  %v1497_v54 = vld [vmem:[#allocation2 + $0x39] sm:$0xff]  ;;  %3958 = vmatprep.mubr.bf16.mxu1 %v430_v49  ;;  %302 = vst [vmem:[#allocation2 + $0xb0] sm:$0xff] %v248_v6  ;;  %303 = vst [vmem:[#allocation2 + $0xb8] sm:$0x3] %v249_v8  ;;  %v254_v24 = vunpack.c.h.bf16 %v4889_v20  ;;  %v207_v42 = vld [vmem:[%s4816_s10 + $0x8c] sm:$0x1] }
  0x20   : > { %4147 = vmatpush3.bf16.msra.mxu0 %v4668_v28  ;;  %3956 = vmatprep.subr.bf16.mxu1 %v4669_v38  ;;  %v1527_v61 = vpack.c.bf16 %v1497_v54, %v1496_v53  ;;  %v1498_v62 = vld [vmem:[#allocation2 + $0x49] sm:$0xff]  ;;  %v1499_v63 = vld [vmem:[#allocation2 + $0x51] sm:$0xff]  ;;  %304 = vst [vmem:[#allocation2 + $0xc0] sm:$0xff] %v3605_v13  ;;  %305 = vst [vmem:[#allocation2 + $0xc8] sm:$0xff] %v3606_v15  ;;  %v261_v46 = vunpack.c.l.bf16 %v207_v42 }
  0x21   : > { %4148 = vmatprep.subr.bf16.mxu0 %v4670_v40  ;;  %4150 = vmatprep.mubr.bf16.mxu0 %v1526_v52  ;;  %v1528_v2 = vpack.c.bf16 %v1499_v63, %v1498_v62  ;;  %v1500_v10 = vld [vmem:[#allocation2 + $0x61] sm:$0xff]  ;;  %306 = vst [vmem:[#allocation2 + $0xd0] sm:$0x3] %v252_v18  ;;  %307 = vst [vmem:[#allocation2 + $0xd8] sm:$0xff] %v253_v23  ;;  %v4680_v28 = vld [vmem:[%s5308_s1 + $0x18] sm:$0xff]  }
  0x22   : > { %v1501_v11 = vld [vmem:[#allocation2 + $0x69] sm:$0xff]  ;;  %308 = vst [vmem:[#allocation2 + $0xe0] sm:$0xff] %v254_v24  ;;  %309 = vst [vmem:[#allocation2 + $0xe8] sm:$0x3] %v255_v26  ;;  %v4683_v43 = vld [vmem:[%s5308_s1 + $0x20] sm:$0xff]  }
  0x23   : > { %3957 = vmatpush3.bf16.msra.mxu1 %v4669_v38  ;;  %v1502_v17 = vld [vmem:[#allocation2 + $0x79] sm:$0xff]  ;;  %v1503_v19 = vld [vmem:[#allocation2 + $0x81] sm:$0xff]  ;;  %v1529_v21 = vpack.c.bf16 %v1501_v11, %v1500_v10  ;;  %v258_v38 = vunpack.c.l.bf16 %v204_v32  ;;  %310 = vst [vmem:[#allocation2 + $0xf0] sm:$0xff] %v3609_v36  ;;  %311 = vst [vmem:[#allocation2 + $0xf8] sm:$0xff] %v3610_v37 }
  0x24   : > { %4149 = vmatpush3.bf16.msra.mxu0 %v4670_v40  ;;  %3990 = vmatprep.subr.bf16.mxu1 %v4671_v45  ;;  %v1530_v25 = vpack.c.bf16 %v1503_v19, %v1502_v17  ;;  %v1504_v33 = vld [vmem:[#allocation2 + $0x91] sm:$0xff]  ;;  %v4906_v40 = vld [vmem:[%s4816_s10 + $0x84] sm:$0xff]   ;;  %315 = vst [vmem:[#allocation2 + $0x118] sm:$0x3] %v261_v46  ;;  %v4923_v56 = vld [vmem:[%s4816_s10 + $0x9c] sm:$0xff]  }
  0x25   : > { %4182 = vmatprep.subr.bf16.mxu0 %v4672_v55  ;;  %v1505_v34 = vld [vmem:[#allocation2 + $0x99] sm:$0xff]  ;;  %312 = vst [vmem:[#allocation2 + $0x100] sm:$0x3] %v258_v38  ;;  %v259_v44 = vunpack.c.l.bf16 %v4906_v40  ;;  %v4679_v49 = vld [vmem:[%s5308_s1 + $0x168] sm:$0xff]   ;;  %v3708_v50 = vld [vmem:[%s4816_s10 + $0x90] sm:$0xff]   ;;  %v265_v58 = vunpack.c.l.bf16 %v4923_v56  ;;  %v266_v59 = vunpack.c.h.bf16 %v4923_v56 }
  0x26   : > { %3959 = vmatmul.mubr.bf16.vlgmr.msra.gmra.mrb[0].mxu1 %v1526_v52  ;;  %v1506_v35 = vld [vmem:[#allocation2 + $0xa9] sm:$0xff]  ;;  %v1507_v39 = vld [vmem:[#allocation2 + $0xb1] sm:$0xff]  ;;  %v1531_v47 = vpack.c.bf16 %v1505_v34, %v1504_v33  ;;  %v3613_v53 = vunpack.c.l.bf16 %v3708_v50  ;;  %v3614_v54 = vunpack.c.h.bf16 %v3708_v50  ;;  %v213_v57 = vld [vmem:[%s4816_s10 + $0xa4] sm:$0x1] }
  0x27   : > { %4151 = vmatmul.mubr.bf16.vlgmr.msra.gmra.mrb[0].mxu0 %v1527_v61  ;;  %3991 = vmatpush3.bf16.msra.mxu1 %v4671_v45  ;;  %v260_v45 = vunpack.c.h.bf16 %v4906_v40  ;;  %v1532_v48 = vpack.c.bf16 %v1507_v39, %v1506_v35  ;;  %313 = vst [vmem:[#allocation2 + $0x108] sm:$0xff] %v259_v44  ;;  %v210_v51 = vld [vmem:[%s4816_s10 + $0x98] sm:$0x1]  ;;  %v4685_v52 = vld [vmem:[%s5308_s1 + $0x28] sm:$0xff]   ;;  %v4681_v62 = vld [vmem:[%s5308_s1 + $0x170] sm:$0xff]   ;;  %v267_v63 = vunpack.c.l.bf16 %v213_v57 }
  0x28   : > { %4183 = vmatpush3.bf16.msra.mxu0 %v4672_v55  ;;  %3962 = vmatprep.mubr.bf16.mxu1 %v1527_v61  ;;  %v264_v55 = vunpack.c.l.bf16 %v210_v51  ;;  %v1508_v60 = vld [vmem:[#allocation2 + $0xc1] sm:$0xff]  ;;  %v1509_v61 = vld [vmem:[#allocation2 + $0xc9] sm:$0xff]  ;;  %316 = vst [vmem:[#allocation2 + $0x120] sm:$0xff] %v3613_v53  ;;  %317 = vst [vmem:[#allocation2 + $0x128] sm:$0xff] %v3614_v54 }
  0x29   : > { %4184 = vmatprep.subr.bf16.mxu0 %v4673_v0  ;;  %4154 = vmatprep.mubr.bf16.mxu0 %v1528_v2  ;;  %314 = vst [vmem:[#allocation2 + $0x110] sm:$0xff] %v260_v45  ;;  %319 = vst [vmem:[#allocation2 + $0x138] sm:$0xff] %v265_v58  ;;  %v3709_v4 = vld [vmem:[%s4816_s10 + $0xa8] sm:$0xff]   ;;  %v1533_v5 = vpack.c.bf16 %v1509_v61, %v1508_v60  ;;  %v216_v8 = vld [vmem:[%s4816_s10 + $0xb0] sm:$0x1] }
  0x2a   : > { %3992 = vmatprep.subr.bf16.mxu1 %v4674_v3  ;;  %318 = vst [vmem:[#allocation2 + $0x130] sm:$0x3] %v264_v55  ;;  %320 = vst [vmem:[#allocation2 + $0x140] sm:$0xff] %v266_v59  ;;  %v3617_v6 = vunpack.c.l.bf16 %v3709_v4  ;;  %v4682_v9 = vld [vmem:[%s5308_s1 + $0x178] sm:$0xff]   ;;  %v270_v11 = vunpack.c.l.bf16 %v216_v8  ;;  %v417_v23 = vld [vmem:[#allocation2 + $0xe1] sm:$0xff] }
  0x2b   : > { %3993 = vmatpush3.bf16.msra.mxu1 %v4674_v3  ;;  %321 = vst [vmem:[#allocation2 + $0x148] sm:$0x3] %v267_v63  ;;  %v4687_v3 = vld [vmem:[%s5308_s1 + $0x30] sm:$0xff]   ;;  %v219_v13 = vld [vmem:[%s4816_s10 + $0xbc] sm:$0x1]  ;;  %v4684_v26 = vld [vmem:[%s5308_s1 + $0x180] sm:$0xff]  }
  0x2c   : > { %4185 = vmatpush3.bf16.msra.mxu0 %v4673_v0  ;;  %3994 = vmatprep.subr.bf16.mxu1 %v4677_v7  ;;  %v1800_v0 = vld [vmem:[#allocation2 + $0x1a] sm:$0xff]  ;;  %322 = vst [vmem:[#allocation2 + $0x150] sm:$0xff] %v3617_v6  ;;  %v1802_v17 = vld [vmem:[#allocation2 + $0x32] sm:$0xff]  ;;  %324 = vst [vmem:[#allocation2 + $0x160] sm:$0x3] %v270_v11  ;;  %v273_v19 = vunpack.c.l.bf16 %v219_v13 }
  0x2d   : > { %4186 = vmatprep.subr.bf16.mxu0 %v4675_v12  ;;  %v1803_v18 = vld [vmem:[#allocation2 + $0x3a] sm:$0xff]  ;;  %v418_v24 = vld [vmem:[#allocation2 + $0xf1] sm:$0xff]  ;;  %v4686_v35 = vld [vmem:[%s5308_s1 + $0x188] sm:$0xff]  }
  0x2e   : > { %3963 = vmatmul.mubr.bf16.gmra.mrb[4].mxu1 %v1528_v2  ;;  %v1801_v2 = vld [vmem:[#allocation2 + $0x22] sm:$0xff]  ;;  %v416_v22 = vld [vmem:[#allocation2 + $0xd9] sm:$0xff]  ;;  %327 = vst [vmem:[#allocation2 + $0x178] sm:$0x3] %v273_v19  ;;  %v4954_v31 = vpack.c.bf16 %v1803_v18, %v1802_v17  ;;  %v1807_v38 = vld [vmem:[#allocation2 + $0x6a] sm:$0xff] }
  0x2f   : > { %4155 = vmatmul.mubr.bf16.gmra.mrb[4].mxu0 %v1529_v21  ;;  %3966 = vmatprep.mubr.bf16.mxu1 %v1529_v21  ;;  %v4939_v10 = vpack.c.bf16 %v1801_v2, %v1800_v0  ;;  %v4689_v21 = vld [vmem:[%s5308_s1 + $0x38] sm:$0xff]   ;;  %v4959_v33 = vld [vmem:[%s5308_s1 + $0x80] sm:$0xff]   ;;  %v4688_v46 = vld [vmem:[%s5308_s1 + $0x190] sm:$0xff]  }
  0x30   : > { %4187 = vmatpush3.bf16.msra.mxu0 %v4675_v12  ;;  %4158 = vmatprep.mubr.bf16.mxu0 %v1530_v25  ;;  %v4942_v12 = vld [vmem:[%s4816_s10 + $0xb4] sm:$0xff]   ;;  %v420_v36 = vld [vmem:[#allocation2 + $0x109] sm:$0xff]  ;;  %v3710_v60 = vld [vmem:[%s4816_s10 + $0xc0] sm:$0xff]  }
  0x31   : > { %4188 = vmatprep.subr.bf16.mxu0 %v4676_v27  ;;  %3995 = vmatpush3.bf16.msra.mxu1 %v4677_v7  ;;  %v3618_v7 = vunpack.c.h.bf16 %v3709_v4  ;;  %v271_v15 = vunpack.c.l.bf16 %v4942_v12  ;;  %v272_v16 = vunpack.c.h.bf16 %v4942_v12  ;;  %v1806_v37 = vld [vmem:[#allocation2 + $0x62] sm:$0xff]  ;;  %v421_v39 = vld [vmem:[#allocation2 + $0x111] sm:$0xff]  ;;  %v1808_v42 = vld [vmem:[#allocation2 + $0x7a] sm:$0xff]  ;;  %v3621_v61 = vunpack.c.l.bf16 %v3710_v60 }
  0x32   : > { %3996 = vmatprep.subr.bf16.mxu1 %v4680_v28  ;;  %v423_v44 = vld [vmem:[#allocation2 + $0x129] sm:$0xff]  ;;  %v424_v51 = vld [vmem:[#allocation2 + $0x139] sm:$0xff]  ;;  %v425_v53 = vld [vmem:[#allocation2 + $0x141] sm:$0xff] }
  0x33   : > { %323 = vst [vmem:[#allocation2 + $0x158] sm:$0xff] %v3618_v7  ;;  %325 = vst [vmem:[#allocation2 + $0x168] sm:$0xff] %v271_v15  ;;  %v1809_v45 = vld [vmem:[#allocation2 + $0x82] sm:$0xff]  ;;  %v1810_v54 = vld [vmem:[#allocation2 + $0x92] sm:$0xff]  ;;  %v443_v4 = vpack.c.bf16 %v425_v53, %v424_v51 }
  0x34   : > { %4189 = vmatpush3.bf16.msra.mxu0 %v4676_v27  ;;  %326 = vst [vmem:[#allocation2 + $0x170] sm:$0xff] %v272_v16  ;;  %v1804_v27 = vld [vmem:[#allocation2 + $0x4a] sm:$0xff]  ;;  %v4974_v50 = vpack.c.bf16 %v1809_v45, %v1808_v42  ;;  %v1811_v55 = vld [vmem:[#allocation2 + $0x9a] sm:$0xff]  ;;  %v222_v63 = vld [vmem:[%s4816_s10 + $0xc8] sm:$0x1] }
  0x35   : > { %4190 = vmatprep.subr.bf16.mxu0 %v4678_v30  ;;  %3997 = vmatpush3.bf16.msra.mxu1 %v4680_v28  ;;  %v1805_v28 = vld [vmem:[#allocation2 + $0x52] sm:$0xff]  ;;  %v1812_v59 = vld [vmem:[#allocation2 + $0xaa] sm:$0xff]  ;;  %v4693_v2 = vld [vmem:[%s5308_s1 + $0x1a0] sm:$0xff]   ;;  %328 = vst [vmem:[#allocation2 + $0x180] sm:$0xff] %v3621_v61 }
  0x36   : > { %3967 = vmatmul.mubr.bf16.gmra.mrb[8].mxu1 %v1530_v25  ;;  %3998 = vmatprep.subr.bf16.mxu1 %v4683_v43  ;;  %v419_v25 = vld [vmem:[#allocation2 + $0xf9] sm:$0xff]  ;;  %v4961_v34 = vpack.c.bf16 %v1805_v28, %v1804_v27  ;;  %v4696_v8 = vld [vmem:[%s5308_s1 + $0x1a8] sm:$0xff]   ;;  %v4699_v18 = vld [vmem:[%s5308_s1 + $0x1b0] sm:$0xff]  }
  0x37   : > { %4159 = vmatmul.mubr.bf16.gmra.mrb[8].mxu0 %v1531_v47  ;;  %3970 = vmatprep.mubr.bf16.mxu1 %v1531_v47  ;;  %v440_v32 = vpack.c.bf16 %v419_v25, %v418_v24  ;;  %v441_v47 = vpack.c.bf16 %v421_v39, %v420_v36  ;;  %v1813_v0 = vld [vmem:[#allocation2 + $0xb2] sm:$0xff]  ;;  %v1814_v11 = vld [vmem:[#allocation2 + $0xc2] sm:$0xff]  ;;  %v1815_v15 = vld [vmem:[#allocation2 + $0xca] sm:$0xff] }
  0x38   : > { %4191 = vmatpush3.bf16.msra.mxu0 %v4678_v30  ;;  %4162 = vmatprep.mubr.bf16.mxu0 %v1532_v48  ;;  %v439_v30 = vpack.c.bf16 %v417_v23, %v416_v22  ;;  %v4988_v7 = vpack.c.bf16 %v1813_v0, %v1812_v59  ;;  %v1816_v16 = vld [vmem:[#allocation2 + $0xda] sm:$0xff]  ;;  %v1817_v17 = vld [vmem:[#allocation2 + $0xe2] sm:$0xff]  ;;  %v1818_v25 = vld [vmem:[#allocation2 + $0xf2] sm:$0xff] }
  0x39   : > { %4192 = vmatprep.subr.bf16.mxu0 %v4679_v49  ;;  %3999 = vmatpush3.bf16.msra.mxu1 %v4683_v43  ;;  %v422_v43 = vld [vmem:[#allocation2 + $0x121] sm:$0xff]  ;;  %v5003_v23 = vpack.c.bf16 %v1817_v17, %v1816_v16  ;;  %v4702_v24 = vld [vmem:[%s5308_s1 + $0x1b8] sm:$0xff]   ;;  %v1820_v27 = vld [vmem:[#allocation2 + $0x10a] sm:$0xff] }
  0x3a   : > { %4000 = vmatprep.subr.bf16.mxu1 %v4685_v52  ;;  %v426_v57 = vld [vmem:[#allocation2 + $0x151] sm:$0xff]  ;;  %v427_v58 = vld [vmem:[#allocation2 + $0x159] sm:$0xff]  ;;  %v4695_v42 = vld [vmem:[%s5308_s1 + $0x88] sm:$0xff]  }
  0x3b   : > { %v444_v6 = vpack.c.bf16 %v427_v58, %v426_v57  ;;  %v429_v13 = vld [vmem:[#allocation2 + $0x171] sm:$0xff]  ;;  %v4691_v22 = vld [vmem:[%s4816_s10] sm:$0xff]  ;;  %v4700_v59 = vld [vmem:[%s4816_s10 + $0x48] sm:$0xff] }
  0x3c   : > { %4193 = vmatpush3.bf16.msra.mxu0 %v4679_v49  ;;  %v442_v49 = vpack.c.bf16 %v423_v44, %v422_v43  ;;  %v1821_v28 = vld [vmem:[#allocation2 + $0x112] sm:$0xff]  ;;  %v1822_v43 = vld [vmem:[#allocation2 + $0x122] sm:$0xff]  ;;  %v1823_v44 = vld [vmem:[#allocation2 + $0x12a] sm:$0xff] }
  0x3d   : > { %4194 = vmatprep.subr.bf16.mxu0 %v4681_v62  ;;  %4001 = vmatpush3.bf16.msra.mxu1 %v4685_v52  ;;  %v4690_v52 = vld [vmem:[%s5308_s1 + $0x198] sm:$0xff]   ;;  %v4698_v45 = vld [vmem:[%s5308_s1 + $0x90] sm:$0xff]   ;;  %v4704_v57 = vld [vmem:[%s5308_s1 + $0xa0] sm:$0xff]  }
  0x3e   : > { %3971 = vmatmul.mubr.bf16.gmra.mrb[12].mxu1 %v1532_v48  ;;  %4002 = vmatprep.subr.bf16.mxu1 %v4687_v3  ;;  %v4972_v48 = vpack.c.bf16 %v1807_v38, %v1806_v37  ;;  %v4694_v36 = vld [vmem:[%s4816_s10 + $0x18] sm:$0xff]  ;;  %v5022_v37 = vpack.c.bf16 %v1821_v28, %v1820_v27  ;;  %v4707_v61 = vld [vmem:[%s5308_s1 + $0xa8] sm:$0xff]   ;;  %v4710_v0 = vld [vmem:[%s5308_s1 + $0xb0] sm:$0xff]  }
  0x3f   : > { %4163 = vmatmul.mubr.bf16.gmra.mrb[12].mxu0 %v1533_v5  ;;  %3974 = vmatprep.mubr.bf16.mxu1 %v1533_v5  ;;  %v4986_v5 = vpack.c.bf16 %v1811_v55, %v1810_v54  ;;  %v1827_v53 = vld [vmem:[#allocation2 + $0x15a] sm:$0xff]  ;;  %v1828_v54 = vld [vmem:[#allocation2 + $0x16a] sm:$0xff]  ;;  %v1829_v55 = vld [vmem:[#allocation2 + $0x172] sm:$0xff] }
  0x40   : > { %4195 = vmatpush3.bf16.msra.mxu0 %v4681_v62  ;;  %4198 = vmatprep.mubr.bf16.mxu0 %v4939_v10  ;;  %v3622_v62 = vunpack.c.h.bf16 %v3710_v60  ;;  %v5054_v60 = vpack.c.bf16 %v1829_v55, %v1828_v54  ;;  %v4709_v16 = vld [vmem:[%s4816_s10 + $0x90] sm:$0xff]  ;;  %v4714_v17 = vld [vmem:[%s5308_s1 + $0x1d8] sm:$0xff]   ;;  %v4717_v28 = vld [vmem:[%s5308_s1 + $0xc8] sm:$0xff]  }
  0x41   : > { %4196 = vmatprep.subr.bf16.mxu0 %v4682_v9  ;;  %4003 = vmatpush3.bf16.msra.mxu1 %v4687_v3  ;;  %v276_v3 = vunpack.c.l.bf16 %v222_v63  ;;  %v4723_v27 = vld [vmem:[%s5308_s1 + $0x1f8] sm:$0xff]   ;;  %v2426_v54 = vld [vmem:[#allocation2 + $0xc9] sm:$0xff]  ;;  %v4732_v55 = vld [vmem:[%s5308_s1 + $0x220] sm:$0xff]  }
  0x42   : > { %4004 = vmatprep.subr.bf16.mxu1 %v4689_v21  ;;  %329 = vst [vmem:[#allocation2 + $0x188] sm:$0xff] %v3622_v62 }
  0x43   : > { %330 = vst [vmem:[#allocation2 + $0x190] sm:$0x3] %v276_v3  ;;  %v4703_v3 = vld [vmem:[%s4816_s10 + $0x60] sm:$0xff] }
  0x44   : > { %4197 = vmatpush3.bf16.msra.mxu0 %v4682_v9  ;;  %v428_v9 = vld [vmem:[#allocation2 + $0x169] sm:$0xff] }
  0x45   : > { %4230 = vmatprep.subr.bf16.mxu0 %v4684_v26  ;;  %4005 = vmatpush3.bf16.msra.mxu1 %v4689_v21  ;;  %v4998_v19 = vpack.c.bf16 %v429_v13, %v428_v9  ;;  %v5000_v21 = vpack.c.bf16 %v1815_v15, %v1814_v11  ;;  %v4715_v9 = vld [vmem:[%s5308_s1 + $0xc0] sm:$0xff]   ;;  %v4706_v11 = vld [vmem:[%s4816_s10 + $0x78] sm:$0xff]  ;;  %v4708_v13 = vld [vmem:[%s5308_s1 + $0x1c8] sm:$0xff]  }
  0x46   : > { %3975 = vmatmul.mubr.bf16.gmra.mrb[16].mxu1 %v439_v30  ;;  %4038 = vmatprep.subr.bf16.mxu1 %v4959_v33  ;;  %v5014_v30 = vld [vmem:[%s5308_s1 + $0x1c0] sm:$0xff]   ;;  %v4711_v15 = vld [vmem:[%s5308_s1 + $0x1d0] sm:$0xff]  }
  0x47   : > { %4199 = vmatmul.mubr.bf16.vlgmr.msra.gmra.mrb[0].mxu0 %v4954_v31  ;;  %3978 = vmatprep.mubr.bf16.mxu1 %v440_v32 }
  0x48   : > { %4231 = vmatpush3.bf16.msra.mxu0 %v4684_v26  ;;  %4202 = vmatprep.mubr.bf16.mxu0 %v4961_v34  ;;  %v1819_v26 = vld [vmem:[#allocation2 + $0xfa] sm:$0xff] }
  0x49   : > { %4232 = vmatprep.subr.bf16.mxu0 %v4686_v35  ;;  %v5016_v32 = vpack.c.bf16 %v1819_v26, %v1818_v25  ;;  %v1830_v62 = vld [vmem:[#allocation2 + $0x182] sm:$0xff]  ;;  %v4720_v25 = vld [vmem:[%s5308_s1 + $0x1f0] sm:$0xff]  }
  0x4a   : > { %v1831_v63 = vld [vmem:[#allocation2 + $0x18a] sm:$0xff] }
  0x4c   : > { %4233 = vmatpush3.bf16.msra.mxu0 %v4686_v35  ;;  %v5019_v35 = vld [vmem:[%s4816_s10 + $0xcc] sm:$0xff]  }
  0x4d   : > { %4234 = vmatprep.subr.bf16.mxu0 %v4688_v46  ;;  %v277_v38 = vunpack.c.l.bf16 %v5019_v35  ;;  %v278_v39 = vunpack.c.h.bf16 %v5019_v35 }
  0x4e   : > { %3979 = vmatmul.mubr.bf16.gmra.mrb[20].mxu1 %v441_v47  ;;  %v1825_v47 = vld [vmem:[#allocation2 + $0x142] sm:$0xff] }
  0x4f   : > { %4203 = vmatmul.mubr.bf16.gmra.mrb[4].mxu0 %v4972_v48  ;;  %3982 = vmatprep.mubr.bf16.mxu1 %v442_v49  ;;  %331 = vst [vmem:[#allocation2 + $0x198] sm:$0xff] %v277_v38  ;;  %332 = vst [vmem:[#allocation2 + $0x1a0] sm:$0xff] %v278_v39  ;;  %v5037_v49 = vpack.c.bf16 %v1823_v44, %v1822_v43  ;;  %v2417_v38 = vld [vmem:[#allocation2 + $0x61] sm:$0xff]  ;;  %v2418_v39 = vld [vmem:[#allocation2 + $0x69] sm:$0xff] }
  0x50   : > { %4206 = vmatprep.mubr.bf16.mxu0 %v4974_v50  ;;  %4235 = vmatpush3.bf16.msra.mxu0 %v4688_v46  ;;  %v1824_v46 = vld [vmem:[#allocation2 + $0x13a] sm:$0xff]  ;;  %v2447_v43 = vpack.c.bf16 %v2418_v39, %v2417_v38  ;;  %v4727_v44 = vld [vmem:[%s5308_s1 + $0x208] sm:$0xff]   ;;  %v1201_v38 = vld [vmem:[#allocation2 + $0xb0] sm:$0xff] }
  0x51   : > { %4236 = vmatprep.subr.bf16.mxu0 %v4690_v52  ;;  %v5040_v51 = vpack.c.bf16 %v1825_v47, %v1824_v46  ;;  %v2422_v46 = vld [vmem:[#allocation2 + $0x99] sm:$0xff]  ;;  %v4729_v47 = vld [vmem:[%s5308_s1 + $0x210] sm:$0xff]   ;;  %v2441_v39 = vld [vmem:[#allocation2 + $0x181] sm:$0xff] }
  0x54   : > { %4237 = vmatpush3.bf16.msra.mxu0 %v4690_v52  ;;  %v1826_v52 = vld [vmem:[#allocation2 + $0x152] sm:$0xff] }
  0x55   : > { %4238 = vmatprep.subr.bf16.mxu0 %v4693_v2  ;;  %v5051_v58 = vpack.c.bf16 %v1827_v53, %v1826_v52  ;;  %v2424_v52 = vld [vmem:[#allocation2 + $0xb1] sm:$0xff]  ;;  %v2425_v53 = vld [vmem:[#allocation2 + $0xc1] sm:$0xff] }
  0x56   : > { %3983 = vmatmul.mubr.bf16.gmra.mrb[24].mxu1 %v443_v4  ;;  %v4713_v4 = vld [vmem:[%s5308_s1 + $0xb8] sm:$0xff]  }
  0x57   : > { %4207 = vmatmul.mubr.bf16.gmra.mrb[8].mxu0 %v4986_v5  ;;  %3986 = vmatprep.mubr.bf16.mxu1 %v444_v6  ;;  %v225_v6 = vld [vmem:[%s4816_s10 + $0xd4] sm:$0x1] }
  0x58   : > { %4210 = vmatprep.mubr.bf16.mxu0 %v4988_v7  ;;  %4239 = vmatpush3.bf16.msra.mxu0 %v4693_v2  ;;  %v1847_v2 = vpack.c.bf16 %v1831_v63, %v1830_v62  ;;  %v1188_v62 = vld [vmem:[#allocation2 + $0x18] sm:$0xff]  ;;  %v1189_v63 = vld [vmem:[#allocation2 + $0x20] sm:$0xff] }
  0x59   : > { %4240 = vmatprep.subr.bf16.mxu0 %v4696_v8 }
  0x5c   : > { %4241 = vmatpush3.bf16.msra.mxu0 %v4696_v8  ;;  %v279_v8 = vunpack.c.l.bf16 %v225_v6  ;;  %v1220_v6 = vpack.c.bf16 %v1189_v63, %v1188_v62  ;;  %v2722_v62 = vld [vmem:[#allocation2 + $0x52] sm:$0xff]  ;;  %v1208_v63 = vld [vmem:[#allocation2 + $0x108] sm:$0xff] }
  0x5d   : > { %4242 = vmatprep.subr.bf16.mxu0 %v4699_v18 }
  0x5e   : > { %3987 = vmatmul.mubr.bf16.gmra.mrb[28].mxu1 %v4998_v19  ;;  %333 = vst [vmem:[#allocation2 + $0x1a8] sm:$0x3] %v279_v8  ;;  %v1190_v8 = vld [vmem:[#allocation2 + $0x30] sm:$0xff] }
  0x5f   : > { %4211 = vmatmul.mubr.bf16.gmra.mrb[12].mxu0 %v5000_v21  ;;  %4006 = vmatprep.mubr.bf16.mxu1 %v4691_v22  ;;  %v4718_v22 = vld [vmem:[%s5308_s1 + $0x1e8] sm:$0xff]  }
  0x60   : > { %4214 = vmatprep.mubr.bf16.mxu0 %v5003_v23  ;;  %4243 = vmatpush3.bf16.msra.mxu0 %v4699_v18  ;;  %v4712_v18 = vld [vmem:[%s4816_s10 + $0xa8] sm:$0xff] }
  0x61   : > { %4244 = vmatprep.subr.bf16.mxu0 %v4702_v24 }
  0x64   : > { %4245 = vmatpush3.bf16.msra.mxu0 %v4702_v24  ;;  %v882_v24 = vld [vmem:[#allocation2 + $0xa] sm:$0xff] }
  0x65   : > { %4278 = vmatprep.subr.bf16.mxu0 %v5014_v30 }
  0x66   : > { %4007 = vmatmul.mubr.bf16.vlgmr.msra.gmra.mrb[0].mxu1 %v4827_v14  ;;  %v4697_v14 = vld [vmem:[%s4816_s10 + $0x30] sm:$0xff] }
  0x67   : > { %4215 = vmatmul.mubr.bf16.gmra.mrb[16].mxu0 %v5016_v32  ;;  %4039 = vmatpush3.bf16.msra.mxu1 %v4959_v33  ;;  %v4701_v33 = vld [vmem:[%s5308_s1 + $0x98] sm:$0xff]  }
  0x68   : > { %4010 = vmatprep.mubr.bf16.mxu1 %v4694_v36  ;;  %4218 = vmatprep.mubr.bf16.mxu0 %v5022_v37 }
  0x69   : > { %4040 = vmatprep.subr.bf16.mxu1 %v4695_v42 }
  0x6b   : > { %4041 = vmatpush3.bf16.msra.mxu1 %v4695_v42 }
  0x6c   : > { %4042 = vmatprep.subr.bf16.mxu1 %v4698_v45 }
  0x6e   : > { %4011 = vmatmul.mubr.bf16.gmra.mrb[4].mxu1 %v4841_v29 }
  0x6f   : > { %4219 = vmatmul.mubr.bf16.gmra.mrb[20].mxu0 %v5037_v49  ;;  %4014 = vmatprep.mubr.bf16.mxu1 %v4697_v14 }
  0x70   : > { %4222 = vmatprep.mubr.bf16.mxu0 %v5040_v51  ;;  %4043 = vmatpush3.bf16.msra.mxu1 %v4698_v45  ;;  %v2421_v45 = vld [vmem:[#allocation2 + $0x91] sm:$0xff] }
  0x71   : > { %4044 = vmatprep.subr.bf16.mxu1 %v4701_v33 }
  0x74   : > { %4045 = vmatpush3.bf16.msra.mxu1 %v4701_v33  ;;  %v2449_v33 = vpack.c.bf16 %v2422_v46, %v2421_v45  ;;  %v1202_v45 = vld [vmem:[#allocation2 + $0xc0] sm:$0xff]  ;;  %v1203_v46 = vld [vmem:[#allocation2 + $0xc8] sm:$0xff] }
  0x75   : > { %4046 = vmatprep.subr.bf16.mxu1 %v4704_v57 }
  0x76   : > { %4015 = vmatmul.mubr.bf16.gmra.mrb[8].mxu1 %v4855_v41 }
  0x77   : > { %4223 = vmatmul.mubr.bf16.gmra.mrb[24].mxu0 %v5051_v58  ;;  %4018 = vmatprep.mubr.bf16.mxu1 %v4700_v59 }
  0x78   : > { %4226 = vmatprep.mubr.bf16.mxu0 %v5054_v60  ;;  %4047 = vmatpush3.bf16.msra.mxu1 %v4704_v57 }
  0x79   : > { %4048 = vmatprep.subr.bf16.mxu1 %v4707_v61 }
  0x7c   : > { %4049 = vmatpush3.bf16.msra.mxu1 %v4707_v61  ;;  %v2428_v61 = vld [vmem:[#allocation2 + $0xe1] sm:$0xff] }
  0x7d   : > { %4050 = vmatprep.subr.bf16.mxu1 %v4710_v0 }
  0x7e   : > { %4019 = vmatmul.mubr.bf16.gmra.mrb[12].mxu1 %v4872_v1 }
  0x7f   : > { %4227 = vmatmul.mubr.bf16.gmra.mrb[28].mxu0 %v1847_v2  ;;  %4022 = vmatprep.mubr.bf16.mxu1 %v4703_v3  ;;  %v2430_v2 = vld [vmem:[#allocation2 + $0xf9] sm:$0xff] }
  0x80   : > { %4246 = vmatprep.mubr.bf16.mxu0 %v4694_v36  ;;  %4051 = vmatpush3.bf16.msra.mxu1 %v4710_v0  ;;  %v2429_v0 = vld [vmem:[#allocation2 + $0xf1] sm:$0xff] }
  0x81   : > { %4052 = vmatprep.subr.bf16.mxu1 %v4713_v4 }
  0x84   : > { %4053 = vmatpush3.bf16.msra.mxu1 %v4713_v4 }
  0x85   : > { %4086 = vmatprep.subr.bf16.mxu1 %v4715_v9 }
  0x86   : > { %4023 = vmatmul.mubr.bf16.gmra.mrb[16].mxu1 %v4889_v20 }
  0x87   : > { %4247 = vmatmul.mubr.bf16.vlgmr.msra.gmra.mrb[0].mxu0 %v4841_v29  ;;  %4026 = vmatprep.mubr.bf16.mxu1 %v4706_v11  ;;  %v4716_v29 = vld [vmem:[%s5308_s1 + $0x1e0] sm:$0xff]  }
  0x88   : > { %4279 = vmatpush3.bf16.msra.mxu0 %v5014_v30  ;;  %4250 = vmatprep.mubr.bf16.mxu0 %v4697_v14  ;;  %v4722_v30 = vld [vmem:[%s5308_s1 + $0xd8] sm:$0xff]  }
  0x89   : > { %4280 = vmatprep.subr.bf16.mxu0 %v4708_v13 }
  0x8c   : > { %4281 = vmatpush3.bf16.msra.mxu0 %v4708_v13  ;;  %v2432_v13 = vld [vmem:[#allocation2 + $0x111] sm:$0xff] }
  0x8d   : > { %4282 = vmatprep.subr.bf16.mxu0 %v4711_v15 }
  0x8e   : > { %4027 = vmatmul.mubr.bf16.gmra.mrb[20].mxu1 %v4906_v40 }
  0x8f   : > { %4251 = vmatmul.mubr.bf16.gmra.mrb[4].mxu0 %v4855_v41  ;;  %4030 = vmatprep.mubr.bf16.mxu1 %v4709_v16  ;;  %v881_v41 = vld [vmem:[#allocation2 + $0x2] sm:$0xff] }
  0x90   : > { %4254 = vmatprep.mubr.bf16.mxu0 %v4700_v59  ;;  %4283 = vmatpush3.bf16.msra.mxu0 %v4711_v15  ;;  %v913_v26 = vpack.c.bf16 %v882_v24, %v881_v41  ;;  %v2451_v59 = vpack.c.bf16 %v2426_v54, %v2425_v53  ;;  %v1192_v15 = vld [vmem:[#allocation2 + $0x48] sm:$0xff]  ;;  %v1194_v24 = vld [vmem:[#allocation2 + $0x60] sm:$0xff]  ;;  %v1227_v54 = vpack.c.bf16 %v1203_v46, %v1202_v45 }
  0x91   : > { %4284 = vmatprep.subr.bf16.mxu0 %v4714_v17  ;;  %v4741_v53 = vld [vmem:[%s5308_s1 + $0x128] sm:$0xff]  }
  0x92   : > { %v2737_v46 = vld [vmem:[#allocation2 + $0x10a] sm:$0xff] }
  0x94   : > { %4285 = vmatpush3.bf16.msra.mxu0 %v4714_v17  ;;  %v2433_v17 = vld [vmem:[#allocation2 + $0x121] sm:$0xff] }
  0x95   : > { %4286 = vmatprep.subr.bf16.mxu0 %v4716_v29 }
  0x96   : > { %4031 = vmatmul.mubr.bf16.gmra.mrb[24].mxu1 %v4923_v56 }
  0x97   : > { %4255 = vmatmul.mubr.bf16.gmra.mrb[8].mxu0 %v4872_v1  ;;  %4034 = vmatprep.mubr.bf16.mxu1 %v4712_v18  ;;  %v4725_v1 = vld [vmem:[%s5308_s1 + $0x200] sm:$0xff]  }
  0x98   : > { %4258 = vmatprep.mubr.bf16.mxu0 %v4703_v3  ;;  %4287 = vmatpush3.bf16.msra.mxu0 %v4716_v29  ;;  %v4734_v3 = vld [vmem:[%s5308_s1 + $0x230] sm:$0xff]  }
  0x99   : > { %4288 = vmatprep.subr.bf16.mxu0 %v4718_v22  ;;  %v2434_v29 = vld [vmem:[#allocation2 + $0x129] sm:$0xff] }
  0x9c   : > { %4289 = vmatpush3.bf16.msra.mxu0 %v4718_v22 }
  0x9d   : > { %4290 = vmatprep.subr.bf16.mxu0 %v4720_v25 }
  0x9e   : > { %4035 = vmatmul.mubr.bf16.gmra.mrb[28].mxu1 %v4942_v12 }
  0x9f   : > { %4259 = vmatmul.mubr.bf16.gmra.mrb[12].mxu0 %v4889_v20  ;;  %4054 = vmatprep.mubr.bf16.mxu1 %v913_v26  ;;  %v4719_v20 = vld [vmem:[%s5308_s1 + $0xd0] sm:$0xff]   ;;  %v2435_v26 = vld [vmem:[#allocation2 + $0x139] sm:$0xff] }
  0xa0   : > { %4262 = vmatprep.mubr.bf16.mxu0 %v4706_v11  ;;  %4291 = vmatpush3.bf16.msra.mxu0 %v4720_v25  ;;  %v2431_v11 = vld [vmem:[#allocation2 + $0x109] sm:$0xff] }
  0xa1   : > { %4292 = vmatprep.subr.bf16.mxu0 %v4723_v27  ;;  %v5187_v22 = vpack.c.bf16 %v2432_v13, %v2431_v11  ;;  %v1195_v25 = vld [vmem:[#allocation2 + $0x68] sm:$0xff]  ;;  %v1210_v13 = vld [vmem:[#allocation2 + $0x120] sm:$0xff] }
  0xa4   : > { %4293 = vmatpush3.bf16.msra.mxu0 %v4723_v27  ;;  %v2436_v27 = vld [vmem:[#allocation2 + $0x141] sm:$0xff] }
  0xa5   : > { %4326 = vmatprep.subr.bf16.mxu0 %v4725_v1 }
  0xa6   : > { %4055 = vmatmul.mubr.bf16.vlgmr.msra.gmra.mrb[0].mxu1 %v4939_v10  ;;  %v5129_v10 = vld [vmem:[%s4816_s10 + $0xc0] sm:$0xff] }
  0xa7   : > { %4263 = vmatmul.mubr.bf16.gmra.mrb[16].mxu0 %v4906_v40  ;;  %4087 = vmatpush3.bf16.msra.mxu1 %v4715_v9  ;;  %v4724_v40 = vld [vmem:[%s5308_s1 + $0xe0] sm:$0xff]   ;;  %v1191_v9 = vld [vmem:[#allocation2 + $0x38] sm:$0xff] }
  0xa8   : > { %4058 = vmatprep.mubr.bf16.mxu1 %v4954_v31  ;;  %4266 = vmatprep.mubr.bf16.mxu0 %v4709_v16  ;;  %v4726_v31 = vld [vmem:[%s5308_s1 + $0xe8] sm:$0xff]   ;;  %v1193_v16 = vld [vmem:[#allocation2 + $0x50] sm:$0xff] }
  0xa9   : > { %4088 = vmatprep.subr.bf16.mxu1 %v4717_v28  ;;  %v1222_v41 = vpack.c.bf16 %v1193_v16, %v1192_v15  ;;  %v1211_v15 = vld [vmem:[#allocation2 + $0x128] sm:$0xff]  ;;  %v2725_v16 = vld [vmem:[#allocation2 + $0x7a] sm:$0xff] }
  0xab   : > { %4089 = vmatpush3.bf16.msra.mxu1 %v4717_v28  ;;  %v1197_v28 = vld [vmem:[#allocation2 + $0x80] sm:$0xff] }
  0xac   : > { %4090 = vmatprep.subr.bf16.mxu1 %v4719_v20 }
  0xae   : > { %4059 = vmatmul.mubr.bf16.gmra.mrb[4].mxu1 %v4961_v34  ;;  %v2414_v34 = vld [vmem:[#allocation2 + $0x39] sm:$0xff] }
  0xaf   : > { %4267 = vmatmul.mubr.bf16.gmra.mrb[20].mxu0 %v4923_v56  ;;  %4062 = vmatprep.mubr.bf16.mxu1 %v4972_v48  ;;  %v2413_v56 = vld [vmem:[#allocation2 + $0x31] sm:$0xff] }
  0xb0   : > { %4270 = vmatprep.mubr.bf16.mxu0 %v4712_v18  ;;  %4091 = vmatpush3.bf16.msra.mxu1 %v4719_v20  ;;  %v4728_v48 = vld [vmem:[%s5308_s1 + $0xf0] sm:$0xff]   ;;  %v2445_v36 = vpack.c.bf16 %v2414_v34, %v2413_v56  ;;  %v1221_v18 = vpack.c.bf16 %v1191_v9, %v1190_v8  ;;  %v4737_v20 = vld [vmem:[%s5308_s1 + $0x108] sm:$0xff]   ;;  %v5197_v56 = vpack.c.bf16 %v2436_v27, %v2435_v26 }
  0xb1   : > { %4092 = vmatprep.subr.bf16.mxu1 %v4722_v30 }
  0xb4   : > { %4093 = vmatpush3.bf16.msra.mxu1 %v4722_v30  ;;  %v2437_v30 = vld [vmem:[#allocation2 + $0x151] sm:$0xff] }
  0xb5   : > { %4094 = vmatprep.subr.bf16.mxu1 %v4724_v40 }
  0xb6   : > { %4063 = vmatmul.mubr.bf16.gmra.mrb[8].mxu1 %v4974_v50  ;;  %v4730_v50 = vld [vmem:[%s5308_s1 + $0xf8] sm:$0xff]  }
  0xb7   : > { %4271 = vmatmul.mubr.bf16.gmra.mrb[24].mxu0 %v4942_v12  ;;  %4066 = vmatprep.mubr.bf16.mxu1 %v4986_v5  ;;  %v2415_v12 = vld [vmem:[#allocation2 + $0x49] sm:$0xff]  ;;  %v2416_v5 = vld [vmem:[#allocation2 + $0x51] sm:$0xff] }
  0xb8   : > { %4274 = vmatprep.mubr.bf16.mxu0 %v5129_v10  ;;  %4095 = vmatpush3.bf16.msra.mxu1 %v4724_v40  ;;  %v2446_v42 = vpack.c.bf16 %v2416_v5, %v2415_v12  ;;  %v2438_v40 = vld [vmem:[#allocation2 + $0x159] sm:$0xff]  ;;  %v1200_v5 = vld [vmem:[#allocation2 + $0xa8] sm:$0xff] }
  0xb9   : > { %4096 = vmatprep.subr.bf16.mxu1 %v4726_v31  ;;  %v1199_v12 = vld [vmem:[#allocation2 + $0x98] sm:$0xff] }
  0xbc   : > { %4097 = vmatpush3.bf16.msra.mxu1 %v4726_v31  ;;  %v1223_v31 = vpack.c.bf16 %v1195_v25, %v1194_v24  ;;  %v2728_v24 = vld [vmem:[#allocation2 + $0x9a] sm:$0xff]  ;;  %v1231_v25 = vpack.c.bf16 %v1211_v15, %v1210_v13 }
  0xbd   : > { %4098 = vmatprep.subr.bf16.mxu1 %v4728_v48 }
  0xbe   : > { %4067 = vmatmul.mubr.bf16.gmra.mrb[12].mxu1 %v4988_v7  ;;  %v5153_v7 = vld [vmem:[%s5308_s1 + $0x100] sm:$0xff]  }
  0xbf   : > { %4275 = vmatmul.mubr.bf16.gmra.mrb[28].mxu0 %v5019_v35  ;;  %4070 = vmatprep.mubr.bf16.mxu1 %v5000_v21  ;;  %v2419_v21 = vld [vmem:[#allocation2 + $0x79] sm:$0xff]  ;;  %v2420_v35 = vld [vmem:[#allocation2 + $0x81] sm:$0xff] }
  0xc0   : > { %4294 = vmatprep.mubr.bf16.mxu0 %v2445_v36  ;;  %4099 = vmatpush3.bf16.msra.mxu1 %v4728_v48  ;;  %v2448_v14 = vpack.c.bf16 %v2420_v35, %v2419_v21  ;;  %v5199_v48 = vpack.c.bf16 %v2438_v40, %v2437_v30  ;;  %v4738_v36 = vld [vmem:[%s5308_s1 + $0x110] sm:$0xff]   ;;  %v4740_v35 = vld [vmem:[%s5308_s1 + $0x120] sm:$0xff]  }
  0xc1   : > { %4100 = vmatprep.subr.bf16.mxu1 %v4730_v50  ;;  %v2729_v30 = vld [vmem:[#allocation2 + $0xaa] sm:$0xff]  ;;  %v2730_v40 = vld [vmem:[#allocation2 + $0xb2] sm:$0xff] }
  0xc4   : > { %4101 = vmatpush3.bf16.msra.mxu1 %v4730_v50  ;;  %v1198_v50 = vld [vmem:[#allocation2 + $0x90] sm:$0xff] }
  0xc5   : > { %4374 = vmatprep.subr.bf16.mxu1 %v5153_v7 }
  0xc6   : > { %4071 = vmatmul.mubr.bf16.gmra.mrb[16].mxu1 %v5003_v23  ;;  %v4731_v23 = vld [vmem:[%s5308_s1 + $0x218] sm:$0xff]  }
  0xc7   : > { %4295 = vmatmul.mubr.bf16.vlgmr.msra.gmra.mrb[0].mxu0 %v2446_v42  ;;  %4074 = vmatprep.mubr.bf16.mxu1 %v5016_v32  ;;  %v2423_v32 = vld [vmem:[#allocation2 + $0xa9] sm:$0xff] }
  0xc8   : > { %4327 = vmatpush3.bf16.msra.mxu0 %v4725_v1  ;;  %4298 = vmatprep.mubr.bf16.mxu0 %v2447_v43  ;;  %v2450_v57 = vpack.c.bf16 %v2424_v52, %v2423_v32  ;;  %v1196_v1 = vld [vmem:[#allocation2 + $0x78] sm:$0xff]  ;;  %v2442_v42 = vld [vmem:[#allocation2 + $0x189] sm:$0xff] }
  0xc9   : > { %4328 = vmatprep.subr.bf16.mxu0 %v4727_v44  ;;  %v1224_v34 = vpack.c.bf16 %v1197_v28, %v1196_v1  ;;  %v4739_v43 = vld [vmem:[%s5308_s1 + $0x118] sm:$0xff]   ;;  %v5209_v21 = vpack.c.bf16 %v2442_v42, %v2441_v39  ;;  %v1214_v28 = vld [vmem:[#allocation2 + $0x150] sm:$0xff] }
  0xca   : > { %v2719_v32 = vld [vmem:[#allocation2 + $0x32] sm:$0xff]  ;;  %v2720_v52 = vld [vmem:[#allocation2 + $0x3a] sm:$0xff] }
  0xcb   : > { %v2733_v42 = vld [vmem:[#allocation2 + $0xda] sm:$0xff] }
  0xcc   : > { %4329 = vmatpush3.bf16.msra.mxu0 %v4727_v44  ;;  %v1225_v44 = vpack.c.bf16 %v1199_v12, %v1198_v50  ;;  %v2732_v50 = vld [vmem:[#allocation2 + $0xca] sm:$0xff] }
  0xcd   : > { %4330 = vmatprep.subr.bf16.mxu0 %v4729_v47 }
  0xce   : > { %4075 = vmatmul.mubr.bf16.gmra.mrb[20].mxu1 %v5022_v37  ;;  %v4733_v37 = vld [vmem:[%s5308_s1 + $0x228] sm:$0xff]  }
  0xcf   : > { %4299 = vmatmul.mubr.bf16.gmra.mrb[4].mxu0 %v2448_v14  ;;  %4078 = vmatprep.mubr.bf16.mxu1 %v5037_v49  ;;  %v2427_v49 = vld [vmem:[#allocation2 + $0xd9] sm:$0xff]  ;;  %v2444_v14 = vld [vmem:[#allocation2 + $0x1a1] sm:$0xff] }
  0xd0   : > { %4302 = vmatprep.mubr.bf16.mxu0 %v2449_v33  ;;  %4331 = vmatpush3.bf16.msra.mxu0 %v4729_v47  ;;  %v5177_v4 = vpack.c.bf16 %v2428_v61, %v2427_v49  ;;  %v2443_v47 = vld [vmem:[#allocation2 + $0x199] sm:$0xff]  ;;  %v2721_v61 = vld [vmem:[#allocation2 + $0x4a] sm:$0xff] }
  0xd1   : > { %4332 = vmatprep.subr.bf16.mxu0 %v4731_v23  ;;  %v1204_v33 = vld [vmem:[#allocation2 + $0xd8] sm:$0xff]  ;;  %v2752_v8 = vpack.c.bf16 %v2722_v62, %v2721_v61 }
  0xd2   : > { %v1207_v49 = vld [vmem:[#allocation2 + $0xf8] sm:$0xff] }
  0xd4   : > { %4333 = vmatpush3.bf16.msra.mxu0 %v4731_v23  ;;  %v1205_v23 = vld [vmem:[#allocation2 + $0xe0] sm:$0xff] }
  0xd5   : > { %4334 = vmatprep.subr.bf16.mxu0 %v4732_v55 }
  0xd6   : > { %4079 = vmatmul.mubr.bf16.gmra.mrb[24].mxu1 %v5040_v51  ;;  %v5179_v51 = vpack.c.bf16 %v2430_v2, %v2429_v0  ;;  %v1209_v0 = vld [vmem:[#allocation2 + $0x110] sm:$0xff]  ;;  %v2723_v2 = vld [vmem:[#allocation2 + $0x62] sm:$0xff] }
  0xd7   : > { %4303 = vmatmul.mubr.bf16.gmra.mrb[8].mxu0 %v2450_v57  ;;  %4082 = vmatprep.mubr.bf16.mxu1 %v5051_v58  ;;  %v4735_v58 = vld [vmem:[%s5308_s1 + $0x238] sm:$0xff]   ;;  %v2751_v57 = vpack.c.bf16 %v2720_v52, %v2719_v32  ;;  %v1230_v9 = vpack.c.bf16 %v1209_v0, %v1208_v63 }
  0xd8   : > { %4306 = vmatprep.mubr.bf16.mxu0 %v2451_v59  ;;  %4335 = vmatpush3.bf16.msra.mxu0 %v4732_v55  ;;  %v2460_v55 = vpack.c.bf16 %v2444_v14, %v2443_v47  ;;  %v4742_v59 = vld [vmem:[%s5308_s1 + $0x130] sm:$0xff]   ;;  %v2739_v14 = vld [vmem:[#allocation2 + $0x122] sm:$0xff]  ;;  %v2741_v52 = vld [vmem:[#allocation2 + $0x13a] sm:$0xff] }
  0xd9   : > { %4336 = vmatprep.subr.bf16.mxu0 %v4733_v37  ;;  %v2738_v47 = vld [vmem:[#allocation2 + $0x112] sm:$0xff]  ;;  %v2749_v63 = vld [vmem:[#allocation2 + $0x19a] sm:$0xff] }
  0xdc   : > { %4337 = vmatpush3.bf16.msra.mxu0 %v4733_v37  ;;  %v1206_v37 = vld [vmem:[#allocation2 + $0xf0] sm:$0xff] }
  0xdd   : > { %4338 = vmatprep.subr.bf16.mxu0 %v4734_v3 }
  0xde   : > { %4083 = vmatmul.mubr.bf16.gmra.mrb[28].mxu1 %v5054_v60  ;;  %v5189_v60 = vpack.c.bf16 %v2434_v29, %v2433_v17  ;;  %v2726_v17 = vld [vmem:[#allocation2 + $0x82] sm:$0xff]  ;;  %v1212_v29 = vld [vmem:[#allocation2 + $0x138] sm:$0xff] }
  0xdf   : > { %4307 = vmatmul.mubr.bf16.gmra.mrb[12].mxu0 %v5177_v4  ;;  %4102 = vmatprep.mubr.bf16.mxu1 %v1220_v6  ;;  %v4743_v6 = vld [vmem:[%s5308_s1 + $0x138] sm:$0xff]   ;;  %v2754_v26 = vpack.c.bf16 %v2726_v17, %v2725_v16 }
  0xe0   : > { %4310 = vmatprep.mubr.bf16.mxu0 %v5179_v51  ;;  %4339 = vmatpush3.bf16.msra.mxu0 %v4734_v3  ;;  %v2724_v3 = vld [vmem:[#allocation2 + $0x6a] sm:$0xff] }
  0xe1   : > { %4340 = vmatprep.subr.bf16.mxu0 %v4735_v58  ;;  %v2753_v11 = vpack.c.bf16 %v2724_v3, %v2723_v2 }
  0xe4   : > { %4341 = vmatpush3.bf16.msra.mxu0 %v4735_v58  ;;  %v1229_v58 = vpack.c.bf16 %v1207_v49, %v1206_v37  ;;  %v2747_v37 = vld [vmem:[#allocation2 + $0x182] sm:$0xff]  ;;  %v2748_v49 = vld [vmem:[#allocation2 + $0x18a] sm:$0xff] }
  0xe5   : > { %v2765_v62 = vpack.c.bf16 %v2748_v49, %v2747_v37 }
  0xe6   : > { %4103 = vmatmul.mubr.bf16.vlgmr.msra.gmra.mrb[0].mxu1 %v1221_v18  ;;  %v1213_v18 = vld [vmem:[#allocation2 + $0x140] sm:$0xff] }
  0xe7   : > { %4311 = vmatmul.mubr.bf16.gmra.mrb[16].mxu0 %v5187_v22  ;;  %4382 = vmatpush3.bf16.msra.mxu1 %v5153_v7  ;;  %v1226_v7 = vpack.c.bf16 %v1201_v38, %v1200_v5  ;;  %v1232_v27 = vpack.c.bf16 %v1213_v18, %v1212_v29  ;;  %v2756_v5 = vpack.c.bf16 %v2730_v40, %v2729_v30 }
  0xe8   : > { %4106 = vmatprep.mubr.bf16.mxu1 %v1222_v41  ;;  %4314 = vmatprep.mubr.bf16.mxu0 %v5189_v60  ;;  %v2727_v41 = vld [vmem:[#allocation2 + $0x92] sm:$0xff] }
  0xe9   : > { %4375 = vmatprep.subr.bf16.mxu1 %v4737_v20  ;;  %v2755_v1 = vpack.c.bf16 %v2728_v24, %v2727_v41  ;;  %v5244_v24 = vld [vmem:[%s5309_s2] ss:$0 sm:$0xff] }
  0xeb   : > { %4383 = vmatpush3.bf16.msra.mxu1 %v4737_v20  ;;  %v1215_v20 = vld [vmem:[#allocation2 + $0x158] sm:$0xff] }
  0xec   : > { %4376 = vmatprep.subr.bf16.mxu1 %v4738_v36  ;;  %v1233_v12 = vpack.c.bf16 %v1215_v20, %v1214_v28 }
  0xee   : > { %4107 = vmatmul.mubr.bf16.gmra.mrb[4].mxu1 %v1223_v31  ;;  %v1216_v31 = vld [vmem:[#allocation2 + $0x168] sm:$0xff] }
  0xef   : > { %4315 = vmatmul.mubr.bf16.gmra.mrb[20].mxu0 %v5197_v56  ;;  %4110 = vmatprep.mubr.bf16.mxu1 %v1224_v34  ;;  %v1217_v34 = vld [vmem:[#allocation2 + $0x170] sm:$0xff] }
  0xf0   : > { %4318 = vmatprep.mubr.bf16.mxu0 %v5199_v48  ;;  %4384 = vmatpush3.bf16.msra.mxu1 %v4738_v36  ;;  %v2731_v36 = vld [vmem:[#allocation2 + $0xc2] sm:$0xff]  ;;  %v1234_v38 = vpack.c.bf16 %v1217_v34, %v1216_v31 }
  0xf1   : > { %4377 = vmatprep.subr.bf16.mxu1 %v4739_v43  ;;  %v2757_v39 = vpack.c.bf16 %v2732_v50, %v2731_v36 }
  0xf4   : > { %4385 = vmatpush3.bf16.msra.mxu1 %v4739_v43  ;;  %v2734_v43 = vld [vmem:[#allocation2 + $0xe2] sm:$0xff] }
  0xf5   : > { %4378 = vmatprep.subr.bf16.mxu1 %v4740_v35 }
  0xf6   : > { %4111 = vmatmul.mubr.bf16.gmra.mrb[8].mxu1 %v1225_v44  ;;  %v2735_v44 = vld [vmem:[#allocation2 + $0xf2] sm:$0xff] }
  0xf7   : > { %4319 = vmatmul.mubr.bf16.gmra.mrb[24].mxu0 %v4998_v19  ;;  %4114 = vmatprep.mubr.bf16.mxu1 %v1226_v7  ;;  %v1228_v19 = vpack.c.bf16 %v1205_v23, %v1204_v33  ;;  %v2736_v7 = vld [vmem:[#allocation2 + $0xfa] sm:$0xff]  ;;  %v2740_v33 = vld [vmem:[#allocation2 + $0x12a] sm:$0xff]  ;;  %v2760_v23 = vpack.c.bf16 %v2738_v47, %v2737_v46 }
  0xf8   : > { %4322 = vmatprep.mubr.bf16.mxu0 %v5209_v21  ;;  %4386 = vmatpush3.bf16.msra.mxu1 %v4740_v35  ;;  %v2758_v35 = vpack.c.bf16 %v2734_v43, %v2733_v42  ;;  %v2759_v45 = vpack.c.bf16 %v2736_v7, %v2735_v44  ;;  %v2761_v32 = vpack.c.bf16 %v2740_v33, %v2739_v14 }
  0xf9   : > { %4379 = vmatprep.subr.bf16.mxu1 %v4741_v53 }
  0xfc   : > { %4387 = vmatpush3.bf16.msra.mxu1 %v4741_v53  ;;  %v2742_v53 = vld [vmem:[#allocation2 + $0x142] sm:$0xff] }
  0xfd   : > { %4380 = vmatprep.subr.bf16.mxu1 %v4742_v59 }
  0xfe   : > { %4115 = vmatmul.mubr.bf16.gmra.mrb[12].mxu1 %v1227_v54  ;;  %v2743_v54 = vld [vmem:[#allocation2 + $0x152] sm:$0xff] }
  0xff   : > { %4323 = vmatmul.mubr.bf16.gmra.mrb[28].mxu0 %v2460_v55  ;;  %4118 = vmatprep.mubr.bf16.mxu1 %v1228_v19  ;;  %v2762_v55 = vpack.c.bf16 %v2742_v53, %v2741_v52 }
 0x100   : > { %4342 = vmatprep.mubr.bf16.mxu0 %v2751_v57  ;;  %4388 = vmatpush3.bf16.msra.mxu1 %v4742_v59  ;;  %v2746_v57 = vld [vmem:[#allocation2 + $0x172] sm:$0xff]  ;;  %v1522_v59 = vld [vmem:[#allocation2 + $0x169] sm:$0xff] }
 0x101   : > { %4381 = vmatprep.subr.bf16.mxu1 %v4743_v6 }
 0x104   : > { %4389 = vmatpush3.bf16.msra.mxu1 %v4743_v6 }
 0x106   : > { %4119 = vmatmul.mubr.bf16.gmra.mrb[16].mxu1 %v1229_v58 }
 0x107   : > { %4343 = vmatmul.mubr.bf16.vlgmr.msra.gmra.mrb[0].mxu0 %v2752_v8  ;;  %4122 = vmatprep.mubr.bf16.mxu1 %v1230_v9 }
 0x108   : > { %4346 = vmatprep.mubr.bf16.mxu0 %v2753_v11 }
 0x10e   : > { %4123 = vmatmul.mubr.bf16.gmra.mrb[20].mxu1 %v1231_v25 }
 0x10f   : > { %4347 = vmatmul.mubr.bf16.gmra.mrb[4].mxu0 %v2754_v26  ;;  %4126 = vmatprep.mubr.bf16.mxu1 %v1232_v27 }
 0x110   : > { %4350 = vmatprep.mubr.bf16.mxu0 %v2755_v1 }
 0x116   : > { %4127 = vmatmul.mubr.bf16.gmra.mrb[24].mxu1 %v1233_v12 }
 0x117   : > { %4351 = vmatmul.mubr.bf16.gmra.mrb[8].mxu0 %v2756_v5  ;;  %4130 = vmatprep.mubr.bf16.mxu1 %v1234_v38 }
 0x118   : > { %4354 = vmatprep.mubr.bf16.mxu0 %v2757_v39 }
 0x11e   : > { %4131 = vmatmul.mubr.bf16.gmra.mrb[28].mxu1 %v5129_v10  ;;  %v2744_v10 = vld [vmem:[#allocation2 + $0x15a] sm:$0xff] }
 0x11f   : > { %4355 = vmatmul.mubr.bf16.gmra.mrb[12].mxu0 %v2758_v35  ;;  %4166 = vmatprep.mubr.bf16.mxu1 %v5177_v4  ;;  %v2763_v19 = vpack.c.bf16 %v2744_v10, %v2743_v54  ;;  %v2745_v4 = vld [vmem:[#allocation2 + $0x16a] sm:$0xff] }
 0x120   : > { %4358 = vmatprep.mubr.bf16.mxu0 %v2759_v45 }
 0x126   : > { %4167 = vmatmul.mubr.bf16.vlgmr.msra.gmra.mrb[16].mxu1 %v5179_v51  ;;  %v1523_v51 = vld [vmem:[#allocation2 + $0x171] sm:$0xff] }
 0x127   : > { %4359 = vmatmul.mubr.bf16.gmra.mrb[16].mxu0 %v2760_v23  ;;  %4170 = vmatprep.mubr.bf16.mxu1 %v5187_v22  ;;  %v2764_v22 = vpack.c.bf16 %v2746_v57, %v2745_v4  ;;  %v1540_v61 = vpack.c.bf16 %v1523_v51, %v1522_v59 }
 0x128   : > { %4362 = vmatprep.mubr.bf16.mxu0 %v2761_v32 }
 0x12e   : > { %4171 = vmatmul.mubr.bf16.gmra.mrb[20].mxu1 %v5189_v60  ;;  %v2750_v60 = vld [vmem:[#allocation2 + $0x1a2] sm:$0xff] }
 0x12f   : > { %4363 = vmatmul.mubr.bf16.gmra.mrb[20].mxu0 %v2762_v55  ;;  %4174 = vmatprep.mubr.bf16.mxu1 %v5197_v56  ;;  %v2766_v0 = vpack.c.bf16 %v2750_v60, %v2749_v63 }
 0x130   : > { %4366 = vmatprep.mubr.bf16.mxu0 %v2763_v19 }
 0x136   : > { %4175 = vmatmul.mubr.bf16.gmra.mrb[24].mxu1 %v5199_v48 }
 0x137   : > { %4367 = vmatmul.mubr.bf16.gmra.mrb[24].mxu0 %v2764_v22  ;;  %4178 = vmatprep.mubr.bf16.mxu1 %v1540_v61 }
 0x138   : > { %4370 = vmatprep.mubr.bf16.mxu0 %v2765_v62 }
 0x13e   : > { %4179 = vmatmul.mubr.bf16.gmra.mrb[28].mxu1 %v5209_v21 }
 0x13f   : > { %4371 = vmatmul.mubr.bf16.gmra.mrb[28].mxu0 %v2766_v0 }
 0x1b9   : > { %v4104_v56 = vpop.f32.mrb[0].mxu1 }
 0x1ba   : > { %v1335_v2 = vpop.f32.mrb[1].mxu1 }
 0x1bb   : > { %v4105_v3 = vpop.f32.mrb[2].mxu1 }
 0x1bc   : > { %v1338_v6 = vpop.f32.mrb[3].mxu1 }
 0x1c1   : > { %v4108_v58 = vpop.f32.mrb[4].mxu1 }
 0x1c2   : > { %v1351_v8 = vpop.f32.mrb[5].mxu1 }
 0x1c3   : > { %v4109_v9 = vpop.f32.mrb[6].mxu1 }
 0x1c4   : > { %v1354_v11 = vpop.f32.mrb[7].mxu1 }
 0x1c9   : > { %v4112_v13 = vpop.f32.mrb[8].mxu1 }
 0x1ca   : > { %v1367_v15 = vpop.f32.mrb[9].mxu1 }
 0x1cb   : > { %v4113_v48 = vpop.f32.mrb[10].mxu1 }
 0x1cc   : > { %v1370_v16 = vpop.f32.mrb[11].mxu1 }
 0x1d1   : > { %v5233_v17 = vpop.f32.mrb[12].mxu1 }
 0x1d2   : > { %v5235_v29 = vpop.f32.mrb[13].mxu1 }
 0x1d3   : > { %v5237_v18 = vpop.f32.mrb[14].mxu1 }
 0x1d4   : > { %v5239_v21 = vpop.f32.mrb[15].mxu1 }
 0x1da   : > { %v4344_v41 = vpop.f32.mrb[0].mxu0 }
 0x1db   : > { %v4390_v25 = vadd.f32 %v4344_v41, %v4104_v56  ;;  %v2866_v26 = vpop.f32.mrb[1].mxu0 }
 0x1dc   : > { %v4391_v27 = vadd.f32 %v2866_v26, %v1335_v2  ;;  %v4345_v1 = vpop.f32.mrb[2].mxu0 }
 0x1dd   : > { %v3034_v28 = vadd.f32 %v4390_v25, %v5244_v24  ;;  %v4392_v20 = vadd.f32 %v4345_v1, %v4105_v3  ;;  %v2869_v30 = vpop.f32.mrb[3].mxu0 }
 0x1de   : > { %v3032_v40 = vadd.f32 %v4391_v27, %v5244_v24  ;;  %v4393_v31 = vadd.f32 %v2869_v30, %v1338_v6 }
 0x1df   : > { %v3035_v34 = vadd.f32 %v4392_v20, %v5244_v24  ;;  %v3066_v50 = vmax.f32 %v3034_v28, 0.0 }
 0x1e0   : > { %v3033_v36 = vadd.f32 %v4393_v31, %v5244_v24  ;;  %v3064_v5 = vmax.f32 %v3032_v40, 0.0 }
 0x1e1   : > { %v3067_v12 = vmax.f32 %v3035_v34, 0.0 }
 0x1e2   : > { %v3065_v38 = vmax.f32 %v3033_v36, 0.0  ;;  %v4348_v39 = vpop.f32.mrb[4].mxu0 }
 0x1e3   : > { %v3631_v42 = vpack.c.bf16 %v3067_v12, %v3066_v50  ;;  %v4394_v43 = vadd.f32 %v4348_v39, %v4108_v58  ;;  %v2882_v44 = vpop.f32.mrb[5].mxu0 }
 0x1e4   : > { %v3626_v7 = vpack.c.bf16 %v3065_v38, %v3064_v5  ;;  %v4395_v35 = vadd.f32 %v2882_v44, %v1351_v8  ;;  %v4349_v45 = vpop.f32.mrb[6].mxu0 }
 0x1e5   : > { %3711 = vst [vmem:[%s5254_s9 + $0x8] sm:$0xff] %v3631_v42   ;;  %v3038_v46 = vadd.f32 %v4394_v43, %v5244_v24  ;;  %v4396_v47 = vadd.f32 %v4349_v45, %v4109_v9  ;;  %v2885_v14 = vpop.f32.mrb[7].mxu0 }
 0x1e6   : > { %3627 = vst [vmem:[%s5254_s9] sm:$0xff] %v3626_v7   ;;  %v3036_v33 = vadd.f32 %v4395_v35, %v5244_v24  ;;  %v4397_v23 = vadd.f32 %v2885_v14, %v1354_v11 }
 0x1e7   : > { %v3039_v32 = vadd.f32 %v4396_v47, %v5244_v24  ;;  %v3070_v53 = vmax.f32 %v3038_v46, 0.0 }
 0x1e8   : > { %v3037_v52 = vadd.f32 %v4397_v23, %v5244_v24  ;;  %v3068_v10 = vmax.f32 %v3036_v33, 0.0 }
 0x1e9   : > { %v3071_v54 = vmax.f32 %v3039_v32, 0.0 }
 0x1ea   : > { %v3069_v55 = vmax.f32 %v3037_v52, 0.0  ;;  %v4352_v19 = vpop.f32.mrb[8].mxu0 }
 0x1eb   : > { %v3641_v4 = vpack.c.bf16 %v3071_v54, %v3070_v53  ;;  %v4398_v57 = vadd.f32 %v4352_v19, %v4112_v13  ;;  %v2898_v59 = vpop.f32.mrb[9].mxu0 }
 0x1ec   : > { %v3636_v51 = vpack.c.bf16 %v3069_v55, %v3068_v10  ;;  %v4399_v37 = vadd.f32 %v2898_v59, %v1367_v15  ;;  %v4353_v49 = vpop.f32.mrb[10].mxu0 }
 0x1ed   : > { %3713 = vst [vmem:[%s5254_s9 + $0x18] sm:$0xff] %v3641_v4   ;;  %v3042_v22 = vadd.f32 %v4398_v57, %v5244_v24  ;;  %v4400_v61 = vadd.f32 %v4353_v49, %v4113_v48  ;;  %v2901_v62 = vpop.f32.mrb[11].mxu0 }
 0x1ee   : > { %3712 = vst [vmem:[%s5254_s9 + $0x10] sm:$0xff] %v3636_v51   ;;  %v3040_v63 = vadd.f32 %v4399_v37, %v5244_v24  ;;  %v4401_v60 = vadd.f32 %v2901_v62, %v1370_v16 }
 0x1ef   : > { %v3043_v0 = vadd.f32 %v4400_v61, %v5244_v24  ;;  %v3074_v2 = vmax.f32 %v3042_v22, 0.0 }
 0x1f0   : > { %v3041_v56 = vadd.f32 %v4401_v60, %v5244_v24  ;;  %v3072_v6 = vmax.f32 %v3040_v63, 0.0 }
 0x1f1   : > { %v3075_v3 = vmax.f32 %v3043_v0, 0.0 }
 0x1f2   : > { %v3073_v58 = vmax.f32 %v3041_v56, 0.0  ;;  %v4356_v8 = vpop.f32.mrb[12].mxu0 }
 0x1f3   : > { %v3651_v9 = vpack.c.bf16 %v3075_v3, %v3074_v2  ;;  %v4402_v11 = vadd.f32 %v4356_v8, %v5233_v17  ;;  %v2914_v13 = vpop.f32.mrb[13].mxu0 }
 0x1f4   : > { %v3646_v15 = vpack.c.bf16 %v3073_v58, %v3072_v6  ;;  %v4403_v48 = vadd.f32 %v2914_v13, %v5235_v29  ;;  %v4357_v41 = vpop.f32.mrb[14].mxu0 }
 0x1f5   : > { %3715 = vst [vmem:[%s5254_s9 + $0x28] sm:$0xff] %v3651_v9   ;;  %v3046_v16 = vadd.f32 %v4402_v11, %v5244_v24  ;;  %v4404_v25 = vadd.f32 %v4357_v41, %v5237_v18  ;;  %v2917_v26 = vpop.f32.mrb[15].mxu0 }
 0x1f6   : > { %3714 = vst [vmem:[%s5254_s9 + $0x20] sm:$0xff] %v3646_v15   ;;  %v3044_v27 = vadd.f32 %v4403_v48, %v5244_v24  ;;  %v4405_v1 = vadd.f32 %v2917_v26, %v5239_v21 }
 0x1f7   : > { %v3047_v28 = vadd.f32 %v4404_v25, %v5244_v24  ;;  %v3078_v20 = vmax.f32 %v3046_v16, 0.0 }
 0x1f8   : > { %v3045_v17 = vadd.f32 %v4405_v1, %v5244_v24  ;;  %v3076_v40 = vmax.f32 %v3044_v27, 0.0 }
 0x1f9   : > { %v3079_v30 = vmax.f32 %v3047_v28, 0.0  ;;  %v4168_v29 = vpop.f32.mrb[16].mxu1 }
 0x1fa   : > { %v3077_v31 = vmax.f32 %v3045_v17, 0.0  ;;  %v4360_v34 = vpop.f32.mrb[16].mxu0  ;;  %v1705_v36 = vpop.f32.mrb[17].mxu1 }
 0x1fb   : > { %v3661_v18 = vpack.c.bf16 %v3079_v30, %v3078_v20  ;;  %v4406_v50 = vadd.f32 %v4360_v34, %v4168_v29  ;;  %v2930_v12 = vpop.f32.mrb[17].mxu0  ;;  %v4169_v5 = vpop.f32.mrb[18].mxu1 }
 0x1fc   : > { %v3656_v38 = vpack.c.bf16 %v3077_v31, %v3076_v40  ;;  %v4407_v39 = vadd.f32 %v2930_v12, %v1705_v36  ;;  %v4361_v21 = vpop.f32.mrb[18].mxu0  ;;  %v1708_v42 = vpop.f32.mrb[19].mxu1 }
 0x1fd   : > { %3717 = vst [vmem:[%s5254_s9 + $0x38] sm:$0xff] %v3661_v18   ;;  %v3050_v43 = vadd.f32 %v4406_v50, %v5244_v24  ;;  %v4408_v44 = vadd.f32 %v4361_v21, %v4169_v5  ;;  %v2933_v7 = vpop.f32.mrb[19].mxu0 }
 0x1fe   : > { %3716 = vst [vmem:[%s5254_s9 + $0x30] sm:$0xff] %v3656_v38   ;;  %v3048_v35 = vadd.f32 %v4407_v39, %v5244_v24  ;;  %v4409_v45 = vadd.f32 %v2933_v7, %v1708_v42 }
 0x1ff   : > { %v3051_v46 = vadd.f32 %v4408_v44, %v5244_v24  ;;  %v3082_v14 = vmax.f32 %v3050_v43, 0.0 }
 0x200   : > { %v3049_v47 = vadd.f32 %v4409_v45, %v5244_v24  ;;  %v3080_v32 = vmax.f32 %v3048_v35, 0.0 }
 0x201   : > { %v3083_v33 = vmax.f32 %v3051_v46, 0.0  ;;  %v4172_v23 = vpop.f32.mrb[20].mxu1 }
 0x202   : > { %v3081_v52 = vmax.f32 %v3049_v47, 0.0  ;;  %v4364_v53 = vpop.f32.mrb[20].mxu0  ;;  %v1721_v54 = vpop.f32.mrb[21].mxu1 }
 0x203   : > { %v3671_v10 = vpack.c.bf16 %v3083_v33, %v3082_v14  ;;  %v4410_v55 = vadd.f32 %v4364_v53, %v4172_v23  ;;  %v2946_v19 = vpop.f32.mrb[21].mxu0  ;;  %v4173_v4 = vpop.f32.mrb[22].mxu1 }
 0x204   : > { %v3666_v57 = vpack.c.bf16 %v3081_v52, %v3080_v32  ;;  %v4411_v59 = vadd.f32 %v2946_v19, %v1721_v54  ;;  %v4365_v51 = vpop.f32.mrb[22].mxu0  ;;  %v1724_v37 = vpop.f32.mrb[23].mxu1 }
 0x205   : > { %3719 = vst [vmem:[%s5254_s9 + $0x48] sm:$0xff] %v3671_v10   ;;  %v3054_v49 = vadd.f32 %v4410_v55, %v5244_v24  ;;  %v4412_v22 = vadd.f32 %v4365_v51, %v4173_v4  ;;  %v2949_v61 = vpop.f32.mrb[23].mxu0 }
 0x206   : > { %3718 = vst [vmem:[%s5254_s9 + $0x40] sm:$0xff] %v3666_v57   ;;  %v3052_v62 = vadd.f32 %v4411_v59, %v5244_v24  ;;  %v4413_v63 = vadd.f32 %v2949_v61, %v1724_v37 }
 0x207   : > { %v3055_v60 = vadd.f32 %v4412_v22, %v5244_v24  ;;  %v3086_v56 = vmax.f32 %v3054_v49, 0.0 }
 0x208   : > { %v3053_v0 = vadd.f32 %v4413_v63, %v5244_v24  ;;  %v3084_v6 = vmax.f32 %v3052_v62, 0.0 }
 0x209   : > { %v3087_v2 = vmax.f32 %v3055_v60, 0.0  ;;  %v4176_v3 = vpop.f32.mrb[24].mxu1 }
 0x20a   : > { %v3085_v58 = vmax.f32 %v3053_v0, 0.0  ;;  %v4368_v8 = vpop.f32.mrb[24].mxu0  ;;  %v1737_v9 = vpop.f32.mrb[25].mxu1 }
 0x20b   : > { %v3681_v11 = vpack.c.bf16 %v3087_v2, %v3086_v56  ;;  %v4414_v13 = vadd.f32 %v4368_v8, %v4176_v3  ;;  %v2962_v15 = vpop.f32.mrb[25].mxu0  ;;  %v4177_v48 = vpop.f32.mrb[26].mxu1 }
 0x20c   : > { %v3676_v41 = vpack.c.bf16 %v3085_v58, %v3084_v6  ;;  %v4415_v16 = vadd.f32 %v2962_v15, %v1737_v9  ;;  %v4369_v25 = vpop.f32.mrb[26].mxu0  ;;  %v1740_v26 = vpop.f32.mrb[27].mxu1 }
 0x20d   : > { %3721 = vst [vmem:[%s5254_s9 + $0x58] sm:$0xff] %v3681_v11   ;;  %v3058_v27 = vadd.f32 %v4414_v13, %v5244_v24  ;;  %v4416_v1 = vadd.f32 %v4369_v25, %v4177_v48  ;;  %v2965_v28 = vpop.f32.mrb[27].mxu0 }
 0x20e   : > { %3720 = vst [vmem:[%s5254_s9 + $0x50] sm:$0xff] %v3676_v41   ;;  %v3056_v17 = vadd.f32 %v4415_v16, %v5244_v24  ;;  %v4417_v20 = vadd.f32 %v2965_v28, %v1740_v26 }
 0x20f   : > { %v3059_v30 = vadd.f32 %v4416_v1, %v5244_v24  ;;  %v3090_v40 = vmax.f32 %v3058_v27, 0.0 }
 0x210   : > { %v3057_v29 = vadd.f32 %v4417_v20, %v5244_v24  ;;  %v3088_v36 = vmax.f32 %v3056_v17, 0.0 }
 0x211   : > { %v3091_v31 = vmax.f32 %v3059_v30, 0.0  ;;  %v4180_v34 = vpop.f32.mrb[28].mxu1 }
 0x212   : > { %v3089_v18 = vmax.f32 %v3057_v29, 0.0  ;;  %v4372_v50 = vpop.f32.mrb[28].mxu0  ;;  %v1753_v12 = vpop.f32.mrb[29].mxu1 }
 0x213   : > { %v3691_v5 = vpack.c.bf16 %v3091_v31, %v3090_v40  ;;  %v4418_v38 = vadd.f32 %v4372_v50, %v4180_v34  ;;  %v2978_v39 = vpop.f32.mrb[29].mxu0  ;;  %v4181_v21 = vpop.f32.mrb[30].mxu1 }
 0x214   : > { %v3686_v42 = vpack.c.bf16 %v3089_v18, %v3088_v36  ;;  %v4419_v43 = vadd.f32 %v2978_v39, %v1753_v12  ;;  %v4373_v44 = vpop.f32.mrb[30].mxu0  ;;  %v1756_v7 = vpop.f32.mrb[31].mxu1 }
 0x215   : > { %3723 = vst [vmem:[%s5254_s9 + $0x68] sm:$0xff] %v3691_v5   ;;  %v3062_v35 = vadd.f32 %v4418_v38, %v5244_v24  ;;  %v4420_v45 = vadd.f32 %v4373_v44, %v4181_v21  ;;  %v2981_v46 = vpop.f32.mrb[31].mxu0 }
 0x216   : > { %3722 = vst [vmem:[%s5254_s9 + $0x60] sm:$0xff] %v3686_v42   ;;  %v3060_v47 = vadd.f32 %v4419_v43, %v5244_v24  ;;  %v4421_v14 = vadd.f32 %v2981_v46, %v1756_v7 }
 0x217   : > { %v3063_v33 = vadd.f32 %v4420_v45, %v5244_v24  ;;  %v3094_v32 = vmax.f32 %v3062_v35, 0.0 }
 0x218   : > { %v3061_v23 = vadd.f32 %v4421_v14, %v5244_v24  ;;  %v3092_v53 = vmax.f32 %v3060_v47, 0.0 }
 0x219   : > { %v3095_v52 = vmax.f32 %v3063_v33, 0.0 }
 0x21a   : > { %v3093_v54 = vmax.f32 %v3061_v23, 0.0 }
 0x21b   : > { %v3701_v10 = vpack.c.bf16 %v3095_v52, %v3094_v32 }
 0x21c   : > { %v3696_v55 = vpack.c.bf16 %v3093_v54, %v3092_v53 }
 0x21d   : > { %3725 = vst [vmem:[%s5254_s9 + $0x78] sm:$0xff] %v3701_v10  }
 0x21e   : > { %3724 = vst [vmem:[%s5254_s9 + $0x70] sm:$0xff] %v3696_v55  }
 0x21f PF: > { %s13_s12 = sadd.s32 1, %s4750_s12  }
 0x220   : > { %p10_p4 = scmp.ge.s32.totalorder %s13_s12, 4  }
 0x222   :  { %12 = sbr.rel (!%p10_p4) target bundleno = 1 (0x1), region = 72 }

// kernel: scat_resnet_forward.4
= control target key start
LH: loop header
LB: loop body
LE: loop exit
PB: predicated region body
PF: predicated region fallthrough
CT: control target
= control target key end

     0   :  { %s8923_s18 = smov 0   ;;  %s9939_s0 = inlined_call_operand.vmem [shape: bf16[2,18,18,128], index: 0, kind: input, shape index: {}]   ;;  %s9940_s1 = inlined_call_operand.vmem [shape: bf16[9,128,128], index: 1, kind: input, shape index: {}]   ;;  %s9941_s2 = inlined_call_operand.vmem [shape: f32[1,128], index: 2, kind: input, shape index: {}, may-alias: {2,4}]   ;;  %s9942_s3 = inlined_call_operand.vmem [shape: bf16[9,128,128], index: 3, kind: input, shape index: {}]   ;;  %s9943_s4 = inlined_call_operand.vmem [shape: f32[1,128], index: 4, kind: input, shape index: {}, may-alias: {2,4}]   ;;  %s9944_s5 = inlined_call_operand.vmem [shape: bf16[2,16,16,128], index: 5, kind: output, shape index: {}]  }
   0x1 LB: > { %s6295_s19 = sadd.s32 4294967295, %s8889_s18   ;;  %p6299_p0 = scmp.ge.s32.totalorder %s8889_s18, 1  ;;  %s8889_s18 = sphi %s8923_s18, %s15_s18  }
   0x2   : > { %p187_p1 = scmp.lt.s32.totalorder %s8889_s18, 3 }
   0x4   : > { %p188_p2 = pnand %p6299_p0, %p187_p1 }
   0x5   : > { %v8729_v0 = vld [vmem:[%s9940_s1 + $0x40] sm:$0xff] (!%p188_p2)   ;;  %p215_p3 = scmp.lt.s32.totalorder (!%p188_p2), %s6295_s19, 1  ;;  %v8730_v1 = vld [vmem:[%s9940_s1 + $0x48] sm:$0xff] (!%p188_p2)   ;;  %v8731_v2 = vld [vmem:[%s9940_s1 + $0x50] sm:$0xff] (!%p188_p2)  }
   0x6   : > { %191 = sbr.rel (%p188_p2) target bundleno = 1563 (0x61b), region = 40  ;;  %7343 = vmatprep.subr.bf16.mxu0 (!%p188_p2), %v8729_v0  ;;  %v8732_v3 = vld [vmem:[%s9940_s1 + $0x58] sm:$0xff] (!%p188_p2)   ;;  %v8733_v21 = vld [vmem:[%s9940_s1 + $0x60] sm:$0xff] (!%p188_p2)   ;;  %v8734_v31 = vld [vmem:[%s9940_s1 + $0x68] sm:$0xff] (!%p188_p2)  }
   0x7   : > { %7344 = vmatpush3.bf16.msra.mxu0 (!%p188_p2), %v8729_v0  ;;  %v8735_v58 = vld [vmem:[%s9940_s1 + $0x70] sm:$0xff] (!%p188_p2)   ;;  %v8736_v61 = vld [vmem:[%s9940_s1 + $0x78] sm:$0xff] (!%p188_p2)  }
   0x8   : > { %7345 = vmatprep.subr.bf16.mxu0 (!%p188_p2), %v8730_v1 }
   0xb   : > { %7346 = vmatpush3.bf16.msra.mxu0 (!%p188_p2), %v8730_v1 }
   0xc   : > { %7347 = vmatprep.subr.bf16.mxu0 (!%p188_p2), %v8731_v2 }
   0xd   : > { %s9946_s19 = smov (!%p215_p3, %s6295_s19), 1 }
   0xe   : > { %s8719_s26 = smul.u32 216, %s9946_s19  ;;  %s6739_s21 = sshll.u32 %s9946_s19, 7 }
   0xf   : > { %7348 = vmatpush3.bf16.msra.mxu0 %v8731_v2  ;;  %s9890_s24 = scalar_lea.vmem %s9944_s5, %s6739_s21 }
  0x10   : > { %s8946_s29 = scalar_lea.vmem %s9939_s0, %s8719_s26  ;;  %7349 = vmatprep.subr.bf16.mxu0 %v8732_v3 }
  0x11   : > { %v6773_v4 = vld [vmem:[%s8946_s29] sm:$0xff]   ;;  %v228_v5 = vld [vmem:[%s8946_s29 + $0x8] sm:$0x1]  ;;  %v8954_v6 = vld [vmem:[%s8946_s29 + $0xc] sm:$0xff]  }
  0x12   : > { %v6774_v7 = vunpack.c.l.bf16 %v6773_v4  ;;  %v6775_v8 = vunpack.c.h.bf16 %v6773_v4  ;;  %v282_v9 = vunpack.c.l.bf16 %v228_v5  ;;  %v231_v10 = vld [vmem:[%s8946_s29 + $0x14] sm:$0x1]  ;;  %v283_v11 = vunpack.c.l.bf16 %v8954_v6  ;;  %v6888_v14 = vld [vmem:[%s8946_s29 + $0x18] sm:$0xff]   ;;  %v234_v15 = vld [vmem:[%s8946_s29 + $0x20] sm:$0x1] }
  0x13   : > { %v284_v12 = vunpack.c.h.bf16 %v8954_v6  ;;  %v285_v13 = vunpack.c.l.bf16 %v231_v10  ;;  %v6778_v16 = vunpack.c.l.bf16 %v6888_v14  ;;  %v6779_v17 = vunpack.c.h.bf16 %v6888_v14  ;;  %v8962_v19 = vld [vmem:[%s8946_s29 + $0x24] sm:$0xff]   ;;  %v237_v20 = vld [vmem:[%s8946_s29 + $0x2c] sm:$0x1]  ;;  %v6889_v25 = vld [vmem:[%s8946_s29 + $0x30] sm:$0xff]   ;;  %7350 = vmatpush3.bf16.msra.mxu0 %v8732_v3 }
  0x14   : > { %334 = vst [vmem:[#allocation2] sm:$0xff] %v6774_v7  ;;  %335 = vst [vmem:[#allocation2 + $0x8] sm:$0xff] %v6775_v8  ;;  %v288_v18 = vunpack.c.l.bf16 %v234_v15  ;;  %v289_v22 = vunpack.c.l.bf16 %v8962_v19  ;;  %v290_v23 = vunpack.c.h.bf16 %v8962_v19  ;;  %v291_v24 = vunpack.c.l.bf16 %v237_v20  ;;  %v240_v28 = vld [vmem:[%s8946_s29 + $0x38] sm:$0x1]  ;;  %v8973_v29 = vld [vmem:[%s8946_s29 + $0x3c] sm:$0xff]   ;;  %7351 = vmatprep.subr.bf16.mxu0 %v8733_v21 }
  0x15   : > { %336 = vst [vmem:[#allocation2 + $0x10] sm:$0x3] %v282_v9  ;;  %337 = vst [vmem:[#allocation2 + $0x18] sm:$0xff] %v283_v11  ;;  %v6782_v26 = vunpack.c.l.bf16 %v6889_v25  ;;  %v6783_v27 = vunpack.c.h.bf16 %v6889_v25  ;;  %v243_v30 = vld [vmem:[%s8946_s29 + $0x44] sm:$0x1]  ;;  %v294_v32 = vunpack.c.l.bf16 %v240_v28  ;;  %v295_v33 = vunpack.c.l.bf16 %v8973_v29  ;;  %v6890_v36 = vld [vmem:[%s8946_s29 + $0x48] sm:$0xff]  }
  0x16   : > { %338 = vst [vmem:[#allocation2 + $0x20] sm:$0xff] %v284_v12  ;;  %339 = vst [vmem:[#allocation2 + $0x28] sm:$0x3] %v285_v13  ;;  %v296_v34 = vunpack.c.h.bf16 %v8973_v29  ;;  %v297_v35 = vunpack.c.l.bf16 %v243_v30  ;;  %v246_v37 = vld [vmem:[%s8946_s29 + $0x50] sm:$0x1]  ;;  %v8984_v38 = vld [vmem:[%s8946_s29 + $0x54] sm:$0xff]   ;;  %v6786_v39 = vunpack.c.l.bf16 %v6890_v36  ;;  %v6787_v40 = vunpack.c.h.bf16 %v6890_v36 }
  0x17   : > { %340 = vst [vmem:[#allocation2 + $0x30] sm:$0xff] %v6778_v16  ;;  %341 = vst [vmem:[#allocation2 + $0x38] sm:$0xff] %v6779_v17  ;;  %v300_v41 = vunpack.c.l.bf16 %v246_v37  ;;  %v249_v42 = vld [vmem:[%s8946_s29 + $0x5c] sm:$0x1]  ;;  %v301_v43 = vunpack.c.l.bf16 %v8984_v38  ;;  %v302_v44 = vunpack.c.h.bf16 %v8984_v38  ;;  %v6891_v46 = vld [vmem:[%s8946_s29 + $0x60] sm:$0xff]   ;;  %7352 = vmatpush3.bf16.msra.mxu0 %v8733_v21 }
  0x18   : > { %342 = vst [vmem:[#allocation2 + $0x40] sm:$0x3] %v288_v18  ;;  %343 = vst [vmem:[#allocation2 + $0x48] sm:$0xff] %v289_v22  ;;  %v303_v45 = vunpack.c.l.bf16 %v249_v42  ;;  %v252_v47 = vld [vmem:[%s8946_s29 + $0x68] sm:$0x1]  ;;  %v6790_v50 = vunpack.c.l.bf16 %v6891_v46  ;;  %v6791_v51 = vunpack.c.h.bf16 %v6891_v46  ;;  %v8992_v53 = vld [vmem:[%s8946_s29 + $0x6c] sm:$0xff]   ;;  %7353 = vmatprep.subr.bf16.mxu0 %v8734_v31 }
  0x19   : > { %344 = vst [vmem:[#allocation2 + $0x50] sm:$0xff] %v290_v23  ;;  %345 = vst [vmem:[#allocation2 + $0x58] sm:$0x3] %v291_v24  ;;  %v306_v52 = vunpack.c.l.bf16 %v252_v47  ;;  %v255_v55 = vld [vmem:[%s8946_s29 + $0x74] sm:$0x1]  ;;  %v307_v56 = vunpack.c.l.bf16 %v8992_v53  ;;  %v308_v57 = vunpack.c.h.bf16 %v8992_v53  ;;  %v6892_v60 = vld [vmem:[%s8946_s29 + $0x78] sm:$0xff]  }
  0x1a   : > { %346 = vst [vmem:[#allocation2 + $0x60] sm:$0xff] %v6782_v26  ;;  %347 = vst [vmem:[#allocation2 + $0x68] sm:$0xff] %v6783_v27  ;;  %v309_v59 = vunpack.c.l.bf16 %v255_v55  ;;  %v6794_v62 = vunpack.c.l.bf16 %v6892_v60  ;;  %v6795_v63 = vunpack.c.h.bf16 %v6892_v60  ;;  %v258_v0 = vld [vmem:[%s8946_s29 + $0x80] sm:$0x1]  ;;  %v9006_v1 = vld [vmem:[%s8946_s29 + $0x84] sm:$0xff]  }
  0x1b   : > { %348 = vst [vmem:[#allocation2 + $0x70] sm:$0x3] %v294_v32  ;;  %349 = vst [vmem:[#allocation2 + $0x78] sm:$0xff] %v295_v33  ;;  %v452_v48 = vld [vmem:[#allocation2 + $0x1] sm:$0xff]  ;;  %7354 = vmatpush3.bf16.msra.mxu0 %v8734_v31  ;;  %v261_v2 = vld [vmem:[%s8946_s29 + $0x8c] sm:$0x1]  ;;  %v312_v3 = vunpack.c.l.bf16 %v258_v0  ;;  %v313_v4 = vunpack.c.l.bf16 %v9006_v1  ;;  %v314_v5 = vunpack.c.h.bf16 %v9006_v1 }
  0x1c   : > { %350 = vst [vmem:[#allocation2 + $0x80] sm:$0xff] %v296_v34  ;;  %351 = vst [vmem:[#allocation2 + $0x88] sm:$0x3] %v297_v35  ;;  %v453_v49 = vld [vmem:[#allocation2 + $0x9] sm:$0xff]  ;;  %7355 = vmatprep.subr.bf16.mxu0 %v8735_v58  ;;  %v315_v7 = vunpack.c.l.bf16 %v261_v2  ;;  %v8737_v8 = vld [vmem:[%s9940_s1] sm:$0xff]  }
  0x1d   : > { %352 = vst [vmem:[#allocation2 + $0x90] sm:$0xff] %v6786_v39  ;;  %353 = vst [vmem:[#allocation2 + $0x98] sm:$0xff] %v6787_v40  ;;  %v484_v54 = vpack.c.bf16 %v453_v49, %v452_v48  ;;  %v454_v9 = vld [vmem:[#allocation2 + $0x19] sm:$0xff]  ;;  %v455_v10 = vld [vmem:[#allocation2 + $0x21] sm:$0xff] }
  0x1e   : > { %354 = vst [vmem:[#allocation2 + $0xa0] sm:$0x3] %v300_v41  ;;  %355 = vst [vmem:[#allocation2 + $0xa8] sm:$0xff] %v301_v43  ;;  %v456_v11 = vld [vmem:[#allocation2 + $0x31] sm:$0xff]  ;;  %v9017_v18 = vld [vmem:[%s8946_s29 + $0x9c] sm:$0xff]   ;;  %v485_v21 = vpack.c.bf16 %v455_v10, %v454_v9 }
  0x1f   : > { %356 = vst [vmem:[#allocation2 + $0xb0] sm:$0xff] %v302_v44  ;;  %357 = vst [vmem:[#allocation2 + $0xb8] sm:$0x3] %v303_v45  ;;  %7359 = vmatprep.mubr.bf16.mxu0 %v484_v54  ;;  %7356 = vmatpush3.bf16.msra.mxu0 %v8735_v58  ;;  %v457_v12 = vld [vmem:[#allocation2 + $0x39] sm:$0xff]  ;;  %v6893_v13 = vld [vmem:[%s8946_s29 + $0x90] sm:$0xff]   ;;  %v319_v22 = vunpack.c.l.bf16 %v9017_v18  ;;  %v320_v23 = vunpack.c.h.bf16 %v9017_v18 }
  0x20   : > { %358 = vst [vmem:[#allocation2 + $0xc0] sm:$0xff] %v6790_v50  ;;  %359 = vst [vmem:[#allocation2 + $0xc8] sm:$0xff] %v6791_v51  ;;  %7357 = vmatprep.subr.bf16.mxu0 %v8736_v61  ;;  %v264_v14 = vld [vmem:[%s8946_s29 + $0x98] sm:$0x1]  ;;  %v6798_v15 = vunpack.c.l.bf16 %v6893_v13  ;;  %v6799_v16 = vunpack.c.h.bf16 %v6893_v13  ;;  %v267_v20 = vld [vmem:[%s8946_s29 + $0xa4] sm:$0x1]  ;;  %v486_v25 = vpack.c.bf16 %v457_v12, %v456_v11 }
  0x21   : > { %360 = vst [vmem:[#allocation2 + $0xd0] sm:$0x3] %v306_v52  ;;  %361 = vst [vmem:[#allocation2 + $0xd8] sm:$0xff] %v307_v56  ;;  %v318_v17 = vunpack.c.l.bf16 %v264_v14  ;;  %v321_v24 = vunpack.c.l.bf16 %v267_v20  ;;  %v6894_v26 = vld [vmem:[%s8946_s29 + $0xa8] sm:$0xff]   ;;  %v270_v27 = vld [vmem:[%s8946_s29 + $0xb0] sm:$0x1] }
  0x22   : > { %362 = vst [vmem:[#allocation2 + $0xe0] sm:$0xff] %v308_v57  ;;  %363 = vst [vmem:[#allocation2 + $0xe8] sm:$0x3] %v309_v59  ;;  %v9025_v28 = vld [vmem:[%s8946_s29 + $0xb4] sm:$0xff]   ;;  %v8738_v30 = vld [vmem:[%s9940_s1 + $0x8] sm:$0xff]   ;;  %v6802_v31 = vunpack.c.l.bf16 %v6894_v26  ;;  %v6803_v32 = vunpack.c.h.bf16 %v6894_v26  ;;  %v324_v33 = vunpack.c.l.bf16 %v270_v27 }
  0x23   : > { %364 = vst [vmem:[#allocation2 + $0xf0] sm:$0xff] %v6794_v62  ;;  %365 = vst [vmem:[#allocation2 + $0xf8] sm:$0xff] %v6795_v63  ;;  %7358 = vmatpush3.bf16.msra.mxu0 %v8736_v61  ;;  %v273_v34 = vld [vmem:[%s8946_s29 + $0xbc] sm:$0x1]  ;;  %v325_v35 = vunpack.c.l.bf16 %v9025_v28  ;;  %v326_v36 = vunpack.c.h.bf16 %v9025_v28  ;;  %v458_v39 = vld [vmem:[#allocation2 + $0x49] sm:$0xff] }
  0x24   : > { %366 = vst [vmem:[#allocation2 + $0x100] sm:$0x3] %v312_v3  ;;  %367 = vst [vmem:[#allocation2 + $0x108] sm:$0xff] %v313_v4  ;;  %7391 = vmatprep.subr.bf16.mxu0 %v8737_v8  ;;  %v327_v37 = vunpack.c.l.bf16 %v273_v34  ;;  %v459_v40 = vld [vmem:[#allocation2 + $0x51] sm:$0xff]  ;;  %v460_v42 = vld [vmem:[#allocation2 + $0x61] sm:$0xff] }
  0x25   : > { %368 = vst [vmem:[#allocation2 + $0x110] sm:$0xff] %v314_v5  ;;  %369 = vst [vmem:[#allocation2 + $0x118] sm:$0x3] %v315_v7  ;;  %v8739_v41 = vld [vmem:[%s9940_s1 + $0x10] sm:$0xff]   ;;  %v487_v44 = vpack.c.bf16 %v459_v40, %v458_v39  ;;  %v8740_v46 = vld [vmem:[%s9940_s1 + $0x18] sm:$0xff]  }
  0x26   : > { %370 = vst [vmem:[#allocation2 + $0x120] sm:$0xff] %v6798_v15  ;;  %371 = vst [vmem:[#allocation2 + $0x128] sm:$0xff] %v6799_v16  ;;  %7360 = vmatmul.mubr.bf16.vlgmr.msra.gmra.mrb[0].mxu0 %v485_v21  ;;  %v461_v43 = vld [vmem:[#allocation2 + $0x69] sm:$0xff]  ;;  %v462_v47 = vld [vmem:[#allocation2 + $0x79] sm:$0xff] }
  0x27   : > { %372 = vst [vmem:[#allocation2 + $0x130] sm:$0x3] %v318_v17  ;;  %373 = vst [vmem:[#allocation2 + $0x138] sm:$0xff] %v319_v22  ;;  %7392 = vmatpush3.bf16.msra.mxu0 %v8737_v8  ;;  %7363 = vmatprep.mubr.bf16.mxu0 %v486_v25  ;;  %v9036_v45 = vpack.c.bf16 %v461_v43, %v460_v42  ;;  %v463_v48 = vld [vmem:[#allocation2 + $0x81] sm:$0xff]  ;;  %v464_v50 = vld [vmem:[#allocation2 + $0x91] sm:$0xff] }
  0x28   : > { %374 = vst [vmem:[#allocation2 + $0x140] sm:$0xff] %v320_v23  ;;  %375 = vst [vmem:[#allocation2 + $0x148] sm:$0x3] %v321_v24  ;;  %7393 = vmatprep.subr.bf16.mxu0 %v8738_v30  ;;  %v8741_v49 = vld [vmem:[%s9940_s1 + $0x20] sm:$0xff]   ;;  %v9045_v52 = vpack.c.bf16 %v463_v48, %v462_v47  ;;  %v8742_v55 = vld [vmem:[%s9940_s1 + $0x28] sm:$0xff]  }
  0x29   : > { %376 = vst [vmem:[#allocation2 + $0x150] sm:$0xff] %v6802_v31  ;;  %377 = vst [vmem:[#allocation2 + $0x158] sm:$0xff] %v6803_v32  ;;  %v465_v51 = vld [vmem:[#allocation2 + $0x99] sm:$0xff]  ;;  %v466_v56 = vld [vmem:[#allocation2 + $0xa9] sm:$0xff] }
  0x2a   : > { %378 = vst [vmem:[#allocation2 + $0x160] sm:$0x3] %v324_v33  ;;  %379 = vst [vmem:[#allocation2 + $0x168] sm:$0xff] %v325_v35  ;;  %v9047_v54 = vpack.c.bf16 %v465_v51, %v464_v50  ;;  %v467_v57 = vld [vmem:[#allocation2 + $0xb1] sm:$0xff]  ;;  %v468_v58 = vld [vmem:[#allocation2 + $0xc1] sm:$0xff] }
  0x2b   : > { %380 = vst [vmem:[#allocation2 + $0x170] sm:$0xff] %v326_v36  ;;  %381 = vst [vmem:[#allocation2 + $0x178] sm:$0x3] %v327_v37  ;;  %7394 = vmatpush3.bf16.msra.mxu0 %v8738_v30  ;;  %v469_v59 = vld [vmem:[#allocation2 + $0xc9] sm:$0xff]  ;;  %v9057_v61 = vpack.c.bf16 %v467_v57, %v466_v56  ;;  %v8744_v63 = vld [vmem:[%s9940_s1 + $0x38] sm:$0xff]  }
  0x2c   : > { %7395 = vmatprep.subr.bf16.mxu0 %v8739_v41  ;;  %v8743_v60 = vld [vmem:[%s9940_s1 + $0x30] sm:$0xff]   ;;  %v9059_v62 = vpack.c.bf16 %v469_v59, %v468_v58  ;;  %v470_v0 = vld [vmem:[#allocation2 + $0xd9] sm:$0xff]  ;;  %v471_v2 = vld [vmem:[#allocation2 + $0xe1] sm:$0xff] }
  0x2d   : > { %v472_v3 = vld [vmem:[#allocation2 + $0xf1] sm:$0xff]  ;;  %v473_v4 = vld [vmem:[#allocation2 + $0xf9] sm:$0xff]  ;;  %v9069_v7 = vpack.c.bf16 %v471_v2, %v470_v0  ;;  %v474_v9 = vld [vmem:[#allocation2 + $0x109] sm:$0xff] }
  0x2e   : > { %7364 = vmatmul.mubr.bf16.gmra.mrb[4].mxu0 %v487_v44  ;;  %v8746_v5 = vld [vmem:[%s9940_s1 + $0x80] sm:$0xff]   ;;  %v9071_v8 = vpack.c.bf16 %v473_v4, %v472_v3  ;;  %v475_v10 = vld [vmem:[#allocation2 + $0x111] sm:$0xff]  ;;  %v477_v12 = vld [vmem:[#allocation2 + $0x129] sm:$0xff] }
  0x2f   : > { %7367 = vmatprep.mubr.bf16.mxu0 %v9036_v45  ;;  %7396 = vmatpush3.bf16.msra.mxu0 %v8739_v41  ;;  %v476_v11 = vld [vmem:[#allocation2 + $0x121] sm:$0xff]  ;;  %v9075_v13 = vpack.c.bf16 %v475_v10, %v474_v9  ;;  %v478_v15 = vld [vmem:[#allocation2 + $0x139] sm:$0xff]  ;;  %v8750_v31 = vld [vmem:[%s9940_s1 + $0x90] sm:$0xff]  }
  0x30   : > { %7397 = vmatprep.subr.bf16.mxu0 %v8740_v46  ;;  %v9077_v14 = vpack.c.bf16 %v477_v12, %v476_v11  ;;  %v479_v16 = vld [vmem:[#allocation2 + $0x141] sm:$0xff]  ;;  %v480_v17 = vld [vmem:[#allocation2 + $0x151] sm:$0xff] }
  0x31   : > { %v481_v20 = vld [vmem:[#allocation2 + $0x159] sm:$0xff]  ;;  %v9081_v21 = vpack.c.bf16 %v479_v16, %v478_v15  ;;  %v8748_v30 = vld [vmem:[%s9940_s1 + $0x88] sm:$0xff]   ;;  %v9103_v32 = vld [vmem:[%s8946_s29 + $0x30] sm:$0xff] }
  0x32   : > { %v9083_v22 = vpack.c.bf16 %v481_v20, %v480_v17  ;;  %v482_v23 = vld [vmem:[#allocation2 + $0x169] sm:$0xff]  ;;  %v483_v24 = vld [vmem:[#allocation2 + $0x171] sm:$0xff]  ;;  %v8745_v25 = vld [vmem:[%s8946_s29] sm:$0xff] }
  0x33   : > { %7398 = vmatpush3.bf16.msra.mxu0 %v8740_v46  ;;  %v9088_v26 = vpack.c.bf16 %v483_v24, %v482_v23  ;;  %v9092_v27 = vld [vmem:[%s8946_s29 + $0x18] sm:$0xff]  ;;  %v8754_v34 = vld [vmem:[%s9940_s1 + $0xa0] sm:$0xff]   ;;  %v9114_v35 = vld [vmem:[%s8946_s29 + $0x48] sm:$0xff] }
  0x34   : > { %7399 = vmatprep.subr.bf16.mxu0 %v8741_v49  ;;  %v8752_v33 = vld [vmem:[%s9940_s1 + $0x98] sm:$0xff]   ;;  %v8756_v36 = vld [vmem:[%s9940_s1 + $0xa8] sm:$0xff]   ;;  %v8758_v37 = vld [vmem:[%s9940_s1 + $0xb0] sm:$0xff]  }
  0x35   : > { %v9125_v39 = vld [vmem:[%s8946_s29 + $0x60] sm:$0xff]  ;;  %v8760_v40 = vld [vmem:[%s9940_s1 + $0xb8] sm:$0xff]   ;;  %v9141_v43 = vld [vmem:[%s8946_s29 + $0x90] sm:$0xff] }
  0x36   : > { %7368 = vmatmul.mubr.bf16.gmra.mrb[8].mxu0 %v9045_v52  ;;  %v8761_v41 = vld [vmem:[%s9940_s1 + $0xc0] sm:$0xff]   ;;  %v9136_v42 = vld [vmem:[%s8946_s29 + $0x78] sm:$0xff]  ;;  %v9146_v44 = vld [vmem:[%s8946_s29 + $0xa8] sm:$0xff] }
  0x37   : > { %7371 = vmatprep.mubr.bf16.mxu0 %v9047_v54  ;;  %7400 = vmatpush3.bf16.msra.mxu0 %v8741_v49  ;;  %v6895_v46 = vld [vmem:[%s8946_s29 + $0xc0] sm:$0xff]   ;;  %v936_v48 = vld [vmem:[#allocation2 + $0xa] sm:$0xff]  ;;  %v939_v57 = vld [vmem:[#allocation2 + $0x32] sm:$0xff] }
  0x38   : > { %7401 = vmatprep.subr.bf16.mxu0 %v8742_v55  ;;  %v935_v47 = vld [vmem:[#allocation2 + $0x2] sm:$0xff]  ;;  %v6806_v49 = vunpack.c.l.bf16 %v6895_v46  ;;  %v6807_v50 = vunpack.c.h.bf16 %v6895_v46  ;;  %v940_v58 = vld [vmem:[#allocation2 + $0x3a] sm:$0xff]  ;;  %v941_v0 = vld [vmem:[#allocation2 + $0x4a] sm:$0xff] }
  0x39   : > { %v967_v51 = vpack.c.bf16 %v936_v48, %v935_v47  ;;  %v938_v56 = vld [vmem:[#allocation2 + $0x22] sm:$0xff]  ;;  %v942_v2 = vld [vmem:[#allocation2 + $0x52] sm:$0xff]  ;;  %v944_v4 = vld [vmem:[#allocation2 + $0x6a] sm:$0xff] }
  0x3a   : > { %382 = vst [vmem:[#allocation2 + $0x180] sm:$0xff] %v6806_v49  ;;  %383 = vst [vmem:[#allocation2 + $0x188] sm:$0xff] %v6807_v50  ;;  %v943_v3 = vld [vmem:[#allocation2 + $0x62] sm:$0xff]  ;;  %v9164_v9 = vpack.c.bf16 %v942_v2, %v941_v0  ;;  %v8764_v11 = vld [vmem:[%s9940_s1 + $0xd8] sm:$0xff]  }
  0x3b   : > { %7402 = vmatpush3.bf16.msra.mxu0 %v8742_v55  ;;  %v937_v55 = vld [vmem:[#allocation2 + $0x1a] sm:$0xff]  ;;  %v9166_v10 = vpack.c.bf16 %v944_v4, %v943_v3  ;;  %v946_v15 = vld [vmem:[#allocation2 + $0x82] sm:$0xff]  ;;  %v947_v16 = vld [vmem:[#allocation2 + $0x92] sm:$0xff] }
  0x3c   : > { %7403 = vmatprep.subr.bf16.mxu0 %v8743_v60  ;;  %v9152_v59 = vpack.c.bf16 %v938_v56, %v937_v55  ;;  %v945_v12 = vld [vmem:[#allocation2 + $0x7a] sm:$0xff]  ;;  %v954_v47 = vld [vmem:[#allocation2 + $0xe2] sm:$0xff]  ;;  %v955_v48 = vld [vmem:[#allocation2 + $0xf2] sm:$0xff] }
  0x3d   : > { %v948_v17 = vld [vmem:[#allocation2 + $0x9a] sm:$0xff]  ;;  %v9176_v23 = vpack.c.bf16 %v946_v15, %v945_v12  ;;  %v957_v56 = vld [vmem:[#allocation2 + $0x10a] sm:$0xff]  ;;  %v962_v4 = vld [vmem:[#allocation2 + $0x142] sm:$0xff] }
  0x3e   : > { %7372 = vmatmul.mubr.bf16.gmra.mrb[12].mxu0 %v9057_v61  ;;  %v8765_v20 = vld [vmem:[%s9940_s1 + $0xe0] sm:$0xff]   ;;  %v9178_v24 = vpack.c.bf16 %v948_v17, %v947_v16  ;;  %v276_v12 = vld [vmem:[%s8946_s29 + $0xc8] sm:$0x1] }
  0x3f   : > { %7375 = vmatprep.mubr.bf16.mxu0 %v9059_v62  ;;  %7404 = vmatpush3.bf16.msra.mxu0 %v8743_v60  ;;  %v9154_v60 = vpack.c.bf16 %v940_v58, %v939_v57  ;;  %v953_v46 = vld [vmem:[#allocation2 + $0xda] sm:$0xff]  ;;  %v958_v57 = vld [vmem:[#allocation2 + $0x112] sm:$0xff]  ;;  %v959_v58 = vld [vmem:[#allocation2 + $0x122] sm:$0xff]  ;;  %v330_v16 = vunpack.c.l.bf16 %v276_v12 }
  0x40   : > { %7405 = vmatprep.subr.bf16.mxu0 %v8744_v63  ;;  %v956_v49 = vld [vmem:[#allocation2 + $0xfa] sm:$0xff]  ;;  %v9206_v0 = vpack.c.bf16 %v958_v57, %v957_v56  ;;  %v2163_v57 = vld [vmem:[#allocation2 + $0x48] sm:$0xff]  ;;  %v2169_v12 = vld [vmem:[#allocation2 + $0x90] sm:$0xff] }
  0x41   : > { %v8769_v50 = vld [vmem:[%s9940_s1 + $0x100] sm:$0xff]   ;;  %v9202_v55 = vpack.c.bf16 %v956_v49, %v955_v48  ;;  %384 = vst [vmem:[#allocation2 + $0x190] sm:$0x3] %v330_v16  ;;  %v8783_v48 = vld [vmem:[%s9940_s1 + $0x168] sm:$0xff]   ;;  %v8796_v16 = vld [vmem:[%s9940_s1 + $0x1d0] sm:$0xff]  }
  0x42   : > { %v961_v3 = vld [vmem:[#allocation2 + $0x13a] sm:$0xff] }
  0x43   : > { %7406 = vmatpush3.bf16.msra.mxu0 %v8744_v63  ;;  %v8762_v63 = vld [vmem:[%s9940_s1 + $0xc8] sm:$0xff]   ;;  %v9213_v15 = vpack.c.bf16 %v962_v4, %v961_v3 }
  0x44   : > { %7439 = vmatprep.subr.bf16.mxu0 %v8746_v5  ;;  %v8795_v4 = vld [vmem:[%s9940_s1 + $0x1c8] sm:$0xff]  }
  0x46   : > { %7376 = vmatmul.mubr.bf16.gmra.mrb[16].mxu0 %v9069_v7 }
  0x47   : > { %7379 = vmatprep.mubr.bf16.mxu0 %v9071_v8 }
  0x4e   : > { %7380 = vmatmul.mubr.bf16.gmra.mrb[20].mxu0 %v9075_v13 }
  0x4f   : > { %7383 = vmatprep.mubr.bf16.mxu0 %v9077_v14 }
  0x56   : > { %7384 = vmatmul.mubr.bf16.gmra.mrb[24].mxu0 %v9081_v21 }
  0x57   : > { %7387 = vmatprep.mubr.bf16.mxu0 %v9083_v22 }
  0x5e   : > { %7388 = vmatmul.mubr.bf16.gmra.mrb[28].mxu0 %v9088_v26 }
  0x5f   : > { %7407 = vmatprep.mubr.bf16.mxu0 %v8745_v25  ;;  %v8766_v25 = vld [vmem:[%s9940_s1 + $0xe8] sm:$0xff]  }
  0x66   : > { %7408 = vmatmul.mubr.bf16.vlgmr.msra.gmra.mrb[0].mxu0 %v8954_v6 }
  0x67   : > { %7440 = vmatpush3.bf16.msra.mxu0 %v8746_v5  ;;  %7411 = vmatprep.mubr.bf16.mxu0 %v9092_v27  ;;  %v8763_v5 = vld [vmem:[%s9940_s1 + $0xd0] sm:$0xff]  }
  0x68   : > { %7441 = vmatprep.subr.bf16.mxu0 %v8748_v30 }
  0x6b   : > { %7442 = vmatpush3.bf16.msra.mxu0 %v8748_v30  ;;  %v949_v30 = vld [vmem:[#allocation2 + $0xaa] sm:$0xff] }
  0x6c   : > { %7443 = vmatprep.subr.bf16.mxu0 %v8750_v31 }
  0x6e   : > { %7412 = vmatmul.mubr.bf16.gmra.mrb[4].mxu0 %v8962_v19 }
  0x6f   : > { %7415 = vmatprep.mubr.bf16.mxu0 %v9103_v32  ;;  %7444 = vmatpush3.bf16.msra.mxu0 %v8750_v31  ;;  %v950_v31 = vld [vmem:[#allocation2 + $0xb2] sm:$0xff] }
  0x70   : > { %7445 = vmatprep.subr.bf16.mxu0 %v8752_v33 }
  0x73   : > { %7446 = vmatpush3.bf16.msra.mxu0 %v8752_v33  ;;  %v951_v33 = vld [vmem:[#allocation2 + $0xc2] sm:$0xff] }
  0x74   : > { %7447 = vmatprep.subr.bf16.mxu0 %v8754_v34 }
  0x76   : > { %7416 = vmatmul.mubr.bf16.gmra.mrb[8].mxu0 %v8973_v29 }
  0x77   : > { %7419 = vmatprep.mubr.bf16.mxu0 %v9114_v35  ;;  %7448 = vmatpush3.bf16.msra.mxu0 %v8754_v34  ;;  %v952_v34 = vld [vmem:[#allocation2 + $0xca] sm:$0xff] }
  0x78   : > { %7449 = vmatprep.subr.bf16.mxu0 %v8756_v36 }
  0x7b   : > { %7450 = vmatpush3.bf16.msra.mxu0 %v8756_v36  ;;  %v8767_v36 = vld [vmem:[%s9940_s1 + $0xf0] sm:$0xff]  }
  0x7c   : > { %7451 = vmatprep.subr.bf16.mxu0 %v8758_v37 }
  0x7e   : > { %7420 = vmatmul.mubr.bf16.gmra.mrb[12].mxu0 %v8984_v38 }
  0x7f   : > { %7423 = vmatprep.mubr.bf16.mxu0 %v9125_v39  ;;  %7452 = vmatpush3.bf16.msra.mxu0 %v8758_v37  ;;  %v9188_v37 = vpack.c.bf16 %v950_v31, %v949_v30  ;;  %v8770_v31 = vld [vmem:[%s9940_s1 + $0x108] sm:$0xff]  }
  0x80   : > { %7453 = vmatprep.subr.bf16.mxu0 %v8760_v40 }
  0x83   : > { %7454 = vmatpush3.bf16.msra.mxu0 %v8760_v40  ;;  %v9190_v40 = vpack.c.bf16 %v952_v34, %v951_v33  ;;  %v8771_v33 = vld [vmem:[%s9940_s1 + $0x110] sm:$0xff]  }
  0x84   : > { %7487 = vmatprep.subr.bf16.mxu0 %v8761_v41 }
  0x86   : > { %7424 = vmatmul.mubr.bf16.gmra.mrb[16].mxu0 %v8992_v53 }
  0x87   : > { %7427 = vmatprep.mubr.bf16.mxu0 %v9136_v42 }
  0x8e   : > { %7428 = vmatmul.mubr.bf16.gmra.mrb[20].mxu0 %v9006_v1 }
  0x8f   : > { %7431 = vmatprep.mubr.bf16.mxu0 %v9141_v43 }
  0x96   : > { %7432 = vmatmul.mubr.bf16.gmra.mrb[24].mxu0 %v9017_v18 }
  0x97   : > { %7435 = vmatprep.mubr.bf16.mxu0 %v9146_v44 }
  0x9e   : > { %7436 = vmatmul.mubr.bf16.gmra.mrb[28].mxu0 %v9025_v28 }
  0x9f   : > { %7455 = vmatprep.mubr.bf16.mxu0 %v967_v51  ;;  %v9200_v51 = vpack.c.bf16 %v954_v47, %v953_v46  ;;  %v8782_v47 = vld [vmem:[%s9940_s1 + $0x160] sm:$0xff]  }
  0xa6   : > { %7456 = vmatmul.mubr.bf16.vlgmr.msra.gmra.mrb[0].mxu0 %v9152_v59 }
  0xa7   : > { %7488 = vmatpush3.bf16.msra.mxu0 %v8761_v41  ;;  %7459 = vmatprep.mubr.bf16.mxu0 %v9154_v60  ;;  %v8768_v41 = vld [vmem:[%s9940_s1 + $0xf8] sm:$0xff]  }
  0xa8   : > { %7489 = vmatprep.subr.bf16.mxu0 %v8762_v63 }
  0xab   : > { %7490 = vmatpush3.bf16.msra.mxu0 %v8762_v63  ;;  %v960_v63 = vld [vmem:[#allocation2 + $0x12a] sm:$0xff] }
  0xac   : > { %7491 = vmatprep.subr.bf16.mxu0 %v8763_v5  ;;  %v9208_v2 = vpack.c.bf16 %v960_v63, %v959_v58  ;;  %v2164_v58 = vld [vmem:[#allocation2 + $0x50] sm:$0xff]  ;;  %v2165_v63 = vld [vmem:[#allocation2 + $0x60] sm:$0xff] }
  0xae   : > { %7460 = vmatmul.mubr.bf16.gmra.mrb[4].mxu0 %v9164_v9 }
  0xaf   : > { %7463 = vmatprep.mubr.bf16.mxu0 %v9166_v10  ;;  %7492 = vmatpush3.bf16.msra.mxu0 %v8763_v5  ;;  %v963_v5 = vld [vmem:[#allocation2 + $0x152] sm:$0xff] }
  0xb0   : > { %7493 = vmatprep.subr.bf16.mxu0 %v8764_v11 }
  0xb3   : > { %7494 = vmatpush3.bf16.msra.mxu0 %v8764_v11  ;;  %v964_v11 = vld [vmem:[#allocation2 + $0x15a] sm:$0xff] }
  0xb4   : > { %7495 = vmatprep.subr.bf16.mxu0 %v8765_v20  ;;  %v9215_v17 = vpack.c.bf16 %v964_v11, %v963_v5  ;;  %v2167_v5 = vld [vmem:[#allocation2 + $0x78] sm:$0xff]  ;;  %v2168_v11 = vld [vmem:[#allocation2 + $0x80] sm:$0xff] }
  0xb6   : > { %7464 = vmatmul.mubr.bf16.gmra.mrb[8].mxu0 %v9176_v23 }
  0xb7   : > { %7467 = vmatprep.mubr.bf16.mxu0 %v9178_v24  ;;  %7496 = vmatpush3.bf16.msra.mxu0 %v8765_v20  ;;  %v965_v20 = vld [vmem:[#allocation2 + $0x16a] sm:$0xff] }
  0xb8   : > { %7497 = vmatprep.subr.bf16.mxu0 %v8766_v25 }
  0xbb   : > { %7498 = vmatpush3.bf16.msra.mxu0 %v8766_v25  ;;  %v966_v25 = vld [vmem:[#allocation2 + $0x172] sm:$0xff] }
  0xbc   : > { %7499 = vmatprep.subr.bf16.mxu0 %v8767_v36  ;;  %v9219_v30 = vpack.c.bf16 %v966_v25, %v965_v20  ;;  %v8797_v25 = vld [vmem:[%s9940_s1 + $0x1d8] sm:$0xff]  }
  0xbe   : > { %7468 = vmatmul.mubr.bf16.gmra.mrb[12].mxu0 %v9188_v37 }
  0xbf   : > { %7471 = vmatprep.mubr.bf16.mxu0 %v9190_v40  ;;  %7500 = vmatpush3.bf16.msra.mxu0 %v8767_v36  ;;  %v1550_v36 = vld [vmem:[#allocation2 + $0x31] sm:$0xff] }
  0xc0   : > { %7501 = vmatprep.subr.bf16.mxu0 %v8768_v41 }
  0xc3   : > { %7502 = vmatpush3.bf16.msra.mxu0 %v8768_v41  ;;  %v1552_v41 = vld [vmem:[#allocation2 + $0x49] sm:$0xff] }
  0xc4   : > { %7535 = vmatprep.subr.bf16.mxu0 %v8769_v50 }
  0xc6   : > { %7472 = vmatmul.mubr.bf16.gmra.mrb[16].mxu0 %v9200_v51 }
  0xc7   : > { %7475 = vmatprep.mubr.bf16.mxu0 %v9202_v55 }
  0xce   : > { %7476 = vmatmul.mubr.bf16.gmra.mrb[20].mxu0 %v9206_v0 }
  0xcf   : > { %7479 = vmatprep.mubr.bf16.mxu0 %v9208_v2 }
  0xd6   : > { %7480 = vmatmul.mubr.bf16.gmra.mrb[24].mxu0 %v9213_v15 }
  0xd7   : > { %7483 = vmatprep.mubr.bf16.mxu0 %v9215_v17 }
  0xde   : > { %7484 = vmatmul.mubr.bf16.gmra.mrb[28].mxu0 %v9219_v30 }
  0xdf   : > { %7503 = vmatprep.mubr.bf16.mxu0 %v8954_v6  ;;  %v8772_v6 = vld [vmem:[%s9940_s1 + $0x118] sm:$0xff]  }
  0xe6   : > { %7504 = vmatmul.mubr.bf16.vlgmr.msra.gmra.mrb[0].mxu0 %v9092_v27  ;;  %v8774_v27 = vld [vmem:[%s9940_s1 + $0x128] sm:$0xff]  }
  0xe7   : > { %7536 = vmatpush3.bf16.msra.mxu0 %v8769_v50  ;;  %7507 = vmatprep.mubr.bf16.mxu0 %v8962_v19  ;;  %v8773_v19 = vld [vmem:[%s9940_s1 + $0x120] sm:$0xff]  }
  0xe8   : > { %7537 = vmatprep.subr.bf16.mxu0 %v8770_v31 }
  0xeb   : > { %7538 = vmatpush3.bf16.msra.mxu0 %v8770_v31  ;;  %v2172_v31 = vld [vmem:[#allocation2 + $0xb0] sm:$0xff] }
  0xec   : > { %7539 = vmatprep.subr.bf16.mxu0 %v8771_v33 }
  0xee   : > { %7508 = vmatmul.mubr.bf16.gmra.mrb[4].mxu0 %v9103_v32  ;;  %v8777_v32 = vld [vmem:[%s9940_s1 + $0x138] sm:$0xff]  }
  0xef   : > { %7511 = vmatprep.mubr.bf16.mxu0 %v8973_v29  ;;  %7540 = vmatpush3.bf16.msra.mxu0 %v8771_v33  ;;  %v8775_v29 = vld [vmem:[%s9940_s1 + $0x130] sm:$0xff]   ;;  %v2173_v33 = vld [vmem:[#allocation2 + $0xc0] sm:$0xff] }
  0xf0   : > { %7541 = vmatprep.subr.bf16.mxu0 %v8772_v6 }
  0xf3   : > { %7542 = vmatpush3.bf16.msra.mxu0 %v8772_v6  ;;  %v2174_v6 = vld [vmem:[#allocation2 + $0xc8] sm:$0xff] }
  0xf4   : > { %7543 = vmatprep.subr.bf16.mxu0 %v8773_v19 }
  0xf6   : > { %7512 = vmatmul.mubr.bf16.gmra.mrb[8].mxu0 %v9114_v35  ;;  %v1549_v35 = vld [vmem:[#allocation2 + $0x21] sm:$0xff] }
  0xf7   : > { %7515 = vmatprep.mubr.bf16.mxu0 %v8984_v38  ;;  %7544 = vmatpush3.bf16.msra.mxu0 %v8773_v19  ;;  %v8778_v38 = vld [vmem:[%s9940_s1 + $0x140] sm:$0xff]  }
  0xf8   : > { %7545 = vmatprep.subr.bf16.mxu0 %v8774_v27  ;;  %v8798_v19 = vld [vmem:[%s9940_s1 + $0x1e0] sm:$0xff]  }
  0xfb   : > { %7546 = vmatpush3.bf16.msra.mxu0 %v8774_v27 }
  0xfc   : > { %7547 = vmatprep.subr.bf16.mxu0 %v8775_v29 }
  0xfe   : > { %7516 = vmatmul.mubr.bf16.gmra.mrb[12].mxu0 %v9125_v39  ;;  %v9262_v39 = vld [vmem:[%s8946_s29 + $0xc0] sm:$0xff] }
  0xff   : > { %7519 = vmatprep.mubr.bf16.mxu0 %v8992_v53  ;;  %7548 = vmatpush3.bf16.msra.mxu0 %v8775_v29  ;;  %v1548_v53 = vld [vmem:[#allocation2 + $0x19] sm:$0xff]  ;;  %v2199_v29 = vpack.c.bf16 %v2174_v6, %v2173_v33  ;;  %v2485_v33 = vld [vmem:[#allocation2 + $0x109] sm:$0xff]  ;;  %v2486_v6 = vld [vmem:[#allocation2 + $0x111] sm:$0xff] }
 0x100   : > { %7549 = vmatprep.subr.bf16.mxu0 %v8777_v32  ;;  %v1580_v34 = vpack.c.bf16 %v1549_v35, %v1548_v53  ;;  %v2176_v53 = vld [vmem:[#allocation2 + $0xe0] sm:$0xff]  ;;  %v2177_v35 = vld [vmem:[#allocation2 + $0xf0] sm:$0xff] }
 0x103   : > { %7550 = vmatpush3.bf16.msra.mxu0 %v8777_v32  ;;  %v8799_v32 = vld [vmem:[%s9940_s1 + $0x1e8] sm:$0xff]  }
 0x104   : > { %7583 = vmatprep.subr.bf16.mxu0 %v8778_v38 }
 0x106   : > { %7520 = vmatmul.mubr.bf16.gmra.mrb[16].mxu0 %v9136_v42  ;;  %v1551_v42 = vld [vmem:[#allocation2 + $0x39] sm:$0xff] }
 0x107   : > { %7523 = vmatprep.mubr.bf16.mxu0 %v9006_v1  ;;  %v1553_v1 = vld [vmem:[#allocation2 + $0x51] sm:$0xff]  ;;  %v9265_v46 = vpack.c.bf16 %v1551_v42, %v1550_v36 }
 0x108   : > { %v8800_v36 = vld [vmem:[%s9940_s1 + $0x1f0] sm:$0xff]  }
 0x10e   : > { %7524 = vmatmul.mubr.bf16.gmra.mrb[20].mxu0 %v9141_v43  ;;  %v9267_v43 = vpack.c.bf16 %v1553_v1, %v1552_v41  ;;  %v8801_v1 = vld [vmem:[%s9940_s1 + $0x1f8] sm:$0xff]  }
 0x10f   : > { %7527 = vmatprep.mubr.bf16.mxu0 %v9017_v18  ;;  %v8779_v18 = vld [vmem:[%s9940_s1 + $0x148] sm:$0xff]  }
 0x116   : > { %7528 = vmatmul.mubr.bf16.gmra.mrb[24].mxu0 %v9146_v44  ;;  %v8781_v44 = vld [vmem:[%s9940_s1 + $0x158] sm:$0xff]  }
 0x117   : > { %7531 = vmatprep.mubr.bf16.mxu0 %v9025_v28  ;;  %v8780_v28 = vld [vmem:[%s9940_s1 + $0x150] sm:$0xff]  }
 0x11e   : > { %7532 = vmatmul.mubr.bf16.gmra.mrb[28].mxu0 %v9262_v39 }
 0x11f   : > { %7551 = vmatprep.mubr.bf16.mxu0 %v1580_v34  ;;  %v2178_v34 = vld [vmem:[#allocation2 + $0xf8] sm:$0xff] }
 0x120   : > { %v2201_v41 = vpack.c.bf16 %v2178_v34, %v2177_v35  ;;  %v2491_v35 = vld [vmem:[#allocation2 + $0x151] sm:$0xff]  ;;  %v2492_v34 = vld [vmem:[#allocation2 + $0x159] sm:$0xff] }
 0x126   : > { %7552 = vmatmul.mubr.bf16.vlgmr.msra.gmra.mrb[0].mxu0 %v9265_v46 }
 0x127   : > { %7584 = vmatpush3.bf16.msra.mxu0 %v8778_v38  ;;  %7555 = vmatprep.mubr.bf16.mxu0 %v9267_v43  ;;  %v2175_v38 = vld [vmem:[#allocation2 + $0xd8] sm:$0xff] }
 0x128   : > { %7585 = vmatprep.subr.bf16.mxu0 %v8779_v18  ;;  %v2200_v42 = vpack.c.bf16 %v2176_v53, %v2175_v38  ;;  %v2489_v38 = vld [vmem:[#allocation2 + $0x139] sm:$0xff]  ;;  %v2490_v53 = vld [vmem:[#allocation2 + $0x141] sm:$0xff] }
 0x12b   : > { %7586 = vmatpush3.bf16.msra.mxu0 %v8779_v18  ;;  %v2179_v18 = vld [vmem:[#allocation2 + $0x108] sm:$0xff] }
 0x12c   : > { %7587 = vmatprep.subr.bf16.mxu0 %v8780_v28 }
 0x12e   : > { %7556 = vmatmul.mubr.bf16.gmra.mrb[4].mxu0 %v9036_v45  ;;  %v8784_v45 = vld [vmem:[%s9940_s1 + $0x170] sm:$0xff]  }
 0x12f   : > { %7559 = vmatprep.mubr.bf16.mxu0 %v9045_v52  ;;  %7588 = vmatpush3.bf16.msra.mxu0 %v8780_v28  ;;  %v8785_v52 = vld [vmem:[%s9940_s1 + $0x178] sm:$0xff]   ;;  %v2180_v28 = vld [vmem:[#allocation2 + $0x110] sm:$0xff] }
 0x130   : > { %7589 = vmatprep.subr.bf16.mxu0 %v8781_v44 }
 0x133   : > { %7590 = vmatpush3.bf16.msra.mxu0 %v8781_v44  ;;  %v2181_v44 = vld [vmem:[#allocation2 + $0x120] sm:$0xff] }
 0x134   : > { %7591 = vmatprep.subr.bf16.mxu0 %v8782_v47 }
 0x136   : > { %7560 = vmatmul.mubr.bf16.gmra.mrb[8].mxu0 %v9047_v54  ;;  %v8786_v54 = vld [vmem:[%s9940_s1 + $0x180] sm:$0xff]  }
 0x137   : > { %7563 = vmatprep.mubr.bf16.mxu0 %v9057_v61  ;;  %7592 = vmatpush3.bf16.msra.mxu0 %v8782_v47  ;;  %v1578_v61 = vld [vmem:[#allocation2 + $0x181] sm:$0xff] }
 0x138   : > { %7593 = vmatprep.subr.bf16.mxu0 %v8783_v48  ;;  %v2182_v47 = vld [vmem:[#allocation2 + $0x128] sm:$0xff] }
 0x13b   : > { %7594 = vmatpush3.bf16.msra.mxu0 %v8783_v48  ;;  %v8802_v48 = vld [vmem:[%s9940_s1 + $0x200] sm:$0xff]  }
 0x13c   : > { %7595 = vmatprep.subr.bf16.mxu0 %v8784_v45 }
 0x13e   : > { %7564 = vmatmul.mubr.bf16.gmra.mrb[12].mxu0 %v9059_v62  ;;  %v1579_v62 = vld [vmem:[#allocation2 + $0x189] sm:$0xff] }
 0x13f   : > { %7567 = vmatprep.mubr.bf16.mxu0 %v9069_v7  ;;  %7596 = vmatpush3.bf16.msra.mxu0 %v8784_v45  ;;  %v9308_v7 = vld [vmem:[%s8946_s29 + $0xcc] sm:$0xff]   ;;  %v9312_v56 = vpack.c.bf16 %v1579_v62, %v1578_v61  ;;  %v2202_v45 = vpack.c.bf16 %v2180_v28, %v2179_v18  ;;  %v2184_v61 = vld [vmem:[#allocation2 + $0x140] sm:$0xff] }
 0x140   : > { %7597 = vmatprep.subr.bf16.mxu0 %v8785_v52  ;;  %v331_v49 = vunpack.c.l.bf16 %v9308_v7  ;;  %v332_v50 = vunpack.c.h.bf16 %v9308_v7  ;;  %v2185_v62 = vld [vmem:[#allocation2 + $0x150] sm:$0xff] }
 0x142   : > { %385 = vst [vmem:[#allocation2 + $0x198] sm:$0xff] %v331_v49  ;;  %386 = vst [vmem:[#allocation2 + $0x1a0] sm:$0xff] %v332_v50  ;;  %v2186_v49 = vld [vmem:[#allocation2 + $0x158] sm:$0xff] }
 0x143   : > { %7598 = vmatpush3.bf16.msra.mxu0 %v8785_v52  ;;  %v2203_v52 = vpack.c.bf16 %v2182_v47, %v2181_v44  ;;  %v2773_v47 = vld [vmem:[#allocation2 + $0x32] sm:$0xff] }
 0x144   : > { %7631 = vmatprep.subr.bf16.mxu0 %v8786_v54 }
 0x146   : > { %7568 = vmatmul.mubr.bf16.gmra.mrb[16].mxu0 %v9071_v8  ;;  %v8787_v8 = vld [vmem:[%s9940_s1 + $0x188] sm:$0xff]  }
 0x147   : > { %7571 = vmatprep.mubr.bf16.mxu0 %v9075_v13  ;;  %v8788_v13 = vld [vmem:[%s9940_s1 + $0x190] sm:$0xff]  }
 0x149   : > { %v2497_v28 = vld [vmem:[#allocation2 + $0x199] sm:$0xff] }
 0x14e   : > { %7572 = vmatmul.mubr.bf16.gmra.mrb[20].mxu0 %v9077_v14  ;;  %v8789_v14 = vld [vmem:[%s9940_s1 + $0x198] sm:$0xff]  }
 0x14f   : > { %7575 = vmatprep.mubr.bf16.mxu0 %v9081_v21  ;;  %v8790_v21 = vld [vmem:[%s9940_s1 + $0x1a0] sm:$0xff]  }
 0x156   : > { %7576 = vmatmul.mubr.bf16.gmra.mrb[24].mxu0 %v9083_v22  ;;  %v8791_v22 = vld [vmem:[%s9940_s1 + $0x1a8] sm:$0xff]  }
 0x157   : > { %7579 = vmatprep.mubr.bf16.mxu0 %v9088_v26  ;;  %v8792_v26 = vld [vmem:[%s9940_s1 + $0x1b0] sm:$0xff]  }
 0x15e   : > { %7580 = vmatmul.mubr.bf16.gmra.mrb[28].mxu0 %v9312_v56 }
 0x15f   : > { %7599 = vmatprep.mubr.bf16.mxu0 %v9152_v59  ;;  %v8793_v59 = vld [vmem:[%s9940_s1 + $0x1b8] sm:$0xff]  }
 0x166   : > { %7600 = vmatmul.mubr.bf16.vlgmr.msra.gmra.mrb[0].mxu0 %v9154_v60  ;;  %v8794_v60 = vld [vmem:[%s9940_s1 + $0x1c0] sm:$0xff]  }
 0x167   : > { %7632 = vmatpush3.bf16.msra.mxu0 %v8786_v54  ;;  %7603 = vmatprep.mubr.bf16.mxu0 %v9164_v9  ;;  %v279_v9 = vld [vmem:[%s8946_s29 + $0xd4] sm:$0x1]  ;;  %v2183_v54 = vld [vmem:[#allocation2 + $0x138] sm:$0xff] }
 0x168   : > { %7633 = vmatprep.subr.bf16.mxu0 %v8787_v8  ;;  %v2204_v50 = vpack.c.bf16 %v2184_v61, %v2183_v54  ;;  %v2775_v54 = vld [vmem:[#allocation2 + $0x4a] sm:$0xff]  ;;  %v2776_v61 = vld [vmem:[#allocation2 + $0x52] sm:$0xff] }
 0x16b   : > { %7634 = vmatpush3.bf16.msra.mxu0 %v8787_v8  ;;  %v2205_v8 = vpack.c.bf16 %v2186_v49, %v2185_v62  ;;  %v2777_v62 = vld [vmem:[#allocation2 + $0x62] sm:$0xff]  ;;  %v2778_v49 = vld [vmem:[#allocation2 + $0x6a] sm:$0xff] }
 0x16c   : > { %7635 = vmatprep.subr.bf16.mxu0 %v8788_v13 }
 0x16e   : > { %7604 = vmatmul.mubr.bf16.gmra.mrb[4].mxu0 %v9166_v10  ;;  %v333_v10 = vunpack.c.l.bf16 %v279_v9  ;;  %v8803_v9 = vld [vmem:[%s9940_s1 + $0x208] sm:$0xff]  }
 0x16f   : > { %7607 = vmatprep.mubr.bf16.mxu0 %v9176_v23  ;;  %7636 = vmatpush3.bf16.msra.mxu0 %v8788_v13  ;;  %v1884_v23 = vld [vmem:[#allocation2 + $0x182] sm:$0xff] }
 0x170   : > { %7637 = vmatprep.subr.bf16.mxu0 %v8789_v14  ;;  %387 = vst [vmem:[#allocation2 + $0x1a8] sm:$0x3] %v333_v10  ;;  %v2187_v13 = vld [vmem:[#allocation2 + $0x168] sm:$0xff]  ;;  %v2473_v10 = vld [vmem:[#allocation2 + $0x79] sm:$0xff] }
 0x173   : > { %7638 = vmatpush3.bf16.msra.mxu0 %v8789_v14  ;;  %v2188_v14 = vld [vmem:[#allocation2 + $0x170] sm:$0xff] }
 0x174   : > { %7639 = vmatprep.subr.bf16.mxu0 %v8790_v21 }
 0x176   : > { %7608 = vmatmul.mubr.bf16.gmra.mrb[8].mxu0 %v9178_v24  ;;  %v1885_v24 = vld [vmem:[#allocation2 + $0x18a] sm:$0xff] }
 0x177   : > { %7611 = vmatprep.mubr.bf16.mxu0 %v9188_v37  ;;  %7640 = vmatpush3.bf16.msra.mxu0 %v8790_v21  ;;  %v2161_v37 = vld [vmem:[#allocation2 + $0x30] sm:$0xff]  ;;  %v2206_v21 = vpack.c.bf16 %v2188_v14, %v2187_v13  ;;  %v2498_v44 = vld [vmem:[#allocation2 + $0x1a1] sm:$0xff] }
 0x178   : > { %7641 = vmatprep.subr.bf16.mxu0 %v8791_v22  ;;  %v2779_v13 = vld [vmem:[#allocation2 + $0x7a] sm:$0xff]  ;;  %v2780_v14 = vld [vmem:[#allocation2 + $0x82] sm:$0xff] }
 0x17b   : > { %7642 = vmatpush3.bf16.msra.mxu0 %v8791_v22  ;;  %v8810_v22 = vld [vmem:[%s9942_s3 + $0x40] sm:$0xff]  }
 0x17c   : > { %7643 = vmatprep.subr.bf16.mxu0 %v8792_v26  ;;  %7775 = vmatprep.subr.bf16.mxu1 %v8810_v22 }
 0x17d   : > { %7776 = vmatpush3.bf16.msra.mxu1 %v8810_v22  ;;  %v2808_v22 = vpack.c.bf16 %v2780_v14, %v2779_v13 }
 0x17e   : > { %7612 = vmatmul.mubr.bf16.gmra.mrb[12].mxu0 %v9190_v40  ;;  %v2162_v40 = vld [vmem:[#allocation2 + $0x38] sm:$0xff] }
 0x17f   : > { %7615 = vmatprep.mubr.bf16.mxu0 %v9200_v51  ;;  %7644 = vmatpush3.bf16.msra.mxu0 %v8792_v26  ;;  %v9355_v51 = vpack.c.bf16 %v1885_v24, %v1884_v23  ;;  %v8811_v26 = vld [vmem:[%s9942_s3 + $0x48] sm:$0xff]   ;;  %v2475_v24 = vld [vmem:[#allocation2 + $0x91] sm:$0xff] }
 0x180   : > { %7645 = vmatprep.subr.bf16.mxu0 %v8793_v59  ;;  %7777 = vmatprep.subr.bf16.mxu1 %v8811_v26  ;;  %v2474_v23 = vld [vmem:[#allocation2 + $0x81] sm:$0xff] }
 0x181   : > { %7778 = vmatpush3.bf16.msra.mxu1 %v8811_v26 }
 0x183   : > { %7646 = vmatpush3.bf16.msra.mxu0 %v8793_v59  ;;  %v2471_v59 = vld [vmem:[#allocation2 + $0x61] sm:$0xff] }
 0x184   : > { %7679 = vmatprep.subr.bf16.mxu0 %v8794_v60 }
 0x186   : > { %7616 = vmatmul.mubr.bf16.gmra.mrb[16].mxu0 %v9202_v55  ;;  %v2193_v55 = vpack.c.bf16 %v2162_v40, %v2161_v37  ;;  %v2476_v37 = vld [vmem:[#allocation2 + $0x99] sm:$0xff]  ;;  %v8804_v40 = vld [vmem:[%s9940_s1 + $0x210] sm:$0xff]  }
 0x187   : > { %7619 = vmatprep.mubr.bf16.mxu0 %v9206_v0  ;;  %v2166_v0 = vld [vmem:[#allocation2 + $0x68] sm:$0xff] }
 0x188   : > { %v2195_v3 = vpack.c.bf16 %v2166_v0, %v2165_v63  ;;  %v2478_v63 = vld [vmem:[#allocation2 + $0xb1] sm:$0xff]  ;;  %v2479_v0 = vld [vmem:[#allocation2 + $0xc1] sm:$0xff] }
 0x18e   : > { %7620 = vmatmul.mubr.bf16.gmra.mrb[20].mxu0 %v9208_v2  ;;  %v2194_v2 = vpack.c.bf16 %v2164_v58, %v2163_v57  ;;  %v8805_v57 = vld [vmem:[%s9940_s1 + $0x218] sm:$0xff]   ;;  %v2477_v58 = vld [vmem:[#allocation2 + $0xa9] sm:$0xff] }
 0x18f   : > { %7623 = vmatprep.mubr.bf16.mxu0 %v9213_v15  ;;  %v2170_v15 = vld [vmem:[#allocation2 + $0x98] sm:$0xff] }
 0x190   : > { %v2197_v20 = vpack.c.bf16 %v2170_v15, %v2169_v12  ;;  %v2481_v12 = vld [vmem:[#allocation2 + $0xd9] sm:$0xff]  ;;  %v2482_v15 = vld [vmem:[#allocation2 + $0xe1] sm:$0xff] }
 0x196   : > { %7624 = vmatmul.mubr.bf16.gmra.mrb[24].mxu0 %v9215_v17  ;;  %v2196_v17 = vpack.c.bf16 %v2168_v11, %v2167_v5  ;;  %v8807_v11 = vld [vmem:[%s9940_s1 + $0x228] sm:$0xff]  }
 0x197   : > { %7627 = vmatprep.mubr.bf16.mxu0 %v9219_v30  ;;  %v2171_v30 = vld [vmem:[#allocation2 + $0xa8] sm:$0xff] }
 0x198   : > { %v2198_v27 = vpack.c.bf16 %v2172_v31, %v2171_v30  ;;  %v8809_v31 = vld [vmem:[%s9940_s1 + $0x238] sm:$0xff]  }
 0x19e   : > { %7628 = vmatmul.mubr.bf16.gmra.mrb[28].mxu0 %v9355_v51 }
 0x19f   : > { %7647 = vmatprep.mubr.bf16.mxu0 %v2193_v55  ;;  %v2502_v55 = vpack.c.bf16 %v2474_v23, %v2473_v10  ;;  %v2787_v10 = vld [vmem:[#allocation2 + $0xda] sm:$0xff]  ;;  %v2788_v23 = vld [vmem:[#allocation2 + $0xe2] sm:$0xff] }
 0x1a6   : > { %7648 = vmatmul.mubr.bf16.vlgmr.msra.gmra.mrb[0].mxu0 %v2194_v2  ;;  %v2480_v2 = vld [vmem:[#allocation2 + $0xc9] sm:$0xff] }
 0x1a7   : > { %7680 = vmatpush3.bf16.msra.mxu0 %v8794_v60  ;;  %7651 = vmatprep.mubr.bf16.mxu0 %v2195_v3  ;;  %v2472_v60 = vld [vmem:[#allocation2 + $0x69] sm:$0xff]  ;;  %v8806_v3 = vld [vmem:[%s9940_s1 + $0x220] sm:$0xff]   ;;  %v2505_v5 = vpack.c.bf16 %v2480_v2, %v2479_v0 }
 0x1a8   : > { %7681 = vmatprep.subr.bf16.mxu0 %v8795_v4 }
 0x1ab   : > { %7682 = vmatpush3.bf16.msra.mxu0 %v8795_v4  ;;  %v2504_v4 = vpack.c.bf16 %v2478_v63, %v2477_v58  ;;  %v2793_v58 = vld [vmem:[#allocation2 + $0x122] sm:$0xff]  ;;  %v2794_v63 = vld [vmem:[#allocation2 + $0x12a] sm:$0xff] }
 0x1ac   : > { %7683 = vmatprep.subr.bf16.mxu0 %v8796_v16  ;;  %v2815_v2 = vpack.c.bf16 %v2794_v63, %v2793_v58  ;;  %v8822_v63 = vld [vmem:[%s9942_s3 + $0x20] sm:$0xff]  }
 0x1ae   : > { %7652 = vmatmul.mubr.bf16.gmra.mrb[4].mxu0 %v2196_v17  ;;  %v2484_v17 = vld [vmem:[#allocation2 + $0xf9] sm:$0xff] }
 0x1af   : > { %7655 = vmatprep.mubr.bf16.mxu0 %v2197_v20  ;;  %7684 = vmatpush3.bf16.msra.mxu0 %v8796_v16  ;;  %v2483_v16 = vld [vmem:[#allocation2 + $0xf1] sm:$0xff] }
 0x1b0   : > { %7685 = vmatprep.subr.bf16.mxu0 %v8797_v25  ;;  %v8808_v20 = vld [vmem:[%s9940_s1 + $0x230] sm:$0xff]   ;;  %v2507_v30 = vpack.c.bf16 %v2484_v17, %v2483_v16 }
 0x1b1   : > { %v2799_v16 = vld [vmem:[#allocation2 + $0x16a] sm:$0xff]  ;;  %v2800_v17 = vld [vmem:[#allocation2 + $0x172] sm:$0xff] }
 0x1b3   : > { %7686 = vmatpush3.bf16.msra.mxu0 %v8797_v25  ;;  %v2506_v25 = vpack.c.bf16 %v2482_v15, %v2481_v12 }
 0x1b4   : > { %7687 = vmatprep.subr.bf16.mxu0 %v8798_v19 }
 0x1b6   : > { %7656 = vmatmul.mubr.bf16.gmra.mrb[8].mxu0 %v2198_v27  ;;  %v2488_v27 = vld [vmem:[#allocation2 + $0x129] sm:$0xff] }
 0x1b7   : > { %7659 = vmatprep.mubr.bf16.mxu0 %v2199_v29  ;;  %7688 = vmatpush3.bf16.msra.mxu0 %v8798_v19  ;;  %v2487_v19 = vld [vmem:[#allocation2 + $0x121] sm:$0xff]  ;;  %v2508_v29 = vpack.c.bf16 %v2486_v6, %v2485_v33 }
 0x1b8   : > { %7689 = vmatprep.subr.bf16.mxu0 %v8799_v32  ;;  %v8814_v33 = vld [vmem:[%s9942_s3 + $0x60] sm:$0xff]   ;;  %v8815_v6 = vld [vmem:[%s9942_s3 + $0x68] sm:$0xff]  }
 0x1bb   : > { %7690 = vmatpush3.bf16.msra.mxu0 %v8799_v32  ;;  %v2509_v32 = vpack.c.bf16 %v2488_v27, %v2487_v19  ;;  %v8891_v19 = vmov 0.0   ;;  %v8817_v27 = vld [vmem:[%s9942_s3 + $0x78] sm:$0xff]  }
 0x1bc   : > { %7691 = vmatprep.subr.bf16.mxu0 %v8800_v36  ;;  %3150 = vst [vmem:[#allocation3] sm:$0xff] %v8891_v19  ;;  %3151 = vst [vmem:[#allocation3 + $0x8] sm:$0xff] %v8891_v19 }
 0x1bd   : > { %3152 = vst [vmem:[#allocation3 + $0x10] sm:$0xff] %v8891_v19  ;;  %3153 = vst [vmem:[#allocation3 + $0x18] sm:$0x3] %v8891_v19 }
 0x1be   : > { %7660 = vmatmul.mubr.bf16.gmra.mrb[12].mxu0 %v2200_v42  ;;  %v2511_v42 = vpack.c.bf16 %v2492_v34, %v2491_v35  ;;  %3154 = vst [vmem:[#allocation3 + $0x20] sm:$0xff] %v8891_v19  ;;  %3157 = vst [vmem:[#allocation3 + $0x38] sm:$0x3] %v8891_v19 }
 0x1bf   : > { %7663 = vmatprep.mubr.bf16.mxu0 %v2201_v41  ;;  %7692 = vmatpush3.bf16.msra.mxu0 %v8800_v36  ;;  %v2510_v36 = vpack.c.bf16 %v2490_v53, %v2489_v38  ;;  %v2493_v41 = vld [vmem:[#allocation2 + $0x169] sm:$0xff]  ;;  %3158 = vst [vmem:[#allocation3 + $0x40] sm:$0xff] %v8891_v19  ;;  %3161 = vst [vmem:[#allocation3 + $0x58] sm:$0x3] %v8891_v19  ;;  %v9439_v38 = vld [vmem:[%s9941_s2] ss:$0 sm:$0xff] }
 0x1c0   : > { %7693 = vmatprep.subr.bf16.mxu0 %v8801_v1  ;;  %3162 = vst [vmem:[#allocation3 + $0x60] sm:$0xff] %v8891_v19  ;;  %3165 = vst [vmem:[#allocation3 + $0x78] sm:$0x3] %v8891_v19 }
 0x1c1   : > { %3166 = vst [vmem:[#allocation3 + $0x80] sm:$0xff] %v8891_v19  ;;  %3169 = vst [vmem:[#allocation3 + $0x98] sm:$0x3] %v8891_v19 }
 0x1c2   : > { %3170 = vst [vmem:[#allocation3 + $0xa0] sm:$0xff] %v8891_v19  ;;  %3173 = vst [vmem:[#allocation3 + $0xb8] sm:$0x3] %v8891_v19 }
 0x1c3   : > { %7694 = vmatpush3.bf16.msra.mxu0 %v8801_v1  ;;  %v2494_v1 = vld [vmem:[#allocation2 + $0x171] sm:$0xff]  ;;  %3174 = vst [vmem:[#allocation3 + $0xc0] sm:$0xff] %v8891_v19  ;;  %3177 = vst [vmem:[#allocation3 + $0xd8] sm:$0x3] %v8891_v19 }
 0x1c4   : > { %7727 = vmatprep.subr.bf16.mxu0 %v8802_v48  ;;  %v2512_v18 = vpack.c.bf16 %v2494_v1, %v2493_v41  ;;  %3178 = vst [vmem:[#allocation3 + $0xe0] sm:$0xff] %v8891_v19  ;;  %3181 = vst [vmem:[#allocation3 + $0xf8] sm:$0x3] %v8891_v19 }
 0x1c5   : > { %3182 = vst [vmem:[#allocation3 + $0x100] sm:$0xff] %v8891_v19  ;;  %3185 = vst [vmem:[#allocation3 + $0x118] sm:$0x3] %v8891_v19 }
 0x1c6   : > { %7664 = vmatmul.mubr.bf16.gmra.mrb[16].mxu0 %v2202_v45  ;;  %v2514_v45 = vpack.c.bf16 %v2498_v44, %v2497_v28  ;;  %3186 = vst [vmem:[#allocation3 + $0x120] sm:$0xff] %v8891_v19  ;;  %3189 = vst [vmem:[#allocation3 + $0x138] sm:$0x3] %v8891_v19 }
 0x1c7   : > { %7667 = vmatprep.mubr.bf16.mxu0 %v2203_v52  ;;  %3190 = vst [vmem:[#allocation3 + $0x140] sm:$0xff] %v8891_v19  ;;  %3193 = vst [vmem:[#allocation3 + $0x158] sm:$0x3] %v8891_v19 }
 0x1c8   : > { %3194 = vst [vmem:[#allocation3 + $0x160] sm:$0xff] %v8891_v19  ;;  %3197 = vst [vmem:[#allocation3 + $0x178] sm:$0x3] %v8891_v19 }
 0x1c9   : > { %3198 = vst [vmem:[#allocation3 + $0x180] sm:$0xff] %v8891_v19  ;;  %3201 = vst [vmem:[#allocation3 + $0x198] sm:$0x3] %v8891_v19 }
 0x1ca   : > { %3202 = vst [vmem:[#allocation3 + $0x1a0] sm:$0xff] %v8891_v19  ;;  %3205 = vst [vmem:[#allocation3 + $0x1b8] sm:$0x3] %v8891_v19 }
 0x1cb   : > { %3206 = vst [vmem:[#allocation3 + $0x1c0] sm:$0xff] %v8891_v19  ;;  %3209 = vst [vmem:[#allocation3 + $0x1d8] sm:$0x3] %v8891_v19 }
 0x1cc   : > { %3210 = vst [vmem:[#allocation3 + $0x1e0] sm:$0xff] %v8891_v19  ;;  %3213 = vst [vmem:[#allocation3 + $0x1f8] sm:$0x3] %v8891_v19 }
 0x1cd   : > { %3214 = vst [vmem:[#allocation3 + $0x200] sm:$0xff] %v8891_v19  ;;  %3217 = vst [vmem:[#allocation3 + $0x218] sm:$0x3] %v8891_v19 }
 0x1ce   : > { %7668 = vmatmul.mubr.bf16.gmra.mrb[20].mxu0 %v2204_v50  ;;  %v2806_v50 = vpack.c.bf16 %v2776_v61, %v2775_v54  ;;  %3218 = vst [vmem:[#allocation3 + $0x220] sm:$0xff] %v8891_v19  ;;  %3219 = vst [vmem:[#allocation3 + $0x228] sm:$0xff] %v8891_v19  ;;  %v8819_v61 = vld [vmem:[%s9942_s3 + $0x8] sm:$0xff]  }
 0x1cf   : > { %7671 = vmatprep.mubr.bf16.mxu0 %v2205_v8  ;;  %v2807_v8 = vpack.c.bf16 %v2778_v49, %v2777_v62  ;;  %3220 = vst [vmem:[#allocation3 + $0x230] sm:$0xff] %v8891_v19  ;;  %3221 = vst [vmem:[#allocation3 + $0x238] sm:$0x3] %v8891_v19 }
 0x1d6   : > { %7672 = vmatmul.mubr.bf16.gmra.mrb[24].mxu0 %v2206_v21  ;;  %v2781_v21 = vld [vmem:[#allocation2 + $0x92] sm:$0xff] }
 0x1d7   : > { %7675 = vmatprep.mubr.bf16.mxu0 %v9262_v39  ;;  %v8812_v39 = vld [vmem:[%s9942_s3 + $0x50] sm:$0xff]  }
 0x1d8   : > { %7779 = vmatprep.subr.bf16.mxu1 %v8812_v39 }
 0x1d9   : > { %7780 = vmatpush3.bf16.msra.mxu1 %v8812_v39  ;;  %v2785_v39 = vld [vmem:[#allocation2 + $0xc2] sm:$0xff] }
 0x1de   : > { %7676 = vmatmul.mubr.bf16.gmra.mrb[28].mxu0 %v9308_v7  ;;  %v2501_v7 = vpack.c.bf16 %v2472_v60, %v2471_v59  ;;  %v2783_v59 = vld [vmem:[#allocation2 + $0xaa] sm:$0xff]  ;;  %v2784_v60 = vld [vmem:[#allocation2 + $0xb2] sm:$0xff] }
 0x1df   : > { %7695 = vmatprep.mubr.bf16.mxu0 %v9265_v46  ;;  %v8813_v46 = vld [vmem:[%s9942_s3 + $0x58] sm:$0xff]  }
 0x1e0   : > { %7781 = vmatprep.subr.bf16.mxu1 %v8813_v46 }
 0x1e1   : > { %7782 = vmatpush3.bf16.msra.mxu1 %v8813_v46 }
 0x1e2   : > { %7783 = vmatprep.subr.bf16.mxu1 %v8814_v33 }
 0x1e5   : > { %7784 = vmatpush3.bf16.msra.mxu1 %v8814_v33 }
 0x1e6   : > { %7696 = vmatmul.mubr.bf16.vlgmr.msra.gmra.mrb[0].mxu0 %v9267_v43  ;;  %v2503_v43 = vpack.c.bf16 %v2476_v37, %v2475_v24  ;;  %v2789_v24 = vld [vmem:[#allocation2 + $0xf2] sm:$0xff]  ;;  %v2790_v37 = vld [vmem:[#allocation2 + $0xfa] sm:$0xff]  ;;  %7785 = vmatprep.subr.bf16.mxu1 %v8815_v6 }
 0x1e7   : > { %7728 = vmatpush3.bf16.msra.mxu0 %v8802_v48  ;;  %7699 = vmatprep.mubr.bf16.mxu0 %v2501_v7  ;;  %v2774_v48 = vld [vmem:[#allocation2 + $0x3a] sm:$0xff]  ;;  %v2786_v7 = vld [vmem:[#allocation2 + $0xca] sm:$0xff] }
 0x1e8   : > { %7729 = vmatprep.subr.bf16.mxu0 %v8803_v9  ;;  %v2805_v52 = vpack.c.bf16 %v2774_v48, %v2773_v47  ;;  %v2811_v46 = vpack.c.bf16 %v2786_v7, %v2785_v39 }
 0x1e9   : > { %7786 = vmatpush3.bf16.msra.mxu1 %v8815_v6  ;;  %v8824_v6 = vld [vmem:[%s9942_s3 + $0x30] sm:$0xff]  }
 0x1eb   : > { %7730 = vmatpush3.bf16.msra.mxu0 %v8803_v9  ;;  %v2810_v9 = vpack.c.bf16 %v2784_v60, %v2783_v59 }
 0x1ec   : > { %7731 = vmatprep.subr.bf16.mxu0 %v8804_v40 }
 0x1ee   : > { %7700 = vmatmul.mubr.bf16.gmra.mrb[4].mxu0 %v2502_v55  ;;  %v2813_v55 = vpack.c.bf16 %v2790_v37, %v2789_v24 }
 0x1ef   : > { %7703 = vmatprep.mubr.bf16.mxu0 %v2503_v43  ;;  %7732 = vmatpush3.bf16.msra.mxu0 %v8804_v40  ;;  %v2812_v40 = vpack.c.bf16 %v2788_v23, %v2787_v10  ;;  %v2791_v43 = vld [vmem:[#allocation2 + $0x10a] sm:$0xff] }
 0x1f0   : > { %7733 = vmatprep.subr.bf16.mxu0 %v8805_v57 }
 0x1f3   : > { %7734 = vmatpush3.bf16.msra.mxu0 %v8805_v57  ;;  %v2792_v57 = vld [vmem:[#allocation2 + $0x112] sm:$0xff] }
 0x1f4   : > { %7735 = vmatprep.subr.bf16.mxu0 %v8806_v3  ;;  %v2814_v0 = vpack.c.bf16 %v2792_v57, %v2791_v43 }
 0x1f6   : > { %7704 = vmatmul.mubr.bf16.gmra.mrb[8].mxu0 %v2504_v4  ;;  %v2796_v4 = vld [vmem:[#allocation2 + $0x142] sm:$0xff] }
 0x1f7   : > { %7707 = vmatprep.mubr.bf16.mxu0 %v2505_v5  ;;  %7736 = vmatpush3.bf16.msra.mxu0 %v8806_v3  ;;  %v2795_v3 = vld [vmem:[#allocation2 + $0x13a] sm:$0xff]  ;;  %v2797_v5 = vld [vmem:[#allocation2 + $0x152] sm:$0xff] }
 0x1f8   : > { %7737 = vmatprep.subr.bf16.mxu0 %v8807_v11  ;;  %v2816_v12 = vpack.c.bf16 %v2796_v4, %v2795_v3 }
 0x1fb   : > { %7738 = vmatpush3.bf16.msra.mxu0 %v8807_v11  ;;  %v2798_v11 = vld [vmem:[#allocation2 + $0x15a] sm:$0xff] }
 0x1fc   : > { %7739 = vmatprep.subr.bf16.mxu0 %v8808_v20  ;;  %v2817_v15 = vpack.c.bf16 %v2798_v11, %v2797_v5  ;;  %v8823_v11 = vld [vmem:[%s9942_s3 + $0x28] sm:$0xff]  }
 0x1fe   : > { %7708 = vmatmul.mubr.bf16.gmra.mrb[12].mxu0 %v2506_v25  ;;  %v2803_v25 = vld [vmem:[#allocation2 + $0x19a] sm:$0xff] }
 0x1ff   : > { %7711 = vmatprep.mubr.bf16.mxu0 %v2507_v30  ;;  %7740 = vmatpush3.bf16.msra.mxu0 %v8808_v20  ;;  %v2818_v20 = vpack.c.bf16 %v2800_v17, %v2799_v16  ;;  %v2804_v30 = vld [vmem:[#allocation2 + $0x1a2] sm:$0xff] }
 0x200   : > { %7741 = vmatprep.subr.bf16.mxu0 %v8809_v31 }
 0x203   : > { %7742 = vmatpush3.bf16.msra.mxu0 %v8809_v31  ;;  %v2820_v31 = vpack.c.bf16 %v2804_v30, %v2803_v25 }
 0x206   : > { %7712 = vmatmul.mubr.bf16.gmra.mrb[16].mxu0 %v2508_v29  ;;  %v8892_v29 = vmov 0.0|0.0  }
 0x207   : > { %7715 = vmatprep.mubr.bf16.mxu0 %v2509_v32  ;;  %7791 = vmatprep.mubr.bf16.mxu1 %v8892_v29  ;;  %v8818_v32 = vld [vmem:[%s9942_s3] sm:$0xff]  }
 0x20e   : > { %7716 = vmatmul.mubr.bf16.gmra.mrb[20].mxu0 %v2510_v36 }
 0x20f   : > { %7719 = vmatprep.mubr.bf16.mxu0 %v2511_v42 }
 0x216   : > { %7720 = vmatmul.mubr.bf16.gmra.mrb[24].mxu0 %v2512_v18 }
 0x217   : > { %7723 = vmatprep.mubr.bf16.mxu0 %v9312_v56  ;;  %v2782_v56 = vld [vmem:[#allocation2 + $0x9a] sm:$0xff] }
 0x218   : > { %v2809_v26 = vpack.c.bf16 %v2782_v56, %v2781_v21 }
 0x21e   : > { %7724 = vmatmul.mubr.bf16.gmra.mrb[28].mxu0 %v2514_v45 }
 0x21f   : > { %7743 = vmatprep.mubr.bf16.mxu0 %v2805_v52 }
 0x226   : > { %7744 = vmatmul.mubr.bf16.vlgmr.msra.gmra.mrb[0].mxu0 %v2806_v50 }
 0x227   : > { %7747 = vmatprep.mubr.bf16.mxu0 %v2807_v8 }
 0x22e   : > { %7748 = vmatmul.mubr.bf16.gmra.mrb[4].mxu0 %v2808_v22 }
 0x22f   : > { %7751 = vmatprep.mubr.bf16.mxu0 %v2809_v26  ;;  %v8820_v26 = vld [vmem:[%s9942_s3 + $0x10] sm:$0xff]  }
 0x236   : > { %7752 = vmatmul.mubr.bf16.gmra.mrb[8].mxu0 %v2810_v9 }
 0x237   : > { %7755 = vmatprep.mubr.bf16.mxu0 %v2811_v46  ;;  %v8821_v46 = vld [vmem:[%s9942_s3 + $0x18] sm:$0xff]  }
 0x23e   : > { %7756 = vmatmul.mubr.bf16.gmra.mrb[12].mxu0 %v2812_v40 }
 0x23f   : > { %7759 = vmatprep.mubr.bf16.mxu0 %v2813_v55 }
 0x246   : > { %7760 = vmatmul.mubr.bf16.gmra.mrb[16].mxu0 %v2814_v0 }
 0x247   : > { %7763 = vmatprep.mubr.bf16.mxu0 %v2815_v2 }
 0x24e   : > { %7764 = vmatmul.mubr.bf16.gmra.mrb[20].mxu0 %v2816_v12 }
 0x24f   : > { %7767 = vmatprep.mubr.bf16.mxu0 %v2817_v15 }
 0x256   : > { %7768 = vmatmul.mubr.bf16.gmra.mrb[24].mxu0 %v2818_v20 }
 0x257   : > { %7771 = vmatprep.mubr.bf16.mxu0 %v9355_v51  ;;  %v8816_v51 = vld [vmem:[%s9942_s3 + $0x70] sm:$0xff]  }
 0x258   : > { %7787 = vmatprep.subr.bf16.mxu1 %v8816_v51 }
 0x259   : > { %7788 = vmatpush3.bf16.msra.mxu1 %v8816_v51 }
 0x25a   : > { %7789 = vmatprep.subr.bf16.mxu1 %v8817_v27 }
 0x25d   : > { %7790 = vmatpush3.bf16.msra.mxu1 %v8817_v27 }
 0x25e   : > { %7772 = vmatmul.mubr.bf16.gmra.mrb[28].mxu0 %v2820_v31  ;;  %7823 = vmatprep.subr.bf16.mxu1 %v8818_v32 }
 0x2f9   : > { %v7745_v53 = vpop.f32.mrb[0].mxu0 }
 0x2fa   : > { %v3088_v35 = vadd.f32 %v7745_v53, %v9439_v38  ;;  %v2920_v34 = vpop.f32.mrb[1].mxu0  ;;  %v8825_v53 = vld [vmem:[%s9942_s3 + $0x38] sm:$0xff]  }
 0x2fb   : > { %v3086_v36 = vadd.f32 %v9439_v38, %v2920_v34  ;;  %v7746_v42 = vpop.f32.mrb[2].mxu0 }
 0x2fc   : > { %v3120_v41 = vmax.f32 %v3088_v35, 0.0  ;;  %v3089_v1 = vadd.f32 %v7746_v42, %v9439_v38  ;;  %v2923_v18 = vpop.f32.mrb[3].mxu0 }
 0x2fd   : > { %v3118_v28 = vmax.f32 %v3086_v36, 0.0  ;;  %v3087_v44 = vadd.f32 %v9439_v38, %v2923_v18 }
 0x2fe   : > { %3225 = vst [vmem:[#allocation3 + $0x48] sm:$0xff] %v3120_v41  ;;  %v3121_v47 = vmax.f32 %v3089_v1, 0.0 }
 0x2ff   : > { %3223 = vst [vmem:[#allocation3 + $0x28] sm:$0xff] %v3118_v28  ;;  %v3119_v48 = vmax.f32 %v3087_v44, 0.0 }
 0x300   : > { %3226 = vst [vmem:[#allocation3 + $0x50] sm:$0xff] %v3121_v47  ;;  %v3353_v45 = vpack.c.bf16 %v3121_v47, %v3120_v41  ;;  %v9496_v47 = vld [vmem:[%s9942_s3 + $0x80] sm:$0xff]  }
 0x301   : > { %3224 = vst [vmem:[#allocation3 + $0x30] sm:$0xff] %v3119_v48  ;;  %v7749_v52 = vpop.f32.mrb[4].mxu0  ;;  %v3352_v54 = vpack.c.bf16 %v3119_v48, %v3118_v28 }
 0x302   : > { %v3092_v62 = vadd.f32 %v7749_v52, %v9439_v38  ;;  %v2936_v49 = vpop.f32.mrb[5].mxu0 }
 0x303   : > { %v3090_v50 = vadd.f32 %v9439_v38, %v2936_v49  ;;  %v7750_v8 = vpop.f32.mrb[6].mxu0  ;;  %7792 = vmatmul.mubr.bf16.vlgmr.msra.gmra.mrb[0].mxu1 %v3352_v54 }
 0x304   : > { %v3124_v13 = vmax.f32 %v3092_v62, 0.0  ;;  %v3093_v14 = vadd.f32 %v7750_v8, %v9439_v38  ;;  %v2939_v21 = vpop.f32.mrb[7].mxu0  ;;  %7795 = vmatprep.mubr.bf16.mxu1 %v3353_v45  ;;  %7824 = vmatpush3.bf16.msra.mxu1 %v8818_v32 }
 0x305   : > { %v3122_v56 = vmax.f32 %v3090_v50, 0.0  ;;  %v3091_v22 = vadd.f32 %v9439_v38, %v2939_v21  ;;  %7825 = vmatprep.subr.bf16.mxu1 %v8819_v61 }
 0x306   : > { %3229 = vst [vmem:[#allocation3 + $0x88] sm:$0xff] %v3124_v13  ;;  %v3125_v59 = vmax.f32 %v3093_v14, 0.0 }
 0x307   : > { %3227 = vst [vmem:[#allocation3 + $0x68] sm:$0xff] %v3122_v56  ;;  %v3123_v60 = vmax.f32 %v3091_v22, 0.0 }
 0x308   : > { %3230 = vst [vmem:[#allocation3 + $0x90] sm:$0xff] %v3125_v59  ;;  %v3355_v39 = vpack.c.bf16 %v3125_v59, %v3124_v13  ;;  %7826 = vmatpush3.bf16.msra.mxu1 %v8819_v61 }
 0x309   : > { %3228 = vst [vmem:[#allocation3 + $0x70] sm:$0xff] %v3123_v60  ;;  %v7753_v7 = vpop.f32.mrb[8].mxu0  ;;  %v3354_v9 = vpack.c.bf16 %v3123_v60, %v3122_v56  ;;  %7827 = vmatprep.subr.bf16.mxu1 %v8820_v26 }
 0x30a   : > { %v3096_v10 = vadd.f32 %v7753_v7, %v9439_v38  ;;  %v2952_v23 = vpop.f32.mrb[9].mxu0 }
 0x30b   : > { %v3094_v24 = vadd.f32 %v9439_v38, %v2952_v23  ;;  %v7754_v37 = vpop.f32.mrb[10].mxu0  ;;  %7796 = vmatmul.mubr.bf16.gmra.mrb[4].mxu1 %v3354_v9 }
 0x30c   : > { %v3128_v40 = vmax.f32 %v3096_v10, 0.0  ;;  %v3097_v55 = vadd.f32 %v7754_v37, %v9439_v38  ;;  %v2955_v43 = vpop.f32.mrb[11].mxu0  ;;  %7799 = vmatprep.mubr.bf16.mxu1 %v3355_v39  ;;  %7828 = vmatpush3.bf16.msra.mxu1 %v8820_v26 }
 0x30d   : > { %v3126_v57 = vmax.f32 %v3094_v24, 0.0  ;;  %v3095_v58 = vadd.f32 %v9439_v38, %v2955_v43  ;;  %7829 = vmatprep.subr.bf16.mxu1 %v8821_v46 }
 0x30e   : > { %3233 = vst [vmem:[#allocation3 + $0xc8] sm:$0xff] %v3128_v40  ;;  %v3129_v0 = vmax.f32 %v3097_v55, 0.0 }
 0x30f   : > { %3231 = vst [vmem:[#allocation3 + $0xa8] sm:$0xff] %v3126_v57  ;;  %v9465_v2 = vmax.f32 %v3095_v58, 0.0 }
 0x310   : > { %3234 = vst [vmem:[#allocation3 + $0xd0] sm:$0xff] %v3129_v0  ;;  %v3357_v3 = vpack.c.bf16 %v3129_v0, %v3128_v40  ;;  %7830 = vmatpush3.bf16.msra.mxu1 %v8821_v46 }
 0x311   : > { %3232 = vst [vmem:[#allocation3 + $0xb0] sm:$0xff] %v9465_v2  ;;  %v7757_v4 = vpop.f32.mrb[12].mxu0  ;;  %v3356_v5 = vpack.c.bf16 %v9465_v2, %v3126_v57  ;;  %7831 = vmatprep.subr.bf16.mxu1 %v8822_v63 }
 0x312   : > { %v3100_v12 = vadd.f32 %v7757_v4, %v9439_v38  ;;  %v2968_v15 = vpop.f32.mrb[13].mxu0 }
 0x313   : > { %v3098_v16 = vadd.f32 %v9439_v38, %v2968_v15  ;;  %v7758_v17 = vpop.f32.mrb[14].mxu0  ;;  %7800 = vmatmul.mubr.bf16.gmra.mrb[8].mxu1 %v3356_v5 }
 0x314   : > { %v3132_v20 = vmax.f32 %v3100_v12, 0.0  ;;  %v3101_v25 = vadd.f32 %v7758_v17, %v9439_v38  ;;  %v2971_v30 = vpop.f32.mrb[15].mxu0  ;;  %7803 = vmatprep.mubr.bf16.mxu1 %v3357_v3  ;;  %7832 = vmatpush3.bf16.msra.mxu1 %v8822_v63 }
 0x315   : > { %v3130_v31 = vmax.f32 %v3098_v16, 0.0  ;;  %v3099_v33 = vadd.f32 %v9439_v38, %v2971_v30  ;;  %7833 = vmatprep.subr.bf16.mxu1 %v8823_v11  ;;  %v3255_v30 = vld [vmem:[#allocation3 + $0x7] sm:$0xff] }
 0x316   : > { %3237 = vst [vmem:[#allocation3 + $0x108] sm:$0xff] %v3132_v20  ;;  %v9479_v51 = vmax.f32 %v3101_v25, 0.0 }
 0x317   : > { %3235 = vst [vmem:[#allocation3 + $0xe8] sm:$0xff] %v3130_v31  ;;  %v3131_v19 = vmax.f32 %v3099_v33, 0.0 }
 0x318   : > { %3238 = vst [vmem:[#allocation3 + $0x110] sm:$0xff] %v9479_v51  ;;  %v3359_v27 = vpack.c.bf16 %v9479_v51, %v3132_v20  ;;  %7834 = vmatpush3.bf16.msra.mxu1 %v8823_v11 }
 0x319   : > { %3236 = vst [vmem:[#allocation3 + $0xf0] sm:$0xff] %v3131_v19  ;;  %v7761_v29 = vpop.f32.mrb[16].mxu0  ;;  %v9483_v32 = vpack.c.bf16 %v3131_v19, %v3130_v31  ;;  %7835 = vmatprep.subr.bf16.mxu1 %v8824_v6  ;;  %v3256_v31 = vld [vmem:[#allocation3 + $0xf] sm:$0xff] }
 0x31a   : > { %v3104_v35 = vadd.f32 %v7761_v29, %v9439_v38  ;;  %v2984_v34 = vpop.f32.mrb[17].mxu0  ;;  %v3287_v19 = vpack.c.bf16 %v3256_v31, %v3255_v30 }
 0x31b   : > { %v3102_v36 = vadd.f32 %v9439_v38, %v2984_v34  ;;  %v7762_v42 = vpop.f32.mrb[18].mxu0  ;;  %7804 = vmatmul.mubr.bf16.gmra.mrb[12].mxu1 %v9483_v32  ;;  %v3257_v34 = vld [vmem:[#allocation3 + $0x27] sm:$0xff] }
 0x31c   : > { %v3136_v41 = vmax.f32 %v3104_v35, 0.0  ;;  %v3105_v1 = vadd.f32 %v7762_v42, %v9439_v38  ;;  %v2987_v18 = vpop.f32.mrb[19].mxu0  ;;  %7807 = vmatprep.mubr.bf16.mxu1 %v3359_v27  ;;  %7836 = vmatpush3.bf16.msra.mxu1 %v8824_v6  ;;  %v3260_v35 = vld [vmem:[#allocation3 + $0x4f] sm:$0xff]  ;;  %v8827_v42 = vld [vmem:[%s9942_s3 + $0x88] sm:$0xff]  }
 0x31d   : > { %v3134_v28 = vmax.f32 %v3102_v36, 0.0  ;;  %v3103_v44 = vadd.f32 %v9439_v38, %v2987_v18  ;;  %7837 = vmatprep.subr.bf16.mxu1 %v8825_v53  ;;  %v3259_v36 = vld [vmem:[#allocation3 + $0x47] sm:$0xff]  ;;  %v3262_v18 = vld [vmem:[#allocation3 + $0x6f] sm:$0xff] }
 0x31e   : > { %3241 = vst [vmem:[#allocation3 + $0x148] sm:$0xff] %v3136_v41  ;;  %v3137_v48 = vmax.f32 %v3105_v1, 0.0  ;;  %v8828_v1 = vld [vmem:[%s9942_s3 + $0x90] sm:$0xff]  }
 0x31f   : > { %3239 = vst [vmem:[#allocation3 + $0x128] sm:$0xff] %v3134_v28  ;;  %v3135_v45 = vmax.f32 %v3103_v44, 0.0  ;;  %v3261_v44 = vld [vmem:[#allocation3 + $0x67] sm:$0xff] }
 0x320   : > { %3242 = vst [vmem:[#allocation3 + $0x150] sm:$0xff] %v3137_v48  ;;  %v9498_v52 = vpack.c.bf16 %v3137_v48, %v3136_v41  ;;  %7838 = vmatpush3.bf16.msra.mxu1 %v8825_v53  ;;  %v3258_v53 = vld [vmem:[#allocation3 + $0x2f] sm:$0xff]  ;;  %v9539_v41 = vpack.c.bf16 %v3260_v35, %v3259_v36  ;;  %v9547_v48 = vpack.c.bf16 %v3262_v18, %v3261_v44  ;;  %v8835_v44 = vld [vmem:[%s9942_s3 + $0xc8] sm:$0xff]  }
 0x321   : > { %3240 = vst [vmem:[#allocation3 + $0x130] sm:$0xff] %v3135_v45  ;;  %v7765_v54 = vpop.f32.mrb[20].mxu0  ;;  %v9500_v61 = vpack.c.bf16 %v3135_v45, %v3134_v28  ;;  %7871 = vmatprep.subr.bf16.mxu1 %v9496_v47  ;;  %v3264_v28 = vld [vmem:[#allocation3 + $0x8f] sm:$0xff]  ;;  %v3263_v45 = vld [vmem:[#allocation3 + $0x87] sm:$0xff] }
 0x322   : > { %v3108_v62 = vadd.f32 %v7765_v54, %v9439_v38  ;;  %v3000_v49 = vpop.f32.mrb[21].mxu0  ;;  %v8829_v54 = vld [vmem:[%s9942_s3 + $0x98] sm:$0xff]   ;;  %v3807_v18 = vld [vmem:[#allocation3 + $0x51] sm:$0xff] }
 0x323   : > { %v3106_v50 = vadd.f32 %v9439_v38, %v3000_v49  ;;  %v7766_v8 = vpop.f32.mrb[22].mxu0  ;;  %7808 = vmatmul.mubr.bf16.gmra.mrb[16].mxu1 %v9500_v61  ;;  %v3266_v49 = vld [vmem:[#allocation3 + $0xaf] sm:$0xff] }
 0x324   : > { %v3140_v13 = vmax.f32 %v3108_v62, 0.0  ;;  %v3109_v14 = vadd.f32 %v7766_v8, %v9439_v38  ;;  %v3003_v21 = vpop.f32.mrb[23].mxu0  ;;  %7811 = vmatprep.mubr.bf16.mxu1 %v9498_v52  ;;  %v9552_v62 = vpack.c.bf16 %v3264_v28, %v3263_v45  ;;  %v3265_v8 = vld [vmem:[#allocation3 + $0xa7] sm:$0xff] }
 0x325   : > { %v3138_v56 = vmax.f32 %v3106_v50, 0.0  ;;  %v3107_v22 = vadd.f32 %v9439_v38, %v3003_v21  ;;  %v3268_v50 = vld [vmem:[#allocation3 + $0xcf] sm:$0xff]  ;;  %v8831_v21 = vld [vmem:[%s9942_s3 + $0xa8] sm:$0xff]  }
 0x326   : > { %3245 = vst [vmem:[#allocation3 + $0x188] sm:$0xff] %v3140_v13  ;;  %v3141_v26 = vmax.f32 %v3109_v14, 0.0  ;;  %v3267_v14 = vld [vmem:[#allocation3 + $0xc7] sm:$0xff] }
 0x327   : > { %3243 = vst [vmem:[#allocation3 + $0x168] sm:$0xff] %v3138_v56  ;;  %v3139_v59 = vmax.f32 %v3107_v22, 0.0  ;;  %v8832_v22 = vld [vmem:[%s9942_s3 + $0xb0] sm:$0xff]   ;;  %v3804_v36 = vld [vmem:[#allocation3 + $0x29] sm:$0xff] }
 0x328   : > { %3246 = vst [vmem:[#allocation3 + $0x190] sm:$0xff] %v3141_v26  ;;  %v9509_v60 = vpack.c.bf16 %v3141_v26, %v3140_v13  ;;  %v9559_v13 = vpack.c.bf16 %v3266_v49, %v3265_v8  ;;  %v3270_v26 = vld [vmem:[#allocation3 + $0xef] sm:$0xff] }
 0x329   : > { %3244 = vst [vmem:[#allocation3 + $0x170] sm:$0xff] %v3139_v59  ;;  %v7769_v39 = vpop.f32.mrb[24].mxu0  ;;  %v9511_v7 = vpack.c.bf16 %v3139_v59, %v3138_v56  ;;  %v9564_v56 = vpack.c.bf16 %v3268_v50, %v3267_v14  ;;  %v3272_v59 = vld [vmem:[#allocation3 + $0x10f] sm:$0xff] }
 0x32a   : > { %v3112_v9 = vadd.f32 %v7769_v39, %v9439_v38  ;;  %v3016_v46 = vpop.f32.mrb[25].mxu0  ;;  %v3269_v39 = vld [vmem:[#allocation3 + $0xe7] sm:$0xff]  ;;  %v3809_v49 = vld [vmem:[#allocation3 + $0x71] sm:$0xff] }
 0x32b   : > { %v3110_v10 = vadd.f32 %v9439_v38, %v3016_v46  ;;  %v7770_v23 = vpop.f32.mrb[26].mxu0  ;;  %7812 = vmatmul.mubr.bf16.gmra.mrb[20].mxu1 %v9511_v7  ;;  %v3271_v46 = vld [vmem:[#allocation3 + $0x107] sm:$0xff]  ;;  %v3811_v8 = vld [vmem:[#allocation3 + $0x91] sm:$0xff] }
 0x32c   : > { %v3144_v24 = vmax.f32 %v3112_v9, 0.0  ;;  %v3113_v37 = vadd.f32 %v7770_v23, %v9439_v38  ;;  %v3019_v40 = vpop.f32.mrb[27].mxu0  ;;  %7815 = vmatprep.mubr.bf16.mxu1 %v9509_v60  ;;  %v9571_v9 = vpack.c.bf16 %v3270_v26, %v3269_v39  ;;  %v9576_v23 = vpack.c.bf16 %v3272_v59, %v3271_v46  ;;  %v3810_v50 = vld [vmem:[#allocation3 + $0x89] sm:$0xff]  ;;  %v3813_v39 = vld [vmem:[#allocation3 + $0xb1] sm:$0xff] }
 0x32d   : > { %v3142_v55 = vmax.f32 %v3110_v10, 0.0  ;;  %v3111_v43 = vadd.f32 %v9439_v38, %v3019_v40  ;;  %v8833_v10 = vld [vmem:[%s9942_s3 + $0xb8] sm:$0xff]   ;;  %v8838_v26 = vld [vmem:[%s9942_s3 + $0xe0] sm:$0xff]  }
 0x32e   : > { %3249 = vst [vmem:[#allocation3 + $0x1c8] sm:$0xff] %v3144_v24  ;;  %v3145_v57 = vmax.f32 %v3113_v37, 0.0  ;;  %v3274_v37 = vld [vmem:[#allocation3 + $0x12f] sm:$0xff] }
 0x32f   : > { %3247 = vst [vmem:[#allocation3 + $0x1a8] sm:$0xff] %v3142_v55  ;;  %v3143_v58 = vmax.f32 %v3111_v43, 0.0  ;;  %v3276_v40 = vld [vmem:[#allocation3 + $0x14f] sm:$0xff] }
 0x330   : > { %3250 = vst [vmem:[#allocation3 + $0x1d0] sm:$0xff] %v3145_v57  ;;  %v9519_v63 = vpack.c.bf16 %v3145_v57, %v3144_v24  ;;  %v8834_v24 = vld [vmem:[%s9942_s3 + $0xc0] sm:$0xff]   ;;  %v3275_v57 = vld [vmem:[#allocation3 + $0x147] sm:$0xff] }
 0x331   : > { %3248 = vst [vmem:[#allocation3 + $0x1b0] sm:$0xff] %v3143_v58  ;;  %v7773_v0 = vpop.f32.mrb[28].mxu0  ;;  %v9521_v3 = vpack.c.bf16 %v3143_v58, %v3142_v55  ;;  %v3273_v55 = vld [vmem:[#allocation3 + $0x127] sm:$0xff]  ;;  %v9585_v58 = vpack.c.bf16 %v3276_v40, %v3275_v57 }
 0x332   : > { %v3116_v4 = vadd.f32 %v7773_v0, %v9439_v38  ;;  %v3032_v5 = vpop.f32.mrb[29].mxu0  ;;  %v9583_v43 = vpack.c.bf16 %v3274_v37, %v3273_v55  ;;  %v3278_v0 = vld [vmem:[#allocation3 + $0x16f] sm:$0xff]  ;;  %v8839_v37 = vld [vmem:[%s9942_s3 + $0xe8] sm:$0xff]   ;;  %v8840_v55 = vld [vmem:[%s9942_s3 + $0xf0] sm:$0xff]  }
 0x333   : > { %v3114_v11 = vadd.f32 %v9439_v38, %v3032_v5  ;;  %v7774_v12 = vpop.f32.mrb[30].mxu0  ;;  %7816 = vmatmul.mubr.bf16.gmra.mrb[24].mxu1 %v9521_v3  ;;  %v3277_v5 = vld [vmem:[#allocation3 + $0x167] sm:$0xff] }
 0x334   : > { %v3148_v15 = vmax.f32 %v3116_v4, 0.0  ;;  %v3117_v16 = vadd.f32 %v7774_v12, %v9439_v38  ;;  %v3035_v17 = vpop.f32.mrb[31].mxu0  ;;  %7819 = vmatprep.mubr.bf16.mxu1 %v9519_v63  ;;  %v3280_v4 = vld [vmem:[#allocation3 + $0x18f] sm:$0xff]  ;;  %v3279_v12 = vld [vmem:[#allocation3 + $0x187] sm:$0xff] }
 0x335   : > { %v3146_v20 = vmax.f32 %v3114_v11, 0.0  ;;  %v3115_v25 = vadd.f32 %v9439_v38, %v3035_v17  ;;  %v9534_v38 = vpack.c.bf16 %v3258_v53, %v3257_v34  ;;  %v9589_v11 = vpack.c.bf16 %v3278_v0, %v3277_v5  ;;  %v3283_v30 = vld [vmem:[#allocation3 + $0x1c7] sm:$0xff]  ;;  %v3817_v0 = vld [vmem:[#allocation3 + $0xf1] sm:$0xff] }
 0x336   : > { %3253 = vst [vmem:[#allocation3 + $0x208] sm:$0xff] %v3148_v15  ;;  %v3149_v33 = vmax.f32 %v3117_v16, 0.0  ;;  %v3812_v59 = vld [vmem:[#allocation3 + $0xa9] sm:$0xff]  ;;  %v3819_v5 = vld [vmem:[#allocation3 + $0x111] sm:$0xff] }
 0x337   : > { %3251 = vst [vmem:[#allocation3 + $0x1e8] sm:$0xff] %v3146_v20  ;;  %v3147_v6 = vmax.f32 %v3115_v25, 0.0  ;;  %v3284_v17 = vld [vmem:[#allocation3 + $0x1cf] sm:$0xff] }
 0x338   : > { %3254 = vst [vmem:[#allocation3 + $0x210] sm:$0xff] %v3149_v33  ;;  %v9529_v27 = vpack.c.bf16 %v3149_v33, %v3148_v15  ;;  %v9591_v15 = vpack.c.bf16 %v3280_v4, %v3279_v12  ;;  %v3282_v16 = vld [vmem:[#allocation3 + $0x1af] sm:$0xff]  ;;  %v9597_v31 = vpack.c.bf16 %v3284_v17, %v3283_v30 }
 0x339   : > { %3252 = vst [vmem:[#allocation3 + $0x1f0] sm:$0xff] %v3147_v6  ;;  %v9531_v29 = vpack.c.bf16 %v3147_v6, %v3146_v20  ;;  %v3281_v20 = vld [vmem:[#allocation3 + $0x1a7] sm:$0xff]  ;;  %v3803_v6 = vld [vmem:[#allocation3 + $0x11] sm:$0xff] }
 0x33a   : > { %v9595_v25 = vpack.c.bf16 %v3282_v16, %v3281_v20  ;;  %v3802_v33 = vld [vmem:[#allocation3 + $0x9] sm:$0xff] }
 0x33b   : > { %7820 = vmatmul.mubr.bf16.gmra.mrb[28].mxu1 %v9531_v29  ;;  %v3834_v35 = vpack.c.bf16 %v3803_v6, %v3802_v33  ;;  %v3814_v46 = vld [vmem:[#allocation3 + $0xc9] sm:$0xff]  ;;  %v3821_v33 = vld [vmem:[#allocation3 + $0x131] sm:$0xff] }
 0x33c   : > { %7839 = vmatprep.mubr.bf16.mxu1 %v3287_v19  ;;  %v3816_v57 = vld [vmem:[#allocation3 + $0xe9] sm:$0xff] }
 0x33d   : > { %v3818_v4 = vld [vmem:[#allocation3 + $0x109] sm:$0xff]  ;;  %v9640_v12 = vpack.c.bf16 %v3817_v0, %v3816_v57  ;;  %v8847_v57 = vld [vmem:[%s9942_s3 + $0x128] sm:$0xff]   ;;  %v8848_v0 = vld [vmem:[%s9942_s3 + $0x130] sm:$0xff]  }
 0x33e   : > { %v3285_v53 = vld [vmem:[#allocation3 + $0x1e7] sm:$0xff]  ;;  %v9645_v17 = vpack.c.bf16 %v3819_v5, %v3818_v4  ;;  %v8842_v20 = vld [vmem:[%s9942_s3 + $0x100] sm:$0xff]  }
 0x33f   : > { %v8841_v16 = vld [vmem:[%s9942_s3 + $0xf8] sm:$0xff]   ;;  %v8850_v5 = vld [vmem:[%s9942_s3 + $0x140] sm:$0xff]  }
 0x340   : > { %v3286_v19 = vld [vmem:[#allocation3 + $0x1ef] sm:$0xff] }
 0x341   : > { %v9601_v34 = vpack.c.bf16 %v3286_v19, %v3285_v53  ;;  %v3820_v30 = vld [vmem:[#allocation3 + $0x129] sm:$0xff]  ;;  %v3823_v19 = vld [vmem:[#allocation3 + $0x151] sm:$0xff] }
 0x342   : > { %v3822_v6 = vld [vmem:[#allocation3 + $0x149] sm:$0xff]  ;;  %v9652_v53 = vpack.c.bf16 %v3821_v33, %v3820_v30 }
 0x343   : > { %7840 = vmatmul.mubr.bf16.vlgmr.msra.gmra.mrb[0].mxu1 %v9534_v38  ;;  %v8849_v4 = vld [vmem:[%s9942_s3 + $0x138] sm:$0xff]  }
 0x344   : > { %7843 = vmatprep.mubr.bf16.mxu1 %v9539_v41  ;;  %7872 = vmatpush3.bf16.msra.mxu1 %v9496_v47  ;;  %v8830_v47 = vld [vmem:[%s9942_s3 + $0xa0] sm:$0xff]   ;;  %v4138_v30 = vld [vmem:[#allocation3 + $0x207] sm:$0xff] }
 0x345   : > { %7873 = vmatprep.subr.bf16.mxu1 %v8827_v42 }
 0x348   : > { %7874 = vmatpush3.bf16.msra.mxu1 %v8827_v42  ;;  %v3805_v42 = vld [vmem:[#allocation3 + $0x31] sm:$0xff] }
 0x349   : > { %7875 = vmatprep.subr.bf16.mxu1 %v8828_v1  ;;  %v9604_v28 = vpack.c.bf16 %v3805_v42, %v3804_v36  ;;  %v3824_v36 = vld [vmem:[#allocation3 + $0x169] sm:$0xff]  ;;  %v3825_v42 = vld [vmem:[#allocation3 + $0x171] sm:$0xff] }
 0x34b   : > { %7844 = vmatmul.mubr.bf16.gmra.mrb[4].mxu1 %v9547_v48 }
 0x34c   : > { %7847 = vmatprep.mubr.bf16.mxu1 %v9552_v62  ;;  %7876 = vmatpush3.bf16.msra.mxu1 %v8828_v1  ;;  %v3806_v1 = vld [vmem:[#allocation3 + $0x49] sm:$0xff] }
 0x34d   : > { %7877 = vmatprep.subr.bf16.mxu1 %v8829_v54  ;;  %v9609_v45 = vpack.c.bf16 %v3807_v18, %v3806_v1  ;;  %v3826_v1 = vld [vmem:[#allocation3 + $0x189] sm:$0xff]  ;;  %v3827_v18 = vld [vmem:[#allocation3 + $0x191] sm:$0xff] }
 0x350   : > { %7878 = vmatpush3.bf16.msra.mxu1 %v8829_v54  ;;  %v8836_v54 = vld [vmem:[%s9942_s3 + $0xd0] sm:$0xff]  }
 0x351   : > { %7879 = vmatprep.subr.bf16.mxu1 %v8830_v47 }
 0x353   : > { %7848 = vmatmul.mubr.bf16.gmra.mrb[8].mxu1 %v9559_v13 }
 0x354   : > { %7851 = vmatprep.mubr.bf16.mxu1 %v9564_v56  ;;  %7880 = vmatpush3.bf16.msra.mxu1 %v8830_v47  ;;  %v3808_v47 = vld [vmem:[#allocation3 + $0x69] sm:$0xff] }
 0x355   : > { %7881 = vmatprep.subr.bf16.mxu1 %v8831_v21  ;;  %v9616_v14 = vpack.c.bf16 %v3809_v49, %v3808_v47  ;;  %v3828_v47 = vld [vmem:[#allocation3 + $0x1a9] sm:$0xff]  ;;  %v3829_v49 = vld [vmem:[#allocation3 + $0x1b1] sm:$0xff] }
 0x358   : > { %7882 = vmatpush3.bf16.msra.mxu1 %v8831_v21  ;;  %v8837_v21 = vld [vmem:[%s9942_s3 + $0xd8] sm:$0xff]  }
 0x359   : > { %7883 = vmatprep.subr.bf16.mxu1 %v8832_v22 }
 0x35b   : > { %7852 = vmatmul.mubr.bf16.gmra.mrb[12].mxu1 %v9571_v9 }
 0x35c   : > { %7855 = vmatprep.mubr.bf16.mxu1 %v9576_v23  ;;  %7884 = vmatpush3.bf16.msra.mxu1 %v8832_v22  ;;  %v9621_v22 = vpack.c.bf16 %v3811_v8, %v3810_v50  ;;  %v3830_v50 = vld [vmem:[#allocation3 + $0x1c9] sm:$0xff]  ;;  %v3831_v8 = vld [vmem:[#allocation3 + $0x1d1] sm:$0xff] }
 0x35d   : > { %7885 = vmatprep.subr.bf16.mxu1 %v8833_v10 }
 0x360   : > { %7886 = vmatpush3.bf16.msra.mxu1 %v8833_v10  ;;  %v3815_v10 = vld [vmem:[#allocation3 + $0xd1] sm:$0xff] }
 0x361   : > { %7919 = vmatprep.subr.bf16.mxu1 %v8834_v24  ;;  %v9633_v40 = vpack.c.bf16 %v3815_v10, %v3814_v46  ;;  %v8843_v10 = vld [vmem:[%s9942_s3 + $0x108] sm:$0xff]  }
 0x363   : > { %7856 = vmatmul.mubr.bf16.gmra.mrb[16].mxu1 %v9583_v43 }
 0x364   : > { %7859 = vmatprep.mubr.bf16.mxu1 %v9585_v58 }
 0x36b   : > { %7860 = vmatmul.mubr.bf16.gmra.mrb[20].mxu1 %v9589_v11 }
 0x36c   : > { %7863 = vmatprep.mubr.bf16.mxu1 %v9591_v15 }
 0x373   : > { %7864 = vmatmul.mubr.bf16.gmra.mrb[24].mxu1 %v9595_v25 }
 0x374   : > { %7867 = vmatprep.mubr.bf16.mxu1 %v9597_v31 }
 0x37b   : > { %7868 = vmatmul.mubr.bf16.gmra.mrb[28].mxu1 %v9601_v34 }
 0x37c   : > { %7887 = vmatprep.mubr.bf16.mxu1 %v3834_v35  ;;  %v9654_v35 = vpack.c.bf16 %v3823_v19, %v3822_v6  ;;  %v4414_v6 = vld [vmem:[#allocation3 + $0x28] sm:$0xff] }
 0x383   : > { %7888 = vmatmul.mubr.bf16.vlgmr.msra.gmra.mrb[0].mxu1 %v9604_v28 }
 0x384   : > { %7891 = vmatprep.mubr.bf16.mxu1 %v9609_v45  ;;  %7920 = vmatpush3.bf16.msra.mxu1 %v8834_v24  ;;  %v9628_v24 = vpack.c.bf16 %v3813_v39, %v3812_v59  ;;  %v3832_v59 = vld [vmem:[#allocation3 + $0x1e9] sm:$0xff]  ;;  %v3833_v39 = vld [vmem:[#allocation3 + $0x1f1] sm:$0xff] }
 0x385   : > { %7921 = vmatprep.subr.bf16.mxu1 %v8835_v44  ;;  %v9670_v46 = vpack.c.bf16 %v3833_v39, %v3832_v59  ;;  %v4421_v59 = vld [vmem:[#allocation3 + $0x90] sm:$0xff]  ;;  %v9727_v39 = vld [vmem:[#allocation3 + $0xa8] sm:$0xff] }
 0x388   : > { %7922 = vmatpush3.bf16.msra.mxu1 %v8835_v44  ;;  %v9658_v44 = vpack.c.bf16 %v3825_v42, %v3824_v36  ;;  %v4417_v36 = vld [vmem:[#allocation3 + $0x50] sm:$0xff] }
 0x389   : > { %7923 = vmatprep.subr.bf16.mxu1 %v8836_v54  ;;  %v4419_v42 = vld [vmem:[#allocation3 + $0x70] sm:$0xff] }
 0x38b   : > { %7892 = vmatmul.mubr.bf16.gmra.mrb[4].mxu1 %v9616_v14 }
 0x38c   : > { %7895 = vmatprep.mubr.bf16.mxu1 %v9621_v22  ;;  %7924 = vmatpush3.bf16.msra.mxu1 %v8836_v54  ;;  %v9660_v54 = vpack.c.bf16 %v3827_v18, %v3826_v1  ;;  %v4416_v1 = vld [vmem:[#allocation3 + $0x48] sm:$0xff] }
 0x38d   : > { %7925 = vmatprep.subr.bf16.mxu1 %v8837_v21  ;;  %v9715_v18 = vpack.c.bf16 %v4417_v36, %v4416_v1  ;;  %v8881_v36 = vld [vmem:[%s9942_s3 + $0x238] sm:$0xff]   ;;  %v5352_v1 = vld [vmem:[#allocation3 + $0x170] sm:$0xff] }
 0x390   : > { %7926 = vmatpush3.bf16.msra.mxu1 %v8837_v21  ;;  %v9664_v21 = vpack.c.bf16 %v3829_v49, %v3828_v47  ;;  %v4418_v47 = vld [vmem:[#allocation3 + $0x68] sm:$0xff]  ;;  %v8851_v49 = vld [vmem:[%s9942_s3 + $0x148] sm:$0xff]  }
 0x391   : > { %7927 = vmatprep.subr.bf16.mxu1 %v8838_v26 }
 0x393   : > { %7896 = vmatmul.mubr.bf16.gmra.mrb[8].mxu1 %v9628_v24 }
 0x394   : > { %7899 = vmatprep.mubr.bf16.mxu1 %v9633_v40  ;;  %7928 = vmatpush3.bf16.msra.mxu1 %v8838_v26  ;;  %v9666_v26 = vpack.c.bf16 %v3831_v8, %v3830_v50  ;;  %v9720_v50 = vpack.c.bf16 %v4419_v42, %v4418_v47  ;;  %v8852_v8 = vld [vmem:[%s9942_s3 + $0x150] sm:$0xff]   ;;  %v5351_v47 = vld [vmem:[#allocation3 + $0x168] sm:$0xff] }
 0x395   : > { %7929 = vmatprep.subr.bf16.mxu1 %v8839_v37 }
 0x398   : > { %7930 = vmatpush3.bf16.msra.mxu1 %v8839_v37  ;;  %v8844_v37 = vld [vmem:[%s9942_s3 + $0x110] sm:$0xff]  }
 0x399   : > { %7931 = vmatprep.subr.bf16.mxu1 %v8840_v55 }
 0x39b   : > { %7900 = vmatmul.mubr.bf16.gmra.mrb[12].mxu1 %v9640_v12 }
 0x39c   : > { %7903 = vmatprep.mubr.bf16.mxu1 %v9645_v17  ;;  %7932 = vmatpush3.bf16.msra.mxu1 %v8840_v55  ;;  %v8846_v55 = vld [vmem:[%s9942_s3 + $0x120] sm:$0xff]  }
 0x39d   : > { %7933 = vmatprep.subr.bf16.mxu1 %v8841_v16 }
 0x3a0   : > { %7934 = vmatpush3.bf16.msra.mxu1 %v8841_v16  ;;  %v4139_v16 = vld [vmem:[#allocation3 + $0x20f] sm:$0xff] }
 0x3a1   : > { %7967 = vmatprep.subr.bf16.mxu1 %v8842_v20  ;;  %v9712_v33 = vpack.c.bf16 %v4139_v16, %v4138_v30  ;;  %v8855_v16 = vld [vmem:[%s9942_s3 + $0x168] sm:$0xff]  }
 0x3a3   : > { %7904 = vmatmul.mubr.bf16.gmra.mrb[16].mxu1 %v9652_v53 }
 0x3a4   : > { %7907 = vmatprep.mubr.bf16.mxu1 %v9654_v35 }
 0x3ab   : > { %7908 = vmatmul.mubr.bf16.gmra.mrb[20].mxu1 %v9658_v44 }
 0x3ac   : > { %7911 = vmatprep.mubr.bf16.mxu1 %v9660_v54 }
 0x3b3   : > { %7912 = vmatmul.mubr.bf16.gmra.mrb[24].mxu1 %v9664_v21 }
 0x3b4   : > { %7915 = vmatprep.mubr.bf16.mxu1 %v9666_v26 }
 0x3bb   : > { %7916 = vmatmul.mubr.bf16.gmra.mrb[28].mxu1 %v9670_v46 }
 0x3bc   : > { %7935 = vmatprep.mubr.bf16.mxu1 %v9534_v38  ;;  %v8845_v38 = vld [vmem:[%s9942_s3 + $0x118] sm:$0xff]  }
 0x3c3   : > { %7936 = vmatmul.mubr.bf16.vlgmr.msra.gmra.mrb[0].mxu1 %v9539_v41 }
 0x3c4   : > { %7939 = vmatprep.mubr.bf16.mxu1 %v9547_v48  ;;  %7968 = vmatpush3.bf16.msra.mxu1 %v8842_v20  ;;  %v4415_v20 = vld [vmem:[#allocation3 + $0x30] sm:$0xff] }
 0x3c5   : > { %7969 = vmatprep.subr.bf16.mxu1 %v8843_v10  ;;  %v4446_v19 = vpack.c.bf16 %v4415_v20, %v4414_v6  ;;  %v9750_v20 = vld [vmem:[#allocation3 + $0x108] sm:$0xff] }
 0x3c6   : > { %v4453_v30 = vpack.c.bf16 %v9479_v51, %v9750_v20  ;;  %v8857_v6 = vld [vmem:[%s9942_s3 + $0x178] sm:$0xff]   ;;  %v8859_v51 = vld [vmem:[%s9942_s3 + $0x188] sm:$0xff]  }
 0x3c8   : > { %7970 = vmatpush3.bf16.msra.mxu1 %v8843_v10  ;;  %v4420_v10 = vld [vmem:[#allocation3 + $0x88] sm:$0xff] }
 0x3c9   : > { %7971 = vmatprep.subr.bf16.mxu1 %v8844_v37 }
 0x3cb   : > { %7940 = vmatmul.mubr.bf16.gmra.mrb[4].mxu1 %v9552_v62 }
 0x3cc   : > { %7943 = vmatprep.mubr.bf16.mxu1 %v9559_v13  ;;  %7972 = vmatpush3.bf16.msra.mxu1 %v8844_v37  ;;  %v9729_v37 = vpack.c.bf16 %v4421_v59, %v4420_v10  ;;  %v5356_v59 = vld [vmem:[#allocation3 + $0x1b0] sm:$0xff]  ;;  %v5355_v10 = vld [vmem:[#allocation3 + $0x1a8] sm:$0xff] }
 0x3cd   : > { %7973 = vmatprep.subr.bf16.mxu1 %v8845_v38 }
 0x3d0   : > { %7974 = vmatpush3.bf16.msra.mxu1 %v8845_v38  ;;  %v8853_v38 = vld [vmem:[%s9942_s3 + $0x158] sm:$0xff]  }
 0x3d1   : > { %7975 = vmatprep.subr.bf16.mxu1 %v8846_v55 }
 0x3d3   : > { %7944 = vmatmul.mubr.bf16.gmra.mrb[8].mxu1 %v9564_v56 }
 0x3d4   : > { %7947 = vmatprep.mubr.bf16.mxu1 %v9571_v9  ;;  %7976 = vmatpush3.bf16.msra.mxu1 %v8846_v55  ;;  %v4450_v55 = vpack.c.bf16 %v9465_v2, %v9727_v39  ;;  %v8856_v2 = vld [vmem:[%s9942_s3 + $0x170] sm:$0xff]  }
 0x3d5   : > { %7977 = vmatprep.subr.bf16.mxu1 %v8847_v57 }
 0x3d8   : > { %7978 = vmatpush3.bf16.msra.mxu1 %v8847_v57  ;;  %v8854_v57 = vld [vmem:[%s9942_s3 + $0x160] sm:$0xff]  }
 0x3d9   : > { %7979 = vmatprep.subr.bf16.mxu1 %v8848_v0 }
 0x3db   : > { %7948 = vmatmul.mubr.bf16.gmra.mrb[12].mxu1 %v9576_v23 }
 0x3dc   : > { %7951 = vmatprep.mubr.bf16.mxu1 %v9583_v43  ;;  %7980 = vmatpush3.bf16.msra.mxu1 %v8848_v0  ;;  %v4425_v0 = vld [vmem:[#allocation3 + $0xd0] sm:$0xff] }
 0x3dd   : > { %7981 = vmatprep.subr.bf16.mxu1 %v8849_v4 }
 0x3e0   : > { %7982 = vmatpush3.bf16.msra.mxu1 %v8849_v4  ;;  %v4424_v4 = vld [vmem:[#allocation3 + $0xc8] sm:$0xff] }
 0x3e1   : > { %8015 = vmatprep.subr.bf16.mxu1 %v8850_v5 }
 0x3e3   : > { %7952 = vmatmul.mubr.bf16.gmra.mrb[16].mxu1 %v9585_v58 }
 0x3e4   : > { %7955 = vmatprep.mubr.bf16.mxu1 %v9589_v11 }
 0x3eb   : > { %7956 = vmatmul.mubr.bf16.gmra.mrb[20].mxu1 %v9591_v15 }
 0x3ec   : > { %7959 = vmatprep.mubr.bf16.mxu1 %v9595_v25 }
 0x3f3   : > { %7960 = vmatmul.mubr.bf16.gmra.mrb[24].mxu1 %v9597_v31 }
 0x3f4   : > { %7963 = vmatprep.mubr.bf16.mxu1 %v9601_v34 }
 0x3fb   : > { %7964 = vmatmul.mubr.bf16.gmra.mrb[28].mxu1 %v9712_v33 }
 0x3fc   : > { %7983 = vmatprep.mubr.bf16.mxu1 %v4446_v19  ;;  %v5349_v19 = vld [vmem:[#allocation3 + $0x148] sm:$0xff] }
 0x403   : > { %7984 = vmatmul.mubr.bf16.vlgmr.msra.gmra.mrb[0].mxu1 %v9715_v18 }
 0x404   : > { %7987 = vmatprep.mubr.bf16.mxu1 %v9720_v50  ;;  %8016 = vmatpush3.bf16.msra.mxu1 %v8850_v5  ;;  %v9740_v5 = vpack.c.bf16 %v4425_v0, %v4424_v4  ;;  %v5362_v0 = vld [vmem:[#allocation3 + $0x210] sm:$0xff]  ;;  %v5359_v4 = vld [vmem:[#allocation3 + $0x1e8] sm:$0xff] }
 0x405   : > { %8017 = vmatprep.subr.bf16.mxu1 %v8851_v49 }
 0x408   : > { %8018 = vmatpush3.bf16.msra.mxu1 %v8851_v49  ;;  %v5374_v49 = vpack.c.bf16 %v5352_v1, %v5351_v47  ;;  %v5670_v1 = vld [vmem:[#allocation3 + $0x231] sm:$0xff]  ;;  %v9880_v47 = vld [vmem:[%s9943_s4] ss:$0 sm:$0xff] }
 0x409   : > { %8019 = vmatprep.subr.bf16.mxu1 %v8852_v8 }
 0x40b   : > { %7988 = vmatmul.mubr.bf16.gmra.mrb[4].mxu1 %v9729_v37 }
 0x40c   : > { %7991 = vmatprep.mubr.bf16.mxu1 %v4450_v55  ;;  %8020 = vmatpush3.bf16.msra.mxu1 %v8852_v8 }
 0x40d   : > { %8021 = vmatprep.subr.bf16.mxu1 %v8853_v38 }
 0x410   : > { %8022 = vmatpush3.bf16.msra.mxu1 %v8853_v38  ;;  %v5357_v38 = vld [vmem:[#allocation3 + $0x1c8] sm:$0xff] }
 0x411   : > { %8023 = vmatprep.subr.bf16.mxu1 %v8854_v57 }
 0x413   : > { %7992 = vmatmul.mubr.bf16.gmra.mrb[8].mxu1 %v9740_v5 }
 0x414   : > { %7995 = vmatprep.mubr.bf16.mxu1 %v9483_v32  ;;  %8024 = vmatpush3.bf16.msra.mxu1 %v8854_v57  ;;  %v8858_v32 = vld [vmem:[%s9942_s3 + $0x180] sm:$0xff]  }
 0x415   : > { %8025 = vmatprep.subr.bf16.mxu1 %v8855_v16  ;;  %v5360_v57 = vld [vmem:[#allocation3 + $0x1f0] sm:$0xff] }
 0x418   : > { %8026 = vmatpush3.bf16.msra.mxu1 %v8855_v16  ;;  %v5361_v16 = vld [vmem:[#allocation3 + $0x208] sm:$0xff] }
 0x419   : > { %8027 = vmatprep.subr.bf16.mxu1 %v8856_v2 }
 0x41b   : > { %7996 = vmatmul.mubr.bf16.gmra.mrb[12].mxu1 %v4453_v30 }
 0x41c   : > { %7999 = vmatprep.mubr.bf16.mxu1 %v9500_v61  ;;  %8028 = vmatpush3.bf16.msra.mxu1 %v8856_v2  ;;  %v8861_v61 = vld [vmem:[%s9942_s3 + $0x198] sm:$0xff]   ;;  %v5379_v2 = vpack.c.bf16 %v5362_v0, %v5361_v16  ;;  %v5985_v0 = vld [vmem:[#allocation2 + $0x21] sm:$0xff] }
 0x41d   : > { %8029 = vmatprep.subr.bf16.mxu1 %v8857_v6 }
 0x420   : > { %8030 = vmatpush3.bf16.msra.mxu1 %v8857_v6  ;;  %v5639_v6 = vld [vmem:[#allocation3 + $0x49] sm:$0xff] }
 0x421   : > { %8063 = vmatprep.subr.bf16.mxu1 %v8858_v32 }
 0x423   : > { %8000 = vmatmul.mubr.bf16.gmra.mrb[16].mxu1 %v9498_v52  ;;  %v8860_v52 = vld [vmem:[%s9942_s3 + $0x190] sm:$0xff]  }
 0x424   : > { %8003 = vmatprep.mubr.bf16.mxu1 %v9511_v7  ;;  %v8863_v7 = vld [vmem:[%s9942_s3 + $0x1a8] sm:$0xff]  }
 0x42b   : > { %8004 = vmatmul.mubr.bf16.gmra.mrb[20].mxu1 %v9509_v60  ;;  %v8862_v60 = vld [vmem:[%s9942_s3 + $0x1a0] sm:$0xff]  }
 0x42c   : > { %8007 = vmatprep.mubr.bf16.mxu1 %v9521_v3  ;;  %v8865_v3 = vld [vmem:[%s9942_s3 + $0x1b8] sm:$0xff]  }
 0x433   : > { %8008 = vmatmul.mubr.bf16.gmra.mrb[24].mxu1 %v9519_v63  ;;  %v8864_v63 = vld [vmem:[%s9942_s3 + $0x1b0] sm:$0xff]  }
 0x434   : > { %8011 = vmatprep.mubr.bf16.mxu1 %v9531_v29  ;;  %v4750_v29 = vld [vmem:[#allocation3 + $0x209] sm:$0xff] }
 0x43b   : > { %8012 = vmatmul.mubr.bf16.gmra.mrb[28].mxu1 %v9529_v27  ;;  %v8866_v27 = vld [vmem:[%s9942_s3 + $0x1c0] sm:$0xff]  }
 0x43c   : > { %8031 = vmatprep.mubr.bf16.mxu1 %v9604_v28  ;;  %v4751_v28 = vld [vmem:[#allocation3 + $0x211] sm:$0xff] }
 0x443   : > { %8032 = vmatmul.mubr.bf16.vlgmr.msra.gmra.mrb[0].mxu1 %v9609_v45  ;;  %v9807_v45 = vpack.c.bf16 %v4751_v28, %v4750_v29  ;;  %v5646_v29 = vld [vmem:[#allocation3 + $0xb1] sm:$0xff]  ;;  %v5647_v28 = vld [vmem:[#allocation3 + $0xc9] sm:$0xff] }
 0x444   : > { %8035 = vmatprep.mubr.bf16.mxu1 %v9616_v14  ;;  %8064 = vmatpush3.bf16.msra.mxu1 %v8858_v32  ;;  %v8867_v14 = vld [vmem:[%s9942_s3 + $0x1c8] sm:$0xff]  }
 0x445   : > { %8065 = vmatprep.subr.bf16.mxu1 %v8859_v51  ;;  %v5640_v32 = vld [vmem:[#allocation3 + $0x51] sm:$0xff] }
 0x448   : > { %8066 = vmatpush3.bf16.msra.mxu1 %v8859_v51  ;;  %v5671_v51 = vpack.c.bf16 %v5640_v32, %v5639_v6 }
 0x449   : > { %8067 = vmatprep.subr.bf16.mxu1 %v8860_v52 }
 0x44b   : > { %8036 = vmatmul.mubr.bf16.gmra.mrb[4].mxu1 %v9621_v22  ;;  %v8868_v22 = vld [vmem:[%s9942_s3 + $0x1d0] sm:$0xff]  }
 0x44c   : > { %8039 = vmatprep.mubr.bf16.mxu1 %v9628_v24  ;;  %8068 = vmatpush3.bf16.msra.mxu1 %v8860_v52  ;;  %v8878_v24 = vld [vmem:[%s9942_s3 + $0x220] sm:$0xff]  }
 0x44d   : > { %8069 = vmatprep.subr.bf16.mxu1 %v8861_v61  ;;  %v5641_v52 = vld [vmem:[#allocation3 + $0x69] sm:$0xff] }
 0x450   : > { %8070 = vmatpush3.bf16.msra.mxu1 %v8861_v61  ;;  %v5642_v61 = vld [vmem:[#allocation3 + $0x71] sm:$0xff] }
 0x451   : > { %8071 = vmatprep.subr.bf16.mxu1 %v8862_v60 }
 0x453   : > { %8040 = vmatmul.mubr.bf16.gmra.mrb[8].mxu1 %v9633_v40  ;;  %v5344_v40 = vld [vmem:[#allocation3 + $0xf0] sm:$0xff] }
 0x454   : > { %8043 = vmatprep.mubr.bf16.mxu1 %v9640_v12  ;;  %8072 = vmatpush3.bf16.msra.mxu1 %v8862_v60  ;;  %v5346_v12 = vld [vmem:[#allocation3 + $0x110] sm:$0xff] }
 0x455   : > { %8073 = vmatprep.subr.bf16.mxu1 %v8863_v7  ;;  %v5643_v60 = vld [vmem:[#allocation3 + $0x89] sm:$0xff] }
 0x458   : > { %8074 = vmatpush3.bf16.msra.mxu1 %v8863_v7  ;;  %v5644_v7 = vld [vmem:[#allocation3 + $0x91] sm:$0xff] }
 0x459   : > { %8075 = vmatprep.subr.bf16.mxu1 %v8864_v63 }
 0x45b   : > { %8044 = vmatmul.mubr.bf16.gmra.mrb[12].mxu1 %v9645_v17  ;;  %v5343_v17 = vld [vmem:[#allocation3 + $0xe8] sm:$0xff] }
 0x45c   : > { %8047 = vmatprep.mubr.bf16.mxu1 %v9652_v53  ;;  %8076 = vmatpush3.bf16.msra.mxu1 %v8864_v63  ;;  %v5370_v53 = vpack.c.bf16 %v5344_v40, %v5343_v17  ;;  %v5672_v63 = vpack.c.bf16 %v5642_v61, %v5641_v52  ;;  %v5659_v40 = vld [vmem:[#allocation3 + $0x189] sm:$0xff]  ;;  %v5990_v52 = vld [vmem:[#allocation2 + $0x61] sm:$0xff] }
 0x45d   : > { %8077 = vmatprep.subr.bf16.mxu1 %v8865_v3 }
 0x460   : > { %8078 = vmatpush3.bf16.msra.mxu1 %v8865_v3  ;;  %v5673_v3 = vpack.c.bf16 %v5644_v7, %v5643_v60 }
 0x461   : > { %8111 = vmatprep.subr.bf16.mxu1 %v8866_v27 }
 0x463   : > { %8048 = vmatmul.mubr.bf16.gmra.mrb[16].mxu1 %v9654_v35  ;;  %v8879_v35 = vld [vmem:[%s9942_s3 + $0x228] sm:$0xff]  }
 0x464   : > { %8051 = vmatprep.mubr.bf16.mxu1 %v9658_v44  ;;  %v5371_v44 = vpack.c.bf16 %v5346_v12, %v9750_v20  ;;  %v8882_v20 = vld [vmem:[#allocation3] sm:$0xff]  ;;  %v5660_v12 = vld [vmem:[#allocation3 + $0x191] sm:$0xff] }
 0x465   : > { %v5380_v30 = vpack.c.bf16 %v8882_v20, %v8882_v20 }
 0x46b   : > { %8052 = vmatmul.mubr.bf16.gmra.mrb[20].mxu1 %v9660_v54  ;;  %v8880_v54 = vld [vmem:[%s9942_s3 + $0x230] sm:$0xff]  }
 0x46c   : > { %8055 = vmatprep.mubr.bf16.mxu1 %v9664_v21  ;;  %v5348_v21 = vld [vmem:[#allocation3 + $0x130] sm:$0xff] }
 0x473   : > { %8056 = vmatmul.mubr.bf16.gmra.mrb[24].mxu1 %v9666_v26  ;;  %v5350_v26 = vld [vmem:[#allocation3 + $0x150] sm:$0xff] }
 0x474   : > { %8059 = vmatprep.mubr.bf16.mxu1 %v9670_v46  ;;  %v5347_v46 = vld [vmem:[#allocation3 + $0x128] sm:$0xff]  ;;  %v5373_v42 = vpack.c.bf16 %v5350_v26, %v5349_v19  ;;  %v5666_v19 = vld [vmem:[#allocation3 + $0x1f1] sm:$0xff] }
 0x47b   : > { %8060 = vmatmul.mubr.bf16.gmra.mrb[28].mxu1 %v9807_v45 }
 0x47c   : > { %8079 = vmatprep.mubr.bf16.mxu1 %v9539_v41  ;;  %v8869_v41 = vld [vmem:[%s9942_s3 + $0x1d8] sm:$0xff]  }
 0x483   : > { %8080 = vmatmul.mubr.bf16.vlgmr.msra.gmra.mrb[0].mxu1 %v9547_v48  ;;  %v8870_v48 = vld [vmem:[%s9942_s3 + $0x1e0] sm:$0xff]  }
 0x484   : > { %8083 = vmatprep.mubr.bf16.mxu1 %v9552_v62  ;;  %8112 = vmatpush3.bf16.msra.mxu1 %v8866_v27  ;;  %v8871_v62 = vld [vmem:[%s9942_s3 + $0x1e8] sm:$0xff]   ;;  %v5645_v27 = vld [vmem:[#allocation3 + $0xa9] sm:$0xff] }
 0x485   : > { %8113 = vmatprep.subr.bf16.mxu1 %v8867_v14 }
 0x488   : > { %8114 = vmatpush3.bf16.msra.mxu1 %v8867_v14  ;;  %v5648_v14 = vld [vmem:[#allocation3 + $0xd1] sm:$0xff] }
 0x489   : > { %8115 = vmatprep.subr.bf16.mxu1 %v8868_v22 }
 0x48b   : > { %8084 = vmatmul.mubr.bf16.gmra.mrb[4].mxu1 %v9559_v13  ;;  %v8872_v13 = vld [vmem:[%s9942_s3 + $0x1f0] sm:$0xff]  }
 0x48c   : > { %8087 = vmatprep.mubr.bf16.mxu1 %v9564_v56  ;;  %8116 = vmatpush3.bf16.msra.mxu1 %v8868_v22  ;;  %v8873_v56 = vld [vmem:[%s9942_s3 + $0x1f8] sm:$0xff]   ;;  %v5674_v22 = vpack.c.bf16 %v5646_v29, %v5645_v27 }
 0x48d   : > { %8117 = vmatprep.subr.bf16.mxu1 %v8869_v41 }
 0x490   : > { %8118 = vmatpush3.bf16.msra.mxu1 %v8869_v41  ;;  %v5675_v41 = vpack.c.bf16 %v5648_v14, %v5647_v28  ;;  %v5991_v28 = vld [vmem:[#allocation2 + $0x69] sm:$0xff] }
 0x491   : > { %8119 = vmatprep.subr.bf16.mxu1 %v8870_v48 }
 0x493   : > { %8088 = vmatmul.mubr.bf16.gmra.mrb[8].mxu1 %v9571_v9  ;;  %v8874_v9 = vld [vmem:[%s9942_s3 + $0x200] sm:$0xff]  }
 0x494   : > { %8091 = vmatprep.mubr.bf16.mxu1 %v9576_v23  ;;  %8120 = vmatpush3.bf16.msra.mxu1 %v8870_v48  ;;  %v5057_v23 = vld [vmem:[#allocation3 + $0x227] sm:$0xff] }
 0x495   : > { %8121 = vmatprep.subr.bf16.mxu1 %v8871_v62  ;;  %v5649_v48 = vld [vmem:[#allocation3 + $0xe9] sm:$0xff] }
 0x498   : > { %8122 = vmatpush3.bf16.msra.mxu1 %v8871_v62  ;;  %v5650_v62 = vld [vmem:[#allocation3 + $0xf1] sm:$0xff] }
 0x499   : > { %8123 = vmatprep.subr.bf16.mxu1 %v8872_v13 }
 0x49b   : > { %8092 = vmatmul.mubr.bf16.gmra.mrb[12].mxu1 %v9583_v43  ;;  %v5058_v43 = vld [vmem:[#allocation3 + $0x22f] sm:$0xff] }
 0x49c   : > { %8095 = vmatprep.mubr.bf16.mxu1 %v9585_v58  ;;  %8124 = vmatpush3.bf16.msra.mxu1 %v8872_v13  ;;  %v5074_v58 = vpack.c.bf16 %v5058_v43, %v5057_v23  ;;  %v5651_v13 = vld [vmem:[#allocation3 + $0x109] sm:$0xff] }
 0x49d   : > { %8125 = vmatprep.subr.bf16.mxu1 %v8873_v56  ;;  %v5653_v43 = vld [vmem:[#allocation3 + $0x129] sm:$0xff] }
 0x4a0   : > { %8126 = vmatpush3.bf16.msra.mxu1 %v8873_v56  ;;  %v5652_v56 = vld [vmem:[#allocation3 + $0x111] sm:$0xff] }
 0x4a1   : > { %8159 = vmatprep.subr.bf16.mxu1 %v8874_v9  ;;  %v5677_v23 = vpack.c.bf16 %v5652_v56, %v5651_v13 }
 0x4a3   : > { %8096 = vmatmul.mubr.bf16.gmra.mrb[16].mxu1 %v9589_v11  ;;  %v8875_v11 = vld [vmem:[%s9942_s3 + $0x208] sm:$0xff]  }
 0x4a4   : > { %8099 = vmatprep.mubr.bf16.mxu1 %v9591_v15  ;;  %v8876_v15 = vld [vmem:[%s9942_s3 + $0x210] sm:$0xff]  }
 0x4ab   : > { %8100 = vmatmul.mubr.bf16.gmra.mrb[20].mxu1 %v9595_v25  ;;  %v5340_v25 = vld [vmem:[#allocation3 + $0xb0] sm:$0xff] }
 0x4ac   : > { %8103 = vmatprep.mubr.bf16.mxu1 %v9597_v31  ;;  %v5368_v31 = vpack.c.bf16 %v5340_v25, %v9727_v39  ;;  %v5358_v39 = vld [vmem:[#allocation3 + $0x1d0] sm:$0xff] }
 0x4ad   : > { %v5377_v55 = vpack.c.bf16 %v5358_v39, %v5357_v38  ;;  %v5984_v39 = vld [vmem:[#allocation2 + $0x19] sm:$0xff] }
 0x4b3   : > { %8104 = vmatmul.mubr.bf16.gmra.mrb[24].mxu1 %v9601_v34  ;;  %v8877_v34 = vld [vmem:[%s9942_s3 + $0x218] sm:$0xff]  }
 0x4b4   : > { %8107 = vmatprep.mubr.bf16.mxu1 %v9712_v33  ;;  %v5372_v33 = vpack.c.bf16 %v5348_v21, %v5347_v46  ;;  %v5664_v21 = vld [vmem:[#allocation3 + $0x1d1] sm:$0xff] }
 0x4bb   : > { %8108 = vmatmul.mubr.bf16.gmra.mrb[28].mxu1 %v5074_v58  ;;  %v5654_v58 = vld [vmem:[#allocation3 + $0x131] sm:$0xff] }
 0x4bc   : > { %8127 = vmatprep.mubr.bf16.mxu1 %v9715_v18  ;;  %v5354_v18 = vld [vmem:[#allocation3 + $0x190] sm:$0xff]  ;;  %v5678_v25 = vpack.c.bf16 %v5654_v58, %v5653_v43 }
 0x4c3   : > { %8128 = vmatmul.mubr.bf16.vlgmr.msra.gmra.mrb[0].mxu1 %v9720_v50  ;;  %v5353_v50 = vld [vmem:[#allocation3 + $0x188] sm:$0xff] }
 0x4c4   : > { %8131 = vmatprep.mubr.bf16.mxu1 %v9729_v37  ;;  %8160 = vmatpush3.bf16.msra.mxu1 %v8874_v9  ;;  %v5375_v8 = vpack.c.bf16 %v5354_v18, %v5353_v50  ;;  %v5376_v37 = vpack.c.bf16 %v5356_v59, %v5355_v10  ;;  %v5676_v9 = vpack.c.bf16 %v5650_v62, %v5649_v48  ;;  %v5986_v50 = vld [vmem:[#allocation2 + $0x31] sm:$0xff] }
 0x4c5   : > { %8161 = vmatprep.subr.bf16.mxu1 %v8875_v11  ;;  %v5989_v48 = vld [vmem:[#allocation2 + $0x51] sm:$0xff] }
 0x4c8   : > { %8162 = vmatpush3.bf16.msra.mxu1 %v8875_v11  ;;  %v5655_v11 = vld [vmem:[#allocation3 + $0x149] sm:$0xff] }
 0x4c9   : > { %8163 = vmatprep.subr.bf16.mxu1 %v8876_v15 }
 0x4cb   : > { %8132 = vmatmul.mubr.bf16.gmra.mrb[4].mxu1 %v5368_v31 }
 0x4cc   : > { %8135 = vmatprep.mubr.bf16.mxu1 %v9740_v5  ;;  %8164 = vmatpush3.bf16.msra.mxu1 %v8876_v15  ;;  %v5378_v5 = vpack.c.bf16 %v5360_v57, %v5359_v4  ;;  %v5656_v15 = vld [vmem:[#allocation3 + $0x151] sm:$0xff] }
 0x4cd   : > { %8165 = vmatprep.subr.bf16.mxu1 %v8877_v34  ;;  %v5679_v31 = vpack.c.bf16 %v5656_v15, %v5655_v11 }
 0x4d0   : > { %8166 = vmatpush3.bf16.msra.mxu1 %v8877_v34  ;;  %v5657_v34 = vld [vmem:[#allocation3 + $0x169] sm:$0xff] }
 0x4d1   : > { %8167 = vmatprep.subr.bf16.mxu1 %v8878_v24 }
 0x4d3   : > { %8136 = vmatmul.mubr.bf16.gmra.mrb[8].mxu1 %v5370_v53  ;;  %v5681_v53 = vpack.c.bf16 %v5660_v12, %v5659_v40  ;;  %v5992_v40 = vld [vmem:[#allocation2 + $0x79] sm:$0xff] }
 0x4d4   : > { %8139 = vmatprep.mubr.bf16.mxu1 %v5371_v44  ;;  %8168 = vmatpush3.bf16.msra.mxu1 %v8878_v24  ;;  %v5658_v24 = vld [vmem:[#allocation3 + $0x171] sm:$0xff] }
 0x4d5   : > { %8169 = vmatprep.subr.bf16.mxu1 %v8879_v35  ;;  %v5680_v17 = vpack.c.bf16 %v5658_v24, %v5657_v34  ;;  %v5662_v44 = vld [vmem:[#allocation3 + $0x1b1] sm:$0xff] }
 0x4d8   : > { %8170 = vmatpush3.bf16.msra.mxu1 %v8879_v35  ;;  %v5661_v35 = vld [vmem:[#allocation3 + $0x1a9] sm:$0xff] }
 0x4d9   : > { %8171 = vmatprep.subr.bf16.mxu1 %v8880_v54  ;;  %v5682_v26 = vpack.c.bf16 %v5662_v44, %v5661_v35  ;;  %v5995_v35 = vld [vmem:[#allocation2 + $0x99] sm:$0xff] }
 0x4db   : > { %8140 = vmatmul.mubr.bf16.gmra.mrb[12].mxu1 %v5372_v33  ;;  %v5665_v33 = vld [vmem:[#allocation3 + $0x1e9] sm:$0xff] }
 0x4dc   : > { %8143 = vmatprep.mubr.bf16.mxu1 %v5373_v42  ;;  %8172 = vmatpush3.bf16.msra.mxu1 %v8880_v54  ;;  %v5663_v54 = vld [vmem:[#allocation3 + $0x1c9] sm:$0xff] }
 0x4dd   : > { %8173 = vmatprep.subr.bf16.mxu1 %v8881_v36  ;;  %v5683_v46 = vpack.c.bf16 %v5664_v21, %v5663_v54  ;;  %v5669_v42 = vld [vmem:[#allocation3 + $0x229] sm:$0xff] }
 0x4de   : > { %v5686_v18 = vpack.c.bf16 %v5670_v1, %v5669_v42 }
 0x4e0   : > { %8174 = vmatpush3.bf16.msra.mxu1 %v8881_v36  ;;  %v5684_v36 = vpack.c.bf16 %v5666_v19, %v5665_v33 }
 0x4e3   : > { %8144 = vmatmul.mubr.bf16.gmra.mrb[16].mxu1 %v5374_v49 }
 0x4e4   : > { %8147 = vmatprep.mubr.bf16.mxu1 %v5375_v8 }
 0x4eb   : > { %8148 = vmatmul.mubr.bf16.gmra.mrb[20].mxu1 %v5376_v37 }
 0x4ec   : > { %8151 = vmatprep.mubr.bf16.mxu1 %v5377_v55 }
 0x4f3   : > { %8152 = vmatmul.mubr.bf16.gmra.mrb[24].mxu1 %v5378_v5 }
 0x4f4   : > { %8155 = vmatprep.mubr.bf16.mxu1 %v5379_v2 }
 0x4fb   : > { %8156 = vmatmul.mubr.bf16.gmra.mrb[28].mxu1 %v5380_v30 }
 0x4fc   : > { %8175 = vmatprep.mubr.bf16.mxu1 %v5671_v51 }
 0x503   : > { %8176 = vmatmul.mubr.bf16.vlgmr.msra.gmra.mrb[0].mxu1 %v5672_v63  ;;  %v5988_v63 = vld [vmem:[#allocation2 + $0x49] sm:$0xff] }
 0x504   : > { %8179 = vmatprep.mubr.bf16.mxu1 %v5673_v3 }
 0x50b   : > { %8180 = vmatmul.mubr.bf16.gmra.mrb[4].mxu1 %v5674_v22 }
 0x50c   : > { %8183 = vmatprep.mubr.bf16.mxu1 %v5675_v41 }
 0x513   : > { %8184 = vmatmul.mubr.bf16.gmra.mrb[8].mxu1 %v5676_v9 }
 0x514   : > { %8187 = vmatprep.mubr.bf16.mxu1 %v5677_v23 }
 0x51b   : > { %8188 = vmatmul.mubr.bf16.gmra.mrb[12].mxu1 %v5678_v25  ;;  %v5994_v25 = vld [vmem:[#allocation2 + $0x91] sm:$0xff] }
 0x51c   : > { %8191 = vmatprep.mubr.bf16.mxu1 %v5679_v31 }
 0x523   : > { %8192 = vmatmul.mubr.bf16.gmra.mrb[16].mxu1 %v5680_v17 }
 0x524   : > { %8195 = vmatprep.mubr.bf16.mxu1 %v5681_v53 }
 0x52b   : > { %8196 = vmatmul.mubr.bf16.gmra.mrb[20].mxu1 %v5682_v26  ;;  %v5993_v26 = vld [vmem:[#allocation2 + $0x81] sm:$0xff] }
 0x52c   : > { %8199 = vmatprep.mubr.bf16.mxu1 %v5683_v46 }
 0x533   : > { %8200 = vmatmul.mubr.bf16.gmra.mrb[24].mxu1 %v5684_v36 }
 0x534   : > { %8203 = vmatprep.mubr.bf16.mxu1 %v9807_v45  ;;  %v5987_v45 = vld [vmem:[#allocation2 + $0x39] sm:$0xff] }
 0x53b   : > { %8204 = vmatmul.mubr.bf16.gmra.mrb[28].mxu1 %v5686_v18 }
 0x5d6   : > { %v8177_v49 = vpop.f32.mrb[0].mxu1 }
 0x5d7   : > { %v5954_v8 = vadd.f32 %v8177_v49, %v9880_v47  ;;  %v5786_v59 = vpop.f32.mrb[1].mxu1 }
 0x5d8   : > { %v5952_v10 = vadd.f32 %v9880_v47, %v5786_v59  ;;  %v8178_v37 = vpop.f32.mrb[2].mxu1 }
 0x5d9   : > { %v6018_v38 = vadd.f32 %v5986_v50, %v5954_v8  ;;  %v5955_v55 = vadd.f32 %v8178_v37, %v9880_v47  ;;  %v5789_v57 = vpop.f32.mrb[3].mxu1  ;;  %v5998_v8 = vld [vmem:[#allocation2 + $0xc1] sm:$0xff]  ;;  %v5996_v37 = vld [vmem:[#allocation2 + $0xa9] sm:$0xff] }
 0x5da   : > { %v6016_v4 = vadd.f32 %v5984_v39, %v5952_v10  ;;  %v5953_v5 = vadd.f32 %v9880_v47, %v5789_v57  ;;  %v5999_v57 = vld [vmem:[#allocation2 + $0xc9] sm:$0xff] }
 0x5db   : > { %v6019_v16 = vadd.f32 %v5987_v45, %v5955_v55  ;;  %v6050_v20 = vmax.f32 %v6018_v38, 0.0 }
 0x5dc   : > { %v6017_v2 = vadd.f32 %v5985_v0, %v5953_v5  ;;  %v6048_v6 = vmax.f32 %v6016_v4, 0.0 }
 0x5dd   : > { %v6051_v30 = vmax.f32 %v6019_v16, 0.0  ;;  %v5997_v16 = vld [vmem:[#allocation2 + $0xb1] sm:$0xff] }
 0x5de   : > { %v6049_v32 = vmax.f32 %v6017_v2, 0.0  ;;  %v8181_v51 = vpop.f32.mrb[4].mxu1 }
 0x5df   : > { %v6816_v61 = vpack.c.bf16 %v6051_v30, %v6050_v20  ;;  %v5958_v60 = vadd.f32 %v8181_v51, %v9880_v47  ;;  %v5802_v7 = vpop.f32.mrb[5].mxu1 }
 0x5e0   : > { %v6811_v3 = vpack.c.bf16 %v6049_v32, %v6048_v6  ;;  %v5956_v27 = vadd.f32 %v9880_v47, %v5802_v7  ;;  %v8182_v29 = vpop.f32.mrb[6].mxu1  ;;  %v6002_v7 = vld [vmem:[#allocation2 + $0xf1] sm:$0xff] }
 0x5e1   : > { %6896 = vst [vmem:[%s9890_s24 + $0x8] sm:$0xff] %v6816_v61   ;;  %v6022_v14 = vadd.f32 %v5990_v52, %v5958_v60  ;;  %v5959_v22 = vadd.f32 %v8182_v29, %v9880_v47  ;;  %v5805_v41 = vpop.f32.mrb[7].mxu1  ;;  %v6000_v29 = vld [vmem:[#allocation2 + $0xd9] sm:$0xff] }
 0x5e2   : > { %6812 = vst [vmem:[%s9890_s24] sm:$0xff] %v6811_v3   ;;  %v6020_v62 = vadd.f32 %v5988_v63, %v5956_v27  ;;  %v5957_v13 = vadd.f32 %v9880_v47, %v5805_v41  ;;  %v6003_v41 = vld [vmem:[#allocation2 + $0xf9] sm:$0xff] }
 0x5e3   : > { %v6023_v56 = vadd.f32 %v5991_v28, %v5959_v22  ;;  %v6054_v23 = vmax.f32 %v6022_v14, 0.0 }
 0x5e4   : > { %v6021_v9 = vadd.f32 %v5989_v48, %v5957_v13  ;;  %v6052_v58 = vmax.f32 %v6020_v62, 0.0 }
 0x5e5   : > { %v6055_v43 = vmax.f32 %v6023_v56, 0.0  ;;  %v6001_v56 = vld [vmem:[#allocation2 + $0xe1] sm:$0xff] }
 0x5e6   : > { %v6053_v11 = vmax.f32 %v6021_v9, 0.0  ;;  %v8185_v15 = vpop.f32.mrb[8].mxu1 }
 0x5e7   : > { %v6826_v31 = vpack.c.bf16 %v6055_v43, %v6054_v23  ;;  %v5962_v34 = vadd.f32 %v8185_v15, %v9880_v47  ;;  %v5818_v24 = vpop.f32.mrb[9].mxu1 }
 0x5e8   : > { %v6821_v12 = vpack.c.bf16 %v6053_v11, %v6052_v58  ;;  %v5960_v17 = vadd.f32 %v9880_v47, %v5818_v24  ;;  %v8186_v53 = vpop.f32.mrb[10].mxu1  ;;  %v6006_v24 = vld [vmem:[#allocation2 + $0x121] sm:$0xff] }
 0x5e9   : > { %6898 = vst [vmem:[%s9890_s24 + $0x18] sm:$0xff] %v6826_v31   ;;  %v6026_v44 = vadd.f32 %v5994_v25, %v5962_v34  ;;  %v5963_v54 = vadd.f32 %v8186_v53, %v9880_v47  ;;  %v5821_v21 = vpop.f32.mrb[11].mxu1  ;;  %v6004_v53 = vld [vmem:[#allocation2 + $0x109] sm:$0xff] }
 0x5ea   : > { %6897 = vst [vmem:[%s9890_s24 + $0x10] sm:$0xff] %v6821_v12   ;;  %v6024_v46 = vadd.f32 %v5992_v40, %v5960_v17  ;;  %v5961_v33 = vadd.f32 %v9880_v47, %v5821_v21  ;;  %v6007_v21 = vld [vmem:[#allocation2 + $0x129] sm:$0xff] }
 0x5eb   : > { %v6027_v19 = vadd.f32 %v5995_v35, %v5963_v54  ;;  %v6058_v42 = vmax.f32 %v6026_v44, 0.0 }
 0x5ec   : > { %v6025_v36 = vadd.f32 %v5993_v26, %v5961_v33  ;;  %v6056_v18 = vmax.f32 %v6024_v46, 0.0 }
 0x5ed   : > { %v6059_v1 = vmax.f32 %v6027_v19, 0.0  ;;  %v6005_v19 = vld [vmem:[#allocation2 + $0x111] sm:$0xff] }
 0x5ee   : > { %v6057_v49 = vmax.f32 %v6025_v36, 0.0  ;;  %v8189_v50 = vpop.f32.mrb[12].mxu1 }
 0x5ef   : > { %v6836_v59 = vpack.c.bf16 %v6059_v1, %v6058_v42  ;;  %v5966_v39 = vadd.f32 %v8189_v50, %v9880_v47  ;;  %v5834_v10 = vpop.f32.mrb[13].mxu1 }
 0x5f0   : > { %v6831_v45 = vpack.c.bf16 %v6057_v49, %v6056_v18  ;;  %v5964_v38 = vadd.f32 %v9880_v47, %v5834_v10  ;;  %v8190_v55 = vpop.f32.mrb[14].mxu1  ;;  %v6010_v10 = vld [vmem:[#allocation2 + $0x151] sm:$0xff] }
 0x5f1   : > { %6900 = vst [vmem:[%s9890_s24 + $0x28] sm:$0xff] %v6836_v59   ;;  %v6030_v0 = vadd.f32 %v5998_v8, %v5966_v39  ;;  %v5967_v4 = vadd.f32 %v8190_v55, %v9880_v47  ;;  %v5837_v5 = vpop.f32.mrb[15].mxu1  ;;  %v6008_v55 = vld [vmem:[#allocation2 + $0x139] sm:$0xff] }
 0x5f2   : > { %6899 = vst [vmem:[%s9890_s24 + $0x20] sm:$0xff] %v6831_v45   ;;  %v6028_v2 = vadd.f32 %v5996_v37, %v5964_v38  ;;  %v5965_v20 = vadd.f32 %v9880_v47, %v5837_v5  ;;  %v6011_v5 = vld [vmem:[#allocation2 + $0x159] sm:$0xff] }
 0x5f3   : > { %v6031_v30 = vadd.f32 %v5999_v57, %v5967_v4  ;;  %v6062_v32 = vmax.f32 %v6030_v0, 0.0 }
 0x5f4   : > { %v6029_v6 = vadd.f32 %v5997_v16, %v5965_v20  ;;  %v6060_v52 = vmax.f32 %v6028_v2, 0.0 }
 0x5f5   : > { %v6063_v51 = vmax.f32 %v6031_v30, 0.0  ;;  %v6009_v30 = vld [vmem:[#allocation2 + $0x141] sm:$0xff] }
 0x5f6   : > { %v6061_v61 = vmax.f32 %v6029_v6, 0.0  ;;  %v8193_v60 = vpop.f32.mrb[16].mxu1 }
 0x5f7   : > { %v6846_v63 = vpack.c.bf16 %v6063_v51, %v6062_v32  ;;  %v5970_v3 = vadd.f32 %v8193_v60, %v9880_v47  ;;  %v5850_v27 = vpop.f32.mrb[17].mxu1 }
 0x5f8   : > { %v6841_v28 = vpack.c.bf16 %v6061_v61, %v6060_v52  ;;  %v5968_v14 = vadd.f32 %v9880_v47, %v5850_v27  ;;  %v8194_v22 = vpop.f32.mrb[18].mxu1  ;;  %v6014_v27 = vld [vmem:[#allocation2 + $0x181] sm:$0xff] }
 0x5f9   : > { %6902 = vst [vmem:[%s9890_s24 + $0x38] sm:$0xff] %v6846_v63   ;;  %v6034_v48 = vadd.f32 %v6002_v7, %v5970_v3  ;;  %v5971_v62 = vadd.f32 %v8194_v22, %v9880_v47  ;;  %v5853_v13 = vpop.f32.mrb[19].mxu1  ;;  %v6012_v22 = vld [vmem:[#allocation2 + $0x169] sm:$0xff] }
 0x5fa   : > { %6901 = vst [vmem:[%s9890_s24 + $0x30] sm:$0xff] %v6841_v28   ;;  %v6032_v9 = vadd.f32 %v6000_v29, %v5968_v14  ;;  %v5969_v23 = vadd.f32 %v9880_v47, %v5853_v13  ;;  %v6015_v13 = vld [vmem:[#allocation2 + $0x189] sm:$0xff] }
 0x5fb   : > { %v6035_v43 = vadd.f32 %v6003_v41, %v5971_v62  ;;  %v6066_v11 = vmax.f32 %v6034_v48, 0.0 }
 0x5fc   : > { %v6033_v58 = vadd.f32 %v6001_v56, %v5969_v23  ;;  %v6064_v25 = vmax.f32 %v6032_v9, 0.0 }
 0x5fd   : > { %v6067_v15 = vmax.f32 %v6035_v43, 0.0  ;;  %v6013_v43 = vld [vmem:[#allocation2 + $0x171] sm:$0xff] }
 0x5fe   : > { %v6065_v31 = vmax.f32 %v6033_v58, 0.0  ;;  %v8197_v34 = vpop.f32.mrb[20].mxu1 }
 0x5ff   : > { %v6856_v40 = vpack.c.bf16 %v6067_v15, %v6066_v11  ;;  %v5974_v12 = vadd.f32 %v8197_v34, %v9880_v47  ;;  %v5866_v17 = vpop.f32.mrb[21].mxu1 }
 0x600   : > { %v6851_v35 = vpack.c.bf16 %v6065_v31, %v6064_v25  ;;  %v5972_v44 = vadd.f32 %v9880_v47, %v5866_v17  ;;  %v8198_v54 = vpop.f32.mrb[22].mxu1 }
 0x601   : > { %6904 = vst [vmem:[%s9890_s24 + $0x48] sm:$0xff] %v6856_v40   ;;  %v6038_v26 = vadd.f32 %v6006_v24, %v5974_v12  ;;  %v5975_v46 = vadd.f32 %v8198_v54, %v9880_v47  ;;  %v5869_v33 = vpop.f32.mrb[23].mxu1 }
 0x602   : > { %6903 = vst [vmem:[%s9890_s24 + $0x40] sm:$0xff] %v6851_v35   ;;  %v6036_v36 = vadd.f32 %v6004_v53, %v5972_v44  ;;  %v5973_v42 = vadd.f32 %v9880_v47, %v5869_v33 }
 0x603   : > { %v6039_v1 = vadd.f32 %v6007_v21, %v5975_v46  ;;  %v6070_v49 = vmax.f32 %v6038_v26, 0.0 }
 0x604   : > { %v6037_v18 = vadd.f32 %v6005_v19, %v5973_v42  ;;  %v6068_v8 = vmax.f32 %v6036_v36, 0.0 }
 0x605   : > { %v6071_v50 = vmax.f32 %v6039_v1, 0.0 }
 0x606   : > { %v6069_v59 = vmax.f32 %v6037_v18, 0.0  ;;  %v8201_v39 = vpop.f32.mrb[24].mxu1 }
 0x607   : > { %v6866_v37 = vpack.c.bf16 %v6071_v50, %v6070_v49  ;;  %v5978_v45 = vadd.f32 %v8201_v39, %v9880_v47  ;;  %v5882_v38 = vpop.f32.mrb[25].mxu1 }
 0x608   : > { %v6861_v57 = vpack.c.bf16 %v6069_v59, %v6068_v8  ;;  %v5976_v0 = vadd.f32 %v9880_v47, %v5882_v38  ;;  %v8202_v4 = vpop.f32.mrb[26].mxu1 }
 0x609   : > { %6906 = vst [vmem:[%s9890_s24 + $0x58] sm:$0xff] %v6866_v37   ;;  %v6042_v16 = vadd.f32 %v6010_v10, %v5978_v45  ;;  %v5979_v2 = vadd.f32 %v8202_v4, %v9880_v47  ;;  %v5885_v20 = vpop.f32.mrb[27].mxu1 }
 0x60a   : > { %6905 = vst [vmem:[%s9890_s24 + $0x50] sm:$0xff] %v6861_v57   ;;  %v6040_v6 = vadd.f32 %v6008_v55, %v5976_v0  ;;  %v5977_v32 = vadd.f32 %v9880_v47, %v5885_v20 }
 0x60b   : > { %v6043_v51 = vadd.f32 %v6011_v5, %v5979_v2  ;;  %v6074_v61 = vmax.f32 %v6042_v16, 0.0 }
 0x60c   : > { %v6041_v52 = vadd.f32 %v6009_v30, %v5977_v32  ;;  %v6072_v7 = vmax.f32 %v6040_v6, 0.0 }
 0x60d   : > { %v6075_v60 = vmax.f32 %v6043_v51, 0.0 }
 0x60e   : > { %v6073_v63 = vmax.f32 %v6041_v52, 0.0  ;;  %v8205_v3 = vpop.f32.mrb[28].mxu1 }
 0x60f   : > { %v6876_v29 = vpack.c.bf16 %v6075_v60, %v6074_v61  ;;  %v5982_v28 = vadd.f32 %v8205_v3, %v9880_v47  ;;  %v5898_v14 = vpop.f32.mrb[29].mxu1 }
 0x610   : > { %v6871_v41 = vpack.c.bf16 %v6073_v63, %v6072_v7  ;;  %v5980_v48 = vadd.f32 %v9880_v47, %v5898_v14  ;;  %v8206_v62 = vpop.f32.mrb[30].mxu1 }
 0x611   : > { %6908 = vst [vmem:[%s9890_s24 + $0x68] sm:$0xff] %v6876_v29   ;;  %v6046_v56 = vadd.f32 %v6014_v27, %v5982_v28  ;;  %v5983_v9 = vadd.f32 %v8206_v62, %v9880_v47  ;;  %v5901_v23 = vpop.f32.mrb[31].mxu1 }
 0x612   : > { %6907 = vst [vmem:[%s9890_s24 + $0x60] sm:$0xff] %v6871_v41   ;;  %v6044_v58 = vadd.f32 %v6012_v22, %v5980_v48  ;;  %v5981_v11 = vadd.f32 %v9880_v47, %v5901_v23 }
 0x613   : > { %v6047_v15 = vadd.f32 %v6015_v13, %v5983_v9  ;;  %v6078_v31 = vmax.f32 %v6046_v56, 0.0 }
 0x614   : > { %v6045_v25 = vadd.f32 %v6013_v43, %v5981_v11  ;;  %v6076_v24 = vmax.f32 %v6044_v58, 0.0 }
 0x615   : > { %v6079_v34 = vmax.f32 %v6047_v15, 0.0 }
 0x616   : > { %v6077_v40 = vmax.f32 %v6045_v25, 0.0 }
 0x617   : > { %v6886_v12 = vpack.c.bf16 %v6079_v34, %v6078_v31 }
 0x618   : > { %v6881_v17 = vpack.c.bf16 %v6077_v40, %v6076_v24 }
 0x619   : > { %6910 = vst [vmem:[%s9890_s24 + $0x78] sm:$0xff] %v6886_v12  }
 0x61a   : > { %6909 = vst [vmem:[%s9890_s24 + $0x70] sm:$0xff] %v6881_v17  }
 0x61b PF: > { %s15_s18 = sadd.s32 1, %s8889_s18  }
 0x61c   : > { %p12_p4 = scmp.ge.s32.totalorder %s15_s18, 4  }
 0x61e   :  { %14 = sbr.rel (!%p12_p4) target bundleno = 1 (0x1), region = 90 }

// kernel: scat_resnet_forward.5
= control target key start
LH: loop header
LB: loop body
LE: loop exit
PB: predicated region body
PF: predicated region fallthrough
CT: control target
= control target key end

     0   :  { %s6340_s0 = inlined_call_operand.vmem [shape: bf16[2,4,9,9,128], index: 0, kind: input, shape index: {}]   ;;  %s6341_s1 = inlined_call_operand.vmem [shape: bf16[9,128,128], index: 1, kind: input, shape index: {}]   ;;  %s6342_s2 = inlined_call_operand.vmem [shape: f32[1,128], index: 2, kind: input, shape index: {}, may-alias: {2,4,6}]   ;;  %s6343_s3 = inlined_call_operand.vmem [shape: bf16[9,128,128], index: 3, kind: input, shape index: {}]   ;;  %s6344_s4 = inlined_call_operand.vmem [shape: f32[1,128], index: 4, kind: input, shape index: {}, may-alias: {2,4,6}]   ;;  %s6345_s5 = inlined_call_operand.vmem [shape: bf16[128,128], index: 5, kind: input, shape index: {}]   ;;  %s6346_s6 = inlined_call_operand.vmem [shape: f32[1,128], index: 6, kind: input, shape index: {}, may-alias: {2,4,6}]   ;;  %s6347_s7 = inlined_call_operand.vmem [shape: f32[128,128], index: 7, kind: input, shape index: {}]   ;;  %s6348_s8 = inlined_call_operand.vmem [shape: f32[1,128], index: 8, kind: input, shape index: {}]   ;;  %s6349_s9 = inlined_call_operand.hbm [shape: bf16[2,8,8,128], index: 9, kind: output, shape index: {0}]   ;;  %s6350_s10 = inlined_call_operand.vmem [shape: f32[2,8,128], index: 10, kind: output, shape index: {1}]  }
   0x1   :  { %6351 = sst [smem:[#allocation7_spill]] %s6340_s0 }
   0x2   :  { %16 = vsyncpa [#allocation5], 0 }
   0x3   :  { %18 = vsyncpa [#allocation5 + $0x1], 0  ;;  %s5431_s13 = smov 0   ;;  %s5433_s14 = smov 0  }
   0x4   :  { %s5435_s15 = smov 0   ;;  %s5437_s16 = smov 0  }
   0x5 LB: > { %s5452_s17 = sadd.s32 4294967295, %s5368_s16   ;;  %s3728_s18 = sadd.s32 4294967294, %s5368_s16   ;;  %s5368_s16 = sphi %s5437_s16, %s6358_s16   ;;  %s5364_s15 = sphi %s5435_s15, %s6357_s15   ;;  %s5360_s14 = sphi %s5433_s14, %s6356_s14   ;;  %s5356_s13 = sphi %s5431_s13, %s6355_s13  }
   0x6   : > { %s5456_s19 = sadd.s32 1, %s5368_s16   ;;  %s225_s20 = sadd.s32 1, %s5364_s15 }
   0x7   : > { %s222_s21 = ssub.s32 %s5368_s16, %s5456_s19  ;;  %p235_p0 = scmp.ne.s32.totalorder %s5364_s15, %s5360_s14 }
   0x8   : > { %p223_p1 = scmp.eq.s32.totalorder %s222_s21, 0  ;;  %p236_p2 = scmp.eq.s32.totalorder %s5452_s17, 1 }
   0x9   : > { %p241_p3 = scmp.ne.s32.totalorder %s5360_s14, %s5356_s13  ;;  %p242_p4 = scmp.eq.s32.totalorder %s3728_s18, 1 }
   0xa   : > { %s5467_s22 = scalar_select %p223_p1, %s5364_s15, %s225_s20  }
   0xb   : > { %p5469_p5 = por %p236_p2, %p235_p0  ;;  %p5473_p6 = por %p242_p4, %p241_p3 }
   0xc   : > { %p3731_p7 = scmp.ge.s32.totalorder %s5368_s16, 1  ;;  %p318_p8 = scmp.lt.s32.totalorder %s5368_s16, 3 }
   0xe   : > { %p319_p9 = pnand %p3731_p7, %p318_p8 }
   0xf   : > { %v5132_v0 = vld [vmem:[%s6341_s1 + $0x40] sm:$0xff] (!%p319_p9)   ;;  %p360_p10 = scmp.lt.s32.totalorder (!%p319_p9), %s5452_s17, 1  ;;  %v5133_v1 = vld [vmem:[%s6341_s1 + $0x48] sm:$0xff] (!%p319_p9)   ;;  %v5134_v2 = vld [vmem:[%s6341_s1 + $0x50] sm:$0xff] (!%p319_p9)   ;;  %s6354_s0 = sld [smem:[#allocation7_spill]] (!%p319_p9)  ;;  %vm5372_vm0 = vmmov (!%p319_p9), 0  }
  0x10   : > { %322 = sbr.rel (%p319_p9) target bundleno = 1277 (0x4fd), region = 56  ;;  %4420 = vmatprep.subr.bf16.mxu0 (!%p319_p9), %v5132_v0  ;;  %v5135_v3 = vld [vmem:[%s6341_s1 + $0x58] sm:$0xff] (!%p319_p9)   ;;  %v5136_v6 = vld [vmem:[%s6341_s1 + $0x60] sm:$0xff] (!%p319_p9)   ;;  %v5137_v8 = vld [vmem:[%s6341_s1 + $0x68] sm:$0xff] (!%p319_p9)   ;;  %s4151_s28 = sshll.u32 (!%p319_p9), %s5452_s17, 9 }
  0x11   : > { %4421 = vmatpush3.bf16.msra.mxu0 (!%p319_p9), %v5132_v0  ;;  %v5138_v12 = vld [vmem:[%s6341_s1 + $0x70] sm:$0xff] (!%p319_p9)   ;;  %v5139_v17 = vld [vmem:[%s6341_s1 + $0x78] sm:$0xff] (!%p319_p9)   ;;  %v5141_v24 = vld [vmem:[%s6341_s1] sm:$0xff] (!%p319_p9)  }
  0x12   : > { %4422 = vmatprep.subr.bf16.mxu0 (!%p319_p9), %v5133_v1  ;;  %v5143_v29 = vld [vmem:[%s6341_s1 + $0x8] sm:$0xff] (!%p319_p9)   ;;  %v5144_v34 = vld [vmem:[%s6341_s1 + $0x10] sm:$0xff] (!%p319_p9)   ;;  %v5145_v47 = vld [vmem:[%s6341_s1 + $0x18] sm:$0xff] (!%p319_p9)  }
  0x13   : > { %v5146_v50 = vld [vmem:[%s6341_s1 + $0x20] sm:$0xff] (!%p319_p9)   ;;  %v5147_v58 = vld [vmem:[%s6341_s1 + $0x28] sm:$0xff] (!%p319_p9)   ;;  %v5149_v0 = vld [vmem:[%s6341_s1 + $0x30] sm:$0xff] (!%p319_p9)  }
  0x15   : > { %4423 = vmatpush3.bf16.msra.mxu0 (!%p319_p9), %v5133_v1  ;;  %v5151_v1 = vld [vmem:[%s6341_s1 + $0x38] sm:$0xff] (!%p319_p9)  }
  0x16   : > { %4424 = vmatprep.subr.bf16.mxu0 (!%p319_p9), %v5134_v2 }
  0x17   : > { %s5487_s29 = scalar_select %p360_p10, %s5452_s17, 1 }
  0x19   : > { %s5087_s12 = smul.u32 288, %s5487_s29  ;;  %4425 = vmatpush3.bf16.msra.mxu0 %v5134_v2 }
  0x1a   : > { %4426 = vmatprep.subr.bf16.mxu0 %v5135_v3 }
  0x1b   : > { %s5499_s26 = scalar_lea.vmem %s6354_s0, %s5087_s12  ;;  %s6288_s12 = scalar_lea.hbm %s6349_s9, %s4151_s28 }
  0x1c   : > { %v388_v4 = vld [vmem:[%s5499_s26 + $0x48] ss:$8 sps:$4 sm:$0xff]   ;;  %v392_v9 = vld [vmem:[%s5499_s26 + $0x58] ss:$8 sps:$4 sm:$0xff]   ;;  %v371_v37 = vld [vmem:[%s5499_s26 + $0x4] sm:$0x1] }
  0x1d   : > { %v462_v5 = vunpack.c.h.bf16 %v388_v4  ;;  %4427 = vmatpush3.bf16.msra.mxu0 %v5135_v3  ;;  %v5140_v7 = vld [vmem:[%s5499_s26 + $0x48] ss:$8 sps:$4 sm:$0xff]   ;;  %v464_v10 = vunpack.c.l.bf16 %v392_v9  ;;  %v466_v11 = vunpack.c.h.bf16 %v392_v9  ;;  %v400_v16 = vld [vmem:[%s5499_s26 + $0x78] ss:$8 sps:$4 sm:$0xff]   ;;  %v373_v38 = vld [vmem:[%s5499_s26 + $0xc] sm:$0x1]  ;;  %v443_v40 = vunpack.c.l.bf16 %v371_v37 }
  0x1e   : > { %4428 = vmatprep.subr.bf16.mxu0 %v5136_v6  ;;  %4436 = vmatprep.mubr.bf16.mxu0 %v5140_v7  ;;  %v396_v13 = vld [vmem:[%s5499_s26 + $0x68] ss:$8 sps:$4 sm:$0xff]   ;;  %v472_v18 = vunpack.c.l.bf16 %v400_v16  ;;  %v474_v19 = vunpack.c.h.bf16 %v400_v16  ;;  %v5142_v27 = vld [vmem:[%s5499_s26 + $0x58] ss:$8 sps:$4 sm:$0xff]   ;;  %v445_v41 = vunpack.c.l.bf16 %v373_v38  ;;  %v375_v42 = vld [vmem:[%s5499_s26 + $0x14] sm:$0x1] }
  0x1f   : > { %534 = vst [vmem:[#allocation2 + $0xa0] sm:$0xff] %v462_v5  ;;  %536 = vst [vmem:[#allocation2 + $0xb0] sm:$0xff] %v464_v10  ;;  %v468_v14 = vunpack.c.l.bf16 %v396_v13  ;;  %v470_v15 = vunpack.c.h.bf16 %v396_v13  ;;  %v370_v20 = vld [vmem:[%s5499_s26] ss:$8 sps:$4 sm:$0xff]   ;;  %v374_v23 = vld [vmem:[%s5499_s26 + $0x10] ss:$8 sps:$4 sm:$0xff]   ;;  %v447_v44 = vunpack.c.l.bf16 %v375_v42 }
  0x20   : > { %538 = vst [vmem:[#allocation2 + $0xc0] sm:$0xff] %v466_v11  ;;  %544 = vst [vmem:[#allocation2 + $0xf0] sm:$0xff] %v472_v18  ;;  %v442_v21 = vunpack.c.l.bf16 %v370_v20  ;;  %v444_v22 = vunpack.c.h.bf16 %v370_v20  ;;  %v446_v25 = vunpack.c.l.bf16 %v374_v23  ;;  %v448_v26 = vunpack.c.h.bf16 %v374_v23  ;;  %v5148_v28 = vld [vmem:[%s5499_s26 + $0x68] ss:$8 sps:$4 sm:$0xff]   ;;  %v5150_v39 = vld [vmem:[%s5499_s26 + $0x78] ss:$8 sps:$4 sm:$0xff]  }
  0x21   : > { %4429 = vmatpush3.bf16.msra.mxu0 %v5136_v6  ;;  %540 = vst [vmem:[#allocation2 + $0xd0] sm:$0xff] %v468_v14  ;;  %542 = vst [vmem:[#allocation2 + $0xe0] sm:$0xff] %v470_v15  ;;  %v378_v30 = vld [vmem:[%s5499_s26 + $0x20] ss:$8 sps:$4 sm:$0xff]   ;;  %v382_v33 = vld [vmem:[%s5499_s26 + $0x30] ss:$8 sps:$4 sm:$0xff]  }
  0x22   : > { %4430 = vmatprep.subr.bf16.mxu0 %v5137_v8  ;;  %546 = vst [vmem:[#allocation2 + $0x100] sm:$0xff] %v474_v19  ;;  %514 = vst [vmem:[#allocation2] sm:$0xff] %v442_v21  ;;  %v450_v31 = vunpack.c.l.bf16 %v378_v30  ;;  %v452_v32 = vunpack.c.h.bf16 %v378_v30  ;;  %v454_v35 = vunpack.c.l.bf16 %v382_v33  ;;  %v456_v36 = vunpack.c.h.bf16 %v382_v33  ;;  %v377_v43 = vld [vmem:[%s5499_s26 + $0x1c] sm:$0x1]  ;;  %v5152_v45 = vld [vmem:[%s5499_s26] ss:$8 sps:$4 sm:$0xff]  }
  0x23   : > { %516 = vst [vmem:[#allocation2 + $0x10] sm:$0xff] %v444_v22  ;;  %518 = vst [vmem:[#allocation2 + $0x20] sm:$0xff] %v446_v25  ;;  %v449_v46 = vunpack.c.l.bf16 %v377_v43  ;;  %v379_v48 = vld [vmem:[%s5499_s26 + $0x24] sm:$0x1]  ;;  %v381_v49 = vld [vmem:[%s5499_s26 + $0x2c] sm:$0x1] }
  0x24   : > { %520 = vst [vmem:[#allocation2 + $0x30] sm:$0xff] %v448_v26  ;;  %522 = vst [vmem:[#allocation2 + $0x40] sm:$0xff] %v450_v31  ;;  %v451_v51 = vunpack.c.l.bf16 %v379_v48  ;;  %v453_v52 = vunpack.c.l.bf16 %v381_v49  ;;  %v383_v53 = vld [vmem:[%s5499_s26 + $0x34] sm:$0x1]  ;;  %v385_v54 = vld [vmem:[%s5499_s26 + $0x3c] sm:$0x1] }
  0x25   : > { %4431 = vmatpush3.bf16.msra.mxu0 %v5137_v8  ;;  %524 = vst [vmem:[#allocation2 + $0x50] sm:$0xff] %v452_v32  ;;  %526 = vst [vmem:[#allocation2 + $0x60] sm:$0xff] %v454_v35  ;;  %v455_v55 = vunpack.c.l.bf16 %v383_v53  ;;  %v457_v56 = vunpack.c.l.bf16 %v385_v54  ;;  %v406_v57 = vld [vmem:[%s5499_s26 + $0x90] ss:$8 sps:$4 sm:$0xff]   ;;  %v410_v61 = vld [vmem:[%s5499_s26 + $0xa0] ss:$8 sps:$4 sm:$0xff]  }
  0x26   : > { %4432 = vmatprep.subr.bf16.mxu0 %v5138_v12  ;;  %528 = vst [vmem:[#allocation2 + $0x70] sm:$0xff] %v456_v36  ;;  %515 = vst [vmem:[#allocation2 + $0x8] sm:$0x1] %v443_v40  ;;  %v478_v59 = vunpack.c.l.bf16 %v406_v57  ;;  %v480_v60 = vunpack.c.h.bf16 %v406_v57  ;;  %v482_v62 = vunpack.c.l.bf16 %v410_v61  ;;  %v484_v63 = vunpack.c.h.bf16 %v410_v61  ;;  %v414_v2 = vld [vmem:[%s5499_s26 + $0xb0] ss:$8 sps:$4 sm:$0xff]   ;;  %v5153_v8 = vld [vmem:[%s6341_s1 + $0x80] sm:$0xff]  }
  0x27   : > { %517 = vst [vmem:[#allocation2 + $0x18] sm:$0x1] %v445_v41  ;;  %519 = vst [vmem:[#allocation2 + $0x28] sm:$0x1] %v447_v44  ;;  %v486_v3 = vunpack.c.l.bf16 %v414_v2  ;;  %v488_v4 = vunpack.c.h.bf16 %v414_v2  ;;  %v418_v5 = vld [vmem:[%s5499_s26 + $0xc0] ss:$8 sps:$4 sm:$0xff]  }
  0x28   : > { %521 = vst [vmem:[#allocation2 + $0x38] sm:$0x1] %v449_v46  ;;  %523 = vst [vmem:[#allocation2 + $0x48] sm:$0x1] %v451_v51  ;;  %v490_v6 = vunpack.c.l.bf16 %v418_v5  ;;  %v492_v7 = vunpack.c.h.bf16 %v418_v5  ;;  %v424_v9 = vld [vmem:[%s5499_s26 + $0xd8] ss:$8 sps:$4 sm:$0xff]  }
  0x29   : > { %4433 = vmatpush3.bf16.msra.mxu0 %v5138_v12  ;;  %525 = vst [vmem:[#allocation2 + $0x58] sm:$0x1] %v453_v52  ;;  %527 = vst [vmem:[#allocation2 + $0x68] sm:$0x1] %v455_v55  ;;  %v496_v10 = vunpack.c.l.bf16 %v424_v9  ;;  %v498_v11 = vunpack.c.h.bf16 %v424_v9  ;;  %v428_v12 = vld [vmem:[%s5499_s26 + $0xe8] ss:$8 sps:$4 sm:$0xff]  }
  0x2a   : > { %4434 = vmatprep.subr.bf16.mxu0 %v5139_v17  ;;  %529 = vst [vmem:[#allocation2 + $0x78] sm:$0x1] %v457_v56  ;;  %550 = vst [vmem:[#allocation2 + $0x120] sm:$0xff] %v478_v59  ;;  %v5154_v13 = vld [vmem:[%s5499_s26 + $0x10] ss:$8 sps:$4 sm:$0xff]   ;;  %v500_v14 = vunpack.c.l.bf16 %v428_v12  ;;  %v502_v15 = vunpack.c.h.bf16 %v428_v12  ;;  %v5158_v38 = vld [vmem:[%s6341_s1 + $0xa0] sm:$0xff]  }
  0x2b   : > { %552 = vst [vmem:[#allocation2 + $0x130] sm:$0xff] %v480_v60  ;;  %554 = vst [vmem:[#allocation2 + $0x140] sm:$0xff] %v482_v62  ;;  %v5160_v16 = vld [vmem:[%s5499_s26 + $0x20] ss:$8 sps:$4 sm:$0xff]   ;;  %v5156_v18 = vld [vmem:[%s6341_s1 + $0x90] sm:$0xff]  }
  0x2c   : > { %556 = vst [vmem:[#allocation2 + $0x150] sm:$0xff] %v484_v63  ;;  %558 = vst [vmem:[#allocation2 + $0x160] sm:$0xff] %v486_v3  ;;  %v432_v20 = vld [vmem:[%s5499_s26 + $0xf8] ss:$8 sps:$4 sm:$0xff]   ;;  %v409_v30 = vld [vmem:[%s5499_s26 + $0x9c] sm:$0x1] }
  0x2d   : > { %4435 = vmatpush3.bf16.msra.mxu0 %v5139_v17  ;;  %560 = vst [vmem:[#allocation2 + $0x170] sm:$0xff] %v488_v4  ;;  %562 = vst [vmem:[#allocation2 + $0x180] sm:$0xff] %v490_v6  ;;  %v5155_v17 = vld [vmem:[%s6341_s1 + $0x88] sm:$0xff]   ;;  %v504_v22 = vunpack.c.l.bf16 %v432_v20  ;;  %v506_v23 = vunpack.c.h.bf16 %v432_v20  ;;  %v5162_v25 = vld [vmem:[%s5499_s26 + $0x30] ss:$8 sps:$4 sm:$0xff]   ;;  %v481_v33 = vunpack.c.l.bf16 %v409_v30 }
  0x2e   : > { %4444 = vmatprep.subr.bf16.mxu0 %v5141_v24  ;;  %564 = vst [vmem:[#allocation2 + $0x190] sm:$0xff] %v492_v7  ;;  %568 = vst [vmem:[#allocation2 + $0x1b0] sm:$0xff] %v496_v10  ;;  %v870_v19 = vld [vmem:[#allocation2 + $0x1] sm:$0xff]  ;;  %v5576_v21 = vld [vmem:[#allocation2 + $0x11] sm:$0xff] }
  0x2f   : > { %570 = vst [vmem:[#allocation2 + $0x1c0] sm:$0xff] %v498_v11  ;;  %572 = vst [vmem:[#allocation2 + $0x1d0] sm:$0xff] %v500_v14  ;;  %v5157_v32 = vld [vmem:[%s6341_s1 + $0x98] sm:$0xff]   ;;  %v413_v35 = vld [vmem:[%s5499_s26 + $0xac] sm:$0x1] }
  0x30   : > { %4437 = vmatmul.mubr.bf16.vlgmr.msra.gmra.mrb[0].mxu0 %v5142_v27  ;;  %574 = vst [vmem:[#allocation2 + $0x1e0] sm:$0xff] %v502_v15  ;;  %576 = vst [vmem:[#allocation2 + $0x1f0] sm:$0xff] %v504_v22  ;;  %v485_v37 = vunpack.c.l.bf16 %v413_v35  ;;  %v417_v40 = vld [vmem:[%s5499_s26 + $0xbc] sm:$0x1]  ;;  %v419_v43 = vld [vmem:[%s5499_s26 + $0xc4] sm:$0x1] }
  0x31   : > { %4445 = vmatpush3.bf16.msra.mxu0 %v5141_v24  ;;  %4440 = vmatprep.mubr.bf16.mxu0 %v5148_v28  ;;  %v436_v24 = vld [vmem:[%s5499_s26 + $0x108] ss:$8 sps:$4 sm:$0xff]   ;;  %578 = vst [vmem:[#allocation2 + $0x200] sm:$0xff] %v506_v23  ;;  %v407_v28 = vld [vmem:[%s5499_s26 + $0x94] sm:$0x1]  ;;  %v489_v42 = vunpack.c.l.bf16 %v417_v40  ;;  %v5163_v49 = vld [vmem:[%s6341_s1 + $0xb8] sm:$0xff]  }
  0x32   : > { %4446 = vmatprep.subr.bf16.mxu0 %v5143_v29  ;;  %v508_v26 = vunpack.c.l.bf16 %v436_v24  ;;  %v510_v27 = vunpack.c.h.bf16 %v436_v24  ;;  %v479_v31 = vunpack.c.l.bf16 %v407_v28  ;;  %553 = vst [vmem:[#allocation2 + $0x138] sm:$0x1] %v481_v33  ;;  %557 = vst [vmem:[#allocation2 + $0x158] sm:$0x1] %v485_v37  ;;  %v421_v44 = vld [vmem:[%s5499_s26 + $0xcc] sm:$0x1] }
  0x33   : > { %v5159_v46 = vld [vmem:[%s6341_s1 + $0xa8] sm:$0xff]   ;;  %561 = vst [vmem:[#allocation2 + $0x178] sm:$0x1] %v489_v42  ;;  %v5161_v48 = vld [vmem:[%s6341_s1 + $0xb0] sm:$0xff]   ;;  %v5164_v52 = vld [vmem:[%s6341_s1 + $0xc0] sm:$0xff]  }
  0x34   : > { %580 = vst [vmem:[#allocation2 + $0x210] sm:$0xff] %v508_v26  ;;  %582 = vst [vmem:[#allocation2 + $0x220] sm:$0xff] %v510_v27  ;;  %v5606_v51 = vld [vmem:[#allocation2 + $0x31] sm:$0xff]  ;;  %v5611_v53 = vld [vmem:[#allocation2 + $0x41] sm:$0xff] }
  0x35   : > { %4447 = vmatpush3.bf16.msra.mxu0 %v5143_v29  ;;  %v878_v29 = vpack.c.bf16 %v5576_v21, %v870_v19  ;;  %551 = vst [vmem:[#allocation2 + $0x128] sm:$0x1] %v479_v31  ;;  %v5613_v54 = vld [vmem:[#allocation2 + $0x51] sm:$0xff]  ;;  %v5165_v57 = vld [vmem:[%s6341_s1 + $0xc8] sm:$0xff]   ;;  %v5173_v6 = vld [vmem:[%s6341_s1 + $0x100] sm:$0xff]  }
  0x36   : > { %4448 = vmatprep.subr.bf16.mxu0 %v5144_v34  ;;  %v880_v56 = vpack.c.bf16 %v5613_v54, %v5611_v53  ;;  %v5166_v59 = vld [vmem:[%s6341_s1 + $0xd0] sm:$0xff]   ;;  %v5167_v61 = vld [vmem:[%s6341_s1 + $0xd8] sm:$0xff]   ;;  %v5648_v4 = vld [vmem:[%s5499_s26 + $0x40] ss:$72 sps:$4 sm:$0xff]  }
  0x37   : > { %v5627_v60 = vld [vmem:[#allocation2 + $0x71] sm:$0xff]  ;;  %v458_v5 = vunpack.c.l.bf16 %v5648_v4  ;;  %v5174_v7 = vld [vmem:[%s5499_s26 + $0xa0] ss:$8 sps:$4 sm:$0xff]   ;;  %v387_v20 = vld [vmem:[%s5499_s26 + $0x44] sm:$0x1] }
  0x38   : > { %4441 = vmatmul.mubr.bf16.gmra.mrb[4].mxu0 %v5150_v39  ;;  %v415_v39 = vld [vmem:[%s5499_s26 + $0xb4] sm:$0x1]  ;;  %v5172_v63 = vld [vmem:[%s5499_s26 + $0x90] ss:$8 sps:$4 sm:$0xff]   ;;  %v5175_v9 = vld [vmem:[%s6341_s1 + $0x108] sm:$0xff]   ;;  %v459_v23 = vunpack.c.l.bf16 %v387_v20 }
  0x39   : > { %4449 = vmatpush3.bf16.msra.mxu0 %v5144_v34  ;;  %4460 = vmatprep.mubr.bf16.mxu0 %v5152_v45  ;;  %v411_v34 = vld [vmem:[%s5499_s26 + $0xa4] sm:$0x1]  ;;  %v487_v41 = vunpack.c.l.bf16 %v415_v39  ;;  %v491_v45 = vunpack.c.l.bf16 %v419_v43  ;;  %v5170_v2 = vld [vmem:[%s6341_s1 + $0xf0] sm:$0xff]   ;;  %v5171_v3 = vld [vmem:[%s6341_s1 + $0xf8] sm:$0xff]   ;;  %530 = vst [vmem:[#allocation2 + $0x80] sm:$0xff] %v458_v5 }
  0x3a   : > { %4450 = vmatprep.subr.bf16.mxu0 %v5145_v47  ;;  %v483_v36 = vunpack.c.l.bf16 %v411_v34  ;;  %v5176_v10 = vld [vmem:[%s6341_s1 + $0x110] sm:$0xff]   ;;  %v5182_v11 = vld [vmem:[%s5499_s26 + $0xc0] ss:$8 sps:$4 sm:$0xff]   ;;  %v5177_v12 = vld [vmem:[%s6341_s1 + $0x118] sm:$0xff]   ;;  %531 = vst [vmem:[#allocation2 + $0x88] sm:$0x1] %v459_v23 }
  0x3b   : > { %559 = vst [vmem:[#allocation2 + $0x168] sm:$0x1] %v487_v41  ;;  %563 = vst [vmem:[#allocation2 + $0x188] sm:$0x1] %v491_v45  ;;  %v5178_v14 = vld [vmem:[%s6341_s1 + $0x120] sm:$0xff]   ;;  %v5179_v15 = vld [vmem:[%s6341_s1 + $0x128] sm:$0xff]  }
  0x3c   : > { %555 = vst [vmem:[#allocation2 + $0x148] sm:$0x1] %v483_v36  ;;  %v5185_v19 = vld [vmem:[%s6341_s1 + $0x140] sm:$0xff]   ;;  %v5186_v22 = vld [vmem:[%s5499_s26 + $0xe8] ss:$8 sps:$4 sm:$0xff]   ;;  %v5189_v31 = vld [vmem:[%s6341_s1 + $0x158] sm:$0xff]  }
  0x3d   : > { %4451 = vmatpush3.bf16.msra.mxu0 %v5145_v47  ;;  %v493_v47 = vunpack.c.l.bf16 %v421_v44  ;;  %v5192_v24 = vld [vmem:[%s5499_s26 + $0xf8] ss:$8 sps:$4 sm:$0xff]   ;;  %v5188_v26 = vld [vmem:[%s6341_s1 + $0x150] sm:$0xff]   ;;  %v5225_v33 = vld [vmem:[%s6343_s3 + $0x48] sm:$0xff]  }
  0x3e   : > { %4452 = vmatprep.subr.bf16.mxu0 %v5146_v50  ;;  %v1322_v27 = vld [vmem:[#allocation2 + $0x121] sm:$0xff]  ;;  %v1323_v28 = vld [vmem:[#allocation2 + $0x131] sm:$0xff] }
  0x3f   : > { %565 = vst [vmem:[#allocation2 + $0x198] sm:$0x1] %v493_v47  ;;  %v1330_v30 = vpack.c.bf16 %v1323_v28, %v1322_v27  ;;  %v5190_v34 = vld [vmem:[%s6341_s1 + $0x160] sm:$0xff]   ;;  %v5226_v35 = vld [vmem:[%s6343_s3 + $0x50] sm:$0xff]   ;;  %v5191_v36 = vld [vmem:[%s6341_s1 + $0x168] sm:$0xff]  }
  0x40   : > { %v5227_v37 = vld [vmem:[%s6343_s3 + $0x58] sm:$0xff]   ;;  %v5196_v42 = vld [vmem:[%s6341_s1 + $0x180] sm:$0xff]   ;;  %v5197_v47 = vld [vmem:[%s6341_s1 + $0x188] sm:$0xff]  }
  0x41   : > { %4453 = vmatpush3.bf16.msra.mxu0 %v5146_v50  ;;  %v5604_v50 = vld [vmem:[#allocation2 + $0x21] sm:$0xff]  ;;  %v5195_v39 = vld [vmem:[%s6341_s1 + $0x178] sm:$0xff]   ;;  %v5208_v5 = vld [vmem:[%s6341_s1 + $0x1d0] sm:$0xff]  }
  0x42   : > { %4454 = vmatprep.subr.bf16.mxu0 %v5147_v58  ;;  %v879_v55 = vpack.c.bf16 %v5606_v51, %v5604_v50  ;;  %v1325_v41 = vld [vmem:[#allocation2 + $0x151] sm:$0xff]  ;;  %v1326_v43 = vld [vmem:[#allocation2 + $0x161] sm:$0xff]  ;;  %v1782_v28 = vpack.c.bf16 %v5604_v50, %v5576_v21 }
  0x43   : > { %v1324_v40 = vld [vmem:[#allocation2 + $0x141] sm:$0xff]  ;;  %v1327_v44 = vld [vmem:[#allocation2 + $0x171] sm:$0xff] }
  0x44   : > { %v1331_v45 = vpack.c.bf16 %v1325_v41, %v1324_v40  ;;  %v5222_v21 = vld [vmem:[%s6341_s1 + $0x230] sm:$0xff]   ;;  %v5223_v50 = vld [vmem:[%s6341_s1 + $0x238] sm:$0xff]  }
  0x45   : > { %4455 = vmatpush3.bf16.msra.mxu0 %v5147_v58  ;;  %v5622_v58 = vld [vmem:[#allocation2 + $0x61] sm:$0xff] }
  0x46   : > { %4456 = vmatprep.subr.bf16.mxu0 %v5149_v0  ;;  %v881_v62 = vpack.c.bf16 %v5627_v60, %v5622_v58 }
  0x49   : > { %4457 = vmatpush3.bf16.msra.mxu0 %v5149_v0  ;;  %v5168_v0 = vld [vmem:[%s6341_s1 + $0xe0] sm:$0xff]  }
  0x4a   : > { %4458 = vmatprep.subr.bf16.mxu0 %v5151_v1 }
  0x4d   : > { %4459 = vmatpush3.bf16.msra.mxu0 %v5151_v1  ;;  %v5169_v1 = vld [vmem:[%s6341_s1 + $0xe8] sm:$0xff]  }
  0x4e   : > { %4468 = vmatprep.subr.bf16.mxu0 %v5153_v8 }
  0x50   : > { %4461 = vmatmul.mubr.bf16.vlgmr.msra.gmra.mrb[0].mxu0 %v5154_v13  ;;  %v5184_v13 = vld [vmem:[%s5499_s26 + $0xd8] ss:$8 sps:$4 sm:$0xff]  }
  0x51   : > { %4469 = vmatpush3.bf16.msra.mxu0 %v5153_v8  ;;  %4464 = vmatprep.mubr.bf16.mxu0 %v5160_v16  ;;  %v5180_v8 = vld [vmem:[%s5499_s26 + $0xb0] ss:$8 sps:$4 sm:$0xff]  }
  0x52   : > { %4470 = vmatprep.subr.bf16.mxu0 %v5155_v17  ;;  %v5181_v16 = vld [vmem:[%s6341_s1 + $0x130] sm:$0xff]  }
  0x55   : > { %4471 = vmatpush3.bf16.msra.mxu0 %v5155_v17  ;;  %v476_v17 = vunpack.c.h.bf16 %v5648_v4  ;;  %v5221_v4 = vld [vmem:[%s6341_s1 + $0x228] sm:$0xff]  }
  0x56   : > { %4472 = vmatprep.subr.bf16.mxu0 %v5156_v18 }
  0x58   : > { %4465 = vmatmul.mubr.bf16.gmra.mrb[4].mxu0 %v5162_v25  ;;  %v5187_v25 = vld [vmem:[%s6341_s1 + $0x148] sm:$0xff]  }
  0x59   : > { %4473 = vmatpush3.bf16.msra.mxu0 %v5156_v18  ;;  %4484 = vmatprep.mubr.bf16.mxu0 %v878_v29  ;;  %v5183_v18 = vld [vmem:[%s6341_s1 + $0x138] sm:$0xff]   ;;  %v5194_v29 = vld [vmem:[%s5499_s26 + $0x108] ss:$8 sps:$4 sm:$0xff]  }
  0x5a   : > { %4474 = vmatprep.subr.bf16.mxu0 %v5157_v32 }
  0x5d   : > { %4475 = vmatpush3.bf16.msra.mxu0 %v5157_v32  ;;  %v5224_v32 = vld [vmem:[%s6343_s3 + $0x40] sm:$0xff]  }
  0x5e   : > { %4476 = vmatprep.subr.bf16.mxu0 %v5158_v38  ;;  %4636 = vmatprep.subr.bf16.mxu1 %v5224_v32 }
  0x5f   : > { %4637 = vmatpush3.bf16.msra.mxu1 %v5224_v32  ;;  %v1781_v32 = vld [vmem:[#allocation2 + $0x81] sm:$0xff] }
  0x60   : > { %4638 = vmatprep.subr.bf16.mxu1 %v5225_v33 }
  0x61   : > { %4477 = vmatpush3.bf16.msra.mxu0 %v5158_v38  ;;  %v5193_v38 = vld [vmem:[%s6341_s1 + $0x170] sm:$0xff]  }
  0x62   : > { %4478 = vmatprep.subr.bf16.mxu0 %v5159_v46 }
  0x63   : > { %4639 = vmatpush3.bf16.msra.mxu1 %v5225_v33  ;;  %v1785_v33 = vpack.c.bf16 %v1781_v32, %v5627_v60  ;;  %v5232_v60 = vld [vmem:[%s6343_s3] sm:$0xff]  }
  0x64   : > { %4640 = vmatprep.subr.bf16.mxu1 %v5226_v35 }
  0x65   : > { %4479 = vmatpush3.bf16.msra.mxu0 %v5159_v46  ;;  %v1332_v46 = vpack.c.bf16 %v1327_v44, %v1326_v43 }
  0x66   : > { %4480 = vmatprep.subr.bf16.mxu0 %v5161_v48 }
  0x67   : > { %4641 = vmatpush3.bf16.msra.mxu1 %v5226_v35  ;;  %v3935_v35 = vld [vmem:[%s6342_s2] ss:$0 sm:$0xff] }
  0x68   : > { %4642 = vmatprep.subr.bf16.mxu1 %v5227_v37 }
  0x69   : > { %4481 = vmatpush3.bf16.msra.mxu0 %v5161_v48  ;;  %v1328_v48 = vld [vmem:[#allocation2 + $0x181] sm:$0xff] }
  0x6a   : > { %4482 = vmatprep.subr.bf16.mxu0 %v5163_v49 }
  0x6b   : > { %4643 = vmatpush3.bf16.msra.mxu1 %v5227_v37 }
  0x6d   : > { %4483 = vmatpush3.bf16.msra.mxu0 %v5163_v49  ;;  %v1329_v49 = vld [vmem:[#allocation2 + $0x191] sm:$0xff] }
  0x6e   : > { %4492 = vmatprep.subr.bf16.mxu0 %v5164_v52 }
  0x70   : > { %4485 = vmatmul.mubr.bf16.vlgmr.msra.gmra.mrb[0].mxu0 %v879_v55  ;;  %v1333_v55 = vpack.c.bf16 %v1329_v49, %v1328_v48 }
  0x71   : > { %4493 = vmatpush3.bf16.msra.mxu0 %v5164_v52  ;;  %4488 = vmatprep.mubr.bf16.mxu0 %v880_v56  ;;  %v5198_v52 = vld [vmem:[%s6341_s1 + $0x190] sm:$0xff]  }
  0x72   : > { %4494 = vmatprep.subr.bf16.mxu0 %v5165_v57  ;;  %v5204_v56 = vld [vmem:[%s5499_s26 + $0x8] ss:$8 sps:$4 sm:$0xff]  }
  0x75   : > { %4495 = vmatpush3.bf16.msra.mxu0 %v5165_v57  ;;  %v5199_v57 = vld [vmem:[%s6341_s1 + $0x198] sm:$0xff]  }
  0x76   : > { %4496 = vmatprep.subr.bf16.mxu0 %v5166_v59 }
  0x78   : > { %4489 = vmatmul.mubr.bf16.gmra.mrb[4].mxu0 %v881_v62  ;;  %v5202_v62 = vld [vmem:[%s6341_s1 + $0x1b0] sm:$0xff]  }
  0x79   : > { %4497 = vmatpush3.bf16.msra.mxu0 %v5166_v59  ;;  %4508 = vmatprep.mubr.bf16.mxu0 %v5172_v63  ;;  %v5200_v59 = vld [vmem:[%s6341_s1 + $0x1a0] sm:$0xff]   ;;  %v5203_v63 = vld [vmem:[%s6341_s1 + $0x1b8] sm:$0xff]  }
  0x7a   : > { %4498 = vmatprep.subr.bf16.mxu0 %v5167_v61 }
  0x7d   : > { %4499 = vmatpush3.bf16.msra.mxu0 %v5167_v61  ;;  %v5201_v61 = vld [vmem:[%s6341_s1 + $0x1a8] sm:$0xff]  }
  0x7e   : > { %4500 = vmatprep.subr.bf16.mxu0 %v5168_v0 }
  0x81   : > { %4501 = vmatpush3.bf16.msra.mxu0 %v5168_v0  ;;  %v5205_v0 = vld [vmem:[%s6341_s1 + $0x1c0] sm:$0xff]  }
  0x82   : > { %4502 = vmatprep.subr.bf16.mxu0 %v5169_v1 }
  0x85   : > { %4503 = vmatpush3.bf16.msra.mxu0 %v5169_v1  ;;  %v5206_v1 = vld [vmem:[%s5499_s26 + $0x18] ss:$8 sps:$4 sm:$0xff]  }
  0x86   : > { %4504 = vmatprep.subr.bf16.mxu0 %v5170_v2 }
  0x89   : > { %4505 = vmatpush3.bf16.msra.mxu0 %v5170_v2  ;;  %v5212_v2 = vld [vmem:[%s5499_s26 + $0x28] ss:$8 sps:$4 sm:$0xff]  }
  0x8a   : > { %4506 = vmatprep.subr.bf16.mxu0 %v5171_v3 }
  0x8d   : > { %4507 = vmatpush3.bf16.msra.mxu0 %v5171_v3  ;;  %v5207_v3 = vld [vmem:[%s6341_s1 + $0x1c8] sm:$0xff]  }
  0x8e   : > { %4516 = vmatprep.subr.bf16.mxu0 %v5173_v6 }
  0x90   : > { %4509 = vmatmul.mubr.bf16.vlgmr.msra.gmra.mrb[0].mxu0 %v5174_v7  ;;  %v1625_v7 = vld [vmem:[#allocation2 + $0xb0] sm:$0xff] }
  0x91   : > { %4517 = vmatpush3.bf16.msra.mxu0 %v5173_v6  ;;  %4512 = vmatprep.mubr.bf16.mxu0 %v5180_v8  ;;  %v1624_v6 = vld [vmem:[#allocation2 + $0xa0] sm:$0xff] }
  0x92   : > { %4518 = vmatprep.subr.bf16.mxu0 %v5175_v9  ;;  %v5214_v8 = vld [vmem:[%s5499_s26 + $0x38] ss:$8 sps:$4 sm:$0xff]   ;;  %s351_s26 = sand.u32 1, %s5360_s14  }
  0x93   : > { %s3732_s21 = sshll.u32 %s351_s26, 5  ;;  %s6292_s18 = scalar_lea.sflag [#allocation5], %s351_s26 }
  0x94   : > { %s6275_s25 = scalar_lea.vmem [#allocation4], %s3732_s21  ;;  %s5373_s21 = smov [#allocation4]  }
  0x95   : > { %4519 = vmatpush3.bf16.msra.mxu0 %v5175_v9  ;;  %v1632_v9 = vpack.c.bf16 %v1625_v7, %v1624_v6  ;;  %v5234_v6 = vld [vmem:[%s6343_s3 + $0x10] sm:$0xff]   ;;  %s3639_s27 = sshll.u32 %s6275_s25, 4  ;;  %s6282_s27 = int_to_ptr.vmem [resolvable:$true] %s3639_s27 }
  0x96   : > { %4520 = vmatprep.subr.bf16.mxu0 %v5176_v10  ;;  %s5306_s20 = scalar_lea.vmem %s6282_s27, 512 }
  0x97   : > { %p5307_p11 = scmp.ne.s32.totalorder %s6282_s27, %s5306_s20 }
  0x98   : > { %4513 = vmatmul.mubr.bf16.gmra.mrb[4].mxu0 %v5182_v11  ;;  %v5210_v11 = vld [vmem:[%s6341_s1 + $0x1e0] sm:$0xff]  }
  0x99   : > { %4521 = vmatpush3.bf16.msra.mxu0 %v5176_v10  ;;  %4532 = vmatprep.mubr.bf16.mxu0 %v5184_v13  ;;  %v5209_v10 = vld [vmem:[%s6341_s1 + $0x1d8] sm:$0xff]   ;;  %v5213_v13 = vld [vmem:[%s6341_s1 + $0x1f0] sm:$0xff]   ;;  %p5308_p12 = pnand %p5307_p11, %p5469_p5 }
  0x9a   : > { %4522 = vmatprep.subr.bf16.mxu0 %v5177_v12 }
  0x9b   : > { %p5309_p13 = pneg %p5308_p12 }
  0x9d   : > { %4523 = vmatpush3.bf16.msra.mxu0 %v5177_v12  ;;  %v5211_v12 = vld [vmem:[%s6341_s1 + $0x1e8] sm:$0xff]  }
  0x9e   : > { %4524 = vmatprep.subr.bf16.mxu0 %v5178_v14 }
  0xa1   : > { %4525 = vmatpush3.bf16.msra.mxu0 %v5178_v14  ;;  %v5215_v14 = vld [vmem:[%s6341_s1 + $0x1f8] sm:$0xff]  }
  0xa2   : > { %4526 = vmatprep.subr.bf16.mxu0 %v5179_v15 }
  0xa5   : > { %4527 = vmatpush3.bf16.msra.mxu0 %v5179_v15  ;;  %v1626_v15 = vld [vmem:[#allocation2 + $0xc0] sm:$0xff] }
  0xa6   : > { %4528 = vmatprep.subr.bf16.mxu0 %v5181_v16 }
  0xa9   : > { %4529 = vmatpush3.bf16.msra.mxu0 %v5181_v16  ;;  %v5216_v16 = vld [vmem:[%s6341_s1 + $0x200] sm:$0xff]  }
  0xaa   : > { %4530 = vmatprep.subr.bf16.mxu0 %v5183_v18 }
  0xad   : > { %4531 = vmatpush3.bf16.msra.mxu0 %v5183_v18  ;;  %v1628_v18 = vld [vmem:[#allocation2 + $0xe0] sm:$0xff] }
  0xae   : > { %4540 = vmatprep.subr.bf16.mxu0 %v5185_v19 }
  0xb0   : > { %4533 = vmatmul.mubr.bf16.vlgmr.msra.gmra.mrb[0].mxu0 %v5186_v22  ;;  %v5305_v22 = vld [vmem:[#allocation2 + $0xf0] sm:$0xff] }
  0xb1   : > { %4541 = vmatpush3.bf16.msra.mxu0 %v5185_v19  ;;  %4536 = vmatprep.mubr.bf16.mxu0 %v5192_v24  ;;  %v5304_v19 = vld [vmem:[#allocation2 + $0xd0] sm:$0xff]  ;;  %v1634_v23 = vpack.c.bf16 %v5305_v22, %v1628_v18  ;;  %v5217_v24 = vld [vmem:[%s6341_s1 + $0x208] sm:$0xff]  }
  0xb2   : > { %4542 = vmatprep.subr.bf16.mxu0 %v5187_v25  ;;  %v1633_v20 = vpack.c.bf16 %v5304_v19, %v1626_v15  ;;  %v5235_v19 = vld [vmem:[%s6343_s3 + $0x18] sm:$0xff]  }
  0xb5   : > { %4543 = vmatpush3.bf16.msra.mxu0 %v5187_v25  ;;  %v1630_v25 = vld [vmem:[#allocation2 + $0x100] sm:$0xff] }
  0xb6   : > { %4544 = vmatprep.subr.bf16.mxu0 %v5188_v26  ;;  %v1635_v27 = vpack.c.bf16 %v476_v17, %v1630_v25  ;;  %v1783_v17 = vpack.c.bf16 %v5611_v53, %v5606_v51  ;;  %v5229_v51 = vld [vmem:[%s6343_s3 + $0x68] sm:$0xff]   ;;  %v5230_v53 = vld [vmem:[%s6343_s3 + $0x70] sm:$0xff]   ;;  %v5236_v25 = vld [vmem:[%s6343_s3 + $0x20] sm:$0xff]  }
  0xb8   : > { %4537 = vmatmul.mubr.bf16.gmra.mrb[4].mxu0 %v5194_v29  ;;  %v5219_v29 = vld [vmem:[%s6341_s1 + $0x218] sm:$0xff]  }
  0xb9   : > { %4545 = vmatpush3.bf16.msra.mxu0 %v5188_v26  ;;  %4556 = vmatprep.mubr.bf16.mxu0 %v1330_v30  ;;  %v5218_v26 = vld [vmem:[%s6341_s1 + $0x210] sm:$0xff]   ;;  %v5220_v30 = vld [vmem:[%s6341_s1 + $0x220] sm:$0xff]  }
  0xba   : > { %4546 = vmatprep.subr.bf16.mxu0 %v5189_v31 }
  0xbd   : > { %4547 = vmatpush3.bf16.msra.mxu0 %v5189_v31  ;;  %v1784_v31 = vpack.c.bf16 %v5622_v58, %v5613_v54  ;;  %v5231_v54 = vld [vmem:[%s6343_s3 + $0x78] sm:$0xff]   ;;  %v5370_v58 = vmov 0.0  }
  0xbe   : > { %4548 = vmatprep.subr.bf16.mxu0 %v5190_v34  ;;  %1947 = vst [vmem:[#allocation3] sm:$0xff] %v5370_v58  ;;  %1948 = vst [vmem:[#allocation3 + $0x8] sm:$0xff] %v5370_v58 }
  0xbf   : > { %1949 = vst [vmem:[#allocation3 + $0x10] sm:$0x3] %v5370_v58  ;;  %1950 = vst [vmem:[#allocation3 + $0x18] sm:$0xff] %v5370_v58 }
  0xc0   : > { %1952 = vst [vmem:[#allocation3 + $0x28] sm:$0x3] %v5370_v58  ;;  %1953 = vst [vmem:[#allocation3 + $0x30] sm:$0xff] %v5370_v58 }
  0xc1   : > { %4549 = vmatpush3.bf16.msra.mxu0 %v5190_v34  ;;  %v5228_v34 = vld [vmem:[%s6343_s3 + $0x60] sm:$0xff]   ;;  %1955 = vst [vmem:[#allocation3 + $0x40] sm:$0x3] %v5370_v58  ;;  %1956 = vst [vmem:[#allocation3 + $0x48] sm:$0xff] %v5370_v58 }
  0xc2   : > { %4550 = vmatprep.subr.bf16.mxu0 %v5191_v36  ;;  %4644 = vmatprep.subr.bf16.mxu1 %v5228_v34  ;;  %1958 = vst [vmem:[#allocation3 + $0x58] sm:$0x3] %v5370_v58  ;;  %1959 = vst [vmem:[#allocation3 + $0x60] sm:$0xff] %v5370_v58 }
  0xc3   : > { %4645 = vmatpush3.bf16.msra.mxu1 %v5228_v34  ;;  %1961 = vst [vmem:[#allocation3 + $0x70] sm:$0x3] %v5370_v58  ;;  %1962 = vst [vmem:[#allocation3 + $0x78] sm:$0xff] %v5370_v58  ;;  %v5241_v34 = vld [vmem:[%s6343_s3 + $0x88] sm:$0xff]  }
  0xc4   : > { %4646 = vmatprep.subr.bf16.mxu1 %v5229_v51  ;;  %1964 = vst [vmem:[#allocation3 + $0x88] sm:$0x3] %v5370_v58  ;;  %1965 = vst [vmem:[#allocation3 + $0x90] sm:$0xff] %v5370_v58 }
  0xc5   : > { %4551 = vmatpush3.bf16.msra.mxu0 %v5191_v36  ;;  %1967 = vst [vmem:[#allocation3 + $0xa0] sm:$0x3] %v5370_v58  ;;  %1968 = vst [vmem:[#allocation3 + $0xa8] sm:$0xff] %v5370_v58 }
  0xc6   : > { %4552 = vmatprep.subr.bf16.mxu0 %v5193_v38  ;;  %1970 = vst [vmem:[#allocation3 + $0xb8] sm:$0x3] %v5370_v58  ;;  %1971 = vst [vmem:[#allocation3 + $0xc0] sm:$0xff] %v5370_v58 }
  0xc7   : > { %4647 = vmatpush3.bf16.msra.mxu1 %v5229_v51  ;;  %1973 = vst [vmem:[#allocation3 + $0xd0] sm:$0x3] %v5370_v58  ;;  %1974 = vst [vmem:[#allocation3 + $0xd8] sm:$0xff] %v5370_v58 }
  0xc8   : > { %4648 = vmatprep.subr.bf16.mxu1 %v5230_v53  ;;  %1975 = vst [vmem:[#allocation3 + $0xe0] sm:$0xff] %v5370_v58  ;;  %1976 = vst [vmem:[#allocation3 + $0xe8] sm:$0x3] %v5370_v58 }
  0xc9   : > { %4553 = vmatpush3.bf16.msra.mxu0 %v5193_v38 }
  0xca   : > { %4554 = vmatprep.subr.bf16.mxu0 %v5195_v39 }
  0xcb   : > { %4649 = vmatpush3.bf16.msra.mxu1 %v5230_v53  ;;  %v5242_v53 = vld [vmem:[%s6343_s3 + $0x90] sm:$0xff]  }
  0xcc   : > { %4650 = vmatprep.subr.bf16.mxu1 %v5231_v54 }
  0xcd   : > { %4555 = vmatpush3.bf16.msra.mxu0 %v5195_v39 }
  0xce   : > { %4564 = vmatprep.subr.bf16.mxu0 %v5196_v42 }
  0xcf   : > { %4651 = vmatpush3.bf16.msra.mxu1 %v5231_v54 }
  0xd0   : > { %4557 = vmatmul.mubr.bf16.vlgmr.msra.gmra.mrb[0].mxu0 %v1331_v45  ;;  %4660 = vmatprep.subr.bf16.mxu1 %v5232_v60 }
  0xd1   : > { %4565 = vmatpush3.bf16.msra.mxu0 %v5196_v42  ;;  %4560 = vmatprep.mubr.bf16.mxu0 %v1332_v46 }
  0xd2   : > { %4566 = vmatprep.subr.bf16.mxu0 %v5197_v47 }
  0xd5   : > { %4567 = vmatpush3.bf16.msra.mxu0 %v5197_v47 }
  0xd6   : > { %4568 = vmatprep.subr.bf16.mxu0 %v5198_v52 }
  0xd8   : > { %4561 = vmatmul.mubr.bf16.gmra.mrb[4].mxu0 %v1333_v55 }
  0xd9   : > { %4569 = vmatpush3.bf16.msra.mxu0 %v5198_v52  ;;  %4580 = vmatprep.mubr.bf16.mxu0 %v5204_v56  ;;  %v5233_v56 = vld [vmem:[%s6343_s3 + $0x8] sm:$0xff]  }
  0xda   : > { %4570 = vmatprep.subr.bf16.mxu0 %v5199_v57 }
  0xdd   : > { %4571 = vmatpush3.bf16.msra.mxu0 %v5199_v57 }
  0xde   : > { %4572 = vmatprep.subr.bf16.mxu0 %v5200_v59 }
  0xe1   : > { %4573 = vmatpush3.bf16.msra.mxu0 %v5200_v59 }
  0xe2   : > { %4574 = vmatprep.subr.bf16.mxu0 %v5201_v61 }
  0xe5   : > { %4575 = vmatpush3.bf16.msra.mxu0 %v5201_v61 }
  0xe6   : > { %4576 = vmatprep.subr.bf16.mxu0 %v5202_v62 }
  0xe9   : > { %4577 = vmatpush3.bf16.msra.mxu0 %v5202_v62 }
  0xea   : > { %4578 = vmatprep.subr.bf16.mxu0 %v5203_v63 }
  0xed   : > { %4579 = vmatpush3.bf16.msra.mxu0 %v5203_v63 }
  0xee   : > { %4588 = vmatprep.subr.bf16.mxu0 %v5205_v0 }
  0xf0   : > { %4581 = vmatmul.mubr.bf16.vlgmr.msra.gmra.mrb[0].mxu0 %v5206_v1 }
  0xf1   : > { %4589 = vmatpush3.bf16.msra.mxu0 %v5205_v0  ;;  %4584 = vmatprep.mubr.bf16.mxu0 %v5212_v2 }
  0xf2   : > { %4590 = vmatprep.subr.bf16.mxu0 %v5207_v3 }
  0xf5   : > { %4591 = vmatpush3.bf16.msra.mxu0 %v5207_v3 }
  0xf6   : > { %4592 = vmatprep.subr.bf16.mxu0 %v5208_v5 }
  0xf8   : > { %4585 = vmatmul.mubr.bf16.gmra.mrb[4].mxu0 %v5214_v8  ;;  %v1986_v8 = vld [vmem:[#allocation3 + $0x7] sm:$0xff] }
  0xf9   : > { %4593 = vmatpush3.bf16.msra.mxu0 %v5208_v5  ;;  %4604 = vmatprep.mubr.bf16.mxu0 %v1632_v9 }
  0xfa   : > { %4594 = vmatprep.subr.bf16.mxu0 %v5209_v10 }
  0xfd   : > { %4595 = vmatpush3.bf16.msra.mxu0 %v5209_v10 }
  0xfe   : > { %4596 = vmatprep.subr.bf16.mxu0 %v5210_v11 }
 0x101   : > { %4597 = vmatpush3.bf16.msra.mxu0 %v5210_v11 }
 0x102   : > { %4598 = vmatprep.subr.bf16.mxu0 %v5211_v12 }
 0x105   : > { %4599 = vmatpush3.bf16.msra.mxu0 %v5211_v12 }
 0x106   : > { %4600 = vmatprep.subr.bf16.mxu0 %v5213_v13 }
 0x109   : > { %4601 = vmatpush3.bf16.msra.mxu0 %v5213_v13 }
 0x10a   : > { %4602 = vmatprep.subr.bf16.mxu0 %v5215_v14 }
 0x10d   : > { %4603 = vmatpush3.bf16.msra.mxu0 %v5215_v14 }
 0x10e   : > { %4612 = vmatprep.subr.bf16.mxu0 %v5216_v16 }
 0x110   : > { %4605 = vmatmul.mubr.bf16.vlgmr.msra.gmra.mrb[0].mxu0 %v1633_v20 }
 0x111   : > { %4613 = vmatpush3.bf16.msra.mxu0 %v5216_v16  ;;  %4608 = vmatprep.mubr.bf16.mxu0 %v1634_v23 }
 0x112   : > { %4614 = vmatprep.subr.bf16.mxu0 %v5217_v24 }
 0x115   : > { %4615 = vmatpush3.bf16.msra.mxu0 %v5217_v24 }
 0x116   : > { %4616 = vmatprep.subr.bf16.mxu0 %v5218_v26 }
 0x118   : > { %4609 = vmatmul.mubr.bf16.gmra.mrb[4].mxu0 %v1635_v27 }
 0x119   : > { %4617 = vmatpush3.bf16.msra.mxu0 %v5218_v26  ;;  %4628 = vmatprep.mubr.bf16.mxu0 %v1782_v28  ;;  %v5237_v28 = vld [vmem:[%s6343_s3 + $0x28] sm:$0xff]  }
 0x11a   : > { %4618 = vmatprep.subr.bf16.mxu0 %v5219_v29 }
 0x11d   : > { %4619 = vmatpush3.bf16.msra.mxu0 %v5219_v29 }
 0x11e   : > { %4620 = vmatprep.subr.bf16.mxu0 %v5220_v30 }
 0x121   : > { %4621 = vmatpush3.bf16.msra.mxu0 %v5220_v30  ;;  %v5238_v30 = vld [vmem:[%s6343_s3 + $0x30] sm:$0xff]  }
 0x122   : > { %4622 = vmatprep.subr.bf16.mxu0 %v5221_v4 }
 0x125   : > { %4623 = vmatpush3.bf16.msra.mxu0 %v5221_v4  ;;  %v5239_v4 = vld [vmem:[%s6343_s3 + $0x38] sm:$0xff]  }
 0x126   : > { %4624 = vmatprep.subr.bf16.mxu0 %v5222_v21 }
 0x129   : > { %4625 = vmatpush3.bf16.msra.mxu0 %v5222_v21  ;;  %v5240_v21 = vld [vmem:[%s6343_s3 + $0x80] sm:$0xff]  }
 0x12a   : > { %4626 = vmatprep.subr.bf16.mxu0 %v5223_v50 }
 0x12d   : > { %4627 = vmatpush3.bf16.msra.mxu0 %v5223_v50 }
 0x130   : > { %4629 = vmatmul.mubr.bf16.vlgmr.msra.gmra.mrb[0].mxu0 %v1783_v17 }
 0x131   : > { %4632 = vmatprep.mubr.bf16.mxu0 %v1784_v31 }
 0x138   : > { %4633 = vmatmul.mubr.bf16.gmra.mrb[4].mxu0 %v1785_v33 }
 0x139   : > { %4908 = vmatprep.mubr.msk.f32.mxu0 %vm5372_vm0, %v5370_v58 }
 0x203   : > { %v4630_v36 = vpop.f32.mrb[0].mxu0 }
 0x204   : > { %v1933_v37 = vadd.f32 %v4630_v36, %v3935_v35  ;;  %v1885_v38 = vpop.f32.mrb[1].mxu0 }
 0x205   : > { %v1931_v39 = vadd.f32 %v3935_v35, %v1885_v38  ;;  %v4631_v40 = vpop.f32.mrb[2].mxu0 }
 0x206   : > { %v5845_v41 = vmax.f32 %v1933_v37, 0.0  ;;  %v1934_v42 = vadd.f32 %v4631_v40, %v3935_v35  ;;  %v1888_v43 = vpop.f32.mrb[3].mxu0  ;;  %v5243_v37 = vld [vmem:[%s6343_s3 + $0x98] sm:$0xff]   ;;  %v5245_v40 = vld [vmem:[%s6343_s3 + $0xa8] sm:$0xff]  }
 0x207   : > { %v5847_v44 = vmax.f32 %v1931_v39, 0.0  ;;  %v1932_v45 = vadd.f32 %v3935_v35, %v1888_v43  ;;  %v5244_v39 = vld [vmem:[%s6343_s3 + $0xa0] sm:$0xff]   ;;  %v5247_v43 = vld [vmem:[%s6343_s3 + $0xb8] sm:$0xff]  }
 0x208   : > { %1980 = vst [vmem:[#allocation3 + $0x50] sm:$0xff] %v5845_v41  ;;  %v5850_v46 = vmax.f32 %v1934_v42, 0.0  ;;  %v5246_v42 = vld [vmem:[%s6343_s3 + $0xb0] sm:$0xff]  }
 0x209   : > { %1978 = vst [vmem:[#allocation3 + $0x20] sm:$0xff] %v5847_v44  ;;  %v5853_v47 = vmax.f32 %v1932_v45, 0.0  ;;  %v2022_v48 = vpack.c.bf16 %v5847_v44, %v5370_v58  ;;  %v5248_v45 = vld [vmem:[%s6343_s3 + $0xc0] sm:$0xff]  }
 0x20a   : > { %1981 = vst [vmem:[#allocation3 + $0x68] sm:$0xff] %v5850_v46  ;;  %v2578_v49 = vpack.c.bf16 %v5850_v46, %v5845_v41 }
 0x20b   : > { %1979 = vst [vmem:[#allocation3 + $0x38] sm:$0xff] %v5853_v47  ;;  %v4634_v52 = vpop.f32.mrb[4].mxu0  ;;  %4652 = vmatprep.mubr.bf16.mxu1 %v2022_v48  ;;  %v5863_v55 = vpack.c.bf16 %v5845_v41, %v5853_v47  ;;  %v2577_v57 = vpack.c.bf16 %v5853_v47, %v5847_v44  ;;  %v5263_v44 = vld [vmem:[%s6343_s3 + $0x138] sm:$0xff]   ;;  %v5264_v47 = vld [vmem:[%s6343_s3 + $0x140] sm:$0xff]  }
 0x20c   : > { %v1937_v59 = vadd.f32 %v4634_v52, %v3935_v35  ;;  %v1901_v61 = vpop.f32.mrb[5].mxu0  ;;  %v5249_v52 = vld [vmem:[%s6343_s3 + $0xc8] sm:$0xff]   ;;  %v5268_v41 = vld [vmem:[%s6343_s3 + $0x160] sm:$0xff]  }
 0x20d   : > { %v1935_v62 = vadd.f32 %v3935_v35, %v1901_v61  ;;  %v4635_v63 = vpop.f32.mrb[6].mxu0  ;;  %4653 = vmatmul.mubr.bf16.vlgmr.msra.gmra.mrb[0].mxu1 %v5863_v55 }
 0x20e   : > { %v5871_v0 = vmax.f32 %v1937_v59, 0.0  ;;  %v1938_v1 = vadd.f32 %v4635_v63, %v3935_v35  ;;  %v1904_v2 = vpop.f32.mrb[7].mxu0  ;;  %4661 = vmatpush3.bf16.msra.mxu1 %v5232_v60  ;;  %v2269_v60 = vld [vmem:[#allocation3 + $0x9] sm:$0xff]  ;;  %v5251_v63 = vld [vmem:[%s6343_s3 + $0xd8] sm:$0xff]  }
 0x20f   : > { %v5873_v3 = vmax.f32 %v1935_v62, 0.0  ;;  %v1936_v5 = vadd.f32 %v3935_v35, %v1904_v2  ;;  %4662 = vmatprep.subr.bf16.mxu1 %v5233_v56  ;;  %v5890_v12 = vld [vmem:[#allocation3 + $0x51] sm:$0xff]  ;;  %v5252_v2 = vld [vmem:[%s6343_s3 + $0xe0] sm:$0xff]  }
 0x210   : > { %1984 = vst [vmem:[#allocation3 + $0xb0] sm:$0xff] %v5871_v0  ;;  %v5879_v7 = vmax.f32 %v1938_v1, 0.0  ;;  %v5888_v11 = vld [vmem:[#allocation3 + $0x1f] sm:$0xff]  ;;  %v5941_v31 = vld [vmem:[#allocation3 + $0x4f] sm:$0xff] }
 0x211   : > { %1982 = vst [vmem:[#allocation3 + $0x80] sm:$0xff] %v5873_v3  ;;  %v5882_v9 = vmax.f32 %v1936_v5, 0.0  ;;  %v5886_v10 = vpack.c.bf16 %v5873_v3, %v5850_v46  ;;  %v5892_v13 = vld [vmem:[#allocation3 + $0x69] sm:$0xff]  ;;  %v5910_v20 = vld [vmem:[#allocation3 + $0x21] sm:$0xff]  ;;  %v1994_v22 = vpack.c.bf16 %v5888_v11, %v1986_v8  ;;  %v5255_v8 = vld [vmem:[%s6343_s3 + $0xf8] sm:$0xff]  }
 0x212   : > { %1985 = vst [vmem:[#allocation3 + $0xc8] sm:$0xff] %v5879_v7  ;;  %4663 = vmatpush3.bf16.msra.mxu1 %v5233_v56  ;;  %v5895_v14 = vld [vmem:[#allocation3 + $0x39] sm:$0xff]  ;;  %v2580_v15 = vpack.c.bf16 %v5879_v7, %v5871_v0  ;;  %v2728_v16 = vpack.c.bf16 %v5892_v13, %v5890_v12  ;;  %v5946_v33 = vld [vmem:[#allocation3 + $0x67] sm:$0xff]  ;;  %v2277_v38 = vpack.c.bf16 %v5910_v20, %v2269_v60  ;;  %v5250_v59 = vld [vmem:[%s6343_s3 + $0xd0] sm:$0xff]  }
 0x213   : > { %1983 = vst [vmem:[#allocation3 + $0x98] sm:$0xff] %v5882_v9  ;;  %4656 = vmatprep.mubr.bf16.mxu1 %v5886_v10  ;;  %4664 = vmatprep.subr.bf16.mxu1 %v5234_v6  ;;  %v5905_v18 = vpack.c.bf16 %v5871_v0, %v5882_v9  ;;  %v2579_v23 = vpack.c.bf16 %v5882_v9, %v5873_v3  ;;  %v1988_v50 = vld [vmem:[#allocation3 + $0x37] sm:$0xff]  ;;  %v5253_v5 = vld [vmem:[%s6343_s3 + $0xe8] sm:$0xff]   ;;  %v5272_v3 = vld [vmem:[%s6343_s3 + $0x180] sm:$0xff]  }
 0x214   : > { %v2727_v24 = vpack.c.bf16 %v5895_v14, %v5910_v20  ;;  %v5944_v32 = vpack.c.bf16 %v5941_v31, %v1988_v50  ;;  %v5990_v48 = vpack.c.bf16 %v5890_v12, %v5895_v14  ;;  %v2427_v1 = vpack.c.bf16 %v1988_v50, %v5888_v11  ;;  %v5256_v11 = vld [vmem:[%s6343_s3 + $0x100] sm:$0xff]   ;;  %v5269_v46 = vld [vmem:[%s6343_s3 + $0x168] sm:$0xff]   ;;  %v5271_v0 = vld [vmem:[%s6343_s3 + $0x178] sm:$0xff]  }
 0x215   : > { %4657 = vmatmul.mubr.bf16.gmra.mrb[4].mxu1 %v5905_v18  ;;  %v5260_v50 = vld [vmem:[%s6343_s3 + $0x120] sm:$0xff]   ;;  %v5273_v9 = vld [vmem:[%s6343_s3 + $0x188] sm:$0xff]   ;;  %v5274_v14 = vld [vmem:[%s6343_s3 + $0x190] sm:$0xff]  }
 0x216   : > { %4665 = vmatpush3.bf16.msra.mxu1 %v5234_v6  ;;  %4676 = vmatprep.mubr.bf16.mxu1 %v1994_v22  ;;  %v5254_v6 = vld [vmem:[%s6343_s3 + $0xf0] sm:$0xff]   ;;  %v5257_v22 = vld [vmem:[%s6343_s3 + $0x108] sm:$0xff]   ;;  %v5275_v12 = vld [vmem:[%s6343_s3 + $0x198] sm:$0xff]  }
 0x217   : > { %4666 = vmatprep.subr.bf16.mxu1 %v5235_v19  ;;  %v5962_v35 = vld [vmem:[#allocation3 + $0xaf] sm:$0xff] }
 0x218   : > { %v5921_v26 = vld [vmem:[#allocation3 + $0x81] sm:$0xff]  ;;  %v6004_v61 = vld [vmem:[#allocation3 + $0xb1] sm:$0xff] }
 0x219   : > { %v5939_v17 = vld [vmem:[#allocation3 + $0x7f] sm:$0xff]  ;;  %v5997_v56 = vpack.c.bf16 %v5921_v26, %v5892_v13  ;;  %v5285_v60 = vld [vmem:[%s6343_s3 + $0x1e8] sm:$0xff]  }
 0x21a   : > { %4667 = vmatpush3.bf16.msra.mxu1 %v5235_v19  ;;  %v5923_v27 = vld [vmem:[#allocation3 + $0x99] sm:$0xff]  ;;  %v5953_v51 = vpack.c.bf16 %v5939_v17, %v5946_v33  ;;  %v2428_v19 = vpack.c.bf16 %v5946_v33, %v5941_v31  ;;  %v5262_v31 = vld [vmem:[%s6343_s3 + $0x130] sm:$0xff]  }
 0x21b   : > { %4668 = vmatprep.subr.bf16.mxu1 %v5236_v25  ;;  %v2729_v29 = vpack.c.bf16 %v5923_v27, %v5921_v26  ;;  %v5960_v54 = vld [vmem:[#allocation3 + $0x97] sm:$0xff]  ;;  %v6008_v62 = vpack.c.bf16 %v6004_v61, %v5923_v27  ;;  %v5276_v13 = vld [vmem:[%s6343_s3 + $0x1a0] sm:$0xff]   ;;  %v5281_v27 = vld [vmem:[%s6343_s3 + $0x1c8] sm:$0xff]  }
 0x21c   : > { %v5966_v36 = vpack.c.bf16 %v5962_v35, %v5960_v54  ;;  %v5266_v33 = vld [vmem:[%s6343_s3 + $0x150] sm:$0xff]   ;;  %v5280_v26 = vld [vmem:[%s6343_s3 + $0x1c0] sm:$0xff]  }
 0x21e   : > { %4669 = vmatpush3.bf16.msra.mxu1 %v5236_v25  ;;  %v2429_v25 = vpack.c.bf16 %v5960_v54, %v5939_v17  ;;  %v5261_v17 = vld [vmem:[%s6343_s3 + $0x128] sm:$0xff]   ;;  %v5283_v54 = vld [vmem:[%s6343_s3 + $0x1d8] sm:$0xff]  }
 0x21f   : > { %4670 = vmatprep.subr.bf16.mxu1 %v5237_v28 }
 0x222   : > { %4671 = vmatpush3.bf16.msra.mxu1 %v5237_v28  ;;  %v5258_v28 = vld [vmem:[%s6343_s3 + $0x110] sm:$0xff]  }
 0x223   : > { %4672 = vmatprep.subr.bf16.mxu1 %v5238_v30 }
 0x226   : > { %4673 = vmatpush3.bf16.msra.mxu1 %v5238_v30  ;;  %v6040_v30 = vld [vmem:[#allocation3 + $0xc7] sm:$0xff] }
 0x227   : > { %4674 = vmatprep.subr.bf16.mxu1 %v5239_v4 }
 0x22a   : > { %4675 = vmatpush3.bf16.msra.mxu1 %v5239_v4  ;;  %v2430_v4 = vpack.c.bf16 %v6040_v30, %v5962_v35  ;;  %v5286_v35 = vld [vmem:[%s6343_s3 + $0x1f0] sm:$0xff]  }
 0x22b   : > { %4684 = vmatprep.subr.bf16.mxu1 %v5240_v21 }
 0x22d   : > { %4677 = vmatmul.mubr.bf16.vlgmr.msra.gmra.mrb[0].mxu1 %v5944_v32 }
 0x22e   : > { %4680 = vmatprep.mubr.bf16.mxu1 %v5953_v51  ;;  %4685 = vmatpush3.bf16.msra.mxu1 %v5240_v21  ;;  %v5259_v21 = vld [vmem:[%s6343_s3 + $0x118] sm:$0xff]  }
 0x22f   : > { %4686 = vmatprep.subr.bf16.mxu1 %v5241_v34 }
 0x232   : > { %4687 = vmatpush3.bf16.msra.mxu1 %v5241_v34  ;;  %v5267_v34 = vld [vmem:[%s6343_s3 + $0x158] sm:$0xff]  }
 0x233   : > { %4688 = vmatprep.subr.bf16.mxu1 %v5242_v53 }
 0x235   : > { %4681 = vmatmul.mubr.bf16.gmra.mrb[4].mxu1 %v5966_v36 }
 0x236   : > { %4689 = vmatpush3.bf16.msra.mxu1 %v5242_v53  ;;  %4700 = vmatprep.mubr.bf16.mxu1 %v2277_v38  ;;  %v5290_v38 = vld [vmem:[%s6343_s3 + $0x210] sm:$0xff]  }
 0x237   : > { %4690 = vmatprep.subr.bf16.mxu1 %v5243_v37 }
 0x23a   : > { %4691 = vmatpush3.bf16.msra.mxu1 %v5243_v37  ;;  %v5289_v37 = vld [vmem:[%s6343_s3 + $0x208] sm:$0xff]  }
 0x23b   : > { %4692 = vmatprep.subr.bf16.mxu1 %v5244_v39 }
 0x23e   : > { %4693 = vmatpush3.bf16.msra.mxu1 %v5244_v39  ;;  %v3031_v39 = vpack.c.bf16 %v5370_v58, %v5879_v7  ;;  %v5293_v7 = vld [vmem:[%s6343_s3 + $0x228] sm:$0xff]  }
 0x23f   : > { %4694 = vmatprep.subr.bf16.mxu1 %v5245_v40 }
 0x242   : > { %4695 = vmatpush3.bf16.msra.mxu1 %v5245_v40  ;;  %v5291_v40 = vld [vmem:[%s6343_s3 + $0x218] sm:$0xff]  }
 0x243   : > { %4696 = vmatprep.subr.bf16.mxu1 %v5246_v42 }
 0x246   : > { %4697 = vmatpush3.bf16.msra.mxu1 %v5246_v42  ;;  %v5295_v42 = vld [vmem:[%s6343_s3 + $0x238] sm:$0xff]  }
 0x247   : > { %4698 = vmatprep.subr.bf16.mxu1 %v5247_v43 }
 0x24a   : > { %4699 = vmatpush3.bf16.msra.mxu1 %v5247_v43  ;;  %v5296_v43 = vld [vmem:[%s6345_s5] sm:$0xff]  }
 0x24b   : > { %4708 = vmatprep.subr.bf16.mxu1 %v5248_v45 }
 0x24d   : > { %4701 = vmatmul.mubr.bf16.vlgmr.msra.gmra.mrb[0].mxu1 %v5990_v48 }
 0x24e   : > { %4704 = vmatprep.mubr.bf16.mxu1 %v5997_v56  ;;  %4709 = vmatpush3.bf16.msra.mxu1 %v5248_v45  ;;  %v5297_v45 = vld [vmem:[%s6345_s5 + $0x8] sm:$0xff]  }
 0x24f   : > { %4710 = vmatprep.subr.bf16.mxu1 %v5249_v52 }
 0x252   : > { %4711 = vmatpush3.bf16.msra.mxu1 %v5249_v52  ;;  %v3335_v52 = vld [vmem:[#allocation2 + $0x1b0] sm:$0xff] }
 0x253   : > { %4712 = vmatprep.subr.bf16.mxu1 %v5250_v59 }
 0x255   : > { %4705 = vmatmul.mubr.bf16.gmra.mrb[4].mxu1 %v6008_v62 }
 0x256   : > { %4713 = vmatpush3.bf16.msra.mxu1 %v5250_v59  ;;  %4724 = vmatprep.mubr.bf16.mxu1 %v2427_v1  ;;  %v3336_v59 = vld [vmem:[#allocation2 + $0x1c0] sm:$0xff] }
 0x257   : > { %4714 = vmatprep.subr.bf16.mxu1 %v5251_v63 }
 0x25a   : > { %4715 = vmatpush3.bf16.msra.mxu1 %v5251_v63  ;;  %v3343_v63 = vpack.c.bf16 %v3336_v59, %v3335_v52 }
 0x25b   : > { %4716 = vmatprep.subr.bf16.mxu1 %v5252_v2 }
 0x25e   : > { %4717 = vmatpush3.bf16.msra.mxu1 %v5252_v2  ;;  %v5301_v2 = vld [vmem:[%s6345_s5 + $0x28] sm:$0xff]  }
 0x25f   : > { %4718 = vmatprep.subr.bf16.mxu1 %v5253_v5 }
 0x262   : > { %4719 = vmatpush3.bf16.msra.mxu1 %v5253_v5  ;;  %v5302_v5 = vld [vmem:[%s6345_s5 + $0x30] sm:$0xff]  }
 0x263   : > { %4720 = vmatprep.subr.bf16.mxu1 %v5254_v6 }
 0x266   : > { %4721 = vmatpush3.bf16.msra.mxu1 %v5254_v6  ;;  %v5303_v6 = vld [vmem:[%s6345_s5 + $0x38] sm:$0xff]  }
 0x267   : > { %4722 = vmatprep.subr.bf16.mxu1 %v5255_v8 }
 0x26a   : > { %4723 = vmatpush3.bf16.msra.mxu1 %v5255_v8  ;;  %v3337_v8 = vld [vmem:[#allocation2 + $0x1d0] sm:$0xff] }
 0x26b   : > { %4732 = vmatprep.subr.bf16.mxu1 %v5256_v11 }
 0x26d   : > { %4725 = vmatmul.mubr.bf16.vlgmr.msra.gmra.mrb[0].mxu1 %v2428_v19  ;;  %v3339_v19 = vld [vmem:[#allocation2 + $0x1f0] sm:$0xff] }
 0x26e   : > { %4728 = vmatprep.mubr.bf16.mxu1 %v2429_v25  ;;  %4733 = vmatpush3.bf16.msra.mxu1 %v5256_v11  ;;  %v3338_v11 = vld [vmem:[#allocation2 + $0x1e0] sm:$0xff] }
 0x26f   : > { %4734 = vmatprep.subr.bf16.mxu1 %v5257_v22  ;;  %v3344_v25 = vpack.c.bf16 %v3338_v11, %v3337_v8 }
 0x272   : > { %4735 = vmatpush3.bf16.msra.mxu1 %v5257_v22  ;;  %v3340_v22 = vld [vmem:[#allocation2 + $0x200] sm:$0xff] }
 0x273   : > { %4736 = vmatprep.subr.bf16.mxu1 %v5258_v28 }
 0x275   : > { %4729 = vmatmul.mubr.bf16.gmra.mrb[4].mxu1 %v2430_v4  ;;  %v3342_v4 = vld [vmem:[#allocation2 + $0x220] sm:$0xff] }
 0x276   : > { %4737 = vmatpush3.bf16.msra.mxu1 %v5258_v28  ;;  %4748 = vmatprep.mubr.bf16.mxu1 %v2577_v57  ;;  %v5265_v57 = vld [vmem:[%s6343_s3 + $0x148] sm:$0xff]   ;;  %v3345_v28 = vpack.c.bf16 %v3340_v22, %v3339_v19 }
 0x277   : > { %4738 = vmatprep.subr.bf16.mxu1 %v5259_v21 }
 0x27a   : > { %4739 = vmatpush3.bf16.msra.mxu1 %v5259_v21 }
 0x27b   : > { %4740 = vmatprep.subr.bf16.mxu1 %v5260_v50 }
 0x27e   : > { %4741 = vmatpush3.bf16.msra.mxu1 %v5260_v50  ;;  %v3529_v50 = vld [vmem:[%s6347_s7] sm:$0xff] }
 0x27f   : > { %4742 = vmatprep.subr.bf16.mxu1 %v5261_v17 }
 0x282   : > { %4743 = vmatpush3.bf16.msra.mxu1 %v5261_v17  ;;  %v3530_v17 = vld [vmem:[%s6347_s7 + $0x8] sm:$0xff] }
 0x283   : > { %4744 = vmatprep.subr.bf16.mxu1 %v5262_v31 }
 0x286   : > { %4745 = vmatpush3.bf16.msra.mxu1 %v5262_v31  ;;  %v4912_v31 = vpack.c.bf16 %v3530_v17, %v3529_v50 }
 0x287   : > { %4746 = vmatprep.subr.bf16.mxu1 %v5263_v44 }
 0x28a   : > { %4747 = vmatpush3.bf16.msra.mxu1 %v5263_v44  ;;  %v5371_v44 = vmov 0.0|0.0  }
 0x28b   : > { %4756 = vmatprep.subr.bf16.mxu1 %v5264_v47  ;;  %4911 = vmatprep.subr.bf16.mxu0 %v5371_v44 }
 0x28c   : > { %4913 = vmatpush3.bf16.msra.mxu0 %v4912_v31 }
 0x28d   : > { %4749 = vmatmul.mubr.bf16.vlgmr.msra.gmra.mrb[0].mxu1 %v2578_v49  ;;  %v5270_v49 = vld [vmem:[%s6343_s3 + $0x170] sm:$0xff]   ;;  %4914 = vmatprep.subr.bf16.mxu0 %v5371_v44 }
 0x28e   : > { %4752 = vmatprep.mubr.bf16.mxu1 %v2579_v23  ;;  %4757 = vmatpush3.bf16.msra.mxu1 %v5264_v47  ;;  %v5278_v23 = vld [vmem:[%s6343_s3 + $0x1b0] sm:$0xff]  }
 0x28f   : > { %4758 = vmatprep.subr.bf16.mxu1 %v5265_v57  ;;  %v3531_v47 = vld [vmem:[%s6347_s7 + $0x10] sm:$0xff] }
 0x292   : > { %4759 = vmatpush3.bf16.msra.mxu1 %v5265_v57  ;;  %v3532_v57 = vld [vmem:[%s6347_s7 + $0x18] sm:$0xff] }
 0x293   : > { %4760 = vmatprep.subr.bf16.mxu1 %v5266_v33 }
 0x295   : > { %4753 = vmatmul.mubr.bf16.gmra.mrb[4].mxu1 %v2580_v15  ;;  %v6113_v15 = vld [vmem:[#allocation3 + $0xc9] sm:$0xff] }
 0x296   : > { %4761 = vmatpush3.bf16.msra.mxu1 %v5266_v33  ;;  %4772 = vmatprep.mubr.bf16.mxu1 %v2727_v24  ;;  %v2730_v20 = vpack.c.bf16 %v6113_v15, %v6004_v61  ;;  %v5279_v24 = vld [vmem:[%s6343_s3 + $0x1b8] sm:$0xff]   ;;  %v3177_v61 = vld [vmem:[#allocation3 + $0xe1] sm:$0xff]  ;;  %v4915_v33 = vpack.c.bf16 %v3532_v57, %v3531_v47 }
 0x297   : > { %4762 = vmatprep.subr.bf16.mxu1 %v5267_v34  ;;  %v3181_v1 = vpack.c.bf16 %v3177_v61, %v6113_v15 }
 0x298   : > { %4916 = vmatpush3.bf16.msra.mxu0 %v4915_v33 }
 0x299   : > { %4917 = vmatprep.subr.bf16.mxu0 %v5371_v44 }
 0x29a   : > { %4763 = vmatpush3.bf16.msra.mxu1 %v5267_v34  ;;  %v3533_v34 = vld [vmem:[%s6347_s7 + $0x20] sm:$0xff] }
 0x29b   : > { %4764 = vmatprep.subr.bf16.mxu1 %v5268_v41 }
 0x29e   : > { %4765 = vmatpush3.bf16.msra.mxu1 %v5268_v41  ;;  %v3534_v41 = vld [vmem:[%s6347_s7 + $0x28] sm:$0xff] }
 0x29f   : > { %4766 = vmatprep.subr.bf16.mxu1 %v5269_v46 }
 0x2a2   : > { %4767 = vmatpush3.bf16.msra.mxu1 %v5269_v46  ;;  %v4918_v46 = vpack.c.bf16 %v3534_v41, %v3533_v34 }
 0x2a3   : > { %4768 = vmatprep.subr.bf16.mxu1 %v5270_v49 }
 0x2a4   : > { %4919 = vmatpush3.bf16.msra.mxu0 %v4918_v46 }
 0x2a5   : > { %4920 = vmatprep.subr.bf16.mxu0 %v5371_v44 }
 0x2a6   : > { %4769 = vmatpush3.bf16.msra.mxu1 %v5270_v49  ;;  %v3535_v49 = vld [vmem:[%s6347_s7 + $0x30] sm:$0xff] }
 0x2a7   : > { %4770 = vmatprep.subr.bf16.mxu1 %v5271_v0 }
 0x2aa   : > { %4771 = vmatpush3.bf16.msra.mxu1 %v5271_v0  ;;  %v3536_v0 = vld [vmem:[%s6347_s7 + $0x38] sm:$0xff] }
 0x2ab   : > { %4780 = vmatprep.subr.bf16.mxu1 %v5272_v3 }
 0x2ad   : > { %4773 = vmatmul.mubr.bf16.vlgmr.msra.gmra.mrb[0].mxu1 %v2728_v16  ;;  %v5277_v16 = vld [vmem:[%s6343_s3 + $0x1a8] sm:$0xff]  }
 0x2ae   : > { %4776 = vmatprep.mubr.bf16.mxu1 %v2729_v29  ;;  %4781 = vmatpush3.bf16.msra.mxu1 %v5272_v3  ;;  %v5282_v29 = vld [vmem:[%s6343_s3 + $0x1d0] sm:$0xff]   ;;  %v4921_v3 = vpack.c.bf16 %v3536_v0, %v3535_v49 }
 0x2af   : > { %4782 = vmatprep.subr.bf16.mxu1 %v5273_v9 }
 0x2b0   : > { %4922 = vmatpush3.bf16.msra.mxu0 %v4921_v3 }
 0x2b1   : > { %4923 = vmatprep.subr.bf16.mxu0 %v5371_v44 }
 0x2b2   : > { %4783 = vmatpush3.bf16.msra.mxu1 %v5273_v9  ;;  %v3537_v9 = vld [vmem:[%s6347_s7 + $0x40] sm:$0xff] }
 0x2b3   : > { %4784 = vmatprep.subr.bf16.mxu1 %v5274_v14 }
 0x2b5   : > { %4777 = vmatmul.mubr.bf16.gmra.mrb[4].mxu1 %v2730_v20  ;;  %v3539_v20 = vld [vmem:[%s6347_s7 + $0x50] sm:$0xff] }
 0x2b6   : > { %4785 = vmatpush3.bf16.msra.mxu1 %v5274_v14  ;;  %4796 = vmatprep.mubr.bf16.mxu1 %v5944_v32  ;;  %v2877_v32 = vld [vmem:[#allocation3 + $0xdf] sm:$0xff]  ;;  %v3538_v14 = vld [vmem:[%s6347_s7 + $0x48] sm:$0xff] }
 0x2b7   : > { %4786 = vmatprep.subr.bf16.mxu1 %v5275_v12  ;;  %v2881_v53 = vpack.c.bf16 %v2877_v32, %v6040_v30  ;;  %v3341_v30 = vld [vmem:[#allocation2 + $0x210] sm:$0xff]  ;;  %v4924_v15 = vpack.c.bf16 %v3538_v14, %v3537_v9  ;;  %v4136_v32 = vld [vmem:[%s6344_s4] ss:$0 sm:$0xff] }
 0x2b8   : > { %v3346_v21 = vpack.c.bf16 %v3342_v4, %v3341_v30 }
 0x2b9   : > { %4925 = vmatpush3.bf16.msra.mxu0 %v4924_v15 }
 0x2ba   : > { %4787 = vmatpush3.bf16.msra.mxu1 %v5275_v12  ;;  %4926 = vmatprep.subr.bf16.mxu0 %v5371_v44  ;;  %v3540_v12 = vld [vmem:[%s6347_s7 + $0x58] sm:$0xff] }
 0x2bb   : > { %4788 = vmatprep.subr.bf16.mxu1 %v5276_v13 }
 0x2be   : > { %4789 = vmatpush3.bf16.msra.mxu1 %v5276_v13  ;;  %v4927_v13 = vpack.c.bf16 %v3540_v12, %v3539_v20 }
 0x2bf   : > { %4790 = vmatprep.subr.bf16.mxu1 %v5277_v16 }
 0x2c0   : > { %4928 = vmatpush3.bf16.msra.mxu0 %v4927_v13 }
 0x2c1   : > { %4929 = vmatprep.subr.bf16.mxu0 %v5371_v44 }
 0x2c2   : > { %4791 = vmatpush3.bf16.msra.mxu1 %v5277_v16  ;;  %v3541_v16 = vld [vmem:[%s6347_s7 + $0x60] sm:$0xff] }
 0x2c3   : > { %4792 = vmatprep.subr.bf16.mxu1 %v5278_v23 }
 0x2c6   : > { %4793 = vmatpush3.bf16.msra.mxu1 %v5278_v23  ;;  %v3542_v23 = vld [vmem:[%s6347_s7 + $0x68] sm:$0xff] }
 0x2c7   : > { %4794 = vmatprep.subr.bf16.mxu1 %v5279_v24 }
 0x2ca   : > { %4795 = vmatpush3.bf16.msra.mxu1 %v5279_v24  ;;  %v4930_v24 = vpack.c.bf16 %v3542_v23, %v3541_v16 }
 0x2cb   : > { %4804 = vmatprep.subr.bf16.mxu1 %v5280_v26 }
 0x2cc   : > { %4931 = vmatpush3.bf16.msra.mxu0 %v4930_v24 }
 0x2cd   : > { %4797 = vmatmul.mubr.bf16.vlgmr.msra.gmra.mrb[0].mxu1 %v5953_v51  ;;  %v5284_v51 = vld [vmem:[%s6343_s3 + $0x1e0] sm:$0xff]   ;;  %4932 = vmatprep.subr.bf16.mxu0 %v5371_v44 }
 0x2ce   : > { %4800 = vmatprep.mubr.bf16.mxu1 %v5966_v36  ;;  %4805 = vmatpush3.bf16.msra.mxu1 %v5280_v26  ;;  %v5288_v36 = vld [vmem:[%s6343_s3 + $0x200] sm:$0xff]   ;;  %v3543_v26 = vld [vmem:[%s6347_s7 + $0x70] sm:$0xff] }
 0x2cf   : > { %4806 = vmatprep.subr.bf16.mxu1 %v5281_v27 }
 0x2d2   : > { %4807 = vmatpush3.bf16.msra.mxu1 %v5281_v27  ;;  %v3544_v27 = vld [vmem:[%s6347_s7 + $0x78] sm:$0xff] }
 0x2d3   : > { %4808 = vmatprep.subr.bf16.mxu1 %v5282_v29 }
 0x2d5   : > { %4801 = vmatmul.mubr.bf16.gmra.mrb[4].mxu1 %v2881_v53  ;;  %v4137_v53 = vld [vmem:[%s6346_s6] ss:$0 sm:$0xff] }
 0x2d6   : > { %4809 = vmatpush3.bf16.msra.mxu1 %v5282_v29  ;;  %4820 = vmatprep.mubr.bf16.mxu1 %v5863_v55  ;;  %v5287_v55 = vld [vmem:[%s6343_s3 + $0x1f8] sm:$0xff]   ;;  %v4933_v29 = vpack.c.bf16 %v3544_v27, %v3543_v26 }
 0x2d7   : > { %4810 = vmatprep.subr.bf16.mxu1 %v5283_v54 }
 0x2d8   : > { %4934 = vmatpush3.bf16.msra.mxu0 %v4933_v29 }
 0x2da   : > { %4811 = vmatpush3.bf16.msra.mxu1 %v5283_v54  ;;  %v4941_v54 = vadd.f32 %v4137_v53, %v4136_v32 }
 0x2db   : > { %4812 = vmatprep.subr.bf16.mxu1 %v5284_v51 }
 0x2de   : > { %4813 = vmatpush3.bf16.msra.mxu1 %v5284_v51 }
 0x2df   : > { %4814 = vmatprep.subr.bf16.mxu1 %v5285_v60 }
 0x2e2   : > { %4815 = vmatpush3.bf16.msra.mxu1 %v5285_v60 }
 0x2e3   : > { %4816 = vmatprep.subr.bf16.mxu1 %v5286_v35 }
 0x2e6   : > { %4817 = vmatpush3.bf16.msra.mxu1 %v5286_v35 }
 0x2e7   : > { %4818 = vmatprep.subr.bf16.mxu1 %v5287_v55 }
 0x2ea   : > { %4819 = vmatpush3.bf16.msra.mxu1 %v5287_v55 }
 0x2eb   : > { %4828 = vmatprep.subr.bf16.mxu1 %v5288_v36 }
 0x2ed   : > { %4821 = vmatmul.mubr.bf16.vlgmr.msra.gmra.mrb[0].mxu1 %v5886_v10  ;;  %v5292_v10 = vld [vmem:[%s6343_s3 + $0x220] sm:$0xff]  }
 0x2ee   : > { %4824 = vmatprep.mubr.bf16.mxu1 %v5905_v18  ;;  %4829 = vmatpush3.bf16.msra.mxu1 %v5288_v36  ;;  %v5294_v18 = vld [vmem:[%s6343_s3 + $0x230] sm:$0xff]  }
 0x2ef   : > { %4830 = vmatprep.subr.bf16.mxu1 %v5289_v37 }
 0x2f2   : > { %4831 = vmatpush3.bf16.msra.mxu1 %v5289_v37 }
 0x2f3   : > { %4832 = vmatprep.subr.bf16.mxu1 %v5290_v38 }
 0x2f5   : > { %4825 = vmatmul.mubr.bf16.gmra.mrb[4].mxu1 %v3031_v39 }
 0x2f6   : > { %4833 = vmatpush3.bf16.msra.mxu1 %v5290_v38  ;;  %4844 = vmatprep.mubr.bf16.mxu1 %v5990_v48  ;;  %v5298_v48 = vld [vmem:[%s6345_s5 + $0x10] sm:$0xff]  }
 0x2f7   : > { %4834 = vmatprep.subr.bf16.mxu1 %v5291_v40 }
 0x2fa   : > { %4835 = vmatpush3.bf16.msra.mxu1 %v5291_v40 }
 0x2fb   : > { %4836 = vmatprep.subr.bf16.mxu1 %v5292_v10 }
 0x2fe   : > { %4837 = vmatpush3.bf16.msra.mxu1 %v5292_v10 }
 0x2ff   : > { %4838 = vmatprep.subr.bf16.mxu1 %v5293_v7 }
 0x302   : > { %4839 = vmatpush3.bf16.msra.mxu1 %v5293_v7 }
 0x303   : > { %4840 = vmatprep.subr.bf16.mxu1 %v5294_v18 }
 0x306   : > { %4841 = vmatpush3.bf16.msra.mxu1 %v5294_v18 }
 0x307   : > { %4842 = vmatprep.subr.bf16.mxu1 %v5295_v42 }
 0x30a   : > { %4843 = vmatpush3.bf16.msra.mxu1 %v5295_v42 }
 0x30b   : > { %4852 = vmatprep.subr.bf16.mxu1 %v5296_v43 }
 0x30d   : > { %4845 = vmatmul.mubr.bf16.vlgmr.msra.gmra.mrb[0].mxu1 %v5997_v56  ;;  %v5299_v56 = vld [vmem:[%s6345_s5 + $0x18] sm:$0xff]  }
 0x30e   : > { %4848 = vmatprep.mubr.bf16.mxu1 %v6008_v62  ;;  %4853 = vmatpush3.bf16.msra.mxu1 %v5296_v43  ;;  %v5300_v62 = vld [vmem:[%s6345_s5 + $0x20] sm:$0xff]  }
 0x30f   : > { %4854 = vmatprep.subr.bf16.mxu1 %v5297_v45 }
 0x312   : > { %4855 = vmatpush3.bf16.msra.mxu1 %v5297_v45 }
 0x313   : > { %4856 = vmatprep.subr.bf16.mxu1 %v5298_v48 }
 0x315   : > { %4849 = vmatmul.mubr.bf16.gmra.mrb[4].mxu1 %v3181_v1 }
 0x316   : > { %4857 = vmatpush3.bf16.msra.mxu1 %v5298_v48  ;;  %4868 = vmatprep.mubr.bf16.mxu1 %v3343_v63 }
 0x317   : > { %4858 = vmatprep.subr.bf16.mxu1 %v5299_v56 }
 0x31a   : > { %4859 = vmatpush3.bf16.msra.mxu1 %v5299_v56 }
 0x31b   : > { %4860 = vmatprep.subr.bf16.mxu1 %v5300_v62 }
 0x31e   : > { %4861 = vmatpush3.bf16.msra.mxu1 %v5300_v62 }
 0x31f   : > { %4862 = vmatprep.subr.bf16.mxu1 %v5301_v2 }
 0x322   : > { %4863 = vmatpush3.bf16.msra.mxu1 %v5301_v2 }
 0x323   : > { %4864 = vmatprep.subr.bf16.mxu1 %v5302_v5 }
 0x326   : > { %4865 = vmatpush3.bf16.msra.mxu1 %v5302_v5 }
 0x327   : > { %4866 = vmatprep.subr.bf16.mxu1 %v5303_v6 }
 0x32a   : > { %4867 = vmatpush3.bf16.msra.mxu1 %v5303_v6 }
 0x32d   : > { %4869 = vmatmul.mubr.bf16.vlgmr.msra.gmra.mrb[0].mxu1 %v3344_v25 }
 0x32e   : > { %4872 = vmatprep.mubr.bf16.mxu1 %v3345_v28 }
 0x335   : > { %4873 = vmatmul.mubr.bf16.gmra.mrb[4].mxu1 %v3346_v21 }
 0x400   : > { %v4870_v51 = vpop.f32.mrb[0].mxu1 }
 0x401   : > { %v4935_v60 = vadd.f32 %v4870_v51, %v4136_v32  ;;  %v3452_v35 = vpop.f32.mrb[1].mxu1 }
 0x402   : > { %v4937_v55 = vadd.f32 %v4136_v32, %v3452_v35  ;;  %v4871_v36 = vpop.f32.mrb[2].mxu1 }
 0x403   : > { %v4936_v37 = vadd.f32 %v4935_v60, %v4137_v53  ;;  %v4940_v58 = vadd.f32 %v4941_v54, %v4871_v36  ;;  %v3455_v38 = vpop.f32.mrb[3].mxu1 }
 0x404   : > { %v4938_v39 = vadd.f32 %v4937_v55, %v4137_v53  ;;  %v4942_v40 = vadd.f32 %v4941_v54, %v3455_v38 }
 0x405   : > { %v3493_v10 = vmax.f32 %v4936_v37, 0.0  ;;  %v3494_v7 = vmax.f32 %v4940_v58, 0.0 }
 0x406   : > { %v3491_v18 = vmax.f32 %v4938_v39, 0.0  ;;  %v3492_v42 = vmax.f32 %v4942_v40, 0.0 }
 0x407   : > { %v4160_v43 = vpack.c.bf16 %v3494_v7, %v3493_v10 }
 0x408   : > { %v4155_v45 = vpack.c.bf16 %v3492_v42, %v3491_v18  ;;  %v3515_v48 = vadd.f32 %v3492_v42, %v3491_v18  ;;  %v4874_v52 = vpop.f32.mrb[4].mxu1 }
 0x409   : > { %4172 = vst [vmem:[%s6275_s25 + $0x8] sm:$0xff] %v4160_v43   ;;  %v4944_v59 = vadd.f32 %v4941_v54, %v4874_v52  ;;  %v3468_v61 = vpop.f32.mrb[5].mxu1 }
 0x40a   : > { %4156 = vst [vmem:[%s6275_s25] sm:$0xff] %v4155_v45   ;;  %v3516_v63 = vadd.f32 %v3515_v48, %v3493_v10  ;;  %v4946_v1 = vadd.f32 %v4941_v54, %v3468_v61  ;;  %v4875_v56 = vpop.f32.mrb[6].mxu1 }
 0x40b   : > { %v4948_v62 = vadd.f32 %v4941_v54, %v4875_v56  ;;  %v3471_v2 = vpop.f32.mrb[7].mxu1  ;;  %v3497_v11 = vmax.f32 %v4944_v59, 0.0 }
 0x40c   : > { %v3495_v5 = vmax.f32 %v4946_v1, 0.0  ;;  %v3517_v6 = vadd.f32 %v3516_v63, %v3494_v7  ;;  %v4950_v8 = vadd.f32 %v4941_v54, %v3471_v2 }
 0x40d   : > { %v3498_v19 = vmax.f32 %v4948_v62, 0.0 }
 0x40e   : > { %v3518_v22 = vadd.f32 %v3517_v6, %v3495_v5  ;;  %v3496_v25 = vmax.f32 %v4950_v8, 0.0 }
 0x40f   : > { %v4170_v28 = vpack.c.bf16 %v3498_v19, %v3497_v11 }
 0x410   : > { %v4165_v30 = vpack.c.bf16 %v3496_v25, %v3495_v5  ;;  %v3519_v4 = vadd.f32 %v3518_v22, %v3496_v25 }
 0x411   : > { %4174 = vst [vmem:[%s6275_s25 + $0x18] sm:$0xff] %v4170_v28  }
 0x412   : > { %4173 = vst [vmem:[%s6275_s25 + $0x10] sm:$0xff] %v4165_v30   ;;  %v3520_v21 = vadd.f32 %v3519_v4, %v3497_v11  ;;  %s5310_s25 = sshll.u32 %s5373_s21, 4  ;;  %s5311_s25 = int_to_ptr.vmem [resolvable:$false] %s5310_s25 }
 0x413   : > { %s5312_s0 = scalar_lea.vmem %s5311_s25, 1024  ;;  %p5313_p0 = scmp.lt.s32.totalorder %s6282_s27, %s5311_s25 }
 0x414   : > { %v3521_v50 = vadd.f32 %v3520_v21, %v3498_v19  ;;  %p5314_p1 = scmp.lt.s32.totalorder %s5312_s0, %s5306_s20 }
 0x416   : > { %v3522_v17 = vrot.slane %v3521_v50, 4  ;;  %p5315_p2 = por %p5314_p1, %p5313_p0 }
 0x418   : > { %v3523_v31 = vadd.f32 %v3522_v17, %v3521_v50  ;;  %p5316_p3 = pnand %p5315_p2, %p5309_p13 }
 0x41a   : > { %v3524_v44 = vrot.slane %v3523_v31, 2 }
 0x41c   : > { %v3525_v47 = vadd.f32 %v3524_v44, %v3523_v31 }
 0x41e   : > { %v3526_v57 = vrot.slane %v3525_v47, 1 }
 0x420   : > { %v3527_v33 = vadd.f32 %v3526_v57, %v3525_v47 }
 0x422   : > { %v3528_v34 = vmul.f32 0.015625, %v3527_v33 }
 0x424   : > { %4909 = vmatmul.mubr.f32.vlgmr.msra.gmra.mrb[8].mxu0 %v3528_v34 }
 0x425   : > { %5319 = shalt.err (!%p5316_p3)
}
 0x426   : > { %s5320_s17 = scalar_lea.hbm %s6288_s12, 512  ;;  %s5324_s30 = scalar_lea.hbm %s6349_s9, 1024 }
 0x427   : > { %p5321_p4 = scmp.ne.s32.totalorder %s6288_s12, %s5320_s17  ;;  %p5325_p9 = scmp.lt.u32.totalorder %s6288_s12, %s6349_s9 }
 0x428   : > { %p5326_p10 = scmp.lt.u32.totalorder %s5324_s30, %s5320_s17  ;;  %p5328_p12 = scmp.lt.u32.totalorder %s5320_s17, %s6288_s12 }
 0x429   : > { %p5322_p7 = pnand %p5321_p4, %p5469_p5 }
 0x42a   : > { %p5327_p11 = por %p5326_p10, %p5325_p9 }
 0x42b   : > { %p5323_p8 = pneg %p5322_p7 }
 0x42c   : > { %p5329_p13 = por %p5328_p12, %p5327_p11 }
 0x42e   : > { %p5330_p0 = pnand %p5329_p13, %p5323_p8 }
 0x430   : > { %5333 = shalt.err (!%p5330_p0)
}
 0x431   : > { %s5374_s0 = smov 64   ;;  %s5375_s20 = smov 4   ;;  %v3616_v41 = vlaneseq  ;;  %v3545_v49 = vld [vmem:[%s6348_s8] sm:$0x1] }
 0x432   : > { %5088 = dma.vmem_to_hbm [thread:$0]  (%p5469_p5), %s6282_s27, 512, %s6288_s12, %s6292_s18, %s5374_s0, %s5374_s0, %s5375_s20  }
 0x433   : > { %v3617_v46 = vshrl.u32 %v3616_v41, 7  ;;  %s3734_s28 = sshll.u32 %s5487_s29, 3 }
 0x434   : > { %s368_s11 = scalar_lea.vmem %s6350_s10, %s3734_s28 }
 0x435   : > { %v3618_v0 = vsub.s32 0, %v3617_v46 }
 0x4f7   : > { %v3612_v3 = vpop.f32.mrb[8].mxu0 }
 0x4f8   : > { %v3613_v9 = vadd.f32 %v3612_v3, %v3545_v49  ;;  %v4910_v14 = vpop.f32.mrb[9].mxu0 }
 0x4fa   : > { %v3619_v15 = vrot.slane %v3613_v9, %v3618_v0 }
 0x4fc   : > { %3620 = vst [vmem:[%s368_s11] sm:$0xff] %v3619_v15 }
 0x4fd PF: > { %p5094_p5 = scmp.ge.s32.totalorder %s5368_s16, 2  ;;  %s3657_s23 = sand.u32 1, %s5356_s13  }
 0x4fe   : > { %s3658_s27 = scalar_lea.sflag [#allocation5], %s3657_s23 }
 0x4ff   : > { %p5091_p1 = pnand %p5094_p5, %p5473_p6 }
 0x501   : > { %5351 = dma.done.wait (!%p5091_p1), %s3658_s27, 512  }
 0x502   : > { %5353 = vsyncadd (!%p5091_p1), %s3658_s27, 4294966784  ;;  %p21_p2 = scmp.ge.s32.totalorder %s5456_s19, 4   ;;  %s6355_s13 = smov %s5360_s14 }
 0x503   : > { %s6356_s14 = smov %s5364_s15  ;;  %s6357_s15 = smov %s5467_s22 }
 0x504   : > { %s6358_s16 = smov %s5456_s19  ;;  %23 = sbr.rel (!%p21_p2) target bundleno = 5 (0x5), region = 126 }
 0x50b   :  { %3670 = vsyncpa [#allocation5], 1 }
 0x50c   :  { %3672 = vsyncpa [#allocation5 + $0x1], 1 }

</bundles_post_ra>
